<compile_context>
chip_gen: v7x
topology: tpu7x:2x2x1
jax: 0.10.0
libtpu: 0.0.40
codegen_flags: <defaults>
</compile_context>

<pallas_src>
import jax
import jax.numpy as jnp
from jax import lax
from jax.experimental import pallas as pl
from jax.experimental.pallas import tpu as pltpu

# ----------------------------- config (small) --------------------------------
B = 2            # batch
L = 3            # number of backbone layers (cfg.MODEL.BACKBONE.LAYERS)
C = 32           # cfg.MODEL.CONV_HEAD.WIDTH (= d_model)
H = 8            # retina feature-grid height
W_GRID = 8       # retina feature-grid width
HW = H * W_GRID
D_BB = 32        # synthetic backbone width
P = 24           # positional-encoding dim (cfg.POSITION_ENCODING.IN_DIM)
HID = 32         # coords-MLP hidden width
N_VOX = 256      # n_voxels for the single subject
MU_SIGMA = 0.1   # cfg.MODEL.RETINA_MAPPER.CONSTANT_SIGMA
BHV = 8          # behavior feature dim

P1 = P + 1       # pe + ones column (bias fold)
HID2 = 2 * HID   # fused (layer_selector | retina_mapper) hidden width
LHW = L * HW     # fused sampling-matmul K (= 192)


def _pick_voxel_tile(n_vox):
    # One big tile per grid step: per-voxel streamed state is only ~0.3 KB/row,
    # so even TN=1024-2048 fits all generations' VMEM with double buffering.
    # For N_VOX=256 this yields TN=256, grid=(1,) (full 256-row MXU fill, no
    # duplicated operand DMA across cores / steps).
    return min(n_vox, 1024)


# ------------------------------- Pallas kernel --------------------------------
def voxel_kernel(pe_ref, w1_ref, w2_ref, b2_ref, rows_ref, oh_ref, feats_ref,
                 g_ref, wvoc_ref, bvo_ref, out_ref):
    pe = pe_ref[...]                                                    # (TN, P+1) f32

    # fused coords-MLP front end (layer_selector | retina_mapper); layer-1 biases
    # folded into the ones column of pe, layer-2 weights block-diagonal.
    h = jax.nn.gelu(jnp.dot(pe, w1_ref[...],
                            preferred_element_type=jnp.float32))        # (TN, 2*HID)
    z = jnp.dot(h, w2_ref[...],
                preferred_element_type=jnp.float32) + b2_ref[...]       # (TN, L+2)

    # softmax over the L layer logits; logits are small/bounded so skip the
    # max-subtract, and use the EUP approx reciprocal instead of a divide.
    e = jnp.exp(z[:, :L])
    w_layer = e * pl.reciprocal(jnp.sum(e, axis=-1, keepdims=True),
                                approx=True)                            # (TN, L)
    mu = jnp.tanh(z[:, L:L + 2]) * (1.0 - MU_SIGMA)                     # (TN, 2)

    # grid_sample(bilinear, zeros padding, align_corners=False) as a separable
    # triangle kernel evaluated directly on the (TN, L*HW) plane using the
    # precomputed per-cell coordinate rows (no in-kernel iota / div / mod).
    ix = (mu[:, 0:1] + 1.0) * (W_GRID * 0.5) - 0.5                      # (TN, 1)
    iy = (mu[:, 1:2] + 1.0) * (H * 0.5) - 0.5
    ww = rows_ref[0:1, :]                                               # (1, L*HW)
    hh = rows_ref[1:2, :]
    tri = (jnp.maximum(1.0 - jnp.abs(ix - ww), 0.0) *
           jnp.maximum(1.0 - jnp.abs(iy - hh), 0.0))                    # (TN, L*HW)

    # fold w_layer into the sampling operand via the per-layer one-hot rows
    wl_plane = w_layer[:, 0:1] * oh_ref[0:1, :]
    for l in range(1, L):
        wl_plane = wl_plane + w_layer[:, l:l + 1] * oh_ref[l:l + 1, :]  # (TN, L*HW)
    interp_w = tri * wl_plane

    # single fused MXU matmul over every (layer, batch) feature grid with the
    # layer weighting already applied: (TN, L*HW) x (L*HW, B*C) -> (TN, B*C);
    # bf16 inputs, f32 accumulation.
    samp = jnp.dot(interp_w.astype(feats_ref.dtype), feats_ref[...],
                   preferred_element_type=jnp.float32)                  # (TN, B*C)

    # voxel-out head: (x_y * w).mean(-1) + b, with the 1/C mean folded into the
    # pre-tiled wvoc / precomputed class-token term g in the wrapper.
    prod = samp * wvoc_ref[...]                                         # (TN, B*C)
    g = g_ref[...]                                                      # (TN, B*L)
    bvo = bvo_ref[...][:, 0]                                            # (TN,)
    rows = []
    for b in range(B):
        ret_b = jnp.sum(prod[:, b * C:(b + 1) * C], axis=-1)            # retina term
        cls_b = jnp.sum(w_layer * g[:, b * L:(b + 1) * L], axis=-1)     # cls-token term
        rows.append(ret_b + cls_b + bvo)
    out_ref[...] = jnp.stack(rows, axis=0)                              # (B, TN), lane-dense store


# ------------------------------ plain-JAX glue --------------------------------
def init_params(key):
    ks = jax.random.split(key, 12)
    s = 0.1
    p = {
        # synthetic backbone / behav_embed / conv_blocks / cls_blocks stand-ins
        'w_bhv':   jax.random.normal(ks[0], (BHV, D_BB)) * s,
        'w_patch': jax.random.normal(ks[1], (48, D_BB)) * s,
        'w_layer': jax.random.normal(ks[2], (L, D_BB, D_BB)) * s,
        'w_conv':  jax.random.normal(ks[3], (L, D_BB, C)) * s,
        'w_cls1':  jax.random.normal(ks[4], (L, D_BB, HID)) * s,
        'w_cls2':  jax.random.normal(ks[5], (L, HID, C)) * s,
        # layer_selector[subject] coords-MLP
        'ls_w1': jax.random.normal(ks[6], (P, HID)) * s,
        'ls_b1': jnp.zeros((1, HID)),
        'ls_w2': jax.random.normal(ks[7], (HID, L)) * s,
        'ls_b2': jnp.zeros((1, L)),
        # retina_mapper[subject] coords-MLP
        'rm_w1': jax.random.normal(ks[8], (P, HID)) * s,
        'rm_b1': jnp.zeros((1, HID)),
        'rm_w2': jax.random.normal(ks[9], (HID, 2)) * s,
        'rm_b2': jnp.zeros((1, 2)),
        # voxel_outs_weight[subject] (VoxelNonShareLinearWeight stand-in)
        'w_vo': jax.random.normal(ks[10], (N_VOX, C)) * s,
        'b_vo': jax.random.normal(ks[11], (N_VOX, 1)) * s,
    }
    return jax.tree.map(lambda a: a.astype(jnp.float32), p)


def pos_encode(coords):
    # cached positional encoding of voxel coords (glue)
    freqs = (2.0 ** jnp.arange(4)).astype(jnp.float32)                  # (4,)
    ang = coords[:, :, None] * freqs[None, None, :]                     # (N, 3, 4)
    pe = jnp.concatenate([jnp.sin(ang), jnp.cos(ang)], axis=-1)         # (N, 3, 8)
    return pe.reshape(coords.shape[0], P).astype(jnp.float32)


def backbone_and_heads(x, bhv, p):
    # TODO(synk): synthetic stand-in for behav_embed + backbone + conv_blocks +
    # cls_blocks (external modules).  x is NCHW.
    bsz = x.shape[0]
    xp = x.reshape(bsz, 3, H, 4, W_GRID, 4)
    xp = jnp.transpose(xp, (0, 2, 4, 1, 3, 5)).reshape(bsz, HW, 48)     # 4x4 patchify
    c = bhv @ p['w_bhv']                                                # behavior embedding
    tok = xp @ p['w_patch'] + c[:, None, :]                             # (B, HW, D_BB)
    grids, clss = [], []
    for l in range(L):
        t = jax.nn.gelu(tok @ p['w_layer'][l])                          # (B, HW, D_BB)
        grids.append(t @ p['w_conv'][l])                                # 1x1-conv head -> (B, HW, C)
        cl = t.mean(axis=1)                                             # class token  (B, D_BB)
        clss.append(jax.nn.gelu(cl @ p['w_cls1'][l]) @ p['w_cls2'][l])  # (B, C)
    feats = jnp.stack(grids, axis=0)                                    # (L, B, HW, C)
    x_cls = jnp.stack(clss, axis=1)                                     # (B, L, C)
    return feats, x_cls


def _pack_mlp_params(p):
    # layer-1: concat layer_selector / retina_mapper weights; biases become the
    # extra row matched to the ones column appended to pe.
    w1 = jnp.concatenate([
        jnp.concatenate([p['ls_w1'], p['rm_w1']], axis=1),
        jnp.concatenate([p['ls_b1'], p['rm_b1']], axis=1),
    ], axis=0)                                                          # (P+1, 2*HID)
    # layer-2: block-diagonal so a single matmul yields [logits | mu_raw].
    w2 = jnp.zeros((HID2, L + 2), jnp.float32)
    w2 = w2.at[:HID, :L].set(p['ls_w2'])
    w2 = w2.at[HID:, L:].set(p['rm_w2'])
    b2 = jnp.concatenate([p['ls_b2'], p['rm_b2']], axis=1)              # (1, L+2)
    return w1, w2, b2


def _full_spec(shape):
    n = len(shape)
    return pl.BlockSpec(shape, lambda i: (0,) * n)


@jax.jit
def voxelwise_encoding_forward(x, bhv, coords, params):
    feats, x_cls = backbone_and_heads(x, bhv, params)                   # (L,B,HW,C), (B,L,C)
    n_vox = coords.shape[0]
    tn = _pick_voxel_tile(n_vox)
    assert n_vox % tn == 0

    # sampling-matmul RHS: row l*HW+hw, column b*C+c  -> (L*HW, B*C), bf16 MXU inputs
    feats_flat = jnp.transpose(feats, (0, 2, 1, 3)).reshape(LHW, B * C)
    feats_flat = feats_flat.astype(jnp.bfloat16)

    # class-token head precompute: G[n, b*L+l] = <x_cls[b,l], w_vo[n]> / C
    g = (jnp.einsum('nc,blc->nbl', params['w_vo'], x_cls) / C).reshape(n_vox, B * L)

    # voxel-out weights pre-tiled over batches, 1/C mean folded in
    wvoc = jnp.tile(params['w_vo'], (1, B)) / C                         # (N, B*C)

    pe = pos_encode(coords)
    pe_aug = jnp.concatenate(
        [pe, jnp.ones((n_vox, 1), jnp.float32)], axis=1)                # (N, P+1)
    w1, w2, b2 = _pack_mlp_params(params)

    # hoisted grid-cell coordinate rows + per-layer one-hot masks (no in-kernel
    # iota / mod / div / int->float casts)
    k = jnp.arange(LHW)
    hw = k % HW
    grid_rows = jnp.stack([(hw % W_GRID).astype(jnp.float32),
                           (hw // W_GRID).astype(jnp.float32)], axis=0)          # (2, L*HW)
    layer_oh = (k[None, :] // HW == jnp.arange(L)[:, None]).astype(jnp.float32)  # (L, L*HW)

    cost = pl.CostEstimate(
        flops=2 * n_vox * (P1 * HID2 + HID2 * (L + 2) + LHW * B * C),
        transcendentals=n_vox * (HID2 + L + 2),
        bytes_accessed=(4 * (n_vox * (P1 + B * L + B * C + 1)
                             + P1 * HID2 + HID2 * (L + 2) + (L + 2)
                             + 2 * LHW + L * LHW + B * n_vox)
                        + 2 * LHW * B * C))

    grid = (n_vox // tn,)
    return pl.pallas_call(
        voxel_kernel,
        out_shape=jax.ShapeDtypeStruct((B, n_vox), jnp.float32),
        grid_spec=pltpu.PrefetchScalarGridSpec(
            num_scalar_prefetch=0,
            grid=grid,
            in_specs=[
                pl.BlockSpec((tn, P1), lambda i: (i, 0)),               # pe (voxel tile)
                _full_spec((P1, HID2)),                                 # fused MLP layer-1 weight
                _full_spec((HID2, L + 2)),                              # fused MLP layer-2 (block-diag)
                _full_spec((1, L + 2)),                                 # fused MLP layer-2 bias
                _full_spec((2, LHW)),                                   # cell-coordinate rows (ww, hh)
                _full_spec((L, LHW)),                                   # per-layer one-hot rows
                _full_spec((LHW, B * C)),                               # flat retina grids (bf16)
                pl.BlockSpec((tn, B * L), lambda i: (i, 0)),            # cls-token head precompute G
                pl.BlockSpec((tn, B * C), lambda i: (i, 0)),            # pre-tiled voxel-out weights /C
                pl.BlockSpec((tn, 1), lambda i: (i, 0)),                # voxel-out bias
            ],
            out_specs=pl.BlockSpec((B, tn), lambda i: (0, i)),
        ),
        compiler_params=pltpu.CompilerParams(
            dimension_semantics=("parallel",)),
        cost_estimate=cost,
    )(pe_aug, w1, w2, b2, grid_rows, layer_oh, feats_flat, g, wvoc, params['b_vo'])


# ------------------------- pure-JAX reference (check) --------------------------
def reference_forward(x, bhv, coords, p):
    feats, x_cls = backbone_and_heads(x, bhv, p)
    pe = pos_encode(coords)
    h = jax.nn.gelu(pe @ p['ls_w1'] + p['ls_b1'])
    w_layer = jax.nn.softmax(h @ p['ls_w2'] + p['ls_b2'], axis=-1)      # (N, L)
    h2 = jax.nn.gelu(pe @ p['rm_w1'] + p['rm_b1'])
    mu = jnp.tanh(h2 @ p['rm_w2'] + p['rm_b2']) * (1.0 - MU_SIGMA)      # (N, 2)

    ix = (mu[:, 0] + 1.0) * (W_GRID * 0.5) - 0.5
    iy = (mu[:, 1] + 1.0) * (H * 0.5) - 0.5
    x0 = jnp.floor(ix); y0 = jnp.floor(iy)
    wx1 = ix - x0; wx0 = 1.0 - wx1
    wy1 = iy - y0; wy0 = 1.0 - wy1
    x0i = x0.astype(jnp.int32); x1i = x0i + 1
    y0i = y0.astype(jnp.int32); y1i = y0i + 1

    def gather(feat_lb, yi, xi, wgt):
        valid = ((yi >= 0) & (yi < H) & (xi >= 0) & (xi < W_GRID)).astype(jnp.float32)
        idx = jnp.clip(yi, 0, H - 1) * W_GRID + jnp.clip(xi, 0, W_GRID - 1)
        return feat_lb[idx] * (wgt * valid)[:, None]

    out = jnp.zeros((B, N_VOX, C), jnp.float32)
    for b in range(B):
        x_cls_n = w_layer @ x_cls[b]
        x_ret = jnp.zeros((N_VOX, C), jnp.float32)
        for l in range(L):
            f = feats[l, b]
            samp = (gather(f, y0i, x0i, wy0 * wx0) + gather(f, y0i, x1i, wy0 * wx1)
                    + gather(f, y1i, x0i, wy1 * wx0) + gather(f, y1i, x1i, wy1 * wx1))
            x_ret = x_ret + samp * w_layer[:, l:l + 1]
        out = out.at[b].set(x_ret + x_cls_n)
    return (out * p['w_vo'][None]).mean(-1) + p['b_vo'][None, :, 0]


# ----------------------------------- main --------------------------------------
if __name__ == "__main__":
    key = jax.random.PRNGKey(0)
    kx, kb, kc, kp = jax.random.split(key, 4)
    x = jax.random.normal(kx, (B, 3, 32, 32), jnp.float32)              # NCHW image
    bhv = jax.random.normal(kb, (B, BHV), jnp.float32)
    coords = jax.random.uniform(kc, (N_VOX, 3), jnp.float32, -1.0, 1.0)
    params = init_params(kp)

    out = voxelwise_encoding_forward(x, bhv, coords, params)
    out = jax.block_until_ready(out)

    ref = reference_forward(x, bhv, coords, params)
    assert out.shape == (B, N_VOX), out.shape
    max_err = float(jnp.max(jnp.abs(out - ref)))
    assert max_err < 5e-3, f"kernel/reference mismatch: {max_err}"
    print("KERNEL_OK")
</pallas_src>

<mosaic_0001>
module attributes {stable_mosaic.version = 11 : i64} {
  func.func @voxel_kernel(%arg0: i32, %arg1: memref<256x25xf32, #tpu.memory_space<vmem>>, %arg2: memref<25x64xf32, #tpu.memory_space<vmem>>, %arg3: memref<64x5xf32, #tpu.memory_space<vmem>>, %arg4: memref<1x5xf32, #tpu.memory_space<vmem>>, %arg5: memref<2x192xf32, #tpu.memory_space<vmem>>, %arg6: memref<3x192xf32, #tpu.memory_space<vmem>>, %arg7: memref<192x64xbf16, #tpu.memory_space<vmem>>, %arg8: memref<256x6xf32, #tpu.memory_space<vmem>>, %arg9: memref<256x64xf32, #tpu.memory_space<vmem>>, %arg10: memref<256x1xf32, #tpu.memory_space<vmem>>, %arg11: memref<2x256xf32, #tpu.memory_space<vmem>>) attributes {dimension_semantics = [#tpu.dimension_semantics<parallel>], iteration_bounds = array<i64: 1>, scalar_prefetch = 0 : i64, scratch_operands = 0 : i64, tpu.core_type = #tpu.core_type<tc>, window_params = [{transform_indices = @transform_0, window_bounds = array<i64: 256, 25>}, {pipeline_mode = #tpu.pipeline_mode<synchronous>, transform_indices = @transform_1, window_bounds = array<i64: 25, 64>}, {pipeline_mode = #tpu.pipeline_mode<synchronous>, transform_indices = @transform_2, window_bounds = array<i64: 64, 5>}, {pipeline_mode = #tpu.pipeline_mode<synchronous>, transform_indices = @transform_3, window_bounds = array<i64: 1, 5>}, {pipeline_mode = #tpu.pipeline_mode<synchronous>, transform_indices = @transform_4, window_bounds = array<i64: 2, 192>}, {pipeline_mode = #tpu.pipeline_mode<synchronous>, transform_indices = @transform_5, window_bounds = array<i64: 3, 192>}, {pipeline_mode = #tpu.pipeline_mode<synchronous>, transform_indices = @transform_6, window_bounds = array<i64: 192, 64>}, {transform_indices = @transform_7, window_bounds = array<i64: 256, 6>}, {transform_indices = @transform_8, window_bounds = array<i64: 256, 64>}, {transform_indices = @transform_9, window_bounds = array<i64: 256, 1>}, {transform_indices = @transform_10, window_bounds = array<i64: 2, 256>}]} {
    %c0 = arith.constant 0 : index
    %c0_0 = arith.constant 0 : index
    %0 = vector.load %arg1[%c0, %c0_0] : memref<256x25xf32, #tpu.memory_space<vmem>>, vector<256x25xf32>
    %c0_1 = arith.constant 0 : index
    %c0_2 = arith.constant 0 : index
    %1 = vector.load %arg2[%c0_1, %c0_2] : memref<25x64xf32, #tpu.memory_space<vmem>>, vector<25x64xf32>
    %cst = arith.constant dense<0.000000e+00> : vector<256x64xf32>
    %2 = tpu.matmul %0, %1, %cst {dimension_numbers = #tpu.dot_dimension_numbers<[1], [0], [0], [1], [0, 0, 1, 1], [], []>} : vector<256x25xf32>, vector<25x64xf32>, vector<256x64xf32> -> vector<256x64xf32>
    %3 = arith.mulf %2, %2 : vector<256x64xf32>
    %4 = arith.mulf %2, %3 : vector<256x64xf32>
    %cst_3 = arith.constant 4.471500e-02 : f32
    %5 = vector.broadcast %cst_3 : f32 to vector<256x64xf32>
    %6 = arith.mulf %5, %4 : vector<256x64xf32>
    %7 = arith.addf %2, %6 : vector<256x64xf32>
    %cst_4 = arith.constant 0.797884583 : f32
    %8 = vector.broadcast %cst_4 : f32 to vector<256x64xf32>
    %9 = arith.mulf %8, %7 : vector<256x64xf32>
    %10 = math.tanh %9 : vector<256x64xf32>
    %cst_5 = arith.constant 1.000000e+00 : f32
    %11 = vector.broadcast %cst_5 : f32 to vector<256x64xf32>
    %12 = arith.addf %11, %10 : vector<256x64xf32>
    %cst_6 = arith.constant 5.000000e-01 : f32
    %13 = vector.broadcast %cst_6 : f32 to vector<256x64xf32>
    %14 = arith.mulf %13, %12 : vector<256x64xf32>
    %15 = arith.mulf %2, %14 : vector<256x64xf32>
    %c0_7 = arith.constant 0 : index
    %c0_8 = arith.constant 0 : index
    %16 = vector.load %arg3[%c0_7, %c0_8] : memref<64x5xf32, #tpu.memory_space<vmem>>, vector<64x5xf32>
    %cst_9 = arith.constant dense<0.000000e+00> : vector<256x5xf32>
    %17 = tpu.matmul %15, %16, %cst_9 {dimension_numbers = #tpu.dot_dimension_numbers<[1], [0], [0], [1], [0, 0, 1, 1], [], []>} : vector<256x64xf32>, vector<64x5xf32>, vector<256x5xf32> -> vector<256x5xf32>
    %c0_10 = arith.constant 0 : index
    %c0_11 = arith.constant 0 : index
    %18 = vector.load %arg4[%c0_10, %c0_11] : memref<1x5xf32, #tpu.memory_space<vmem>>, vector<1x5xf32>
    %19 = vector.broadcast %18 : vector<1x5xf32> to vector<256x5xf32>
    %20 = arith.addf %17, %19 : vector<256x5xf32>
    %21 = vector.extract_strided_slice %20 {offsets = [0, 0], sizes = [256, 3], strides = [1, 1]} : vector<256x5xf32> to vector<256x3xf32>
    %22 = math.exp %21 : vector<256x3xf32>
    %cst_12 = arith.constant dense<0.000000e+00> : vector<256xf32>
    %23 = vector.multi_reduction <add>, %22, %cst_12 [1] : vector<256x3xf32> to vector<256xf32>
    %24 = vector.shape_cast %23 : vector<256xf32> to vector<256x1xf32>
    %25 = tpu.reciprocal %24 {approx = true} : vector<256x1xf32> -> vector<256x1xf32>
    %26 = vector.broadcast %25 : vector<256x1xf32> to vector<256x3xf32>
    %27 = arith.mulf %22, %26 : vector<256x3xf32>
    %28 = vector.extract_strided_slice %20 {offsets = [0, 3], sizes = [256, 2], strides = [1, 1]} : vector<256x5xf32> to vector<256x2xf32>
    %29 = math.tanh %28 : vector<256x2xf32>
    %cst_13 = arith.constant 0.899999976 : f32
    %30 = vector.broadcast %cst_13 : f32 to vector<256x2xf32>
    %31 = arith.mulf %29, %30 : vector<256x2xf32>
    %32 = vector.extract_strided_slice %31 {offsets = [0, 0], sizes = [256, 1], strides = [1, 1]} : vector<256x2xf32> to vector<256x1xf32>
    %cst_14 = arith.constant 1.000000e+00 : f32
    %33 = vector.broadcast %cst_14 : f32 to vector<256x1xf32>
    %34 = arith.addf %32, %33 : vector<256x1xf32>
    %cst_15 = arith.constant 4.000000e+00 : f32
    %35 = vector.broadcast %cst_15 : f32 to vector<256x1xf32>
    %36 = arith.mulf %34, %35 : vector<256x1xf32>
    %cst_16 = arith.constant 5.000000e-01 : f32
    %37 = vector.broadcast %cst_16 : f32 to vector<256x1xf32>
    %38 = arith.subf %36, %37 : vector<256x1xf32>
    %39 = vector.extract_strided_slice %31 {offsets = [0, 1], sizes = [256, 1], strides = [1, 1]} : vector<256x2xf32> to vector<256x1xf32>
    %cst_17 = arith.constant 1.000000e+00 : f32
    %40 = vector.broadcast %cst_17 : f32 to vector<256x1xf32>
    %41 = arith.addf %39, %40 : vector<256x1xf32>
    %cst_18 = arith.constant 4.000000e+00 : f32
    %42 = vector.broadcast %cst_18 : f32 to vector<256x1xf32>
    %43 = arith.mulf %41, %42 : vector<256x1xf32>
    %cst_19 = arith.constant 5.000000e-01 : f32
    %44 = vector.broadcast %cst_19 : f32 to vector<256x1xf32>
    %45 = arith.subf %43, %44 : vector<256x1xf32>
    %c0_20 = arith.constant 0 : index
    %c0_21 = arith.constant 0 : index
    %46 = vector.load %arg5[%c0_20, %c0_21] : memref<2x192xf32, #tpu.memory_space<vmem>>, vector<1x192xf32>
    %c1 = arith.constant 1 : index
    %c0_22 = arith.constant 0 : index
    %47 = vector.load %arg5[%c1, %c0_22] : memref<2x192xf32, #tpu.memory_space<vmem>>, vector<1x192xf32>
    %48 = vector.broadcast %38 : vector<256x1xf32> to vector<256x192xf32>
    %49 = vector.broadcast %46 : vector<1x192xf32> to vector<256x192xf32>
    %50 = arith.subf %48, %49 : vector<256x192xf32>
    %51 = math.absf %50 : vector<256x192xf32>
    %cst_23 = arith.constant 1.000000e+00 : f32
    %52 = vector.broadcast %cst_23 : f32 to vector<256x192xf32>
    %53 = arith.subf %52, %51 : vector<256x192xf32>
    %cst_24 = arith.constant 0.000000e+00 : f32
    %54 = vector.broadcast %cst_24 : f32 to vector<256x192xf32>
    %55 = arith.maximumf %53, %54 : vector<256x192xf32>
    %56 = vector.broadcast %45 : vector<256x1xf32> to vector<256x192xf32>
    %57 = vector.broadcast %47 : vector<1x192xf32> to vector<256x192xf32>
    %58 = arith.subf %56, %57 : vector<256x192xf32>
    %59 = math.absf %58 : vector<256x192xf32>
    %cst_25 = arith.constant 1.000000e+00 : f32
    %60 = vector.broadcast %cst_25 : f32 to vector<256x192xf32>
    %61 = arith.subf %60, %59 : vector<256x192xf32>
    %cst_26 = arith.constant 0.000000e+00 : f32
    %62 = vector.broadcast %cst_26 : f32 to vector<256x192xf32>
    %63 = arith.maximumf %61, %62 : vector<256x192xf32>
    %64 = arith.mulf %55, %63 : vector<256x192xf32>
    %65 = vector.extract_strided_slice %27 {offsets = [0, 0], sizes = [256, 1], strides = [1, 1]} : vector<256x3xf32> to vector<256x1xf32>
    %c0_27 = arith.constant 0 : index
    %c0_28 = arith.constant 0 : index
    %66 = vector.load %arg6[%c0_27, %c0_28] : memref<3x192xf32, #tpu.memory_space<vmem>>, vector<1x192xf32>
    %67 = vector.broadcast %65 : vector<256x1xf32> to vector<256x192xf32>
    %68 = vector.broadcast %66 : vector<1x192xf32> to vector<256x192xf32>
    %69 = arith.mulf %67, %68 : vector<256x192xf32>
    %70 = vector.extract_strided_slice %27 {offsets = [0, 1], sizes = [256, 1], strides = [1, 1]} : vector<256x3xf32> to vector<256x1xf32>
    %c1_29 = arith.constant 1 : index
    %c0_30 = arith.constant 0 : index
    %71 = vector.load %arg6[%c1_29, %c0_30] : memref<3x192xf32, #tpu.memory_space<vmem>>, vector<1x192xf32>
    %72 = vector.broadcast %70 : vector<256x1xf32> to vector<256x192xf32>
    %73 = vector.broadcast %71 : vector<1x192xf32> to vector<256x192xf32>
    %74 = arith.mulf %72, %73 : vector<256x192xf32>
    %75 = arith.addf %69, %74 : vector<256x192xf32>
    %76 = vector.extract_strided_slice %27 {offsets = [0, 2], sizes = [256, 1], strides = [1, 1]} : vector<256x3xf32> to vector<256x1xf32>
    %c2 = arith.constant 2 : index
    %c0_31 = arith.constant 0 : index
    %77 = vector.load %arg6[%c2, %c0_31] : memref<3x192xf32, #tpu.memory_space<vmem>>, vector<1x192xf32>
    %78 = vector.broadcast %76 : vector<256x1xf32> to vector<256x192xf32>
    %79 = vector.broadcast %77 : vector<1x192xf32> to vector<256x192xf32>
    %80 = arith.mulf %78, %79 : vector<256x192xf32>
    %81 = arith.addf %75, %80 : vector<256x192xf32>
    %82 = arith.mulf %64, %81 : vector<256x192xf32>
    %83 = arith.truncf %82 : vector<256x192xf32> to vector<256x192xbf16>
    %c0_32 = arith.constant 0 : index
    %c0_33 = arith.constant 0 : index
    %84 = vector.load %arg7[%c0_32, %c0_33] : memref<192x64xbf16, #tpu.memory_space<vmem>>, vector<192x64xbf16>
    %cst_34 = arith.constant dense<0.000000e+00> : vector<256x64xf32>
    %85 = tpu.matmul %83, %84, %cst_34 {dimension_numbers = #tpu.dot_dimension_numbers<[1], [0], [0], [1], [0, 0, 1, 1], [], []>} : vector<256x192xbf16>, vector<192x64xbf16>, vector<256x64xf32> -> vector<256x64xf32>
    %c0_35 = arith.constant 0 : index
    %c0_36 = arith.constant 0 : index
    %86 = vector.load %arg9[%c0_35, %c0_36] : memref<256x64xf32, #tpu.memory_space<vmem>>, vector<256x64xf32>
    %87 = arith.mulf %85, %86 : vector<256x64xf32>
    %c0_37 = arith.constant 0 : index
    %c0_38 = arith.constant 0 : index
    %88 = vector.load %arg8[%c0_37, %c0_38] : memref<256x6xf32, #tpu.memory_space<vmem>>, vector<256x6xf32>
    %c0_39 = arith.constant 0 : index
    %c0_40 = arith.constant 0 : index
    %89 = vector.load %arg10[%c0_39, %c0_40] : memref<256x1xf32, #tpu.memory_space<vmem>>, vector<256x1xf32>
    %90 = vector.shape_cast %89 : vector<256x1xf32> to vector<256xf32>
    %91 = vector.extract_strided_slice %87 {offsets = [0, 0], sizes = [256, 32], strides = [1, 1]} : vector<256x64xf32> to vector<256x32xf32>
    %cst_41 = arith.constant dense<0.000000e+00> : vector<256xf32>
    %92 = vector.multi_reduction <add>, %91, %cst_41 [1] : vector<256x32xf32> to vector<256xf32>
    %93 = vector.extract_strided_slice %88 {offsets = [0, 0], sizes = [256, 3], strides = [1, 1]} : vector<256x6xf32> to vector<256x3xf32>
    %94 = arith.mulf %27, %93 : vector<256x3xf32>
    %cst_42 = arith.constant dense<0.000000e+00> : vector<256xf32>
    %95 = vector.multi_reduction <add>, %94, %cst_42 [1] : vector<256x3xf32> to vector<256xf32>
    %96 = arith.addf %92, %95 : vector<256xf32>
    %97 = arith.addf %96, %90 : vector<256xf32>
    %98 = vector.extract_strided_slice %87 {offsets = [0, 32], sizes = [256, 32], strides = [1, 1]} : vector<256x64xf32> to vector<256x32xf32>
    %cst_43 = arith.constant dense<0.000000e+00> : vector<256xf32>
    %99 = vector.multi_reduction <add>, %98, %cst_43 [1] : vector<256x32xf32> to vector<256xf32>
    %100 = vector.extract_strided_slice %88 {offsets = [0, 3], sizes = [256, 3], strides = [1, 1]} : vector<256x6xf32> to vector<256x3xf32>
    %101 = arith.mulf %27, %100 : vector<256x3xf32>
    %cst_44 = arith.constant dense<0.000000e+00> : vector<256xf32>
    %102 = vector.multi_reduction <add>, %101, %cst_44 [1] : vector<256x3xf32> to vector<256xf32>
    %103 = arith.addf %99, %102 : vector<256xf32>
    %104 = arith.addf %103, %90 : vector<256xf32>
    %105 = vector.shape_cast %97 : vector<256xf32> to vector<1x256xf32>
    %106 = vector.shape_cast %104 : vector<256xf32> to vector<1x256xf32>
    %107 = tpu.concatenate %105, %106 in 0 : vector<1x256xf32>, vector<1x256xf32> -> vector<2x256xf32>
    %c0_45 = arith.constant 0 : index
    %c0_46 = arith.constant 0 : index
    %108 = vector.load %arg11[%c0_45, %c0_46] : memref<2x256xf32, #tpu.memory_space<vmem>>, vector<2x256xf32>
    tpu.vector_store %arg11[%c0_45, %c0_46], %107 {strides = array<i32>} : memref<2x256xf32, #tpu.memory_space<vmem>>, vector<2x256xf32>,
    return
  }
  func.func @transform_0(%arg0: i32) -> (i32, i32) {
    %c0_i32 = arith.constant 0 : i32
    %c0_i32_0 = arith.constant 0 : i32
    return %arg0, %c0_i32 : i32, i32
  }
  func.func @transform_1(%arg0: i32) -> (i32, i32) {
    %c0_i32 = arith.constant 0 : i32
    %c0_i32_0 = arith.constant 0 : i32
    %c0_i32_1 = arith.constant 0 : i32
    return %c0_i32, %c0_i32_0 : i32, i32
  }
  func.func @transform_2(%arg0: i32) -> (i32, i32) {
    %c0_i32 = arith.constant 0 : i32
    %c0_i32_0 = arith.constant 0 : i32
    %c0_i32_1 = arith.constant 0 : i32
    return %c0_i32, %c0_i32_0 : i32, i32
  }
  func.func @transform_3(%arg0: i32) -> (i32, i32) {
    %c0_i32 = arith.constant 0 : i32
    %c0_i32_0 = arith.constant 0 : i32
    %c0_i32_1 = arith.constant 0 : i32
    return %c0_i32, %c0_i32_0 : i32, i32
  }
  func.func @transform_4(%arg0: i32) -> (i32, i32) {
    %c0_i32 = arith.constant 0 : i32
    %c0_i32_0 = arith.constant 0 : i32
    %c0_i32_1 = arith.constant 0 : i32
    return %c0_i32, %c0_i32_0 : i32, i32
  }
  func.func @transform_5(%arg0: i32) -> (i32, i32) {
    %c0_i32 = arith.constant 0 : i32
    %c0_i32_0 = arith.constant 0 : i32
    %c0_i32_1 = arith.constant 0 : i32
    return %c0_i32, %c0_i32_0 : i32, i32
  }
  func.func @transform_6(%arg0: i32) -> (i32, i32) {
    %c0_i32 = arith.constant 0 : i32
    %c0_i32_0 = arith.constant 0 : i32
    %c0_i32_1 = arith.constant 0 : i32
    return %c0_i32, %c0_i32_0 : i32, i32
  }
  func.func @transform_7(%arg0: i32) -> (i32, i32) {
    %c0_i32 = arith.constant 0 : i32
    %c0_i32_0 = arith.constant 0 : i32
    return %arg0, %c0_i32 : i32, i32
  }
  func.func @transform_8(%arg0: i32) -> (i32, i32) {
    %c0_i32 = arith.constant 0 : i32
    %c0_i32_0 = arith.constant 0 : i32
    return %arg0, %c0_i32 : i32, i32
  }
  func.func @transform_9(%arg0: i32) -> (i32, i32) {
    %c0_i32 = arith.constant 0 : i32
    %c0_i32_0 = arith.constant 0 : i32
    return %arg0, %c0_i32 : i32, i32
  }
  func.func @transform_10(%arg0: i32) -> (i32, i32) {
    %c0_i32 = arith.constant 0 : i32
    %c0_i32_0 = arith.constant 0 : i32
    return %c0_i32, %arg0 : i32, i32
  }
}

</mosaic_0001>

<bundles_post_ra>
// kernel: voxelwise_encoding_forward.1
= control target key start
LH: loop header
LB: loop body
LE: loop exit
PB: predicated region body
PF: predicated region fallthrough
CT: control target
= control target key end

     0   :  { %vm170_vm0 = vcmask 1040384   ;;  %vm73_vm1 = vcmask 203776   ;;  %vm5939_vm2 = vmmov 1   ;;  %s9371_s0 = inlined_call_operand.vmem [shape: f32[256,25], index: 0, kind: input, shape index: {}]   ;;  %s9372_s1 = inlined_call_operand.vmem [shape: f32[25,64], index: 1, kind: input, shape index: {}]   ;;  %s9373_s2 = inlined_call_operand.vmem [shape: f32[64,5], index: 2, kind: input, shape index: {}]   ;;  %s9374_s3 = inlined_call_operand.vmem [shape: f32[1,5], index: 3, kind: input, shape index: {}]   ;;  %s9375_s4 = inlined_call_operand.vmem [shape: f32[2,192], index: 4, kind: input, shape index: {}]   ;;  %s9376_s5 = inlined_call_operand.vmem [shape: f32[3,192], index: 5, kind: input, shape index: {}]   ;;  %s9377_s6 = inlined_call_operand.vmem [shape: bf16[192,64], index: 6, kind: input, shape index: {}]   ;;  %s9378_s7 = inlined_call_operand.vmem [shape: f32[256,6], index: 7, kind: input, shape index: {}]   ;;  %s9379_s8 = inlined_call_operand.vmem [shape: f32[256,64], index: 8, kind: input, shape index: {}]   ;;  %s9380_s9 = inlined_call_operand.vmem [shape: f32[256,1], index: 9, kind: input, shape index: {}]   ;;  %s9381_s10 = inlined_call_operand.hbm [shape: f32[2,256], index: 10, kind: output, shape index: {}]  }
   0x1   :  { %v69_v0 = vld [vmem:[%s9372_s1] sm:$0xff]  ;;  %v70_v1 = vld [vmem:[%s9372_s1 + $0x8] sm:$0xff]  ;;  %v71_v2 = vld [vmem:[%s9372_s1 + $0x10] sm:$0xff] }
   0x2   :  { %v5396_v3 = vpack.c.bf16 %v70_v1, %v69_v0  ;;  %v72_v4 = vld [vmem:[%s9372_s1 + $0x18] sm:$0x1]  ;;  %v37_v5 = vld [vmem:[%s9371_s0] sm:$0xff]  ;;  %vm5401_vm3 = vmpackc.low %vm170_vm0, %vm5939_vm2 }
   0x3   :  { %v5400_v6 = vpack.c.bf16 %v72_v4, %v71_v2  ;;  %5284 = vmatprep.mubr.msk.f32.mxu0 %vm73_vm1, %v37_v5  ;;  %v38_v7 = vld [vmem:[%s9371_s0 + $0x8] sm:$0xff]  ;;  %v39_v8 = vld [vmem:[%s9371_s0 + $0x10] sm:$0xff]  ;;  %v40_v9 = vld [vmem:[%s9371_s0 + $0x18] sm:$0xff] }
   0x4   :  { %5397 = vmatprep.subr.bf16.mxu0 %v5396_v3  ;;  %v41_v10 = vld [vmem:[%s9371_s0 + $0x20] sm:$0xff] }
   0x5   :  { %5399 = vmatpush3.bf16.msra.mxu0 %v5396_v3 }
   0x6   :  { %5402 = vmatprep.subr.msk.bf16.mxu0 %vm5401_vm3, %v5400_v6 }
   0x9   :  { %5405 = vmatpush3.bf16.msk.msra.mxu0 %vm5401_vm3, %v5400_v6 }
   0xc   :  { %5285 = vmatmul.mubr.msk.f32.vlgmr.msra.gmra.mrb[0].mxu0 %vm73_vm1, %v38_v7 }
   0xd   :  { %5287 = vmatprep.mubr.msk.f32.mxu0 %vm73_vm1, %v39_v8 }
   0xe   :  { %15 = vsyncpa [#allocation3], 0  ;;  %v42_v11 = vld [vmem:[%s9371_s0 + $0x28] sm:$0xff]  ;;  %v43_v12 = vld [vmem:[%s9371_s0 + $0x30] sm:$0xff]  ;;  %s5940_s13 = smov 125   ;;  %vm702_vm4 = vcmask 523264  }
   0xf   :  { %v44_v13 = vld [vmem:[%s9371_s0 + $0x38] sm:$0xff]  ;;  %v45_v14 = vld [vmem:[%s9371_s0 + $0x40] sm:$0xff]  ;;  %v46_v15 = vld [vmem:[%s9371_s0 + $0x48] sm:$0xff]  ;;  %vm1088_vm5 = vcmask 23552   ;;  %s5946_s11 = smov 96   ;;  %vm3601_vm6 = vcmask 261120  }
  0x10   :  { %5288 = vmatmul.mubr.msk.f32.gmra.mrb[2].mxu0 %vm73_vm1, %v40_v9  ;;  %v47_v16 = vld [vmem:[%s9371_s0 + $0x50] sm:$0xff]  ;;  %v48_v17 = vld [vmem:[%s9371_s0 + $0x58] sm:$0xff]  ;;  %v687_v18 = vld [vmem:[%s9373_s2] sm:$0xff]  ;;  %vm4573_vm7 = vcmask 130112   ;;  %vm4580_vm8 = vcmask 195712   ;;  %vm4587_vm9 = vcmask 261312  }
  0x11   :  { %5290 = vmatprep.mubr.msk.f32.mxu0 %vm73_vm1, %v41_v10  ;;  %v688_v19 = vld [vmem:[%s9373_s2 + $0x8] sm:$0xff]  ;;  %v689_v21 = vld [vmem:[%s9373_s2 + $0x10] sm:$0xff]  ;;  %v690_v22 = vld [vmem:[%s9373_s2 + $0x18] sm:$0xff]  ;;  %vm4594_vm10 = vcmask 326912   ;;  %vm4601_vm11 = vcmask 392512   ;;  %vm4608_vm12 = vcmask 458112  }
  0x12   :  { %v5406_v20 = vpack.c.bf16 %v688_v19, %v687_v18  ;;  %v49_v23 = vld [vmem:[%s9371_s0 + $0x60] sm:$0xff]  ;;  %v5410_v24 = vpack.c.bf16 %v690_v22, %v689_v21  ;;  %v50_v25 = vld [vmem:[%s9371_s0 + $0x68] sm:$0xff]  ;;  %v693_v29 = vld [vmem:[%s9373_s2 + $0x30] sm:$0xff]  ;;  %vm4615_vm13 = vcmask 523712   ;;  %vm4622_vm14 = vcmask 589312  }
  0x13   :  { %v691_v26 = vld [vmem:[%s9373_s2 + $0x20] sm:$0xff]  ;;  %v692_v27 = vld [vmem:[%s9373_s2 + $0x28] sm:$0xff]  ;;  %v694_v30 = vld [vmem:[%s9373_s2 + $0x38] sm:$0xff]  ;;  %vm4629_vm15 = vcmask 654912   ;;  %vm4643_vm2 = vcmask 786112   ;;  %vm4650_vm3 = vcmask 851712  }
  0x14   :  { %5291 = vmatmul.mubr.msk.f32.gmra.mrb[4].mxu0 %vm73_vm1, %v42_v11  ;;  %5407 = vmatprep.subr.bf16.mxu1 %v5406_v20  ;;  %v5414_v28 = vpack.c.bf16 %v692_v27, %v691_v26  ;;  %v5418_v31 = vpack.c.bf16 %v694_v30, %v693_v29  ;;  %v51_v32 = vld [vmem:[%s9371_s0 + $0x70] sm:$0xff]  ;;  %v52_v33 = vld [vmem:[%s9371_s0 + $0x78] sm:$0xff]  ;;  %v53_v34 = vld [vmem:[%s9371_s0 + $0x80] sm:$0xff] }
  0x15   :  { %5293 = vmatprep.mubr.msk.f32.mxu0 %vm73_vm1, %v43_v12  ;;  %5409 = vmatpush3.bf16.msra.mxu1 %v5406_v20  ;;  %v54_v35 = vld [vmem:[%s9371_s0 + $0x88] sm:$0xff]  ;;  %v3537_v37 = vld [vmem:[%s9378_s7] sm:$0xff]  ;;  %v3539_v38 = vld [vmem:[%s9378_s7 + $0x10] sm:$0xff] }
  0x16   :  { %5411 = vmatprep.subr.bf16.mxu1 %v5410_v24  ;;  %v3538_v36 = vld [vmem:[%s9378_s7 + $0x8] sm:$0xff]  ;;  %4146 = vrot.lane.b32.xlu0 %v3537_v37, %s5940_s13  ;;  %v3540_v39 = vld [vmem:[%s9378_s7 + $0x18] sm:$0xff]  ;;  %v55_v40 = vld [vmem:[%s9371_s0 + $0x90] sm:$0xff] }
  0x17   :  { %4148 = vrot.lane.b32.xlu1 %v3538_v36, %s5940_s13  ;;  %v56_v41 = vld [vmem:[%s9371_s0 + $0x98] sm:$0xff]  ;;  %v3541_v42 = vld [vmem:[%s9378_s7 + $0x20] sm:$0xff]  ;;  %v3542_v43 = vld [vmem:[%s9378_s7 + $0x28] sm:$0xff] }
  0x18   :  { %5294 = vmatmul.mubr.msk.f32.gmra.mrb[6].mxu0 %vm73_vm1, %v44_v13  ;;  %v3543_v44 = vld [vmem:[%s9378_s7 + $0x30] sm:$0xff]  ;;  %v3544_v45 = vld [vmem:[%s9378_s7 + $0x38] sm:$0xff]  ;;  %v3545_v46 = vld [vmem:[%s9378_s7 + $0x40] sm:$0xff] }
  0x19   :  { %5296 = vmatprep.mubr.msk.f32.mxu0 %vm73_vm1, %v45_v14  ;;  %5413 = vmatpush3.bf16.msra.mxu1 %v5410_v24  ;;  %v3546_v47 = vld [vmem:[%s9378_s7 + $0x48] sm:$0xff]  ;;  %v3547_v48 = vld [vmem:[%s9378_s7 + $0x50] sm:$0xff]  ;;  %v3548_v49 = vld [vmem:[%s9378_s7 + $0x58] sm:$0xff] }
  0x1a   :  { %5415 = vmatprep.subr.bf16.mxu1 %v5414_v28  ;;  %4152 = vrot.lane.b32.xlu0 %v3540_v39, %s5940_s13  ;;  %v3549_v50 = vld [vmem:[%s9378_s7 + $0x60] sm:$0xff]  ;;  %v3550_v51 = vld [vmem:[%s9378_s7 + $0x68] sm:$0xff]  ;;  %v3551_v52 = vld [vmem:[%s9378_s7 + $0x70] sm:$0xff] }
  0x1b   :  { %4150 = vrot.lane.b32.xlu1 %v3539_v38, %s5940_s13  ;;  %v3552_v53 = vld [vmem:[%s9378_s7 + $0x78] sm:$0xff]  ;;  %v3553_v54 = vld [vmem:[%s9378_s7 + $0x80] sm:$0xff]  ;;  %v3554_v55 = vld [vmem:[%s9378_s7 + $0x88] sm:$0xff] }
  0x1c   :  { %5297 = vmatmul.mubr.msk.f32.gmra.mrb[8].mxu0 %vm73_vm1, %v46_v15  ;;  %v3555_v56 = vld [vmem:[%s9378_s7 + $0x90] sm:$0xff]  ;;  %v3556_v57 = vld [vmem:[%s9378_s7 + $0x98] sm:$0xff]  ;;  %v3557_v58 = vld [vmem:[%s9378_s7 + $0xa0] sm:$0xff] }
  0x1d   :  { %5299 = vmatprep.mubr.msk.f32.mxu0 %vm73_vm1, %v47_v16  ;;  %5417 = vmatpush3.bf16.msra.mxu1 %v5414_v28  ;;  %v3558_v59 = vld [vmem:[%s9378_s7 + $0xa8] sm:$0xff]  ;;  %v3559_v60 = vld [vmem:[%s9378_s7 + $0xb0] sm:$0xff]  ;;  %v3560_v61 = vld [vmem:[%s9378_s7 + $0xb8] sm:$0xff] }
  0x1e   :  { %5419 = vmatprep.subr.bf16.mxu1 %v5418_v31  ;;  %4156 = vrot.lane.b32.xlu0 %v3542_v43, %s5940_s13  ;;  %v3561_v62 = vld [vmem:[%s9378_s7 + $0xc0] sm:$0xff]  ;;  %v3562_v63 = vld [vmem:[%s9378_s7 + $0xc8] sm:$0xff]  ;;  %v3563_v0 = vld [vmem:[%s9378_s7 + $0xd0] sm:$0xff] }
  0x1f   :  { %4154 = vrot.lane.b32.xlu1 %v3541_v42, %s5940_s13  ;;  %v3564_v1 = vld [vmem:[%s9378_s7 + $0xd8] sm:$0xff]  ;;  %v3565_v2 = vld [vmem:[%s9378_s7 + $0xe0] sm:$0xff]  ;;  %v3566_v3 = vld [vmem:[%s9378_s7 + $0xe8] sm:$0xff] }
  0x20   :  { %5300 = vmatmul.mubr.msk.f32.gmra.mrb[10].mxu0 %vm73_vm1, %v48_v17  ;;  %v3567_v4 = vld [vmem:[%s9378_s7 + $0xf0] sm:$0xff]  ;;  %v3568_v5 = vld [vmem:[%s9378_s7 + $0xf8] sm:$0xff] }
  0x21   :  { %5302 = vmatprep.mubr.msk.f32.mxu0 %vm73_vm1, %v49_v23  ;;  %5421 = vmatpush3.bf16.msra.mxu1 %v5418_v31 }
  0x22   :  { %4160 = vrot.lane.b32.xlu0 %v3544_v45, %s5940_s13 }
  0x23   :  { %4158 = vrot.lane.b32.xlu1 %v3543_v44, %s5940_s13 }
  0x24   :  { %5303 = vmatmul.mubr.msk.f32.gmra.mrb[12].mxu0 %vm73_vm1, %v50_v25 }
  0x25   :  { %5305 = vmatprep.mubr.msk.f32.mxu0 %vm73_vm1, %v51_v32 }
  0x26   :  { %4164 = vrot.lane.b32.xlu0 %v3546_v47, %s5940_s13 }
  0x27   :  { %4162 = vrot.lane.b32.xlu1 %v3545_v46, %s5940_s13 }
  0x28   :  { %5306 = vmatmul.mubr.msk.f32.gmra.mrb[14].mxu0 %vm73_vm1, %v52_v33 }
  0x29   :  { %5308 = vmatprep.mubr.msk.f32.mxu0 %vm73_vm1, %v53_v34 }
  0x2a   :  { %4168 = vrot.lane.b32.xlu0 %v3548_v49, %s5940_s13 }
  0x2b   :  { %4166 = vrot.lane.b32.xlu1 %v3547_v48, %s5940_s13 }
  0x2c   :  { %5309 = vmatmul.mubr.msk.f32.gmra.mrb[16].mxu0 %vm73_vm1, %v54_v35 }
  0x2d   :  { %5311 = vmatprep.mubr.msk.f32.mxu0 %vm73_vm1, %v55_v40 }
  0x2e   :  { %4172 = vrot.lane.b32.xlu0 %v3550_v51, %s5940_s13 }
  0x2f   :  { %4170 = vrot.lane.b32.xlu1 %v3549_v50, %s5940_s13 }
  0x30   :  { %5312 = vmatmul.mubr.msk.f32.gmra.mrb[18].mxu0 %vm73_vm1, %v56_v41 }
  0x32   :  { %4176 = vrot.lane.b32.xlu0 %v3552_v53, %s5940_s13 }
  0x33   :  { %4174 = vrot.lane.b32.xlu1 %v3551_v52, %s5940_s13 }
  0x36   :  { %4180 = vrot.lane.b32.xlu0 %v3554_v55, %s5940_s13 }
  0x37   :  { %4178 = vrot.lane.b32.xlu1 %v3553_v54, %s5940_s13 }
  0x3a   :  { %4184 = vrot.lane.b32.xlu0 %v3556_v57, %s5940_s13 }
  0x3b   :  { %4182 = vrot.lane.b32.xlu1 %v3555_v56, %s5940_s13 }
  0x3e   :  { %4188 = vrot.lane.b32.xlu0 %v3558_v59, %s5940_s13 }
  0x3f   :  { %4186 = vrot.lane.b32.xlu1 %v3557_v58, %s5940_s13 }
  0x42   :  { %4192 = vrot.lane.b32.xlu0 %v3560_v61, %s5940_s13 }
  0x43   :  { %4190 = vrot.lane.b32.xlu1 %v3559_v60, %s5940_s13 }
  0x46   :  { %4196 = vrot.lane.b32.xlu0 %v3562_v63, %s5940_s13 }
  0x47   :  { %4194 = vrot.lane.b32.xlu1 %v3561_v62, %s5940_s13 }
  0x4a   :  { %4200 = vrot.lane.b32.xlu0 %v3564_v1, %s5940_s13 }
  0x4b   :  { %4198 = vrot.lane.b32.xlu1 %v3563_v0, %s5940_s13 }
  0x4e   :  { %4204 = vrot.lane.b32.xlu0 %v3566_v3, %s5940_s13 }
  0x4f   :  { %4202 = vrot.lane.b32.xlu1 %v3565_v2, %s5940_s13 }
  0x52   :  { %4208 = vrot.lane.b32.xlu0 %v3568_v5, %s5940_s13 }
  0x53   :  { %4206 = vrot.lane.b32.xlu1 %v3567_v4, %s5940_s13 }
  0xdf   :  { %v6248_v6 = vpop.f32.mrb[0].mxu0 }
  0xe0   :  { %v400_v7 = vmul.f32 %v6248_v6, %v6248_v6  ;;  %v6252_v8 = vpop.f32.mrb[1].mxu0 }
  0xe1   :  { %v399_v9 = vmul.f32 %v6252_v8, %v6252_v8 }
  0xe2   :  { %v432_v10 = vmul.f32 %v6248_v6, %v400_v7 }
  0xe3   :  { %v431_v11 = vmul.f32 %v399_v9, %v6252_v8  ;;  %v6258_v12 = vpop.f32.mrb[2].mxu0 }
  0xe4   :  { %v464_v13 = vmul.f32 0.044715, %v432_v10  ;;  %v402_v14 = vmul.f32 %v6258_v12, %v6258_v12  ;;  %v6262_v15 = vpop.f32.mrb[3].mxu0 }
  0xe5   :  { %v463_v16 = vmul.f32 0.044715, %v431_v11  ;;  %v401_v17 = vmul.f32 %v6262_v15, %v6262_v15 }
  0xe6   :  { %v496_v18 = vadd.f32 %v6248_v6, %v464_v13  ;;  %v434_v19 = vmul.f32 %v6258_v12, %v402_v14 }
  0xe7   :  { %v495_v20 = vadd.f32 %v463_v16, %v6252_v8  ;;  %v433_v21 = vmul.f32 %v401_v17, %v6262_v15  ;;  %v6270_v22 = vpop.f32.mrb[4].mxu0 }
  0xe8   :  { %v528_v23 = vmul.f32 0.7978846, %v496_v18  ;;  %v466_v24 = vmul.f32 0.044715, %v434_v19  ;;  %v404_v25 = vmul.f32 %v6270_v22, %v6270_v22  ;;  %v6274_v26 = vpop.f32.mrb[5].mxu0 }
  0xe9   :  { %v527_v27 = vmul.f32 0.7978846, %v495_v20  ;;  %v465_v28 = vmul.f32 0.044715, %v433_v21  ;;  %v403_v29 = vmul.f32 %v6274_v26, %v6274_v26 }
  0xea   :  { %5626 = vtanh.f32 %v528_v23  ;;  %v498_v30 = vadd.f32 %v6258_v12, %v466_v24  ;;  %v436_v31 = vmul.f32 %v6270_v22, %v404_v25 }
  0xeb   :  { %v497_v32 = vadd.f32 %v465_v28, %v6262_v15  ;;  %5628 = vtanh.f32 %v527_v27  ;;  %v435_v33 = vmul.f32 %v403_v29, %v6274_v26  ;;  %v6282_v34 = vpop.f32.mrb[6].mxu0 }
  0xec   :  { %v530_v35 = vmul.f32 0.7978846, %v498_v30  ;;  %v468_v36 = vmul.f32 0.044715, %v436_v31  ;;  %v406_v37 = vmul.f32 %v6282_v34, %v6282_v34  ;;  %v6286_v38 = vpop.f32.mrb[7].mxu0 }
  0xed   :  { %v529_v39 = vmul.f32 0.7978846, %v497_v32  ;;  %v467_v40 = vmul.f32 0.044715, %v435_v33  ;;  %v405_v41 = vmul.f32 %v6286_v38, %v6286_v38 }
  0xee   :  { %5630 = vtanh.f32 %v530_v35  ;;  %v500_v42 = vadd.f32 %v6270_v22, %v468_v36  ;;  %v438_v43 = vmul.f32 %v6282_v34, %v406_v37 }
  0xef   :  { %5632 = vtanh.f32 %v529_v39  ;;  %v499_v44 = vadd.f32 %v467_v40, %v6274_v26  ;;  %v437_v45 = vmul.f32 %v405_v41, %v6286_v38  ;;  %v6294_v46 = vpop.f32.mrb[8].mxu0 }
  0xf0   :  { %v532_v47 = vmul.f32 0.7978846, %v500_v42  ;;  %v470_v48 = vmul.f32 0.044715, %v438_v43  ;;  %v408_v49 = vmul.f32 %v6294_v46, %v6294_v46  ;;  %v6298_v50 = vpop.f32.mrb[9].mxu0 }
  0xf1   :  { %v531_v51 = vmul.f32 0.7978846, %v499_v44  ;;  %v469_v52 = vmul.f32 0.044715, %v437_v45  ;;  %v407_v53 = vmul.f32 %v6298_v50, %v6298_v50 }
  0xf2   :  { %5634 = vtanh.f32 %v532_v47  ;;  %v502_v54 = vadd.f32 %v6282_v34, %v470_v48  ;;  %v440_v55 = vmul.f32 %v6294_v46, %v408_v49 }
  0xf3   :  { %5636 = vtanh.f32 %v531_v51  ;;  %v501_v56 = vadd.f32 %v469_v52, %v6286_v38  ;;  %v439_v57 = vmul.f32 %v407_v53, %v6298_v50  ;;  %v6306_v58 = vpop.f32.mrb[10].mxu0 }
  0xf4   :  { %v5627_v59 = vpop.eup %5626  ;;  %v534_v60 = vmul.f32 0.7978846, %v502_v54  ;;  %v472_v61 = vmul.f32 0.044715, %v440_v55  ;;  %v410_v62 = vmul.f32 %v6306_v58, %v6306_v58  ;;  %v6310_v63 = vpop.f32.mrb[11].mxu0 }
  0xf5   :  { %v5629_v0 = vpop.eup %5628  ;;  %v592_v1 = vadd.f32 1.0, %v5627_v59  ;;  %v533_v2 = vmul.f32 0.7978846, %v501_v56  ;;  %v471_v3 = vmul.f32 0.044715, %v439_v57  ;;  %v409_v4 = vmul.f32 %v6310_v63, %v6310_v63 }
  0xf6   :  { %v591_v5 = vadd.f32 1.0, %v5629_v0  ;;  %5638 = vtanh.f32 %v534_v60  ;;  %v504_v7 = vadd.f32 %v6294_v46, %v472_v61  ;;  %v442_v9 = vmul.f32 %v6306_v58, %v410_v62 }
  0xf7   :  { %v624_v10 = vmul.f32 0.5, %v592_v1  ;;  %5640 = vtanh.f32 %v533_v2  ;;  %v503_v11 = vadd.f32 %v471_v3, %v6298_v50  ;;  %v441_v13 = vmul.f32 %v409_v4, %v6310_v63  ;;  %v5304_v2 = vpop.f32.mrb[12].mxu0 }
  0xf8   :  { %v5631_v14 = vpop.eup %5630  ;;  %v623_v16 = vmul.f32 0.5, %v591_v5  ;;  %v536_v17 = vmul.f32 0.7978846, %v504_v7  ;;  %v474_v18 = vmul.f32 0.044715, %v442_v9  ;;  %v300_v3 = vpop.f32.mrb[13].mxu0 }
  0xf9   :  { %v5633_v19 = vpop.eup %5632  ;;  %v594_v20 = vadd.f32 1.0, %v5631_v14  ;;  %v535_v21 = vmul.f32 0.7978846, %v503_v11  ;;  %v473_v23 = vmul.f32 0.044715, %v441_v13  ;;  %v656_v28 = vmul.f32 %v6248_v6, %v624_v10 }
  0xfa   :  { %v593_v24 = vadd.f32 1.0, %v5633_v19  ;;  %v655_v25 = vmul.f32 %v623_v16, %v6252_v8  ;;  %5642 = vtanh.f32 %v536_v17  ;;  %v506_v27 = vadd.f32 %v6306_v58, %v474_v18 }
  0xfb   :  { %v626_v29 = vmul.f32 0.5, %v594_v20  ;;  %5644 = vtanh.f32 %v535_v21  ;;  %v505_v30 = vadd.f32 %v473_v23, %v6310_v63  ;;  %v411_v4 = vmul.f32 %v300_v3, %v300_v3 }
  0xfc   :  { %v5635_v31 = vpop.eup %5634  ;;  %v625_v32 = vmul.f32 0.5, %v593_v24  ;;  %5348 = vmatprep.mubr.msk.f32.mxu1 %vm702_vm4, %v655_v25  ;;  %v538_v33 = vmul.f32 0.7978846, %v506_v27  ;;  %v9384_v25 = vmov 3   ;;  %v9386_v27 = vmov 4  }
  0xfd   :  { %v5637_v35 = vpop.eup %5636  ;;  %5349 = vmatmul.mubr.msk.f32.vlgmr.msra.gmra.mrb[0].mxu1 %vm702_vm4, %v656_v28  ;;  %v596_v36 = vadd.f32 1.0, %v5635_v31  ;;  %v537_v37 = vmul.f32 0.7978846, %v505_v30  ;;  %v658_v6 = vmul.f32 %v6258_v12, %v626_v29  ;;  %v443_v5 = vmul.f32 %v411_v4, %v300_v3  ;;  %5455 = vset.pattern.permute.xlu1 %v9384_v25  ;;  %v5307_v28 = vpop.f32.mrb[14].mxu0 }
  0xfe   :  { %v657_v8 = vmul.f32 %v625_v32, %v6262_v15  ;;  %v595_v39 = vadd.f32 1.0, %v5637_v35  ;;  %5646 = vtanh.f32 %v538_v33  ;;  %5456 = vset.pattern.permute.xlu0 %v9386_v27  ;;  %v414_v29 = vmul.f32 %v5307_v28, %v5307_v28  ;;  %v310_v30 = vpop.f32.mrb[15].mxu0  ;;  %v59_v32 = vld [vmem:[%s9371_s0 + $0xb0] sm:$0xff]  ;;  %v60_v33 = vld [vmem:[%s9371_s0 + $0xb8] sm:$0xff] }
  0xff   :  { %v628_v40 = vmul.f32 0.5, %v596_v36  ;;  %5648 = vtanh.f32 %v537_v37  ;;  %v475_v9 = vmul.f32 0.044715, %v443_v5  ;;  %v413_v31 = vmul.f32 %v310_v30, %v310_v30 }
 0x100   :  { %v5639_v41 = vpop.eup %5638  ;;  %5351 = vmatprep.mubr.msk.f32.mxu1 %vm702_vm4, %v657_v8  ;;  %v627_v42 = vmul.f32 0.5, %v595_v39  ;;  %v446_v35 = vmul.f32 %v5307_v28, %v414_v29 }
 0x101   :  { %v5641_v43 = vpop.eup %5640  ;;  %5352 = vmatmul.mubr.msk.f32.gmra.mrb[2].mxu1 %vm702_vm4, %v658_v6  ;;  %v660_v44 = vmul.f32 %v6270_v22, %v628_v40  ;;  %v598_v45 = vadd.f32 1.0, %v5639_v41  ;;  %v507_v11 = vadd.f32 %v475_v9, %v300_v3  ;;  %v445_v36 = vmul.f32 %v413_v31, %v310_v30 }
 0x102   :  { %v659_v47 = vmul.f32 %v627_v42, %v6274_v26  ;;  %v597_v48 = vadd.f32 1.0, %v5641_v43  ;;  %v478_v37 = vmul.f32 0.044715, %v446_v35 }
 0x103   :  { %v630_v15 = vmul.f32 0.5, %v598_v45  ;;  %v539_v14 = vmul.f32 0.7978846, %v507_v11  ;;  %v477_v8 = vmul.f32 0.044715, %v445_v36 }
 0x104   :  { %v5643_v49 = vpop.eup %5642  ;;  %v629_v51 = vmul.f32 0.5, %v597_v48  ;;  %5354 = vmatprep.mubr.msk.f32.mxu1 %vm702_vm4, %v659_v47  ;;  %v510_v39 = vadd.f32 %v5307_v28, %v478_v37 }
 0x105   :  { %v5645_v12 = vpop.eup %5644  ;;  %v662_v52 = vmul.f32 %v6282_v34, %v630_v15  ;;  %5355 = vmatmul.mubr.msk.f32.gmra.mrb[4].mxu1 %vm702_vm4, %v660_v44  ;;  %v600_v53 = vadd.f32 1.0, %v5643_v49  ;;  %v509_v6 = vadd.f32 %v477_v8, %v310_v30 }
 0x106   :  { %v661_v54 = vmul.f32 %v629_v51, %v6286_v38  ;;  %v599_v55 = vadd.f32 1.0, %v5645_v12  ;;  %v542_v40 = vmul.f32 0.7978846, %v510_v39  ;;  %v5310_v51 = vpop.f32.mrb[16].mxu0 }
 0x107   :  { %v632_v56 = vmul.f32 0.5, %v600_v53  ;;  %v541_v41 = vmul.f32 0.7978846, %v509_v6  ;;  %v416_v12 = vmul.f32 %v5310_v51, %v5310_v51 }
 0x108   :  { %v5647_v22 = vpop.eup %5646  ;;  %5357 = vmatprep.mubr.msk.f32.mxu1 %vm702_vm4, %v661_v54  ;;  %v631_v26 = vmul.f32 0.5, %v599_v55 }
 0x109   :  { %v5649_v57 = vpop.eup %5648  ;;  %5358 = vmatmul.mubr.msk.f32.gmra.mrb[6].mxu1 %vm702_vm4, %v662_v52  ;;  %v664_v59 = vmul.f32 %v6294_v46, %v632_v56  ;;  %v602_v60 = vadd.f32 1.0, %v5647_v22  ;;  %v412_v46 = vmul.f32 %v5304_v2, %v5304_v2  ;;  %v320_v52 = vpop.f32.mrb[17].mxu0  ;;  %v448_v54 = vmul.f32 %v5310_v51, %v416_v12 }
 0x10a   :  { %v663_v61 = vmul.f32 %v631_v26, %v6298_v50  ;;  %v601_v34 = vadd.f32 1.0, %v5649_v57  ;;  %v415_v53 = vmul.f32 %v320_v52, %v320_v52 }
 0x10b   :  { %v634_v62 = vmul.f32 0.5, %v602_v60  ;;  %v444_v50 = vmul.f32 %v5304_v2, %v412_v46  ;;  %v480_v56 = vmul.f32 0.044715, %v448_v54 }
 0x10c   :  { %5360 = vmatprep.mubr.msk.f32.mxu1 %vm702_vm4, %v663_v61  ;;  %v633_v0 = vmul.f32 0.5, %v601_v34  ;;  %v447_v55 = vmul.f32 %v415_v53, %v320_v52  ;;  %v61_v61 = vld [vmem:[%s9371_s0 + $0xc0] sm:$0xff]  ;;  %v62_v34 = vld [vmem:[%s9371_s0 + $0xc8] sm:$0xff] }
 0x10d   :  { %5361 = vmatmul.mubr.msk.f32.gmra.mrb[8].mxu1 %vm702_vm4, %v664_v59  ;;  %v666_v38 = vmul.f32 %v6306_v58, %v634_v62  ;;  %v476_v7 = vmul.f32 0.044715, %v444_v50  ;;  %v57_v58 = vld [vmem:[%s9371_s0 + $0xa0] sm:$0xff]  ;;  %v512_v26 = vadd.f32 %v5310_v51, %v480_v56 }
 0x10e   :  { %v665_v1 = vmul.f32 %v633_v0, %v6310_v63  ;;  %5314 = vmatprep.mubr.msk.f32.mxu0 %vm73_vm1, %v57_v58  ;;  %v58_v63 = vld [vmem:[%s9371_s0 + $0xa8] sm:$0xff]  ;;  %v479_v22 = vmul.f32 0.044715, %v447_v55 }
 0x10f   :  { %v508_v10 = vadd.f32 %v5304_v2, %v476_v7  ;;  %5315 = vmatmul.mubr.msk.f32.gmra.mrb[20].mxu0 %vm73_vm1, %v58_v63  ;;  %v544_v59 = vmul.f32 0.7978846, %v512_v26 }
 0x110   :  { %5363 = vmatprep.mubr.msk.f32.mxu1 %vm702_vm4, %v665_v1  ;;  %5317 = vmatprep.mubr.msk.f32.mxu0 %vm73_vm1, %v59_v32  ;;  %v511_v57 = vadd.f32 %v479_v22, %v320_v52 }
 0x111   :  { %5364 = vmatmul.mubr.msk.f32.gmra.mrb[10].mxu1 %vm702_vm4, %v666_v38  ;;  %v540_v13 = vmul.f32 0.7978846, %v508_v10  ;;  %v6377_v38 = vld [vmem:[%s9374_s3] ss:$0 sm:$0xff] }
 0x112   :  { %v543_v60 = vmul.f32 0.7978846, %v511_v57 }
 0x113   :  { %5650 = vtanh.f32 %v540_v13  ;;  %5318 = vmatmul.mubr.msk.f32.gmra.mrb[22].mxu0 %vm73_vm1, %v60_v33 }
 0x114   :  { %5652 = vtanh.f32 %v539_v14  ;;  %5320 = vmatprep.mubr.msk.f32.mxu0 %vm73_vm1, %v61_v61  ;;  %v64_v61 = vld [vmem:[%s9371_s0 + $0xd8] sm:$0xff] }
 0x115   :  { %5654 = vtanh.f32 %v542_v40 }
 0x116   :  { %5656 = vtanh.f32 %v541_v41 }
 0x117   :  { %5658 = vtanh.f32 %v544_v59  ;;  %5321 = vmatmul.mubr.msk.f32.gmra.mrb[24].mxu0 %vm73_vm1, %v62_v34 }
 0x118   :  { %5660 = vtanh.f32 %v543_v60  ;;  %v63_v60 = vld [vmem:[%s9371_s0 + $0xd0] sm:$0xff] }
 0x119   :  { %5323 = vmatprep.mubr.msk.f32.mxu0 %vm73_vm1, %v63_v60  ;;  %v65_v60 = vld [vmem:[%s9371_s0 + $0xe0] sm:$0xff] }
 0x11b   :  { %5324 = vmatmul.mubr.msk.f32.gmra.mrb[26].mxu0 %vm73_vm1, %v64_v61  ;;  %v66_v61 = vld [vmem:[%s9371_s0 + $0xe8] sm:$0xff] }
 0x11c   :  { %5326 = vmatprep.mubr.msk.f32.mxu0 %vm73_vm1, %v65_v60 }
 0x11d   :  { %v5651_v16 = vpop.eup %5650 }
 0x11e   :  { %v5653_v17 = vpop.eup %5652  ;;  %v604_v18 = vadd.f32 1.0, %v5651_v16 }
 0x11f   :  { %v603_v19 = vadd.f32 1.0, %v5653_v17  ;;  %v5655_v42 = vpop.eup %5654  ;;  %5327 = vmatmul.mubr.msk.f32.gmra.mrb[28].mxu0 %vm73_vm1, %v66_v61 }
 0x120   :  { %v636_v20 = vmul.f32 0.5, %v604_v18  ;;  %v5657_v43 = vpop.eup %5656  ;;  %v606_v44 = vadd.f32 1.0, %v5655_v42  ;;  %v5313_v42 = vpop.f32.mrb[18].mxu0 }
 0x121   :  { %v635_v21 = vmul.f32 0.5, %v603_v19  ;;  %v605_v45 = vadd.f32 1.0, %v5657_v43  ;;  %v5659_v62 = vpop.eup %5658 }
 0x122   :  { %v668_v23 = vmul.f32 %v5304_v2, %v636_v20  ;;  %v638_v47 = vmul.f32 0.5, %v606_v44  ;;  %v5661_v0 = vpop.eup %5660  ;;  %v608_v1 = vadd.f32 1.0, %v5659_v62  ;;  %v418_v44 = vmul.f32 %v5313_v42, %v5313_v42 }
 0x123   :  { %v667_v24 = vmul.f32 %v635_v21, %v300_v3  ;;  %v637_v48 = vmul.f32 0.5, %v605_v45  ;;  %v607_v2 = vadd.f32 1.0, %v5661_v0  ;;  %v330_v45 = vpop.f32.mrb[19].mxu0 }
 0x124   :  { %v670_v15 = vmul.f32 %v5307_v28, %v638_v47  ;;  %v640_v3 = vmul.f32 0.5, %v608_v1 }
 0x125   :  { %5366 = vmatprep.mubr.msk.f32.mxu1 %vm702_vm4, %v667_v24  ;;  %v669_v49 = vmul.f32 %v637_v48, %v310_v30  ;;  %v639_v5 = vmul.f32 0.5, %v607_v2  ;;  %v417_v48 = vmul.f32 %v330_v45, %v330_v45 }
 0x126   :  { %5367 = vmatmul.mubr.msk.f32.gmra.mrb[12].mxu1 %vm702_vm4, %v668_v23  ;;  %v672_v9 = vmul.f32 %v5310_v51, %v640_v3 }
 0x127   :  { %5369 = vmatprep.mubr.msk.f32.mxu1 %vm702_vm4, %v669_v49  ;;  %v671_v11 = vmul.f32 %v639_v5, %v320_v52  ;;  %v449_v49 = vmul.f32 %v417_v48, %v330_v45 }
 0x129   :  { %v481_v53 = vmul.f32 0.044715, %v449_v49 }
 0x12a   :  { %5370 = vmatmul.mubr.msk.f32.gmra.mrb[14].mxu1 %vm702_vm4, %v670_v15  ;;  %v450_v15 = vmul.f32 %v5313_v42, %v418_v44 }
 0x12b   :  { %5372 = vmatprep.mubr.msk.f32.mxu1 %vm702_vm4, %v671_v11  ;;  %v513_v55 = vadd.f32 %v481_v53, %v330_v45 }
 0x12c   :  { %v482_v12 = vmul.f32 0.044715, %v450_v15 }
 0x12d   :  { %v545_v57 = vmul.f32 0.7978846, %v513_v55 }
 0x12e   :  { %5373 = vmatmul.mubr.msk.f32.gmra.mrb[16].mxu1 %vm702_vm4, %v672_v9  ;;  %v514_v54 = vadd.f32 %v5313_v42, %v482_v12 }
 0x130   :  { %v546_v56 = vmul.f32 0.7978846, %v514_v54 }
 0x1d0   :  { %v5350_v46 = vpop.f32.mrb[0].mxu1 }
 0x1d1   :  { %v871_v4 = vadd.f32 %v5350_v46, %v6377_v38  ;;  %v865_v50 = vpop.f32.mrb[1].mxu1 }
 0x1d2   :  { %v866_v7 = vadd.f32 %v6377_v38, %v865_v50 }
 0x1d3   :  { %v1026_v10 = vmul.f32 1.442695, %v871_v4 }
 0x1d4   :  { %v1024_v13 = vmul.f32 1.442695, %v866_v7  ;;  %v5353_v14 = vpop.f32.mrb[2].mxu1 }
 0x1d5   :  { %5662 = vpow2.f32 %v1026_v10  ;;  %v6382_v58 = vadd.f32 %v5353_v14, %v6377_v38  ;;  %v875_v63 = vpop.f32.mrb[3].mxu1 }
 0x1d6   :  { %v6386_v16 = vadd.f32 %v6377_v38, %v875_v63  ;;  %5664 = vpow2.f32 %v1024_v13 }
 0x1d7   :  { %v1030_v17 = vmul.f32 1.442695, %v6382_v58 }
 0x1d8   :  { %v1028_v18 = vmul.f32 1.442695, %v6386_v16  ;;  %v6391_v19 = vpop.f32.mrb[4].mxu1 }
 0x1d9   :  { %5666 = vpow2.f32 %v1030_v17  ;;  %v885_v20 = vpop.f32.mrb[5].mxu1  ;;  %v6437_v50 = vadd.f32 %v6391_v19, %v6377_v38 }
 0x1da   :  { %5668 = vpow2.f32 %v1028_v18  ;;  %v886_v0 = vadd.f32 %v6377_v38, %v885_v20 }
 0x1db   :  { %5670 = vtanh.f32 %v871_v4  ;;  %v1034_v11 = vmul.f32 1.442695, %v6437_v50 }
 0x1dc   :  { %v6393_v21 = vpop.f32.mrb[6].mxu1  ;;  %5672 = vtanh.f32 %v866_v7  ;;  %v1032_v5 = vmul.f32 1.442695, %v886_v0 }
 0x1dd   :  { %v895_v23 = vpop.f32.mrb[7].mxu1  ;;  %5674 = vtanh.f32 %v546_v56 }
 0x1de   :  { %5676 = vtanh.f32 %v545_v57  ;;  %v6433_v46 = vadd.f32 %v6377_v38, %v895_v23 }
 0x1df   :  { %v6395_v24 = vpop.eup %5662  ;;  %5678 = vpow2.f32 %v1032_v5 }
 0x1e0   :  { %v1092_v28 = vsel %vm1088_vm5, %v6395_v24, 0.0  ;;  %v6399_v29 = vpop.f32.mrb[8].mxu1  ;;  %v6401_v30 = vpop.eup %5664  ;;  %v1036_v10 = vmul.f32 1.442695, %v6433_v46 }
 0x1e1   :  { %1093 = vadd.xlane.f32.xlu0 %v1092_v28  ;;  %v6403_v31 = vpop.f32.mrb[9].mxu1  ;;  %v1089_v33 = vsel %vm1088_vm5, %v6401_v30, 0.0 }
 0x1e2   :  { %5680 = vpow2.f32 %v1036_v10  ;;  %v6468_v57 = vadd.f32 %v6377_v38, %v6403_v31 }
 0x1e3   :  { %v6405_v32 = vpop.eup %5666  ;;  %5682 = vpow2.f32 %v1034_v11 }
 0x1e4   :  { %v1098_v35 = vsel %vm1088_vm5, %v6405_v32, 0.0  ;;  %v6411_v36 = vpop.eup %5668  ;;  %v6415_v22 = vpop.f32.mrb[10].mxu1  ;;  %5684 = vtanh.f32 %v6382_v58  ;;  %v1040_v31 = vmul.f32 1.442695, %v6468_v57 }
 0x1e5   :  { %1090 = vadd.xlane.f32.xlu0 %v1089_v33  ;;  %1099 = vadd.xlane.f32.xlu1 %v1098_v35  ;;  %v1095_v37 = vsel %vm1088_vm5, %v6411_v36, 0.0  ;;  %v5671_v8 = vpop.eup %5670  ;;  %v6417_v59 = vpop.f32.mrb[11].mxu1  ;;  %5686 = vtanh.f32 %v886_v0 }
 0x1e6   :  { %v1282_v39 = vmul.f32 0.9, %v5671_v8  ;;  %v5673_v6 = vpop.eup %5672  ;;  %5688 = vtanh.f32 %v6386_v16 }
 0x1e7   :  { %v1281_v41 = vmul.f32 0.9, %v5673_v6  ;;  %v5675_v34 = vpop.eup %5674 }
 0x1e8   :  { %v1314_v40 = vadd.f32 1.0, %v1282_v39  ;;  %v5677_v62 = vpop.eup %5676  ;;  %v610_v1 = vadd.f32 1.0, %v5675_v34 }
 0x1e9   :  { %1096 = vadd.xlane.f32.xlu1 %v1095_v37  ;;  %v1313_v47 = vadd.f32 1.0, %v1281_v41  ;;  %v609_v2 = vadd.f32 1.0, %v5677_v62  ;;  %v6444_v13 = vpop.eup %5678  ;;  %v5316_v37 = vpop.f32.mrb[20].mxu0 }
 0x1ea   :  { %v1346_v43 = vmul.f32 4.0, %v1314_v40  ;;  %v642_v3 = vmul.f32 0.5, %v610_v1  ;;  %v1101_v63 = vsel %vm1088_vm5, %v6444_v13, 0.0  ;;  %v420_v39 = vmul.f32 %v5316_v37, %v5316_v37  ;;  %v340_v6 = vpop.f32.mrb[21].mxu0 }
 0x1eb   :  { %v1345_v52 = vmul.f32 4.0, %v1313_v47  ;;  %v641_v4 = vmul.f32 0.5, %v609_v2  ;;  %v419_v41 = vmul.f32 %v340_v6, %v340_v6 }
 0x1ec   :  { %v5137_v51 = vadd.f32 -0.5, %v1346_v43  ;;  %v674_v7 = vmul.f32 %v5313_v42, %v642_v3  ;;  %v6446_v14 = vpop.eup %5680  ;;  %v452_v43 = vmul.f32 %v5316_v37, %v420_v39 }
 0x1ed   :  { %v5136_v26 = vadd.f32 -0.5, %v1345_v52  ;;  %v673_v9 = vmul.f32 %v641_v4, %v330_v45  ;;  %v6450_v17 = vpop.eup %5682  ;;  %v1107_v18 = vsel %vm1088_vm5, %v6446_v14, 0.0  ;;  %v451_v44 = vmul.f32 %v419_v41, %v340_v6 }
 0x1ee   :  { %v1104_v19 = vsel %vm1088_vm5, %v6450_v17, 0.0  ;;  %v5685_v20 = vpop.eup %5684  ;;  %v484_v47 = vmul.f32 0.044715, %v452_v43 }
 0x1ef   :  { %5375 = vmatprep.mubr.msk.f32.mxu1 %vm702_vm4, %v673_v9  ;;  %v1284_v58 = vmul.f32 0.9, %v5685_v20  ;;  %v5687_v23 = vpop.eup %5686  ;;  %v483_v16 = vmul.f32 0.044715, %v451_v44 }
 0x1f0   :  { %5376 = vmatmul.mubr.msk.f32.gmra.mrb[18].mxu1 %vm702_vm4, %v674_v7  ;;  %v1285_v33 = vmul.f32 0.9, %v5687_v23  ;;  %v5689_v35 = vpop.eup %5688  ;;  %v516_v49 = vadd.f32 %v5316_v37, %v484_v47  ;;  %v6485_v7 = vadd.f32 %v6393_v21, %v6377_v38 }
 0x1f1   :  { %v1316_v28 = vadd.f32 1.0, %v1284_v58  ;;  %v1283_v42 = vmul.f32 0.9, %v5689_v35  ;;  %v5319_v58 = vpop.f32.mrb[22].mxu0 }
 0x1f2   :  { %v1317_v40 = vadd.f32 1.0, %v1285_v33  ;;  %v548_v12 = vmul.f32 0.7978846, %v516_v49  ;;  %v1038_v10 = vmul.f32 1.442695, %v6485_v7 }
 0x1f3   :  { %v1348_v8 = vmul.f32 4.0, %v1316_v28  ;;  %v1315_v15 = vadd.f32 1.0, %v1283_v42  ;;  %v350_v28 = vpop.f32.mrb[23].mxu0 }
 0x1f4   :  { %v1349_v48 = vmul.f32 4.0, %v1317_v40  ;;  %5690 = vtanh.f32 %v548_v12  ;;  %v421_v35 = vmul.f32 %v350_v28, %v350_v28  ;;  %v67_v12 = vld [vmem:[%s9371_s0 + $0xf0] sm:$0xff] }
 0x1f5   :  { %v5139_v45 = vadd.f32 -0.5, %v1348_v8  ;;  %v1347_v56 = vmul.f32 4.0, %v1315_v15  ;;  %v6508_v15 = vadd.f32 %v6377_v38, %v6417_v59  ;;  %5329 = vmatprep.mubr.msk.f32.mxu0 %vm73_vm1, %v67_v12 }
 0x1f6   :  { %v6459_v53 = vadd.f32 -0.5, %v1349_v48  ;;  %v453_v39 = vmul.f32 %v421_v35, %v350_v28 }
 0x1f9   :  { %v6457_v52 = vpop.f32.mrb[12].mxu1 }
 0x1fa   :  { %1419 = vperm.xlu1 %5455, %v5137_v51   ;;  %v6461_v55 = vpop.f32.mrb[13].mxu1 }
 0x1fb   :  { %1844 = vperm.xlu0 %5456, %v5137_v51   ;;  %v515_v51 = vadd.f32 %v483_v16, %v340_v6 }
 0x1fd   :  { %v547_v54 = vmul.f32 0.7978846, %v515_v51  ;;  %v6501_v47 = vpop.f32.mrb[14].mxu1  ;;  %v1044_v51 = vmul.f32 1.442695, %v6508_v15 }
 0x1fe   :  { %5458 = vset.pattern.permute.xlu1 %v9386_v27  ;;  %v5691_v34 = vpop.eup %5690  ;;  %v6503_v48 = vpop.f32.mrb[15].mxu1 }
 0x1ff   :  { %5457 = vset.pattern.permute.xlu0 %v9384_v25  ;;  %1840 = vperm.xlu1 %5458, %v5136_v26   ;;  %5692 = vtanh.f32 %v547_v54  ;;  %v612_v0 = vadd.f32 1.0, %v5691_v34  ;;  %v911_v34 = vadd.f32 %v6399_v29, %v6377_v38 }
 0x200   :  { %1414 = vperm.xlu0 %5457, %v5136_v26   ;;  %v5138_v26 = vadd.f32 -0.5, %v1347_v56  ;;  %5694 = vpow2.f32 %v1040_v31  ;;  %v68_v56 = vld [vmem:[%s9371_s0 + $0xf8] sm:$0xff] }
 0x201   :  { %v644_v2 = vmul.f32 0.5, %v612_v0  ;;  %5696 = vtanh.f32 %v6433_v46  ;;  %v422_v46 = vmul.f32 %v5319_v58, %v5319_v58  ;;  %5330 = vmatmul.mubr.msk.f32.gmra.mrb[30].mxu0 %vm73_vm1, %v68_v56  ;;  %vm4636_vm1 = vcmask 720512  }
 0x202   :  { %5698 = vpow2.f32 %v1038_v10 }
 0x203   :  { %5459 = vset.pattern.permute.xlu1 %v9384_v25  ;;  %v676_v4 = vmul.f32 %v5316_v37, %v644_v2  ;;  %5700 = vtanh.f32 %v6437_v50  ;;  %v454_v37 = vmul.f32 %v5319_v58, %v422_v46  ;;  %v485_v50 = vmul.f32 0.044715, %v453_v39 }
 0x204   :  { %5466 = vset.pattern.permute.xlu0 %v9386_v27 }
 0x205   :  { %v517_v43 = vadd.f32 %v485_v50, %v350_v28 }
 0x209   :  { %v5693_v62 = vpop.eup %5692 }
 0x20a   :  { %v611_v1 = vadd.f32 1.0, %v5693_v62  ;;  %v6487_v9 = vpop.eup %5694 }
 0x20b   :  { %v1113_v11 = vsel %vm1088_vm5, %v6487_v9, 0.0 }
 0x20c   :  { %v643_v3 = vmul.f32 0.5, %v611_v1 }
 0x20e   :  { %v675_v5 = vmul.f32 %v643_v3, %v340_v6  ;;  %v486_v6 = vmul.f32 0.044715, %v454_v37  ;;  %v1042_v3 = vmul.f32 1.442695, %v911_v34 }
 0x210   :  { %5378 = vmatprep.mubr.msk.f32.mxu1 %vm702_vm4, %v675_v5  ;;  %v518_v41 = vadd.f32 %v5319_v58, %v486_v6 }
 0x211   :  { %5379 = vmatmul.mubr.msk.f32.gmra.mrb[20].mxu1 %vm702_vm4, %v676_v4 }
 0x212   :  { %v550_v44 = vmul.f32 0.7978846, %v518_v41 }
 0x214   :  { %5702 = vtanh.f32 %v550_v44  ;;  %v6543_v44 = vpop.f32.mrb[16].mxu1 }
 0x21f   :  { %1102 = vadd.xlane.f32.xlu0 %v1101_v63  ;;  %v5697_v63 = vpop.eup %5696 }
 0x223   :  { %1105 = vadd.xlane.f32.xlu1 %v1104_v19  ;;  %1108 = vadd.xlane.f32.xlu0 %v1107_v18  ;;  %v1287_v18 = vmul.f32 0.9, %v5697_v63  ;;  %v6494_v19 = vpop.eup %5698 }
 0x224   :  { %v1110_v21 = vsel %vm1088_vm5, %v6494_v19, 0.0  ;;  %v5701_v23 = vpop.eup %5700 }
 0x225   :  { %v1319_v20 = vadd.f32 1.0, %v1287_v18  ;;  %v1286_v8 = vmul.f32 0.9, %v5701_v23  ;;  %v5703_v54 = vpop.eup %5702  ;;  %v5322_v18 = vpop.f32.mrb[24].mxu0 }
 0x227   :  { %v1351_v33 = vmul.f32 4.0, %v1319_v20  ;;  %v1318_v42 = vadd.f32 1.0, %v1286_v8  ;;  %v424_v20 = vmul.f32 %v5322_v18, %v5322_v18 }
 0x229   :  { %v6498_v40 = vadd.f32 -0.5, %v1351_v33  ;;  %v1350_v16 = vmul.f32 4.0, %v1318_v42 }
 0x22b   :  { %v5141_v49 = vadd.f32 -0.5, %v1350_v16 }
 0x234   :  { %1429 = vperm.xlu1 %5459, %v5139_v45  }
 0x238   :  { %5460 = vset.pattern.permute.xlu1 %v9386_v27 }
 0x239   :  { %1852 = vperm.xlu1 %5460, %v5139_v45   ;;  %1856 = vperm.xlu0 %5466, %v6459_v53   ;;  %v549_v45 = vmul.f32 0.7978846, %v517_v43 }
 0x23b   :  { %5704 = vtanh.f32 %v549_v45  ;;  %v6545_v45 = vpop.f32.mrb[17].mxu1 }
 0x23c   :  { %5706 = vpow2.f32 %v1044_v51 }
 0x23d   :  { %5461 = vset.pattern.permute.xlu1 %v9384_v25  ;;  %5708 = vtanh.f32 %v911_v34 }
 0x23e   :  { %1424 = vperm.xlu1 %5461, %v5138_v26   ;;  %5710 = vtanh.f32 %v6468_v57 }
 0x23f   :  { %5712 = vpow2.f32 %v1042_v3 }
 0x240   :  { %5714 = vtanh.f32 %v6485_v7 }
 0x242   :  { %5462 = vset.pattern.permute.xlu1 %v9386_v27 }
 0x243   :  { %1848 = vperm.xlu1 %5462, %v5138_v26   ;;  %v614_v26 = vadd.f32 1.0, %v5703_v54 }
 0x245   :  { %v5705_v59 = vpop.eup %5704  ;;  %v646_v61 = vmul.f32 0.5, %v614_v26 }
 0x246   :  { %v613_v60 = vadd.f32 1.0, %v5705_v59  ;;  %v6524_v1 = vpop.eup %5706 }
 0x247   :  { %5463 = vset.pattern.permute.xlu1 %v9384_v25  ;;  %v678_v0 = vmul.f32 %v5319_v58, %v646_v61  ;;  %9491 = vst [vmem:[#allocation5_spill] sm:$0xff] %v6524_v1  ;;  %v1119_v2 = vsel %vm1088_vm5, %v6524_v1, 0.0 }
 0x248   :  { %v645_v62 = vmul.f32 0.5, %v613_v60 }
 0x24a   :  { %v677_v31 = vmul.f32 %v645_v62, %v350_v28  ;;  %v456_v28 = vmul.f32 %v5322_v18, %v424_v20 }
 0x24c   :  { %5381 = vmatprep.mubr.msk.f32.mxu1 %vm702_vm4, %v677_v31  ;;  %v488_v35 = vmul.f32 0.044715, %v456_v28 }
 0x24d   :  { %5382 = vmatmul.mubr.msk.f32.gmra.mrb[22].mxu1 %vm702_vm4, %v678_v0 }
 0x24e   :  { %v520_v6 = vadd.f32 %v5322_v18, %v488_v35 }
 0x250   :  { %v552_v41 = vmul.f32 0.7978846, %v520_v6 }
 0x252   :  { %5716 = vtanh.f32 %v552_v41 }
 0x258   :  { %1114 = vadd.xlane.f32.xlu0 %v1113_v11 }
 0x267   :  { %1111 = vadd.xlane.f32.xlu1 %v1110_v21  ;;  %v360_v21 = vpop.f32.mrb[25].mxu0 }
 0x268   :  { %v423_v23 = vmul.f32 %v360_v21, %v360_v21 }
 0x26a   :  { %v455_v33 = vmul.f32 %v423_v23, %v360_v21 }
 0x26c   :  { %v487_v7 = vmul.f32 0.044715, %v455_v33 }
 0x26e   :  { %1864 = vperm.xlu0 %5466, %v6498_v40   ;;  %v519_v50 = vadd.f32 %v487_v7, %v360_v21 }
 0x270   :  { %v551_v43 = vmul.f32 0.7978846, %v519_v50 }
 0x272   :  { %5469 = vset.pattern.permute.xlu0 %v9384_v25  ;;  %5718 = vtanh.f32 %v551_v43 }
 0x278   :  { %1439 = vperm.xlu1 %5463, %v5141_v49  }
 0x27c   :  { %5464 = vset.pattern.permute.xlu1 %v9386_v27 }
 0x27d   :  { %1860 = vperm.xlu1 %5464, %v5141_v49   ;;  %v6550_v49 = vadd.f32 %v6377_v38, %v6461_v55  ;;  %v921_v55 = vadd.f32 %v6415_v22, %v6377_v38 }
 0x27f   :  { %v1048_v12 = vmul.f32 1.442695, %v6550_v49 }
 0x281   :  { %5465 = vset.pattern.permute.xlu1 %v9384_v25  ;;  %5720 = vpow2.f32 %v1048_v12 }
 0x282   :  { %1434 = vperm.xlu1 %5465, %v6459_v53   ;;  %v5709_v53 = vpop.eup %5708  ;;  %5722 = vtanh.f32 %v921_v55 }
 0x283   :  { %v1290_v4 = vmul.f32 0.9, %v5709_v53  ;;  %v5711_v29 = vpop.eup %5710  ;;  %5724 = vtanh.f32 %v6508_v15 }
 0x284   :  { %v1289_v10 = vmul.f32 0.9, %v5711_v29  ;;  %v6534_v46 = vpop.eup %5712  ;;  %v1046_v29 = vmul.f32 1.442695, %v921_v55 }
 0x285   :  { %v1322_v5 = vadd.f32 1.0, %v1290_v4  ;;  %v1116_v37 = vsel %vm1088_vm5, %v6534_v46, 0.0  ;;  %v5715_v8 = vpop.eup %5714 }
 0x286   :  { %v1321_v63 = vadd.f32 1.0, %v1289_v10  ;;  %v1288_v42 = vmul.f32 0.9, %v5715_v8  ;;  %v5717_v54 = vpop.eup %5716  ;;  %5726 = vpow2.f32 %v1046_v29 }
 0x287   :  { %v1354_v11 = vmul.f32 4.0, %v1322_v5  ;;  %v5719_v56 = vpop.eup %5718  ;;  %v616_v26 = vadd.f32 1.0, %v5717_v54 }
 0x288   :  { %v1353_v57 = vmul.f32 4.0, %v1321_v63  ;;  %v1320_v16 = vadd.f32 1.0, %v1288_v42  ;;  %v615_v60 = vadd.f32 1.0, %v5719_v56 }
 0x289   :  { %v6532_v58 = vadd.f32 -0.5, %v1354_v11  ;;  %v648_v61 = vmul.f32 0.5, %v616_v26 }
 0x28a   :  { %v6539_v39 = vadd.f32 -0.5, %v1353_v57  ;;  %v1352_v51 = vmul.f32 4.0, %v1320_v16  ;;  %v647_v34 = vmul.f32 0.5, %v615_v60  ;;  %v6584_v16 = vadd.f32 %v6377_v38, %v6503_v48 }
 0x28b   :  { %v680_v62 = vmul.f32 %v5322_v18, %v648_v61  ;;  %v6559_v31 = vpop.eup %5720 }
 0x28c   :  { %v5143_v59 = vadd.f32 -0.5, %v1352_v51  ;;  %v679_v0 = vmul.f32 %v647_v34, %v360_v21  ;;  %9492 = vst [vmem:[#allocation6_spill] sm:$0xff] %v6559_v31  ;;  %v5723_v53 = vpop.eup %5722  ;;  %v1052_v51 = vmul.f32 1.442695, %v6584_v16 }
 0x28d   :  { %1120 = vadd.xlane.f32.xlu0 %v1119_v2  ;;  %v1125_v2 = vsel %vm1088_vm5, %v6559_v31, 0.0  ;;  %v1292_v3 = vmul.f32 0.9, %v5723_v53  ;;  %v5725_v4 = vpop.eup %5724  ;;  %v5169_v31 = vld [vmem:[%s9376_s5 + $0x1] ss:$4 sm:$0x3] }
 0x28e   :  { %5384 = vmatprep.mubr.msk.f32.mxu1 %vm702_vm4, %v679_v0  ;;  %v1291_v5 = vmul.f32 0.9, %v5725_v4 }
 0x28f   :  { %5385 = vmatmul.mubr.msk.f32.gmra.mrb[24].mxu1 %vm702_vm4, %v680_v62  ;;  %v1324_v22 = vadd.f32 1.0, %v1292_v3  ;;  %v931_v62 = vadd.f32 %v6457_v52, %v6377_v38 }
 0x290   :  { %v1323_v11 = vadd.f32 1.0, %v1291_v5  ;;  %v6571_v35 = vpop.eup %5726 }
 0x291   :  { %v1356_v10 = vmul.f32 4.0, %v1324_v22  ;;  %v1122_v6 = vsel %vm1088_vm5, %v6571_v35, 0.0 }
 0x292   :  { %v1355_v18 = vmul.f32 4.0, %v1323_v11 }
 0x293   :  { %v6566_v63 = vadd.f32 -0.5, %v1356_v10 }
 0x294   :  { %v6569_v28 = vadd.f32 -0.5, %v1355_v18 }
 0x2a3   :  { %1459 = vperm.xlu0 %5469, %v6532_v58  }
 0x2a6   :  { %1117 = vadd.xlane.f32.xlu1 %v1116_v37 }
 0x2a7   :  { %5472 = vset.pattern.permute.xlu0 %v9386_v27 }
 0x2a8   :  { %1872 = vperm.xlu0 %5472, %v6539_v39  }
 0x2ac   :  { %5473 = vset.pattern.permute.xlu0 %v9384_v25 }
 0x2b7   :  { %1449 = vperm.xlu1 %5465, %v5143_v59  }
 0x2bb   :  { %5467 = vset.pattern.permute.xlu1 %v9386_v27 }
 0x2bc   :  { %1868 = vperm.xlu1 %5467, %v5143_v59  }
 0x2c0   :  { %5468 = vset.pattern.permute.xlu1 %v9384_v25 }
 0x2c1   :  { %1444 = vperm.xlu1 %5468, %v6498_v40   ;;  %v5325_v40 = vpop.f32.mrb[26].mxu0 }
 0x2c2   :  { %v426_v20 = vmul.f32 %v5325_v40, %v5325_v40  ;;  %v370_v21 = vpop.f32.mrb[27].mxu0 }
 0x2c3   :  { %v425_v23 = vmul.f32 %v370_v21, %v370_v21  ;;  %v6577_v41 = vpop.f32.mrb[18].mxu1 }
 0x2c4   :  { %v458_v15 = vmul.f32 %v5325_v40, %v426_v20  ;;  %v6579_v43 = vpop.f32.mrb[19].mxu1 }
 0x2c5   :  { %5470 = vset.pattern.permute.xlu1 %v9386_v27  ;;  %v457_v57 = vmul.f32 %v425_v23, %v370_v21 }
 0x2c6   :  { %v490_v33 = vmul.f32 0.044715, %v458_v15 }
 0x2c7   :  { %1126 = vadd.xlane.f32.xlu0 %v1125_v2  ;;  %v489_v37 = vmul.f32 0.044715, %v457_v57  ;;  %v1050_v2 = vmul.f32 1.442695, %v931_v62 }
 0x2c8   :  { %v522_v7 = vadd.f32 %v5325_v40, %v490_v33 }
 0x2c9   :  { %v521_v8 = vadd.f32 %v489_v37, %v370_v21 }
 0x2ca   :  { %v554_v50 = vmul.f32 0.7978846, %v522_v7 }
 0x2cb   :  { %v553_v42 = vmul.f32 0.7978846, %v521_v8 }
 0x2cc   :  { %5728 = vtanh.f32 %v554_v50 }
 0x2cd   :  { %5730 = vtanh.f32 %v553_v42  ;;  %v6618_v42 = vadd.f32 %v6377_v38, %v6545_v45 }
 0x2ce   :  { %5732 = vpow2.f32 %v1052_v51 }
 0x2cf   :  { %5734 = vtanh.f32 %v931_v62  ;;  %v1056_v51 = vmul.f32 1.442695, %v6618_v42  ;;  %v941_v62 = vadd.f32 %v6501_v47, %v6377_v38 }
 0x2d0   :  { %5736 = vtanh.f32 %v6550_v49 }
 0x2d1   :  { %5738 = vpow2.f32 %v1050_v2 }
 0x2d6   :  { %v5729_v12 = vpop.eup %5728 }
 0x2d7   :  { %v5731_v54 = vpop.eup %5730  ;;  %v618_v56 = vadd.f32 1.0, %v5729_v12 }
 0x2d8   :  { %v617_v59 = vadd.f32 1.0, %v5731_v54  ;;  %v6593_v48 = vpop.eup %5732 }
 0x2d9   :  { %v650_v26 = vmul.f32 0.5, %v618_v56  ;;  %9493 = vst [vmem:[#allocation7_spill] sm:$0xff] %v6593_v48  ;;  %v1131_v0 = vsel %vm1088_vm5, %v6593_v48, 0.0  ;;  %v5735_v52 = vpop.eup %5734 }
 0x2da   :  { %v649_v60 = vmul.f32 0.5, %v617_v59  ;;  %v5737_v55 = vpop.eup %5736 }
 0x2db   :  { %v682_v61 = vmul.f32 %v5325_v40, %v650_v26  ;;  %v1293_v3 = vmul.f32 0.9, %v5737_v55  ;;  %v6605_v23 = vpop.eup %5738 }
 0x2dc   :  { %v681_v34 = vmul.f32 %v649_v60, %v370_v21  ;;  %9494 = vst [vmem:[#allocation8_spill] sm:$0xff] %v6605_v23  ;;  %v1128_v37 = vsel %vm1088_vm5, %v6605_v23, 0.0 }
 0x2dd   :  { %1469 = vperm.xlu0 %5473, %v6566_v63   ;;  %v1325_v29 = vadd.f32 1.0, %v1293_v3 }
 0x2de   :  { %5387 = vmatprep.mubr.msk.f32.mxu1 %vm702_vm4, %v681_v34 }
 0x2df   :  { %5388 = vmatmul.mubr.msk.f32.gmra.mrb[26].mxu1 %vm702_vm4, %v682_v61  ;;  %v1357_v5 = vmul.f32 4.0, %v1325_v29 }
 0x2e1   :  { %5476 = vset.pattern.permute.xlu0 %v9386_v27  ;;  %v6603_v20 = vadd.f32 -0.5, %v1357_v5 }
 0x2e2   :  { %1880 = vperm.xlu0 %5476, %v6569_v28  }
 0x2e4   :  { %v6611_v8 = vpop.f32.mrb[20].mxu1 }
 0x2e5   :  { %1123 = vadd.xlane.f32.xlu1 %v1122_v6  ;;  %v6613_v50 = vpop.f32.mrb[21].mxu1 }
 0x2e6   :  { %5477 = vset.pattern.permute.xlu0 %v9384_v25 }
 0x2f6   :  { %1876 = vperm.xlu1 %5470, %v6532_v58   ;;  %v1294_v58 = vmul.f32 0.9, %v5735_v52 }
 0x2f8   :  { %v1326_v53 = vadd.f32 1.0, %v1294_v58  ;;  %v1054_v58 = vmul.f32 1.442695, %v941_v62 }
 0x2fa   :  { %5471 = vset.pattern.permute.xlu1 %v9384_v25  ;;  %v1358_v4 = vmul.f32 4.0, %v1326_v53 }
 0x2fb   :  { %1454 = vperm.xlu1 %5471, %v6539_v39   ;;  %v5328_v39 = vpop.f32.mrb[28].mxu0 }
 0x2fc   :  { %v6600_v22 = vadd.f32 -0.5, %v1358_v4  ;;  %v428_v10 = vmul.f32 %v5328_v39, %v5328_v39  ;;  %v380_v11 = vpop.f32.mrb[29].mxu0 }
 0x2fd   :  { %v427_v40 = vmul.f32 %v380_v11, %v380_v11 }
 0x2fe   :  { %v460_v49 = vmul.f32 %v5328_v39, %v428_v10 }
 0x2ff   :  { %5474 = vset.pattern.permute.xlu1 %v9386_v27  ;;  %v459_v18 = vmul.f32 %v427_v40, %v380_v11 }
 0x300   :  { %v492_v21 = vmul.f32 0.044715, %v460_v49 }
 0x301   :  { %1132 = vadd.xlane.f32.xlu0 %v1131_v0  ;;  %v491_v15 = vmul.f32 0.044715, %v459_v18 }
 0x302   :  { %v524_v57 = vadd.f32 %v5328_v39, %v492_v21 }
 0x303   :  { %v523_v33 = vadd.f32 %v491_v15, %v380_v11 }
 0x304   :  { %v556_v7 = vmul.f32 0.7978846, %v524_v57 }
 0x305   :  { %v555_v6 = vmul.f32 0.7978846, %v523_v33 }
 0x306   :  { %5740 = vtanh.f32 %v556_v7 }
 0x307   :  { %5742 = vtanh.f32 %v555_v6 }
 0x308   :  { %5744 = vpow2.f32 %v1056_v51  ;;  %v956_v51 = vadd.f32 %v6377_v38, %v6579_v43 }
 0x309   :  { %5746 = vtanh.f32 %v941_v62 }
 0x30a   :  { %5748 = vtanh.f32 %v6584_v16 }
 0x30b   :  { %5750 = vpow2.f32 %v1054_v58 }
 0x310   :  { %v5741_v12 = vpop.eup %5740 }
 0x311   :  { %v5743_v54 = vpop.eup %5742  ;;  %v620_v56 = vadd.f32 1.0, %v5741_v12 }
 0x312   :  { %v619_v59 = vadd.f32 1.0, %v5743_v54  ;;  %v6627_v45 = vpop.eup %5744  ;;  %v1060_v54 = vmul.f32 1.442695, %v956_v51 }
 0x313   :  { %v652_v26 = vmul.f32 0.5, %v620_v56  ;;  %9495 = vst [vmem:[#allocation9_spill] sm:$0xff] %v6627_v45  ;;  %v1137_v0 = vsel %vm1088_vm5, %v6627_v45, 0.0  ;;  %v5747_v47 = vpop.eup %5746 }
 0x314   :  { %v651_v60 = vmul.f32 0.5, %v619_v59  ;;  %v5749_v52 = vpop.eup %5748 }
 0x315   :  { %v684_v61 = vmul.f32 %v5328_v39, %v652_v26  ;;  %v1295_v2 = vmul.f32 0.9, %v5749_v52  ;;  %v6639_v18 = vpop.eup %5750 }
 0x316   :  { %v683_v34 = vmul.f32 %v651_v60, %v380_v11  ;;  %9496 = vst [vmem:[#allocation10_spill] sm:$0xff] %v6639_v18  ;;  %v1134_v33 = vsel %vm1088_vm5, %v6639_v18, 0.0 }
 0x317   :  { %1479 = vperm.xlu0 %5477, %v6600_v22   ;;  %v1327_v3 = vadd.f32 1.0, %v1295_v2 }
 0x318   :  { %5390 = vmatprep.mubr.msk.f32.mxu1 %vm702_vm4, %v683_v34 }
 0x319   :  { %5391 = vmatmul.mubr.msk.f32.gmra.mrb[28].mxu1 %vm702_vm4, %v684_v61  ;;  %v1359_v29 = vmul.f32 4.0, %v1327_v3 }
 0x31b   :  { %5480 = vset.pattern.permute.xlu0 %v9386_v27  ;;  %v6637_v40 = vadd.f32 -0.5, %v1359_v29 }
 0x31c   :  { %1888 = vperm.xlu0 %5480, %v6603_v20  }
 0x31f   :  { %1129 = vadd.xlane.f32.xlu1 %v1128_v37 }
 0x320   :  { %5481 = vset.pattern.permute.xlu0 %v9384_v25  ;;  %v6646_v6 = vpop.f32.mrb[22].mxu1 }
 0x321   :  { %v6650_v12 = vpop.f32.mrb[23].mxu1 }
 0x330   :  { %1884 = vperm.xlu1 %5474, %v6566_v63   ;;  %v1296_v63 = vmul.f32 0.9, %v5747_v47  ;;  %v951_v47 = vadd.f32 %v6543_v44, %v6377_v38 }
 0x332   :  { %v1328_v55 = vadd.f32 1.0, %v1296_v63  ;;  %v1058_v58 = vmul.f32 1.442695, %v951_v47 }
 0x334   :  { %5475 = vset.pattern.permute.xlu1 %v9384_v25  ;;  %v1360_v53 = vmul.f32 4.0, %v1328_v55 }
 0x335   :  { %1464 = vperm.xlu1 %5475, %v6569_v28   ;;  %v5331_v28 = vpop.f32.mrb[30].mxu0 }
 0x336   :  { %v6634_v4 = vadd.f32 -0.5, %v1360_v53  ;;  %v430_v39 = vmul.f32 %v5331_v28, %v5331_v28  ;;  %v390_v5 = vpop.f32.mrb[31].mxu0 }
 0x337   :  { %v429_v10 = vmul.f32 %v390_v5, %v390_v5 }
 0x338   :  { %v462_v16 = vmul.f32 %v5331_v28, %v430_v39 }
 0x339   :  { %5478 = vset.pattern.permute.xlu1 %v9386_v27  ;;  %v461_v11 = vmul.f32 %v429_v10, %v390_v5 }
 0x33a   :  { %v494_v49 = vmul.f32 0.044715, %v462_v16  ;;  %v966_v16 = vadd.f32 %v6377_v38, %v6613_v50 }
 0x33b   :  { %1138 = vadd.xlane.f32.xlu0 %v1137_v0  ;;  %v493_v21 = vmul.f32 0.044715, %v461_v11 }
 0x33c   :  { %v526_v15 = vadd.f32 %v5331_v28, %v494_v49  ;;  %v1064_v11 = vmul.f32 1.442695, %v966_v16  ;;  %v961_v49 = vadd.f32 %v6577_v41, %v6377_v38 }
 0x33d   :  { %v525_v57 = vadd.f32 %v493_v21, %v390_v5 }
 0x33e   :  { %v558_v37 = vmul.f32 0.7978846, %v526_v15 }
 0x33f   :  { %v557_v7 = vmul.f32 0.7978846, %v525_v57 }
 0x340   :  { %5752 = vtanh.f32 %v558_v37 }
 0x341   :  { %5754 = vtanh.f32 %v557_v7 }
 0x342   :  { %5756 = vpow2.f32 %v1060_v54 }
 0x343   :  { %5758 = vtanh.f32 %v951_v47 }
 0x344   :  { %5760 = vtanh.f32 %v6618_v42 }
 0x345   :  { %5762 = vpow2.f32 %v1058_v58 }
 0x346   :  { %5764 = vpow2.f32 %v1064_v11 }
 0x347   :  { %5766 = vtanh.f32 %v961_v49 }
 0x348   :  { %5768 = vtanh.f32 %v956_v51 }
 0x34a   :  { %v5753_v56 = vpop.eup %5752 }
 0x34b   :  { %v5755_v59 = vpop.eup %5754  ;;  %v622_v26 = vadd.f32 1.0, %v5753_v56 }
 0x34c   :  { %v621_v60 = vadd.f32 1.0, %v5755_v59  ;;  %v6658_v43 = vpop.eup %5756 }
 0x34d   :  { %v654_v61 = vmul.f32 0.5, %v622_v26  ;;  %9497 = vst [vmem:[#allocation11_spill] sm:$0xff] %v6658_v43  ;;  %v1143_v63 = vsel %vm1088_vm5, %v6658_v43, 0.0  ;;  %v5759_v44 = vpop.eup %5758 }
 0x34e   :  { %v653_v34 = vmul.f32 0.5, %v621_v60  ;;  %v5761_v52 = vpop.eup %5760 }
 0x34f   :  { %v686_v62 = vmul.f32 %v5331_v28, %v654_v61  ;;  %v1297_v2 = vmul.f32 0.9, %v5761_v52  ;;  %v6665_v39 = vpop.eup %5762  ;;  %v6700_v61 = vld [vmem:[%s9374_s3] ss:$0 sm:$0xff] }
 0x350   :  { %v685_v0 = vmul.f32 %v653_v34, %v390_v5  ;;  %9498 = vst [vmem:[#allocation12_spill] sm:$0xff] %v6665_v39  ;;  %v1140_v42 = vsel %vm1088_vm5, %v6665_v39, 0.0  ;;  %v6681_v21 = vpop.eup %5764  ;;  %v976_v34 = vadd.f32 %v6700_v61, %v6650_v12 }
 0x351   :  { %1489 = vperm.xlu0 %5481, %v6634_v4   ;;  %v1329_v3 = vadd.f32 1.0, %v1297_v2  ;;  %9499 = vst [vmem:[#allocation13_spill] sm:$0xff] %v6681_v21  ;;  %v1149_v15 = vsel %vm1088_vm5, %v6681_v21, 0.0  ;;  %v5767_v50 = vpop.eup %5766 }
 0x352   :  { %5393 = vmatprep.mubr.msk.f32.mxu1 %vm702_vm4, %v685_v0  ;;  %v1300_v57 = vmul.f32 0.9, %v5767_v50  ;;  %v971_v0 = vadd.f32 %v6700_v61, %v6611_v8  ;;  %v981_v50 = vadd.f32 %v6700_v61, %v6646_v6 }
 0x353   :  { %5394 = vmatmul.mubr.msk.f32.gmra.mrb[30].mxu1 %vm702_vm4, %v686_v62  ;;  %v1068_v62 = vmul.f32 1.442695, %v976_v34 }
 0x354   :  { %v1332_v37 = vadd.f32 1.0, %v1300_v57  ;;  %v1066_v52 = vmul.f32 1.442695, %v971_v0 }
 0x355   :  { %5484 = vset.pattern.permute.xlu0 %v9386_v27 }
 0x356   :  { %1896 = vperm.xlu0 %5484, %v6637_v40   ;;  %v1364_v41 = vmul.f32 4.0, %v1332_v37 }
 0x358   :  { %v5155_v54 = vadd.f32 -0.5, %v1364_v41  ;;  %v1070_v41 = vmul.f32 1.442695, %v981_v50 }
 0x359   :  { %1135 = vadd.xlane.f32.xlu1 %v1134_v33  ;;  %v1062_v33 = vmul.f32 1.442695, %v961_v49 }
 0x35a   :  { %5485 = vset.pattern.permute.xlu0 %v9384_v25 }
 0x35b   :  { %5770 = vpow2.f32 %v1062_v33 }
 0x35c   :  { %5772 = vpow2.f32 %v1068_v62 }
 0x35d   :  { %5774 = vtanh.f32 %v971_v0 }
 0x35e   :  { %5776 = vtanh.f32 %v966_v16 }
 0x35f   :  { %5778 = vpow2.f32 %v1066_v52 }
 0x362   :  { %v6670_v5 = vpop.f32.mrb[24].mxu1 }
 0x363   :  { %v6672_v10 = vpop.f32.mrb[25].mxu1 }
 0x364   :  { %v986_v11 = vadd.f32 %v6700_v61, %v6672_v10 }
 0x366   :  { %v1072_v49 = vmul.f32 1.442695, %v986_v11 }
 0x368   :  { %5780 = vpow2.f32 %v1072_v49 }
 0x369   :  { %5782 = vtanh.f32 %v981_v50 }
 0x36a   :  { %1892 = vperm.xlu1 %5478, %v6600_v22   ;;  %v1298_v22 = vmul.f32 0.9, %v5759_v44  ;;  %5784 = vtanh.f32 %v976_v34 }
 0x36b   :  { %5786 = vpow2.f32 %v1070_v41 }
 0x36c   :  { %v1330_v55 = vadd.f32 1.0, %v1298_v22 }
 0x36e   :  { %5479 = vset.pattern.permute.xlu1 %v9384_v25  ;;  %v1362_v53 = vmul.f32 4.0, %v1330_v55 }
 0x36f   :  { %1474 = vperm.xlu1 %5479, %v6603_v20   ;;  %v1361_v20 = vmul.f32 4.0, %v1329_v3 }
 0x370   :  { %v5153_v28 = vadd.f32 -0.5, %v1362_v53 }
 0x371   :  { %v5152_v29 = vadd.f32 -0.5, %v1361_v20 }
 0x373   :  { %5482 = vset.pattern.permute.xlu1 %v9386_v27 }
 0x375   :  { %1144 = vadd.xlane.f32.xlu0 %v1143_v63 }
 0x38b   :  { %1499 = vperm.xlu0 %5485, %v5153_v28  }
 0x38f   :  { %5488 = vset.pattern.permute.xlu0 %v9386_v27 }
 0x390   :  { %1904 = vperm.xlu0 %5488, %v5152_v29  }
 0x393   :  { %1141 = vadd.xlane.f32.xlu1 %v1140_v42 }
 0x394   :  { %5489 = vset.pattern.permute.xlu0 %v9384_v25 }
 0x3a4   :  { %1900 = vperm.xlu1 %5482, %v6634_v4   ;;  %v5769_v4 = vpop.eup %5768 }
 0x3a5   :  { %v1299_v38 = vmul.f32 0.9, %v5769_v4  ;;  %v6687_v59 = vpop.eup %5770 }
 0x3a6   :  { %9500 = vst [vmem:[#allocation14_spill] sm:$0xff] %v6687_v59  ;;  %v1146_v51 = vsel %vm1088_vm5, %v6687_v59, 0.0  ;;  %v6707_v47 = vpop.eup %5772 }
 0x3a7   :  { %v1331_v7 = vadd.f32 1.0, %v1299_v38  ;;  %9501 = vst [vmem:[#allocation15_spill] sm:$0xff] %v6707_v47  ;;  %v1155_v63 = vsel %vm1088_vm5, %v6707_v47, 0.0  ;;  %v5775_v12 = vpop.eup %5774 }
 0x3a8   :  { %5483 = vset.pattern.permute.xlu1 %v9384_v25  ;;  %v1302_v44 = vmul.f32 0.9, %v5775_v12  ;;  %v5777_v22 = vpop.eup %5776 }
 0x3a9   :  { %1484 = vperm.xlu1 %5483, %v6637_v40   ;;  %v1363_v56 = vmul.f32 4.0, %v1331_v7  ;;  %v1301_v55 = vmul.f32 0.9, %v5777_v22  ;;  %v6712_v20 = vpop.eup %5778 }
 0x3aa   :  { %v1334_v58 = vadd.f32 1.0, %v1302_v44  ;;  %9502 = vst [vmem:[#allocation16_spill] sm:$0xff] %v6712_v20  ;;  %v6729_v57 = vpop.eup %5780 }
 0x3ab   :  { %v5154_v40 = vadd.f32 -0.5, %v1363_v56  ;;  %v1333_v2 = vadd.f32 1.0, %v1301_v55  ;;  %9503 = vst [vmem:[#allocation17_spill] sm:$0xff] %v6729_v57  ;;  %v1161_v33 = vsel %vm1088_vm5, %v6729_v57, 0.0  ;;  %v5783_v10 = vpop.eup %5782  ;;  %v991_v55 = vadd.f32 %v6700_v61, %v6670_v5 }
 0x3ac   :  { %v1366_v8 = vmul.f32 4.0, %v1334_v58  ;;  %v1304_v37 = vmul.f32 0.9, %v5783_v10  ;;  %v5785_v38 = vpop.eup %5784 }
 0x3ad   :  { %5486 = vset.pattern.permute.xlu1 %v9386_v27  ;;  %v1365_v3 = vmul.f32 4.0, %v1333_v2  ;;  %v1303_v7 = vmul.f32 0.9, %v5785_v38  ;;  %v6736_v0 = vpop.eup %5786  ;;  %v1074_v49 = vmul.f32 1.442695, %v991_v55 }
 0x3ae   :  { %v5157_v53 = vadd.f32 -0.5, %v1366_v8  ;;  %v1336_v6 = vadd.f32 1.0, %v1304_v37  ;;  %9504 = vst [vmem:[#allocation18_spill] sm:$0xff] %v6736_v0  ;;  %v1158_v34 = vsel %vm1088_vm5, %v6736_v0, 0.0 }
 0x3af   :  { %1150 = vadd.xlane.f32.xlu0 %v1149_v15  ;;  %v6724_v15 = vpop.permute.xlu1 %4148  ;;  %v1335_v56 = vadd.f32 1.0, %v1303_v7 }
 0x3b1   :  { %v1367_v62 = vmul.f32 4.0, %v1335_v56 }
 0x3b2   :  { %v6692_v26 = vpop.f32.mrb[26].mxu1 }
 0x3b3   :  { %v6695_v60 = vpop.f32.mrb[27].mxu1  ;;  %v6731_v4 = vpop.permute.xlu1 %4150 }
 0x3b4   :  { %v996_v22 = vadd.f32 %v6700_v61, %v6695_v60  ;;  %v6762_v60 = vpop.permute.xlu0 %4146 }
 0x3b6   :  { %v1076_v52 = vmul.f32 1.442695, %v996_v22 }
 0x3b7   :  { %v6743_v12 = vpop.permute.xlu1 %4154 }
 0x3b8   :  { %5788 = vpow2.f32 %v1076_v52  ;;  %v6766_v38 = vpop.permute.xlu0 %4152  ;;  %v9382_v52 = vmov 0  }
 0x3b9   :  { %5790 = vtanh.f32 %v991_v55  ;;  %3312 = vmatprep.subr.bf16.mxu0 %v9382_v52  ;;  %5422 = vmatprep.subr.bf16.mxu1 %v9382_v52 }
 0x3ba   :  { %5792 = vtanh.f32 %v986_v11 }
 0x3bb   :  { %v6750_v58 = vpop.permute.xlu1 %4158  ;;  %5794 = vpow2.f32 %v1074_v49 }
 0x3bf   :  { %v6757_v2 = vpop.permute.xlu1 %4162 }
 0x3c0   :  { %9506 = vst [vmem:[#allocation20_spill] sm:$0xff] %v6757_v2 }
 0x3c2   :  { %v6755_v8 = vpop.eup %5788 }
 0x3c3   :  { %9505 = vst [vmem:[#allocation19_spill] sm:$0xff] %v6755_v8  ;;  %v6774_v7 = vpop.permute.xlu1 %4166 }
 0x3c4   :  { %9508 = vst [vmem:[#allocation22_spill] sm:$0xff] %v6774_v7 }
 0x3c5   :  { %1509 = vperm.xlu0 %5489, %v5155_v54  }
 0x3c9   :  { %5492 = vset.pattern.permute.xlu0 %v9386_v27 }
 0x3ca   :  { %1912 = vperm.xlu0 %5492, %v5154_v40  }
 0x3cd   :  { %1147 = vadd.xlane.f32.xlu1 %v1146_v51 }
 0x3ce   :  { %5493 = vset.pattern.permute.xlu0 %v9384_v25 }
 0x3de   :  { %1908 = vperm.xlu1 %5486, %v5153_v28   ;;  %v5156_v28 = vadd.f32 -0.5, %v1365_v3  ;;  %v1167_v3 = vsel %vm1088_vm5, %v6755_v8, 0.0 }
 0x3e2   :  { %5487 = vset.pattern.permute.xlu1 %v9384_v25 }
 0x3e3   :  { %1494 = vperm.xlu1 %5487, %v5152_v29   ;;  %v1152_v29 = vsel %vm1088_vm5, %v6712_v20, 0.0 }
 0x3e7   :  { %5490 = vset.pattern.permute.xlu1 %v9386_v27 }
 0x3e9   :  { %1156 = vadd.xlane.f32.xlu0 %v1155_v63 }
 0x3ec   :  { %v6717_v42 = vpop.f32.mrb[28].mxu1 }
 0x3ed   :  { %v6719_v16 = vpop.f32.mrb[29].mxu1 }
 0x3ff   :  { %1519 = vperm.xlu0 %5493, %v5157_v53  }
 0x403   :  { %5496 = vset.pattern.permute.xlu0 %v9386_v27 }
 0x404   :  { %1920 = vperm.xlu0 %5496, %v5156_v28  }
 0x407   :  { %1153 = vadd.xlane.f32.xlu1 %v1152_v29 }
 0x408   :  { %5497 = vset.pattern.permute.xlu0 %v9384_v25 }
 0x418   :  { %1916 = vperm.xlu1 %5490, %v5155_v54   ;;  %v1368_v54 = vmul.f32 4.0, %v1336_v6 }
 0x41a   :  { %v5159_v51 = vadd.f32 -0.5, %v1368_v54  ;;  %v6776_v54 = vpop.permute.xlu0 %4156 }
 0x41c   :  { %5491 = vset.pattern.permute.xlu1 %v9384_v25 }
 0x41d   :  { %1504 = vperm.xlu1 %5491, %v5154_v40   ;;  %v5158_v40 = vadd.f32 -0.5, %v1367_v62  ;;  %v6782_v62 = vpop.permute.xlu1 %4170 }
 0x41e   :  { %9509 = vst [vmem:[#allocation23_spill] sm:$0xff] %v6782_v62 }
 0x421   :  { %5494 = vset.pattern.permute.xlu1 %v9386_v27 }
 0x423   :  { %1162 = vadd.xlane.f32.xlu0 %v1161_v33 }
 0x426   :  { %v6741_v63 = vpop.f32.mrb[30].mxu1 }
 0x427   :  { %v6745_v44 = vpop.f32.mrb[31].mxu1 }
 0x439   :  { %1529 = vperm.xlu0 %5497, %v5159_v51  }
 0x43d   :  { %5500 = vset.pattern.permute.xlu0 %v9386_v27 }
 0x43e   :  { %1928 = vperm.xlu0 %5500, %v5158_v40  }
 0x441   :  { %1159 = vadd.xlane.f32.xlu1 %v1158_v34  ;;  %v6786_v34 = vadd.f32 %v6700_v61, %v6719_v16 }
 0x442   :  { %5501 = vset.pattern.permute.xlu0 %v9384_v25 }
 0x443   :  { %v1080_v55 = vmul.f32 1.442695, %v6786_v34 }
 0x445   :  { %5796 = vpow2.f32 %v1080_v55 }
 0x452   :  { %1924 = vperm.xlu1 %5494, %v5157_v53   ;;  %v5791_v53 = vpop.eup %5790 }
 0x453   :  { %v1306_v29 = vmul.f32 0.9, %v5791_v53  ;;  %v5793_v5 = vpop.eup %5792 }
 0x454   :  { %v1305_v33 = vmul.f32 0.9, %v5793_v5  ;;  %v6771_v11 = vpop.eup %5794 }
 0x455   :  { %v1338_v50 = vadd.f32 1.0, %v1306_v29  ;;  %9507 = vst [vmem:[#allocation21_spill] sm:$0xff] %v6771_v11  ;;  %v1164_v56 = vsel %vm1088_vm5, %v6771_v11, 0.0  ;;  %v1001_v29 = vadd.f32 %v6700_v61, %v6692_v26  ;;  %v6800_v16 = vpop.eup %5796 }
 0x456   :  { %5495 = vset.pattern.permute.xlu1 %v9384_v25  ;;  %v1337_v37 = vadd.f32 1.0, %v1305_v33  ;;  %9513 = vst [vmem:[#allocation27_spill] sm:$0xff] %v6800_v16  ;;  %v1173_v49 = vsel %vm1088_vm5, %v6800_v16, 0.0  ;;  %v6807_v33 = vpop.permute.xlu0 %4160 }
 0x457   :  { %1514 = vperm.xlu1 %5495, %v5156_v28   ;;  %v1370_v10 = vmul.f32 4.0, %v1338_v50  ;;  %5798 = vtanh.f32 %v1001_v29  ;;  %9515 = vst [vmem:[#allocation29_spill] sm:$0xff] %v6807_v33 }
 0x458   :  { %v1369_v41 = vmul.f32 4.0, %v1337_v37  ;;  %5800 = vtanh.f32 %v996_v22 }
 0x459   :  { %v6764_v28 = vadd.f32 -0.5, %v1370_v10 }
 0x45a   :  { %v6769_v6 = vadd.f32 -0.5, %v1369_v41  ;;  %v6811_v37 = vpop.permute.xlu0 %4164 }
 0x45b   :  { %5498 = vset.pattern.permute.xlu1 %v9386_v27  ;;  %9517 = vst [vmem:[#allocation31_spill] sm:$0xff] %v6811_v37 }
 0x45d   :  { %1168 = vadd.xlane.f32.xlu0 %v1167_v3  ;;  %v6791_v3 = vpop.permute.xlu1 %4174 }
 0x45e   :  { %9510 = vst [vmem:[#allocation24_spill] sm:$0xff] %v6791_v3 }
 0x461   :  { %v6793_v53 = vpop.permute.xlu1 %4178  ;;  %v5799_v26 = vpop.eup %5798 }
 0x462   :  { %9511 = vst [vmem:[#allocation25_spill] sm:$0xff] %v6793_v53  ;;  %v1308_v10 = vmul.f32 0.9, %v5799_v26  ;;  %v5801_v41 = vpop.eup %5800 }
 0x463   :  { %v1307_v52 = vmul.f32 0.9, %v5801_v41 }
 0x464   :  { %v1340_v55 = vadd.f32 1.0, %v1308_v10  ;;  %v9524_v10 = vmov 4  }
 0x465   :  { %v6797_v5 = vpop.permute.xlu1 %4182  ;;  %v1339_v22 = vadd.f32 1.0, %v1307_v52 }
 0x466   :  { %9512 = vst [vmem:[#allocation26_spill] sm:$0xff] %v6797_v5 }
 0x467   :  { %v1371_v26 = vmul.f32 4.0, %v1339_v22 }
 0x469   :  { %v6805_v50 = vpop.permute.xlu1 %4186 }
 0x46a   :  { %9514 = vst [vmem:[#allocation28_spill] sm:$0xff] %v6805_v50 }
 0x473   :  { %1539 = vperm.xlu0 %5501, %v6764_v28  }
 0x477   :  { %5504 = vset.pattern.permute.xlu0 %v9386_v27 }
 0x478   :  { %1936 = vperm.xlu0 %5504, %v6769_v6  }
 0x47b   :  { %1165 = vadd.xlane.f32.xlu1 %v1164_v56  ;;  %v1078_v56 = vmul.f32 1.442695, %v1001_v29 }
 0x47c   :  { %5505 = vset.pattern.permute.xlu0 %v9384_v25 }
 0x47d   :  { %5802 = vpow2.f32 %v1078_v56  ;;  %v9527_v56 = vmov 3  }
 0x487   :  { %v6828_v29 = vpop.eup %5802 }
 0x488   :  { %9523 = vst [vmem:[#allocation37_spill] sm:$0xff] %v6828_v29 }
 0x48c   :  { %1932 = vperm.xlu1 %5498, %v5159_v51   ;;  %v6809_v51 = vpop.permute.xlu1 %4190 }
 0x48d   :  { %9516 = vst [vmem:[#allocation30_spill] sm:$0xff] %v6809_v51 }
 0x490   :  { %5499 = vset.pattern.permute.xlu1 %v9384_v25  ;;  %v6815_v25 = vpop.permute.xlu0 %4168 }
 0x491   :  { %1524 = vperm.xlu1 %5499, %v5158_v40   ;;  %v6813_v40 = vpop.permute.xlu1 %4194  ;;  %9519 = vst [vmem:[#allocation33_spill] sm:$0xff] %v6815_v25 }
 0x492   :  { %9518 = vst [vmem:[#allocation32_spill] sm:$0xff] %v6813_v40  ;;  %v6826_v40 = vadd.f32 -0.5, %v1371_v26  ;;  %v1016_v26 = vadd.f32 %v6700_v61, %v6745_v44 }
 0x494   :  { %v6821_v8 = vpop.permute.xlu0 %4172 }
 0x495   :  { %5502 = vset.pattern.permute.xlu1 %v9386_v27  ;;  %v1372_v27 = vmul.f32 4.0, %v1340_v55  ;;  %v6817_v16 = vpop.permute.xlu1 %4198  ;;  %9521 = vst [vmem:[#allocation35_spill] sm:$0xff] %v6821_v8 }
 0x496   :  { %9520 = vst [vmem:[#allocation34_spill] sm:$0xff] %v6817_v16 }
 0x497   :  { %1174 = vadd.xlane.f32.xlu0 %v1173_v49  ;;  %v6819_v49 = vadd.f32 -0.5, %v1372_v27  ;;  %v1170_v27 = vsel %vm1088_vm5, %v6828_v29, 0.0 }
 0x498   :  { %v6831_v41 = vpop.permute.xlu0 %4176 }
 0x499   :  { %v6824_v57 = vpop.permute.xlu1 %4202  ;;  %9525 = vst [vmem:[#allocation38_spill] sm:$0xff] %v6831_v41 }
 0x49a   :  { %9522 = vst [vmem:[#allocation36_spill] sm:$0xff] %v6824_v57  ;;  %v1084_v57 = vmul.f32 1.442695, %v1016_v26 }
 0x49c   :  { %v6839_v55 = vpop.permute.xlu0 %4180  ;;  %5804 = vpow2.f32 %v1084_v57 }
 0x49d   :  { %v6834_v52 = vpop.permute.xlu1 %4206  ;;  %9528 = vst [vmem:[#allocation40_spill] sm:$0xff] %v6839_v55 }
 0x49e   :  { %9526 = vst [vmem:[#allocation39_spill] sm:$0xff] %v6834_v52 }
 0x4a0   :  { %v6845_v16 = vpop.permute.xlu0 %4184 }
 0x4a1   :  { %v6841_v22 = vpop.xlane.xlu1 %1099  ;;  %9529 = vst [vmem:[#allocation41_spill] sm:$0xff] %v6845_v16 }
 0x4a4   :  { %v6849_v52 = vpop.permute.xlu0 %4188 }
 0x4a5   :  { %v6847_v51 = vpop.xlane.xlu1 %1096  ;;  %9530 = vst [vmem:[#allocation42_spill] sm:$0xff] %v6849_v52 }
 0x4a6   :  { %v6861_v44 = vpop.eup %5804 }
 0x4a7   :  { %9532 = vst [vmem:[#allocation44_spill] sm:$0xff] %v6861_v44  ;;  %v1179_v52 = vsel %vm1088_vm5, %v6861_v44, 0.0 }
 0x4a8   :  { %v6856_v29 = vpop.permute.xlu0 %4192 }
 0x4a9   :  { %v6851_v11 = vpop.permute.xlu1 %1419  ;;  %9531 = vst [vmem:[#allocation43_spill] sm:$0xff] %v6856_v29 }
 0x4ad   :  { %1549 = vperm.xlu0 %5505, %v6819_v49   ;;  %v6858_v47 = vpop.permute.xlu1 %1840 }
 0x4b1   :  { %5508 = vset.pattern.permute.xlu0 %v9524_v10  ;;  %v6864_v57 = vpop.xlane.xlu1 %1105 }
 0x4b2   :  { %1944 = vperm.xlu0 %5508, %v6826_v40  }
 0x4b5   :  { %1171 = vadd.xlane.f32.xlu1 %v1170_v27  ;;  %v1011_v27 = vadd.f32 %v6700_v61, %v6717_v42  ;;  %v6873_v42 = vadd.f32 %v6700_v61, %v6741_v63  ;;  %v6876_v29 = vpop.permute.xlu1 %1429 }
 0x4b6   :  { %5509 = vset.pattern.permute.xlu0 %v9527_v56 }
 0x4b7   :  { %5806 = vtanh.f32 %v1011_v27  ;;  %v1082_v21 = vmul.f32 1.442695, %v1011_v27 }
 0x4b8   :  { %5808 = vtanh.f32 %v6786_v34 }
 0x4b9   :  { %5810 = vtanh.f32 %v6873_v42  ;;  %v6881_v44 = vpop.permute.xlu1 %1852 }
 0x4ba   :  { %5812 = vtanh.f32 %v1016_v26 }
 0x4bb   :  { %5814 = vpow2.f32 %v1082_v21 }
 0x4bd   :  { %v6885_v34 = vpop.permute.xlu1 %1424 }
 0x4c1   :  { %v6891_v41 = vpop.permute.xlu1 %1848 }
 0x4c5   :  { %v6894_v27 = vpop.xlane.xlu1 %1111 }
 0x4c6   :  { %1940 = vperm.xlu1 %5502, %v6764_v28   ;;  %v6869_v28 = vpop.permute.xlu0 %4196 }
 0x4c7   :  { %9533 = vst [vmem:[#allocation45_spill] sm:$0xff] %v6869_v28 }
 0x4ca   :  { %5503 = vset.pattern.permute.xlu1 %v9527_v56  ;;  %v6879_v16 = vpop.permute.xlu0 %4200 }
 0x4cb   :  { %1534 = vperm.xlu1 %5503, %v6769_v6   ;;  %v5807_v6 = vpop.eup %5806  ;;  %9534 = vst [vmem:[#allocation46_spill] sm:$0xff] %v6879_v16 }
 0x4cc   :  { %v1310_v50 = vmul.f32 0.9, %v5807_v6  ;;  %v5809_v0 = vpop.eup %5808 }
 0x4cd   :  { %v5811_v63 = vpop.eup %5810  ;;  %v1309_v55 = vmul.f32 0.9, %v5809_v0 }
 0x4ce   :  { %v6883_v28 = vpop.permute.xlu0 %4204  ;;  %v1342_v61 = vadd.f32 1.0, %v1310_v50  ;;  %v1312_v5 = vmul.f32 0.9, %v5811_v63  ;;  %v5813_v16 = vpop.eup %5812 }
 0x4cf   :  { %5506 = vset.pattern.permute.xlu1 %v9524_v10  ;;  %9535 = vst [vmem:[#allocation47_spill] sm:$0xff] %v6883_v28  ;;  %v1341_v43 = vadd.f32 1.0, %v1309_v55  ;;  %v1311_v28 = vmul.f32 0.9, %v5813_v16  ;;  %v6898_v63 = vpop.eup %5814 }
 0x4d0   :  { %v1344_v26 = vadd.f32 1.0, %v1312_v5  ;;  %9537 = vst [vmem:[#allocation49_spill] sm:$0xff] %v6898_v63  ;;  %v1176_v55 = vsel %vm1088_vm5, %v6898_v63, 0.0 }
 0x4d1   :  { %1180 = vadd.xlane.f32.xlu0 %v1179_v52  ;;  %v1374_v52 = vmul.f32 4.0, %v1342_v61  ;;  %v1373_v53 = vmul.f32 4.0, %v1341_v43  ;;  %v1343_v61 = vadd.f32 1.0, %v1311_v28 }
 0x4d2   :  { %v6887_v20 = vpop.permute.xlu0 %4208  ;;  %v1376_v0 = vmul.f32 4.0, %v1344_v26 }
 0x4d3   :  { %9536 = vst [vmem:[#allocation48_spill] sm:$0xff] %v6887_v20  ;;  %v6889_v6 = vadd.f32 -0.5, %v1374_v52  ;;  %v6896_v21 = vadd.f32 -0.5, %v1373_v53  ;;  %v1375_v16 = vmul.f32 4.0, %v1343_v61  ;;  %v6906_v52 = vpop.permute.xlu1 %1439 }
 0x4d4   :  { %v6902_v5 = vadd.f32 -0.5, %v1376_v0  ;;  %9538 = vst [vmem:[#allocation50_spill] sm:$0xff] %v6906_v52  ;;  %v9399_v0 = vmov 1  }
 0x4d5   :  { %v6910_v53 = vadd.f32 -0.5, %v1375_v16 }
 0x4d6   :  { %v1094_v50 = vpop.xlane.xlu0 %1093 }
 0x4d7   :  { %5816 = vrcp.f32 %v1094_v50  ;;  %v6913_v26 = vpop.permute.xlu1 %1860 }
 0x4d8   :  { %9539 = vst [vmem:[#allocation51_spill] sm:$0xff] %v6913_v26 }
 0x4da   :  { %v1091_v43 = vpop.xlane.xlu0 %1090 }
 0x4db   :  { %5818 = vrcp.f32 %v1091_v43  ;;  %v6921_v43 = vpop.permute.xlu1 %1434 }
 0x4dc   :  { %9540 = vst [vmem:[#allocation52_spill] sm:$0xff] %v6921_v43 }
 0x4df   :  { %v6927_v20 = vpop.xlane.xlu1 %1117 }
 0x4e1   :  { %v5817_v28 = vpop.eup %5816 }
 0x4e2   :  { %v6917_v50 = vmul.f32 %v5817_v28, %v6395_v24  ;;  %v6931_v24 = vpop.permute.xlu0 %1844  ;;  %v9403_v28 = vmov 2  }
 0x4e4   :  { %v4243_v39 = vmul.f32 %v6724_v15, %v6917_v50 }
 0x4e5   :  { %v5819_v61 = vpop.eup %5818 }
 0x4e6   :  { %v6924_v16 = vmul.f32 %v5819_v61, %v6401_v30  ;;  %v6937_v30 = vpop.permute.xlu1 %1449  ;;  %v4277_v62 = vsel %vm1088_vm5, %v4243_v39, 0.0 }
 0x4e7   :  { %1559 = vperm.xlu0 %5509, %v6889_v6   ;;  %9542 = vst [vmem:[#allocation53_spill] sm:$0xff] %v6937_v30 }
 0x4ea   :  { %v6943_v61 = vpop.permute.xlu1 %1868 }
 0x4eb   :  { %5512 = vset.pattern.permute.xlu0 %v9524_v10  ;;  %9543 = vst [vmem:[#allocation54_spill] sm:$0xff] %v6943_v61 }
 0x4ec   :  { %1952 = vperm.xlu0 %5512, %v6896_v21  }
 0x4ee   :  { %v6947_v63 = vpop.permute.xlu1 %1444 }
 0x4ef   :  { %1177 = vadd.xlane.f32.xlu1 %v1176_v55  ;;  %v9541_v55 = vmov 0   ;;  %9544 = vst [vmem:[#allocation55_spill] sm:$0xff] %v6947_v63 }
 0x4f0   :  { %5513 = vset.pattern.permute.xlu0 %v9527_v56 }
 0x4f1   :  { %1569 = vperm.xlu0 %5513, %v6902_v5  }
 0x4f5   :  { %5516 = vset.pattern.permute.xlu0 %v9524_v10 }
 0x4f6   :  { %1960 = vperm.xlu0 %5516, %v6910_v53  }
 0x4fa   :  { %5518 = vset.pattern.permute.xlu0 %v9399_v0 }
 0x4fb   :  { %2541 = vperm.xlu0 %5518, %v6917_v50  }
 0x4ff   :  { %5520 = vset.pattern.permute.xlu0 %v9541_v55 }
 0x500   :  { %1948 = vperm.xlu1 %5506, %v6819_v49   ;;  %2301 = vperm.xlu0 %5520, %v6924_v16   ;;  %v6941_v49 = vpop.permute.xlu0 %1414 }
 0x504   :  { %5507 = vset.pattern.permute.xlu1 %v9527_v56  ;;  %5522 = vset.pattern.permute.xlu0 %v9403_v28  ;;  %v6945_v0 = vpop.xlane.xlu0 %1102  ;;  %v6951_v28 = vpop.xlane.xlu1 %1123 }
 0x505   :  { %1544 = vperm.xlu1 %5507, %v6826_v40   ;;  %2806 = vperm.xlu0 %5522, %v6924_v16   ;;  %v1086_v40 = vmul.f32 1.442695, %v6873_v42 }
 0x507   :  { %5820 = vpow2.f32 %v1086_v40 }
 0x508   :  { %v6949_v59 = vpop.xlane.xlu0 %1108  ;;  %v6958_v3 = vpop.permute.xlu1 %1876  ;;  %5822 = vrcp.f32 %v6841_v22 }
 0x509   :  { %5510 = vset.pattern.permute.xlu1 %v9524_v10  ;;  %5523 = vset.pattern.permute.xlu0 %v9541_v55  ;;  %9546 = vst [vmem:[#allocation57_spill] sm:$0xff] %v6958_v3  ;;  %5824 = vrcp.f32 %v6864_v57 }
 0x50a   :  { %5826 = vrcp.f32 %v6847_v51 }
 0x50b   :  { %5828 = vrcp.f32 %v6945_v0 }
 0x50c   :  { %v6954_v45 = vpop.permute.xlu0 %1856  ;;  %v6964_v25 = vpop.permute.xlu1 %1454  ;;  %5830 = vrcp.f32 %v6894_v27 }
 0x50d   :  { %9545 = vst [vmem:[#allocation56_spill] sm:$0xff] %v6954_v45  ;;  %9548 = vst [vmem:[#allocation59_spill] sm:$0xff] %v6964_v25  ;;  %5832 = vrcp.f32 %v6949_v59 }
 0x50e   :  { %5834 = vrcp.f32 %v6927_v20 }
 0x510   :  { %v6956_v8 = vpop.xlane.xlu0 %1114  ;;  %v6971_v63 = vpop.xlane.xlu1 %1129 }
 0x511   :  { %v6969_v42 = vpop.eup %5820  ;;  %9551 = vst [vmem:[#allocation62_spill] sm:$0xff] %v6971_v63  ;;  %5836 = vrcp.f32 %v6956_v8 }
 0x512   :  { %9550 = vst [vmem:[#allocation61_spill] sm:$0xff] %v6969_v42  ;;  %v1182_v3 = vsel %vm1088_vm5, %v6969_v42, 0.0  ;;  %v5615_v42 = vld [vmem:[%s9377_s6 + $0x8] sm:$0xff]   ;;  %5838 = vrcp.f32 %v6951_v28 }
 0x514   :  { %v6962_v48 = vpop.permute.xlu0 %1864  ;;  %v6978_v15 = vpop.permute.xlu1 %1884 }
 0x515   :  { %9547 = vst [vmem:[#allocation58_spill] sm:$0xff] %v6962_v48  ;;  %9553 = vst [vmem:[#allocation64_spill] sm:$0xff] %v6978_v15 }
 0x518   :  { %v6967_v30 = vpop.xlane.xlu0 %1120  ;;  %v6984_v61 = vpop.permute.xlu1 %1464 }
 0x519   :  { %9549 = vst [vmem:[#allocation60_spill] sm:$0xff] %v6967_v30  ;;  %9556 = vst [vmem:[#allocation67_spill] sm:$0xff] %v6984_v61 }
 0x51c   :  { %v6973_v40 = vpop.permute.xlu0 %1459  ;;  %v6993_v22 = vpop.xlane.xlu1 %1135 }
 0x51d   :  { %9552 = vst [vmem:[#allocation63_spill] sm:$0xff] %v6973_v40  ;;  %v5823_v40 = vpop.eup %5822  ;;  %9558 = vst [vmem:[#allocation69_spill] sm:$0xff] %v6993_v22 }
 0x51e   :  { %v6999_v61 = vmul.f32 %v5823_v40, %v6405_v32 }
 0x520   :  { %v6980_v25 = vpop.permute.xlu0 %1872  ;;  %v7007_v15 = vpop.permute.xlu1 %1892 }
 0x521   :  { %9554 = vst [vmem:[#allocation65_spill] sm:$0xff] %v6980_v25  ;;  %9560 = vst [vmem:[#allocation71_spill] sm:$0xff] %v7007_v15 }
 0x524   :  { %4278 = vadd.xlane.f32.xlu0 %v4277_v62  ;;  %v6982_v39 = vpop.xlane.xlu0 %1126  ;;  %v5614_v62 = vld [vmem:[%s9377_s6] sm:$0xff]  }
 0x525   :  { %9555 = vst [vmem:[#allocation66_spill] sm:$0xff] %v6982_v39  ;;  %3313 = vmatpush1.bf16.msra.mxu0 %v5614_v62  ;;  %5434 = vmatpush1.bf16.msra.mxu1 %v5614_v62 }
 0x526   :  { %3314 = vmatprep.subr.bf16.mxu0 %v9541_v55  ;;  %5423 = vmatprep.subr.bf16.mxu1 %v9541_v55 }
 0x529   :  { %1183 = vadd.xlane.f32.xlu1 %v1182_v3  ;;  %v6991_v3 = vpop.permute.xlu0 %1469  ;;  %3315 = vmatpush1.bf16.msra.mxu0 %v5615_v42 }
 0x52a   :  { %9557 = vst [vmem:[#allocation68_spill] sm:$0xff] %v6991_v3  ;;  %5435 = vmatpush1.bf16.msra.mxu1 %v5615_v42  ;;  %3316 = vmatprep.subr.bf16.mxu0 %v9541_v55  ;;  %v9561_v3 = vmov 2   ;;  %v5616_v42 = vld [vmem:[%s9377_s6 + $0x10] sm:$0xff]  }
 0x52b   :  { %5424 = vmatprep.subr.bf16.mxu1 %v9541_v55 }
 0x52d   :  { %v7005_v62 = vpop.permute.xlu0 %1880  ;;  %3317 = vmatpush1.bf16.msra.mxu0 %v5616_v42 }
 0x52e   :  { %9559 = vst [vmem:[#allocation70_spill] sm:$0xff] %v7005_v62  ;;  %5436 = vmatpush1.bf16.msra.mxu1 %v5616_v42  ;;  %3318 = vmatprep.subr.bf16.mxu0 %v9541_v55  ;;  %v5618_v42 = vld [vmem:[%s9377_s6 + $0x20] sm:$0xff]  }
 0x52f   :  { %5425 = vmatprep.subr.bf16.mxu1 %v9541_v55  ;;  %v5622_v62 = vld [vmem:[%s9377_s6 + $0x40] sm:$0xff]  }
 0x531   :  { %v7013_v32 = vpop.xlane.xlu0 %1132 }
 0x532   :  { %9562 = vst [vmem:[#allocation72_spill] sm:$0xff] %v7013_v32 }
 0x535   :  { %v7022_v40 = vpop.permute.xlu0 %1479 }
 0x536   :  { %9564 = vst [vmem:[#allocation74_spill] sm:$0xff] %v7022_v40 }
 0x53a   :  { %1956 = vperm.xlu1 %5510, %v6889_v6   ;;  %2316 = vperm.xlu0 %5523, %v6999_v61   ;;  %v7015_v6 = vpop.permute.xlu1 %1474 }
 0x53b   :  { %9563 = vst [vmem:[#allocation73_spill] sm:$0xff] %v7015_v6  ;;  %v7034_v6 = vpop.permute.xlu0 %1888 }
 0x53c   :  { %9566 = vst [vmem:[#allocation76_spill] sm:$0xff] %v7034_v6 }
 0x53e   :  { %5511 = vset.pattern.permute.xlu1 %v9527_v56  ;;  %5524 = vset.pattern.permute.xlu0 %v9561_v3 }
 0x53f   :  { %1554 = vperm.xlu1 %5511, %v6896_v21   ;;  %2818 = vperm.xlu0 %5524, %v6999_v61   ;;  %v7025_v21 = vpop.xlane.xlu1 %1141  ;;  %v7044_v15 = vpop.xlane.xlu0 %1138 }
 0x540   :  { %9565 = vst [vmem:[#allocation75_spill] sm:$0xff] %v7025_v21  ;;  %9568 = vst [vmem:[#allocation78_spill] sm:$0xff] %v7044_v15  ;;  %v5623_v15 = vld [vmem:[%s9377_s6 + $0x48] sm:$0xff]  }
 0x543   :  { %5514 = vset.pattern.permute.xlu1 %v9524_v10  ;;  %5528 = vset.pattern.permute.xlu0 %v9541_v55  ;;  %v5617_v10 = vld [vmem:[%s9377_s6 + $0x18] sm:$0xff]  }
 0x544   :  { %1964 = vperm.xlu1 %5514, %v6902_v5   ;;  %3319 = vmatpush1.bf16.msra.mxu0 %v5617_v10  ;;  %v7038_v5 = vpop.permute.xlu1 %1900 }
 0x545   :  { %3320 = vmatprep.subr.bf16.mxu0 %v9541_v55  ;;  %5437 = vmatpush1.bf16.msra.mxu1 %v5617_v10  ;;  %9567 = vst [vmem:[#allocation77_spill] sm:$0xff] %v7038_v5  ;;  %v5620_v5 = vld [vmem:[%s9377_s6 + $0x30] sm:$0xff]  }
 0x546   :  { %5426 = vmatprep.subr.bf16.mxu1 %v9541_v55 }
 0x548   :  { %5515 = vset.pattern.permute.xlu1 %v9527_v56  ;;  %3321 = vmatpush1.bf16.msra.mxu0 %v5618_v42  ;;  %v5619_v56 = vld [vmem:[%s9377_s6 + $0x28] sm:$0xff]   ;;  %v7054_v10 = vpop.permute.xlu1 %1484 }
 0x549   :  { %1564 = vperm.xlu1 %5515, %v6910_v53   ;;  %3322 = vmatprep.subr.bf16.mxu0 %v9541_v55  ;;  %v7052_v53 = vpop.permute.xlu0 %1489  ;;  %9570 = vst [vmem:[#allocation80_spill] sm:$0xff] %v7054_v10  ;;  %v5621_v10 = vld [vmem:[%s9377_s6 + $0x38] sm:$0xff]  }
 0x54a   :  { %5438 = vmatpush1.bf16.msra.mxu1 %v5618_v42  ;;  %9569 = vst [vmem:[#allocation79_spill] sm:$0xff] %v7052_v53  ;;  %v9572_v53 = vmov 1  }
 0x54b   :  { %5427 = vmatprep.subr.bf16.mxu1 %v9541_v55 }
 0x54c   :  { %3323 = vmatpush1.bf16.msra.mxu0 %v5619_v56  ;;  %v7063_v42 = vpop.xlane.xlu1 %1147 }
 0x54d   :  { %5517 = vset.pattern.permute.xlu1 %v9541_v55  ;;  %3324 = vmatprep.subr.bf16.mxu0 %v9541_v55  ;;  %9571 = vst [vmem:[#allocation81_spill] sm:$0xff] %v7063_v42  ;;  %v7070_v6 = vpop.permute.xlu0 %1896 }
 0x54e   :  { %2306 = vperm.xlu1 %5517, %v6917_v50   ;;  %5439 = vmatpush1.bf16.msra.mxu1 %v5619_v56  ;;  %9573 = vst [vmem:[#allocation82_spill] sm:$0xff] %v7070_v6  ;;  %v5883_v56 = vld [vmem:[%s9378_s7] sm:$0xff] }
 0x54f   :  { %5428 = vmatprep.subr.bf16.mxu1 %v9541_v55  ;;  %v3698_v40 = vmul.f32 %v5883_v56, %v6924_v16 }
 0x550   :  { %3325 = vmatpush1.bf16.msra.mxu0 %v5620_v5  ;;  %v7084_v6 = vpop.permute.xlu1 %1908 }
 0x551   :  { %3326 = vmatprep.subr.bf16.mxu0 %v9541_v55  ;;  %v7082_v42 = vpop.xlane.xlu0 %1144  ;;  %9575 = vst [vmem:[#allocation84_spill] sm:$0xff] %v7084_v6 }
 0x552   :  { %5519 = vset.pattern.permute.xlu1 %v9561_v3  ;;  %5440 = vmatpush1.bf16.msra.mxu1 %v5620_v5  ;;  %9574 = vst [vmem:[#allocation83_spill] sm:$0xff] %v7082_v42  ;;  %v3730_v5 = vsel %vm1088_vm5, %v3698_v40, 0.0  ;;  %v5624_v40 = vld [vmem:[%s9377_s6 + $0x50] sm:$0xff]  }
 0x553   :  { %2810 = vperm.xlu1 %5519, %v6917_v50   ;;  %5429 = vmatprep.subr.bf16.mxu1 %v9541_v55 }
 0x554   :  { %3327 = vmatpush1.bf16.msra.mxu0 %v5621_v10  ;;  %v7095_v42 = vpop.permute.xlu1 %1494 }
 0x555   :  { %3328 = vmatprep.subr.bf16.mxu0 %v9541_v55  ;;  %v7089_v56 = vpop.permute.xlu0 %1499  ;;  %9577 = vst [vmem:[#allocation86_spill] sm:$0xff] %v7095_v42 }
 0x556   :  { %5441 = vmatpush1.bf16.msra.mxu1 %v5621_v10  ;;  %9576 = vst [vmem:[#allocation85_spill] sm:$0xff] %v7089_v56 }
 0x557   :  { %5521 = vset.pattern.permute.xlu1 %v9572_v53  ;;  %5430 = vmatprep.subr.bf16.mxu1 %v9541_v55 }
 0x558   :  { %2537 = vperm.xlu1 %5521, %v6924_v16   ;;  %3329 = vmatpush1.bf16.msra.mxu0 %v5622_v62 }
 0x559   :  { %3330 = vmatprep.subr.bf16.mxu0 %v9541_v55  ;;  %v7103_v10 = vpop.permute.xlu0 %1904 }
 0x55a   :  { %5442 = vmatpush1.bf16.msra.mxu1 %v5622_v62  ;;  %9578 = vst [vmem:[#allocation87_spill] sm:$0xff] %v7103_v10  ;;  %v5625_v62 = vld [vmem:[%s9377_s6 + $0x58] sm:$0xff]   ;;  %v5825_v10 = vpop.eup %5824 }
 0x55b   :  { %5431 = vmatprep.subr.bf16.mxu1 %v9541_v55  ;;  %v7121_v56 = vmul.f32 %v5825_v10, %v6450_v17 }
 0x55c   :  { %3331 = vmatpush1.bf16.msra.mxu0 %v5623_v15 }
 0x55d   :  { %3332 = vmatprep.subr.bf16.mxu0 %v9541_v55  ;;  %v7112_v42 = vpop.xlane.xlu0 %1150 }
 0x55e   :  { %3731 = vadd.xlane.f32.xlu0 %v3730_v5  ;;  %5443 = vmatpush1.bf16.msra.mxu1 %v5623_v15  ;;  %v7105_v5 = vpop.xlane.xlu1 %1153  ;;  %9580 = vst [vmem:[#allocation89_spill] sm:$0xff] %v7112_v42  ;;  %v5884_v42 = vld [vmem:[%s9378_s7 + $0x8] sm:$0xff] }
 0x55f   :  { %5432 = vmatprep.subr.bf16.mxu1 %v9541_v55  ;;  %9579 = vst [vmem:[#allocation88_spill] sm:$0xff] %v7105_v5 }
 0x560   :  { %3333 = vmatpush1.bf16.msra.mxu0 %v5624_v40 }
 0x561   :  { %3334 = vmatprep.subr.bf16.mxu0 %v9541_v55  ;;  %v7116_v15 = vpop.permute.xlu0 %1509 }
 0x562   :  { %5444 = vmatpush1.bf16.msra.mxu1 %v5624_v40  ;;  %v7114_v57 = vpop.permute.xlu1 %1916  ;;  %9582 = vst [vmem:[#allocation91_spill] sm:$0xff] %v7116_v15 }
 0x563   :  { %5433 = vmatprep.subr.bf16.mxu1 %v9541_v55  ;;  %9581 = vst [vmem:[#allocation90_spill] sm:$0xff] %v7114_v57 }
 0x564   :  { %3335 = vmatpush1.bf16.msra.mxu0 %v5625_v62 }
 0x565   :  { %v7123_v5 = vpop.permute.xlu0 %1912 }
 0x566   :  { %5445 = vmatpush1.bf16.msra.mxu1 %v5625_v62  ;;  %v7118_v6 = vpop.permute.xlu1 %1504  ;;  %9584 = vst [vmem:[#allocation93_spill] sm:$0xff] %v7123_v5  ;;  %v3699_v62 = vmul.f32 %v5884_v42, %v6917_v50 }
 0x567   :  { %9583 = vst [vmem:[#allocation92_spill] sm:$0xff] %v7118_v6 }
 0x568   :  { %v3733_v17 = vsel %vm1088_vm5, %v3699_v62, 0.0  ;;  %v5827_v62 = vpop.eup %5826 }
 0x569   :  { %v7132_v57 = vpop.xlane.xlu0 %1156 }
 0x56a   :  { %v7126_v40 = vpop.xlane.xlu1 %1159  ;;  %9586 = vst [vmem:[#allocation95_spill] sm:$0xff] %v7132_v57 }
 0x56b   :  { %9585 = vst [vmem:[#allocation94_spill] sm:$0xff] %v7126_v40 }
 0x56d   :  { %v7137_v10 = vpop.permute.xlu0 %1519 }
 0x56e   :  { %9587 = vst [vmem:[#allocation96_spill] sm:$0xff] %v7137_v10  ;;  %v7139_v5 = vpop.permute.xlu1 %1924 }
 0x56f   :  { %9588 = vst [vmem:[#allocation97_spill] sm:$0xff] %v7139_v5 }
 0x571   :  { %v7143_v6 = vpop.permute.xlu0 %1920 }
 0x572   :  { %9589 = vst [vmem:[#allocation98_spill] sm:$0xff] %v7143_v6  ;;  %v7145_v50 = vpop.permute.xlu1 %1514  ;;  %v5885_v6 = vld [vmem:[%s9378_s7 + $0x10] sm:$0xff] }
 0x573   :  { %9590 = vst [vmem:[#allocation99_spill] sm:$0xff] %v7145_v50 }
 0x574   :  { %2326 = vperm.xlu0 %5528, %v7121_v56  }
 0x575   :  { %v7147_v42 = vpop.xlane.xlu0 %1162 }
 0x576   :  { %9591 = vst [vmem:[#allocation100_spill] sm:$0xff] %v7147_v42  ;;  %v7149_v15 = vpop.xlane.xlu1 %1165 }
 0x577   :  { %9592 = vst [vmem:[#allocation101_spill] sm:$0xff] %v7149_v15 }
 0x578   :  { %5530 = vset.pattern.permute.xlu0 %v9561_v3 }
 0x579   :  { %2826 = vperm.xlu0 %5530, %v7121_v56   ;;  %v7151_v57 = vpop.permute.xlu0 %1529 }
 0x57a   :  { %9593 = vst [vmem:[#allocation102_spill] sm:$0xff] %v7151_v57  ;;  %v7153_v40 = vpop.permute.xlu1 %1932 }
 0x57b   :  { %9594 = vst [vmem:[#allocation103_spill] sm:$0xff] %v7153_v40 }
 0x57c   :  { %3734 = vadd.xlane.f32.xlu1 %v3733_v17  ;;  %v7157_v17 = vmul.f32 %v5827_v62, %v6411_v36 }
 0x57d   :  { %5532 = vset.pattern.permute.xlu0 %v9572_v53  ;;  %v7159_v5 = vpop.permute.xlu0 %1928 }
 0x57e   :  { %9595 = vst [vmem:[#allocation104_spill] sm:$0xff] %v7159_v5  ;;  %v7162_v51 = vpop.permute.xlu1 %1524  ;;  %v3700_v57 = vmul.f32 %v5885_v6, %v7157_v17  ;;  %v4244_v36 = vmul.f32 %v6731_v4, %v7157_v17 }
 0x57f   :  { %9596 = vst [vmem:[#allocation105_spill] sm:$0xff] %v7162_v51 }
 0x580   :  { %v3736_v10 = vsel %vm1088_vm5, %v3700_v57, 0.0  ;;  %v4280_v5 = vsel %vm1088_vm5, %v4244_v36, 0.0  ;;  %v5829_v36 = vpop.eup %5828 }
 0x581   :  { %v7168_v50 = vpop.xlane.xlu0 %1168  ;;  %v7202_v0 = vmul.f32 %v5829_v36, %v6444_v13 }
 0x582   :  { %9597 = vst [vmem:[#allocation106_spill] sm:$0xff] %v7168_v50  ;;  %v7170_v40 = vpop.xlane.xlu1 %1171 }
 0x583   :  { %9598 = vst [vmem:[#allocation107_spill] sm:$0xff] %v7170_v40 }
 0x585   :  { %v7175_v62 = vpop.permute.xlu0 %1539 }
 0x586   :  { %9599 = vst [vmem:[#allocation108_spill] sm:$0xff] %v7175_v62  ;;  %v7178_v51 = vpop.permute.xlu1 %1940 }
 0x587   :  { %9600 = vst [vmem:[#allocation109_spill] sm:$0xff] %v7178_v51 }
 0x589   :  { %v7180_v42 = vpop.permute.xlu0 %1936 }
 0x58a   :  { %9601 = vst [vmem:[#allocation110_spill] sm:$0xff] %v7180_v42  ;;  %v7184_v50 = vpop.permute.xlu1 %1534 }
 0x58b   :  { %9603 = vst [vmem:[#allocation112_spill] sm:$0xff] %v7184_v50 }
 0x58d   :  { %2549 = vperm.xlu1 %5521, %v6999_v61   ;;  %v7182_v6 = vpop.xlane.xlu0 %1174 }
 0x58e   :  { %9602 = vst [vmem:[#allocation111_spill] sm:$0xff] %v7182_v6  ;;  %v7189_v40 = vpop.xlane.xlu1 %1177 }
 0x58f   :  { %9605 = vst [vmem:[#allocation114_spill] sm:$0xff] %v7189_v40 }
 0x591   :  { %5525 = vset.pattern.permute.xlu1 %v9541_v55  ;;  %v7187_v57 = vpop.permute.xlu0 %1549 }
 0x592   :  { %9604 = vst [vmem:[#allocation113_spill] sm:$0xff] %v7187_v57  ;;  %v5831_v57 = vpop.eup %5830 }
 0x595   :  { %v7192_v4 = vpop.permute.xlu0 %1944 }
 0x596   :  { %9606 = vst [vmem:[#allocation115_spill] sm:$0xff] %v7192_v4  ;;  %v7210_v4 = vmul.f32 %v5831_v57, %v6494_v19  ;;  %v5168_v57 = vld [vmem:[%s9375_s4 + $0x1] ss:$2 sm:$0x3] }
 0x598   :  { %3737 = vadd.xlane.f32.xlu0 %v3736_v10  ;;  %v7194_v10 = vpop.permute.xlu1 %1948  ;;  %9611 = vst [vmem:[#allocation120_spill] sm:$0xff] %v7210_v4 }
 0x599   :  { %9607 = vst [vmem:[#allocation116_spill] sm:$0xff] %v7194_v10  ;;  %v7198_v42 = vpop.xlane.xlu0 %1180  ;;  %v9449_v10 = vlaneseq }
 0x59a   :  { %9608 = vst [vmem:[#allocation117_spill] sm:$0xff] %v7198_v42 }
 0x59b   :  { %v7217_v13 = vshrl.u32 %v9449_v10, 7 }
 0x59c   :  { %4281 = vadd.xlane.f32.xlu0 %v4280_v5  ;;  %v4242_v5 = vmul.f32 %v6762_v60, %v6924_v16  ;;  %v7204_v51 = vpop.permute.xlu1 %1544 }
 0x59d   :  { %9609 = vst [vmem:[#allocation118_spill] sm:$0xff] %v7204_v51  ;;  %v7207_v27 = vpop.permute.xlu0 %1559  ;;  %9613 = vst [vmem:[#allocation122_spill] sm:$0xff] %v7217_v13  ;;  %v1575_v19 = vsub.s32 0, %v7217_v13 }
 0x59e   :  { %v4274_v50 = vsel %vm1088_vm5, %v4242_v5, 0.0  ;;  %9610 = vst [vmem:[#allocation119_spill] sm:$0xff] %v7207_v27  ;;  %v1579_v5 = vsub.s32 1, %v7217_v13 }
 0x5a0   :  { %v7240_v27 = vrot.slane %v5168_v57, %v1579_v5 }
 0x5a1   :  { %v7219_v16 = vpop.permute.xlu0 %1952 }
 0x5a2   :  { %9614 = vst [vmem:[#allocation123_spill] sm:$0xff] %v7219_v16  ;;  %v1409_v16 = vld [vmem:[%s9375_s4] ss:$2 sm:$0x3]  ;;  %v1981_v42 = vsub.f32 %v6931_v24, %v7240_v27  ;;  %v1979_v6 = vsub.f32 %v6858_v47, %v7240_v27 }
 0x5a3   :  { %v7242_v51 = vrot.slane %v1409_v16, %v1575_v19  ;;  %v7247_v13 = vrot.slane %v1409_v16, %v1579_v5 }
 0x5a4   :  { %v2043_v32 = vand.u32 2147483647, %v1979_v6 }
 0x5a5   :  { %v7230_v36 = vpop.permute.xlu0 %1569  ;;  %v1583_v15 = vsub.f32 %v6941_v49, %v7242_v51  ;;  %v1584_v25 = vsub.f32 %v6941_v49, %v7247_v13  ;;  %v2298_v49 = vld [vmem:[%s9376_s5] ss:$4 sm:$0x3] }
 0x5a6   :  { %9616 = vst [vmem:[#allocation125_spill] sm:$0xff] %v7230_v36  ;;  %v2107_v6 = vsub.f32 1.0, %v2043_v32 }
 0x5a8   :  { %v2171_v45 = vmax.f32 %v2107_v6, 0.0 }
 0x5a9   :  { %v7249_v36 = vpop.permute.xlu0 %1960 }
 0x5aa   :  { %9619 = vst [vmem:[#allocation128_spill] sm:$0xff] %v7249_v36 }
 0x5ad   :  { %v2542_v21 = vpop.permute.xlu0 %2541 }
 0x5b1   :  { %4275 = vadd.xlane.f32.xlu1 %v4274_v50 }
 0x5b2   :  { %2553 = vperm.xlu0 %5532, %v7202_v0  }
 0x5b6   :  { %v7212_v60 = vpop.xlane.xlu1 %1183  ;;  %5534 = vset.pattern.permute.xlu0 %v9541_v55 }
 0x5b7   :  { %9612 = vst [vmem:[#allocation121_spill] sm:$0xff] %v7212_v60  ;;  %2336 = vperm.xlu0 %5534, %v7210_v4  }
 0x5ba   :  { %v7221_v50 = vpop.permute.xlu1 %1956 }
 0x5bb   :  { %9615 = vst [vmem:[#allocation124_spill] sm:$0xff] %v7221_v50  ;;  %5536 = vset.pattern.permute.xlu0 %v9561_v3  ;;  %v7238_v50 = vrot.slane %v5168_v57, %v1575_v19  ;;  %v1585_v57 = vsub.f32 %v6851_v11, %v7242_v51 }
 0x5bc   :  { %2834 = vperm.xlu0 %5536, %v7210_v4  }
 0x5bd   :  { %v1978_v36 = vsub.f32 %v6858_v47, %v7238_v50  ;;  %v1649_v40 = vand.u32 2147483647, %v1585_v57  ;;  %v1648_v57 = vand.u32 2147483647, %v1584_v25  ;;  %v7283_v25 = vrot.slane %v5169_v31, %v1575_v19 }
 0x5be   :  { %v7232_v10 = vpop.permute.xlu1 %1554 }
 0x5bf   :  { %9617 = vst [vmem:[#allocation126_spill] sm:$0xff] %v7232_v10  ;;  %v1980_v10 = vsub.f32 %v6931_v24, %v7238_v50  ;;  %v2045_v24 = vand.u32 2147483647, %v1981_v42  ;;  %v1713_v47 = vsub.f32 1.0, %v1649_v40  ;;  %v1647_v42 = vand.u32 2147483647, %v1583_v15 }
 0x5c0   :  { %5538 = vset.pattern.permute.xlu0 %v9572_v53  ;;  %v5170_v15 = vld [vmem:[%s9376_s5 + $0x2] ss:$4 sm:$0x3]  ;;  %v7285_v40 = vrot.slane %v5169_v31, %v1579_v5  ;;  %v1712_v52 = vsub.f32 1.0, %v1648_v57 }
 0x5c1   :  { %v2044_v60 = vand.u32 2147483647, %v1980_v10  ;;  %v2109_v18 = vsub.f32 1.0, %v2045_v24  ;;  %v7289_v24 = vrot.slane %v2298_v49, %v1579_v5  ;;  %v1777_v39 = vmax.f32 %v1713_v47, 0.0 }
 0x5c2   :  { %2311 = vperm.xlu1 %5525, %v7157_v17   ;;  %v1711_v7 = vsub.f32 1.0, %v1647_v42  ;;  %v7293_v32 = vrot.slane %v5170_v15, %v1579_v5  ;;  %v2677_v47 = vmul.f32 %v7283_v25, %v2542_v21 }
 0x5c3   :  { %v7245_v62 = vpop.permute.xlu1 %1964  ;;  %v2108_v10 = vsub.f32 1.0, %v2044_v60  ;;  %9622 = vst [vmem:[#allocation131_spill] sm:$0xff] %v7289_v24 }
 0x5c4   :  { %9618 = vst [vmem:[#allocation127_spill] sm:$0xff] %v7245_v62  ;;  %v1586_v62 = vsub.f32 %v6851_v11, %v7247_v13  ;;  %9624 = vst [vmem:[#allocation133_spill] sm:$0xff] %v7293_v32 }
 0x5c6   :  { %5526 = vset.pattern.permute.xlu1 %v9572_v53  ;;  %v1650_v11 = vand.u32 2147483647, %v1586_v62  ;;  %v2302_v62 = vpop.permute.xlu0 %2301 }
 0x5c7   :  { %2545 = vperm.xlu1 %5526, %v7157_v17  }
 0x5c8   :  { %v7261_v16 = vpop.permute.xlu1 %1564  ;;  %v1714_v37 = vsub.f32 1.0, %v1650_v11  ;;  %v2173_v11 = vmax.f32 %v2109_v18, 0.0 }
 0x5c9   :  { %9620 = vst [vmem:[#allocation129_spill] sm:$0xff] %v7261_v16  ;;  %v2042_v16 = vand.u32 2147483647, %v1978_v36  ;;  %v7287_v36 = vrot.slane %v2298_v49, %v1575_v19  ;;  %v5886_v49 = vld [vmem:[%s9378_s7 + $0x20] sm:$0xff] }
 0x5ca   :  { %v1778_v26 = vmax.f32 %v1714_v37, 0.0  ;;  %v3702_v18 = vmul.f32 %v5886_v49, %v7202_v0  ;;  %v2807_v42 = vpop.permute.xlu0 %2806 }
 0x5cb   :  { %5527 = vset.pattern.permute.xlu1 %v9561_v3  ;;  %v2106_v60 = vsub.f32 1.0, %v2042_v16  ;;  %9621 = vst [vmem:[#allocation130_spill] sm:$0xff] %v7287_v36  ;;  %v2470_v37 = vmul.f32 %v7287_v36, %v2302_v62  ;;  %v2945_v63 = vmul.f32 %v7293_v32, %v2807_v42 }
 0x5cc   :  { %2814 = vperm.xlu1 %5527, %v7157_v17   ;;  %v2172_v17 = vmax.f32 %v2108_v10, 0.0  ;;  %v7291_v10 = vrot.slane %v5170_v15, %v1575_v19  ;;  %v2678_v19 = vmul.f32 %v7285_v40, %v2542_v21  ;;  %v1775_v15 = vmax.f32 %v1711_v7, 0.0 }
 0x5cd   :  { %v2307_v48 = vpop.permute.xlu1 %2306  ;;  %v2170_v31 = vmax.f32 %v2106_v60, 0.0  ;;  %v2471_v60 = vmul.f32 %v7289_v24, %v2302_v62  ;;  %v3742_v30 = vsel %vm1088_vm5, %v3702_v18, 0.0  ;;  %v4246_v7 = vmul.f32 %v6743_v12, %v7202_v0 }
 0x5ce   :  { %9623 = vst [vmem:[#allocation132_spill] sm:$0xff] %v7291_v10  ;;  %v2472_v16 = vmul.f32 %v7287_v36, %v2307_v48  ;;  %v2473_v43 = vmul.f32 %v7289_v24, %v2307_v48  ;;  %v1776_v48 = vmax.f32 %v1712_v52, 0.0  ;;  %v2944_v21 = vmul.f32 %v7291_v10, %v2807_v42 }
 0x5cf   :  { %v2236_v4 = vmul.f32 %v2172_v17, %v1777_v39  ;;  %v5889_v39 = vld [vmem:[%s9378_s7 + $0x28] sm:$0xff]  ;;  %v4247_v17 = vmul.f32 %v6776_v54, %v7121_v56  ;;  %v1589_v54 = vsub.f32 %v6876_v29, %v7242_v51 }
 0x5d0   :  { %5529 = vset.pattern.permute.xlu1 %v9572_v53  ;;  %v2741_v23 = vadd.f32 %v2677_v47, %v2472_v16  ;;  %v2742_v1 = vadd.f32 %v2678_v19, %v2473_v43  ;;  %v2237_v16 = vmul.f32 %v2173_v11, %v1778_v26  ;;  %v2234_v43 = vmul.f32 %v2170_v31, %v1775_v15 }
 0x5d1   :  { %v2235_v47 = vmul.f32 %v2171_v45, %v1776_v48  ;;  %v1985_v31 = vsub.f32 %v6881_v44, %v7240_v27  ;;  %v1588_v15 = vsub.f32 %v6885_v34, %v7247_v13  ;;  %v1653_v48 = vand.u32 2147483647, %v1589_v54 }
 0x5d2   :  { %v2811_v22 = vpop.permute.xlu1 %2810 }
 0x5d3   :  { %v2946_v5 = vmul.f32 %v7291_v10, %v2811_v22  ;;  %v2947_v57 = vmul.f32 %v7293_v32, %v2811_v22  ;;  %v4286_v10 = vsel %vm1088_vm5, %v4246_v7, 0.0 }
 0x5d5   :  { %v3010_v52 = vadd.f32 %v2946_v5, %v2741_v23  ;;  %v3011_v22 = vadd.f32 %v2947_v57, %v2742_v1  ;;  %v5887_v1 = vld [vmem:[%s9378_s7 + $0x18] sm:$0xff]  ;;  %v1983_v5 = vsub.f32 %v6891_v41, %v7240_v27 }
 0x5d6   :  { %v3701_v23 = vmul.f32 %v5887_v1, %v6999_v61 }
 0x5d7   :  { %v2538_v6 = vpop.permute.xlu1 %2537  ;;  %v3074_v24 = vmul.f32 %v3010_v52, %v2236_v4  ;;  %v3075_v42 = vmul.f32 %v3011_v22, %v2237_v16  ;;  %v3703_v4 = vmul.f32 %v5889_v39, %v7121_v56  ;;  %v2047_v7 = vand.u32 2147483647, %v1983_v5  ;;  %v9630_v39 = vld [vmem:[#allocation120_spill] sm:$0xff] }
 0x5d8   :  { %v2675_v49 = vmul.f32 %v7283_v25, %v2538_v6  ;;  %v2676_v33 = vmul.f32 %v7285_v40, %v2538_v6  ;;  %v3739_v45 = vsel %vm1088_vm5, %v3701_v23, 0.0  ;;  %v1652_v22 = vand.u32 2147483647, %v1588_v15 }
 0x5d9   :  { %v2111_v23 = vsub.f32 1.0, %v2047_v7 }
 0x5da   :  { %v2739_v2 = vadd.f32 %v2675_v49, %v2470_v37  ;;  %v2740_v62 = vadd.f32 %v2676_v33, %v2471_v60  ;;  %v5833_v33 = vpop.eup %5832  ;;  %v2049_v49 = vand.u32 2147483647, %v1985_v31 }
 0x5db   :  { %3743 = vadd.xlane.f32.xlu0 %v3742_v30  ;;  %v7327_v26 = vmul.f32 %v5833_v33, %v6446_v14  ;;  %v5835_v59 = vpop.eup %5834  ;;  %v5888_v14 = vld [vmem:[%s9378_s7 + $0x30] sm:$0xff]  ;;  %v2175_v54 = vmax.f32 %v2111_v23, 0.0  ;;  %v9633_v23 = vld [vmem:[#allocation20_spill] sm:$0xff] }
 0x5dc   :  { %v3008_v19 = vadd.f32 %v2944_v21, %v2739_v2  ;;  %v3009_v6 = vadd.f32 %v2945_v63, %v2740_v62  ;;  %v4245_v2 = vmul.f32 %v6766_v38, %v6999_v61  ;;  %v7331_v20 = vmul.f32 %v5835_v59, %v6534_v46 }
 0x5dd   :  { %v3704_v46 = vmul.f32 %v5888_v14, %v7327_v26  ;;  %v4248_v30 = vmul.f32 %v6750_v58, %v7327_v26  ;;  %v5837_v58 = vpop.eup %5836 }
 0x5de   :  { %v3072_v32 = vmul.f32 %v3008_v19, %v2234_v43  ;;  %v3073_v18 = vmul.f32 %v3009_v6, %v2235_v47  ;;  %v4283_v63 = vsel %vm1088_vm5, %v4245_v2, 0.0  ;;  %v7365_v8 = vmul.f32 %v5837_v58, %v6487_v9  ;;  %v5839_v28 = vpop.eup %5838  ;;  %v9628_v6 = vld [vmem:[#allocation130_spill] sm:$0xff] }
 0x5df   :  { %4287 = vadd.xlane.f32.xlu0 %v4286_v10  ;;  %v3748_v38 = vsel %vm1088_vm5, %v3704_v46, 0.0  ;;  %v4292_v61 = vsel %vm1088_vm5, %v4248_v30, 0.0  ;;  %v7369_v10 = vmul.f32 %v5839_v28, %v6571_v35  ;;  %v1984_v9 = vsub.f32 %v6881_v44, %v7238_v50 }
 0x5e0   :  { %v3136_v36 = vpack.c.bf16 %v3074_v24, %v3072_v32  ;;  %v3137_v12 = vpack.c.bf16 %v3075_v42, %v3073_v18  ;;  %v4289_v24 = vsel %vm1088_vm5, %v4247_v17, 0.0  ;;  %v7375_v32 = vpop.xlane.xlu0 %4278  ;;  %v1982_v35 = vsub.f32 %v6891_v41, %v7238_v50  ;;  %v9629_v18 = vld [vmem:[#allocation131_spill] sm:$0xff]  ;;  %v9631_v17 = vld [vmem:[#allocation132_spill] sm:$0xff] }
 0x5e1   :  { %9626 = vst [vmem:[#allocation135_spill] sm:$0xff] %v7375_v32  ;;  %v2048_v44 = vand.u32 2147483647, %v1984_v9  ;;  %v1717_v43 = vsub.f32 1.0, %v1653_v48  ;;  %v2113_v19 = vsub.f32 1.0, %v2049_v49 }
 0x5e2   :  { %5183 = vmatprep.mubr.msk.bf16.mxu0 %vm702_vm4, %v3137_v12  ;;  %v2046_v21 = vand.u32 2147483647, %v1982_v35 }
 0x5e3   :  { %3345 = vmatmul.mubr.bf16.vlgmr.msra.gmra.mrb[32].mxu0 %v3136_v36  ;;  %v2112_v47 = vsub.f32 1.0, %v2048_v44  ;;  %v1781_v46 = vmax.f32 %v1717_v43, 0.0 }
 0x5e4   :  { %v2317_v60 = vpop.permute.xlu0 %2316  ;;  %v2110_v1 = vsub.f32 1.0, %v2046_v21 }
 0x5e5   :  { %v2476_v42 = vmul.f32 %v9628_v6, %v2317_v60  ;;  %v2477_v12 = vmul.f32 %v9629_v18, %v2317_v60 }
 0x5f0   :  { %3740 = vadd.xlane.f32.xlu1 %v3739_v45  ;;  %v2819_v45 = vpop.permute.xlu0 %2818 }
 0x5f1   :  { %v2950_v58 = vmul.f32 %v9631_v17, %v2819_v45 }
 0x5f4   :  { %4284 = vadd.xlane.f32.xlu1 %v4283_v63  ;;  %v1716_v63 = vsub.f32 1.0, %v1652_v22 }
 0x5f5   :  { %2561 = vperm.xlu0 %5538, %v7327_v26  }
 0x5f6   :  { %v1780_v35 = vmax.f32 %v1716_v63, 0.0  ;;  %v5891_v63 = vld [vmem:[%s9378_s7 + $0x38] sm:$0xff] }
 0x5f9   :  { %5540 = vset.pattern.permute.xlu0 %v9541_v55 }
 0x5fa   :  { %2346 = vperm.xlu0 %5540, %v7331_v20  }
 0x5fe   :  { %5542 = vset.pattern.permute.xlu0 %v9561_v3 }
 0x5ff   :  { %2842 = vperm.xlu0 %5542, %v7331_v20  }
 0x603   :  { %5544 = vset.pattern.permute.xlu0 %v9572_v53 }
 0x605   :  { %2557 = vperm.xlu1 %5529, %v7121_v56   ;;  %v1590_v56 = vsub.f32 %v6876_v29, %v7247_v13  ;;  %v1587_v29 = vsub.f32 %v6885_v34, %v7242_v51 }
 0x607   :  { %v1654_v37 = vand.u32 2147483647, %v1590_v56  ;;  %v1651_v41 = vand.u32 2147483647, %v1587_v29 }
 0x609   :  { %5531 = vset.pattern.permute.xlu1 %v9541_v55  ;;  %v7361_v36 = vpop.xlane.xlu1 %3734  ;;  %v1718_v34 = vsub.f32 1.0, %v1654_v37  ;;  %v1715_v33 = vsub.f32 1.0, %v1651_v41  ;;  %v2239_v41 = vmul.f32 %v2175_v54, %v1780_v35 }
 0x60a   :  { %2321 = vperm.xlu1 %5531, %v7202_v0   ;;  %9625 = vst [vmem:[#allocation134_spill] sm:$0xff] %v7361_v36 }
 0x60b   :  { %v1779_v31 = vmax.f32 %v1715_v33, 0.0  ;;  %v9635_v33 = vld [vmem:[#allocation62_spill] sm:$0xff] }
 0x60d   :  { %v2550_v11 = vpop.permute.xlu1 %2549 }
 0x60e   :  { %5533 = vset.pattern.permute.xlu1 %v9561_v3  ;;  %v2681_v62 = vmul.f32 %v7283_v25, %v2550_v11  ;;  %v2682_v16 = vmul.f32 %v7285_v40, %v2550_v11  ;;  %v2174_v11 = vmax.f32 %v2110_v1, 0.0 }
 0x60f   :  { %2822 = vperm.xlu1 %5533, %v7202_v0   ;;  %v3745_v0 = vsel %vm1088_vm5, %v3703_v4, 0.0  ;;  %v2176_v4 = vmax.f32 %v2112_v47, 0.0 }
 0x610   :  { %v2745_v59 = vadd.f32 %v2681_v62, %v2476_v42  ;;  %v2746_v14 = vadd.f32 %v2682_v16, %v2477_v12  ;;  %v2238_v7 = vmul.f32 %v2174_v11, %v1779_v31  ;;  %v5890_v42 = vld [vmem:[%s9378_s7 + $0x40] sm:$0xff] }
 0x611   :  { %v2240_v49 = vmul.f32 %v2176_v4, %v1781_v46  ;;  %v3706_v12 = vmul.f32 %v5890_v42, %v7365_v8 }
 0x612   :  { %v3014_v5 = vadd.f32 %v2950_v58, %v2745_v59  ;;  %v3705_v59 = vmul.f32 %v5891_v63, %v9630_v39  ;;  %v9638_v58 = vld [vmem:[#allocation5_spill] sm:$0xff] }
 0x613   :  { %5535 = vset.pattern.permute.xlu1 %v9572_v53  ;;  %v3754_v1 = vsel %vm1088_vm5, %v3706_v12, 0.0 }
 0x614   :  { %v3751_v46 = vsel %vm1088_vm5, %v3705_v59, 0.0 }
 0x61e   :  { %3749 = vadd.xlane.f32.xlu0 %v3748_v38  ;;  %v1782_v38 = vmax.f32 %v1718_v34, 0.0  ;;  %v3078_v34 = vmul.f32 %v3014_v5, %v2240_v49 }
 0x622   :  { %4293 = vadd.xlane.f32.xlu0 %v4292_v61 }
 0x633   :  { %3746 = vadd.xlane.f32.xlu1 %v3745_v0  ;;  %v2177_v0 = vmax.f32 %v2113_v19, 0.0 }
 0x635   :  { %v2241_v21 = vmul.f32 %v2177_v0, %v1782_v38  ;;  %v9637_v38 = vld [vmem:[#allocation29_spill] sm:$0xff] }
 0x637   :  { %4290 = vadd.xlane.f32.xlu1 %v4289_v24  ;;  %v9632_v24 = vld [vmem:[#allocation133_spill] sm:$0xff] }
 0x638   :  { %2569 = vperm.xlu0 %5544, %v7365_v8   ;;  %v2951_v28 = vmul.f32 %v9632_v24, %v2819_v45  ;;  %v4250_v45 = vmul.f32 %v9633_v23, %v7365_v8 }
 0x63a   :  { %v3015_v29 = vadd.f32 %v2951_v28, %v2746_v14  ;;  %v7429_v14 = vpop.xlane.xlu0 %3731 }
 0x63b   :  { %9636 = vst [vmem:[#allocation130_spill] sm:$0xff] %v7429_v14 }
 0x63c   :  { %5546 = vset.pattern.permute.xlu0 %v9541_v55  ;;  %v3079_v16 = vmul.f32 %v3015_v29, %v2241_v21  ;;  %v9642_v29 = vld [vmem:[#allocation51_spill] sm:$0xff] }
 0x63d   :  { %2356 = vperm.xlu0 %5546, %v7369_v10  }
 0x63e   :  { %v7387_v57 = vpop.xlane.xlu1 %4275  ;;  %v2327_v4 = vpop.permute.xlu0 %2326 }
 0x63f   :  { %9627 = vst [vmem:[#allocation136_spill] sm:$0xff] %v7387_v57  ;;  %v2480_v59 = vmul.f32 %v9628_v6, %v2327_v4 }
 0x641   :  { %5548 = vset.pattern.permute.xlu0 %v9561_v3 }
 0x642   :  { %v2312_v52 = vpop.permute.xlu1 %2311  ;;  %2850 = vperm.xlu0 %5548, %v7369_v10   ;;  %v2827_v54 = vpop.permute.xlu0 %2826 }
 0x643   :  { %v2474_v56 = vmul.f32 %v9628_v6, %v2312_v52  ;;  %v2475_v9 = vmul.f32 %v9629_v18, %v2312_v52 }
 0x646   :  { %v2546_v2 = vpop.permute.xlu1 %2545  ;;  %5550 = vset.pattern.permute.xlu0 %v9572_v53 }
 0x647   :  { %v2679_v30 = vmul.f32 %v7283_v25, %v2546_v2  ;;  %v2680_v61 = vmul.f32 %v7285_v40, %v2546_v2  ;;  %v9634_v2 = vld [vmem:[#allocation60_spill] sm:$0xff] }
 0x648   :  { %2565 = vperm.xlu1 %5535, %v9630_v39   ;;  %5840 = vrcp.f32 %v9634_v2 }
 0x649   :  { %v2743_v48 = vadd.f32 %v2679_v30, %v2474_v56  ;;  %v2744_v37 = vadd.f32 %v2680_v61, %v2475_v9  ;;  %5842 = vrcp.f32 %v9635_v33  ;;  %v4249_v30 = vmul.f32 %v9637_v38, %v9630_v39  ;;  %v9640_v9 = vld [vmem:[#allocation8_spill] sm:$0xff] }
 0x64a   :  { %v9641_v39 = vld [vmem:[#allocation56_spill] sm:$0xff] }
 0x64b   :  { %v2815_v15 = vpop.permute.xlu1 %2814  ;;  %v4295_v0 = vsel %vm1088_vm5, %v4249_v30, 0.0  ;;  %v1986_v35 = vsub.f32 %v9641_v39, %v7238_v50  ;;  %v1987_v5 = vsub.f32 %v9641_v39, %v7240_v27 }
 0x64c   :  { %v2948_v60 = vmul.f32 %v9631_v17, %v2815_v15  ;;  %v2949_v44 = vmul.f32 %v9632_v24, %v2815_v15  ;;  %5537 = vset.pattern.permute.xlu1 %v9541_v55  ;;  %v1988_v15 = vsub.f32 %v9642_v29, %v7238_v50 }
 0x64d   :  { %2331 = vperm.xlu1 %5537, %v7327_v26  }
 0x64e   :  { %v3012_v52 = vadd.f32 %v2948_v60, %v2743_v48  ;;  %v3013_v22 = vadd.f32 %v2949_v44, %v2744_v37  ;;  %v1989_v48 = vsub.f32 %v9642_v29, %v7240_v27  ;;  %v7453_v37 = vpop.xlane.xlu0 %3737  ;;  %v9644_v60 = vld [vmem:[#allocation52_spill] sm:$0xff] }
 0x64f   :  { %9643 = vst [vmem:[#allocation120_spill] sm:$0xff] %v7453_v37  ;;  %v1591_v44 = vsub.f32 %v9644_v60, %v7242_v51  ;;  %v1592_v49 = vsub.f32 %v9644_v60, %v7247_v13  ;;  %v2954_v60 = vmul.f32 %v9631_v17, %v2827_v54 }
 0x650   :  { %v3077_v62 = vmul.f32 %v3013_v22, %v2239_v41  ;;  %v3076_v43 = vmul.f32 %v3012_v52, %v2238_v7  ;;  %v9646_v7 = vld [vmem:[#allocation50_spill] sm:$0xff]  ;;  %v2050_v22 = vand.u32 2147483647, %v1986_v35 }
 0x651   :  { %5539 = vset.pattern.permute.xlu1 %v9561_v3  ;;  %v1593_v41 = vsub.f32 %v9646_v7, %v7242_v51  ;;  %v1594_v52 = vsub.f32 %v9646_v7, %v7247_v13 }
 0x652   :  { %2830 = vperm.xlu1 %5539, %v7327_v26   ;;  %v3139_v47 = vpack.c.bf16 %v3079_v16, %v3077_v62  ;;  %v3138_v19 = vpack.c.bf16 %v3078_v34, %v3076_v43  ;;  %v4298_v26 = vsel %vm1088_vm5, %v4250_v45, 0.0  ;;  %v5841_v61 = vpop.eup %5840  ;;  %v2051_v62 = vand.u32 2147483647, %v1987_v5 }
 0x653   :  { %v7436_v28 = vmul.f32 %v5841_v61, %v9638_v58  ;;  %v5843_v11 = vpop.eup %5842  ;;  %v2052_v16 = vand.u32 2147483647, %v1988_v15  ;;  %v2053_v43 = vand.u32 2147483647, %v1989_v48  ;;  %v1655_v34 = vand.u32 2147483647, %v1591_v44 }
 0x654   :  { %5184 = vmatprep.mubr.msk.bf16.mxu0 %vm702_vm4, %v3139_v47  ;;  %v7442_v31 = vmul.f32 %v5843_v11, %v9640_v9  ;;  %v1656_v47 = vand.u32 2147483647, %v1592_v49  ;;  %v1657_v42 = vand.u32 2147483647, %v1593_v41  ;;  %v1658_v12 = vand.u32 2147483647, %v1594_v52 }
 0x655   :  { %3353 = vmatmul.mubr.bf16.gmra.mrb[36].mxu0 %v3138_v19  ;;  %v2115_v2 = vsub.f32 1.0, %v2051_v62  ;;  %v2116_v33 = vsub.f32 1.0, %v2052_v16  ;;  %v2117_v63 = vsub.f32 1.0, %v2053_v43  ;;  %v1719_v38 = vsub.f32 1.0, %v1655_v34 }
 0x656   :  { %5541 = vset.pattern.permute.xlu1 %v9572_v53  ;;  %v1720_v30 = vsub.f32 1.0, %v1656_v47  ;;  %v1722_v58 = vsub.f32 1.0, %v1658_v12  ;;  %v2955_v44 = vmul.f32 %v9632_v24, %v2827_v54 }
 0x657   :  { %v2179_v5 = vmax.f32 %v2115_v2, 0.0  ;;  %v2180_v48 = vmax.f32 %v2116_v33, 0.0  ;;  %v1783_v49 = vmax.f32 %v1719_v38, 0.0 }
 0x658   :  { %v1784_v7 = vmax.f32 %v1720_v30, 0.0  ;;  %v1786_v62 = vmax.f32 %v1722_v58, 0.0 }
 0x661   :  { %3755 = vadd.xlane.f32.xlu0 %v3754_v1  ;;  %v7468_v1 = vpop.xlane.xlu0 %4281 }
 0x662   :  { %9647 = vst [vmem:[#allocation133_spill] sm:$0xff] %v7468_v1 }
 0x665   :  { %4299 = vadd.xlane.f32.xlu0 %v4298_v26  ;;  %v2114_v26 = vsub.f32 1.0, %v2050_v22  ;;  %v2554_v11 = vpop.permute.xlu0 %2553 }
 0x666   :  { %v2683_v41 = vmul.f32 %v7283_v25, %v2554_v11  ;;  %v2684_v52 = vmul.f32 %v7285_v40, %v2554_v11 }
 0x667   :  { %v2178_v35 = vmax.f32 %v2114_v26, 0.0  ;;  %v2243_v26 = vmul.f32 %v2179_v5, %v1784_v7  ;;  %v9650_v5 = vld [vmem:[#allocation69_spill] sm:$0xff] }
 0x676   :  { %3752 = vadd.xlane.f32.xlu1 %v3751_v46  ;;  %v2481_v46 = vmul.f32 %v9629_v18, %v2327_v4  ;;  %v2181_v4 = vmax.f32 %v2117_v63, 0.0 }
 0x67a   :  { %4296 = vadd.xlane.f32.xlu1 %v4295_v0  ;;  %v1721_v0 = vsub.f32 1.0, %v1657_v42 }
 0x67b   :  { %2577 = vperm.xlu0 %5550, %v7436_v28  }
 0x67c   :  { %v1785_v22 = vmax.f32 %v1721_v0, 0.0  ;;  %v5892_v0 = vld [vmem:[%s9378_s7 + $0x50] sm:$0xff] }
 0x67d   :  { %v7439_v56 = vpop.xlane.xlu1 %3740  ;;  %v3708_v58 = vmul.f32 %v5892_v0, %v7436_v28 }
 0x67e   :  { %9639 = vst [vmem:[#allocation131_spill] sm:$0xff] %v7439_v56  ;;  %v2244_v54 = vmul.f32 %v2180_v48, %v1785_v22 }
 0x67f   :  { %5552 = vset.pattern.permute.xlu0 %v9541_v55  ;;  %v3760_v11 = vsel %vm1088_vm5, %v3708_v58, 0.0 }
 0x680   :  { %2366 = vperm.xlu0 %5552, %v7442_v31  }
 0x681   :  { %v7460_v21 = vpop.xlane.xlu1 %4284 }
 0x682   :  { %9645 = vst [vmem:[#allocation132_spill] sm:$0xff] %v7460_v21 }
 0x684   :  { %5554 = vset.pattern.permute.xlu0 %v9561_v3 }
 0x685   :  { %v2558_v19 = vpop.permute.xlu1 %2557  ;;  %2858 = vperm.xlu0 %5554, %v7442_v31  }
 0x686   :  { %v2685_v23 = vmul.f32 %v7283_v25, %v2558_v19  ;;  %v2686_v45 = vmul.f32 %v7285_v40, %v2558_v19 }
 0x688   :  { %v2749_v9 = vadd.f32 %v2685_v23, %v2480_v59  ;;  %v2750_v39 = vadd.f32 %v2686_v45, %v2481_v46  ;;  %v2245_v23 = vmul.f32 %v2181_v4, %v1786_v62  ;;  %v2242_v45 = vmul.f32 %v2178_v35, %v1783_v49  ;;  %v9649_v35 = vld [vmem:[#allocation66_spill] sm:$0xff]  ;;  %v9651_v49 = vld [vmem:[#allocation31_spill] sm:$0xff] }
 0x689   :  { %v2322_v61 = vpop.permute.xlu1 %2321  ;;  %5556 = vset.pattern.permute.xlu0 %v9572_v53  ;;  %5844 = vrcp.f32 %v9649_v35  ;;  %v4251_v7 = vmul.f32 %v9651_v49, %v7331_v20 }
 0x68a   :  { %v2478_v29 = vmul.f32 %v9628_v6, %v2322_v61  ;;  %v2479_v15 = vmul.f32 %v9629_v18, %v2322_v61  ;;  %v3018_v16 = vadd.f32 %v2954_v60, %v2749_v9  ;;  %v3019_v43 = vadd.f32 %v2955_v44, %v2750_v39  ;;  %v9648_v9 = vld [vmem:[#allocation22_spill] sm:$0xff] }
 0x68b   :  { %2573 = vperm.xlu1 %5541, %v7331_v20   ;;  %v4252_v39 = vmul.f32 %v9648_v9, %v7436_v28  ;;  %5846 = vrcp.f32 %v9650_v5  ;;  %v4301_v62 = vsel %vm1088_vm5, %v4251_v7, 0.0 }
 0x68c   :  { %v2747_v47 = vadd.f32 %v2683_v41, %v2478_v29  ;;  %v2748_v19 = vadd.f32 %v2684_v52, %v2479_v15  ;;  %v3083_v59 = vmul.f32 %v3019_v43, %v2245_v23  ;;  %v3082_v38 = vmul.f32 %v3018_v16, %v2244_v54  ;;  %v5893_v29 = vld [vmem:[%s9378_s7 + $0x48] sm:$0xff]  ;;  %v2337_v52 = vpop.permute.xlu0 %2336 }
 0x68d   :  { %v3707_v15 = vmul.f32 %v5893_v29, %v7331_v20  ;;  %v9652_v16 = vld [vmem:[#allocation6_spill] sm:$0xff] }
 0x68e   :  { %v2823_v34 = vpop.permute.xlu1 %2822  ;;  %v9655_v20 = vld [vmem:[#allocation58_spill] sm:$0xff] }
 0x68f   :  { %v2952_v42 = vmul.f32 %v9631_v17, %v2823_v34  ;;  %v2953_v12 = vmul.f32 %v9632_v24, %v2823_v34  ;;  %5543 = vset.pattern.permute.xlu1 %v9541_v55  ;;  %v3757_v44 = vsel %vm1088_vm5, %v3707_v15, 0.0  ;;  %v1990_v54 = vsub.f32 %v9655_v20, %v7238_v50 }
 0x690   :  { %2341 = vperm.xlu1 %5543, %v7365_v8   ;;  %v1991_v23 = vsub.f32 %v9655_v20, %v7240_v27 }
 0x691   :  { %v3016_v2 = vadd.f32 %v2952_v42, %v2747_v47  ;;  %v3017_v33 = vadd.f32 %v2953_v12, %v2748_v19  ;;  %v2835_v47 = vpop.permute.xlu0 %2834  ;;  %v9654_v42 = vld [vmem:[#allocation10_spill] sm:$0xff]  ;;  %v2054_v58 = vand.u32 2147483647, %v1990_v54 }
 0x693   :  { %v3081_v63 = vmul.f32 %v3017_v33, %v2243_v26  ;;  %v3080_v46 = vmul.f32 %v3016_v2, %v2242_v45  ;;  %v5845_v41 = vpop.eup %5844  ;;  %v9656_v45 = vld [vmem:[#allocation54_spill] sm:$0xff]  ;;  %v2118_v7 = vsub.f32 1.0, %v2054_v58  ;;  %v2958_v58 = vmul.f32 %v9631_v17, %v2835_v47 }
 0x694   :  { %5545 = vset.pattern.permute.xlu1 %v9561_v3  ;;  %v7513_v43 = vmul.f32 %v5845_v41, %v9652_v16  ;;  %v1992_v26 = vsub.f32 %v9656_v45, %v7238_v50  ;;  %v1993_v2 = vsub.f32 %v9656_v45, %v7240_v27  ;;  %v2484_v16 = vmul.f32 %v9628_v6, %v2337_v52 }
 0x695   :  { %2838 = vperm.xlu1 %5545, %v7365_v8   ;;  %v3141_v30 = vpack.c.bf16 %v3083_v59, %v3081_v63  ;;  %v3140_v61 = vpack.c.bf16 %v3082_v38, %v3080_v46  ;;  %v4304_v8 = vsel %vm1088_vm5, %v4252_v39, 0.0  ;;  %v5847_v34 = vpop.eup %5846  ;;  %v7530_v33 = vpop.xlane.xlu0 %3743  ;;  %v9658_v63 = vld [vmem:[#allocation55_spill] sm:$0xff] }
 0x696   :  { %v7519_v12 = vmul.f32 %v5847_v34, %v9654_v42  ;;  %9657 = vst [vmem:[#allocation60_spill] sm:$0xff] %v7530_v33  ;;  %v1595_v59 = vsub.f32 %v9658_v63, %v7242_v51  ;;  %v1596_v46 = vsub.f32 %v9658_v63, %v7247_v13  ;;  %v2056_v9 = vand.u32 2147483647, %v1992_v26 }
 0x697   :  { %5185 = vmatprep.mubr.msk.bf16.mxu0 %vm702_vm4, %v3141_v30  ;;  %v9660_v30 = vld [vmem:[#allocation53_spill] sm:$0xff]  ;;  %v2057_v39 = vand.u32 2147483647, %v1993_v2  ;;  %v2485_v34 = vmul.f32 %v9629_v18, %v2337_v52 }
 0x698   :  { %3361 = vmatmul.mubr.bf16.gmra.mrb[40].mxu0 %v3140_v61  ;;  %v1597_v61 = vsub.f32 %v9660_v30, %v7242_v51  ;;  %v1598_v0 = vsub.f32 %v9660_v30, %v7247_v13  ;;  %v1660_v35 = vand.u32 2147483647, %v1596_v46 }
 0x699   :  { %5547 = vset.pattern.permute.xlu1 %v9572_v53 }
 0x69a   :  { %v1661_v29 = vand.u32 2147483647, %v1597_v61  ;;  %v1662_v15 = vand.u32 2147483647, %v1598_v0  ;;  %v1724_v20 = vsub.f32 1.0, %v1660_v35 }
 0x69c   :  { %v1726_v45 = vsub.f32 1.0, %v1662_v15 }
 0x6a4   :  { %3761 = vadd.xlane.f32.xlu0 %v3760_v11  ;;  %v2055_v11 = vand.u32 2147483647, %v1991_v23  ;;  %v1725_v23 = vsub.f32 1.0, %v1661_v29  ;;  %v1790_v29 = vmax.f32 %v1726_v45, 0.0 }
 0x6a6   :  { %v2119_v41 = vsub.f32 1.0, %v2055_v11  ;;  %v2959_v11 = vmul.f32 %v9632_v24, %v2835_v47 }
 0x6a8   :  { %4305 = vadd.xlane.f32.xlu0 %v4304_v8  ;;  %v1659_v8 = vand.u32 2147483647, %v1595_v59  ;;  %v2182_v59 = vmax.f32 %v2118_v7, 0.0  ;;  %v2183_v46 = vmax.f32 %v2119_v41, 0.0 }
 0x6aa   :  { %v1723_v42 = vsub.f32 1.0, %v1659_v8 }
 0x6b6   :  { %v7504_v48 = vpop.f32.mrb[32].mxu0 }
 0x6b7   :  { %v3348_v4 = vpop.f32.mrb[33].mxu0 }
 0x6b8   :  { %v7506_v60 = vpop.f32.mrb[34].mxu0  ;;  %v7545_v4 = vpop.xlane.xlu0 %4287 }
 0x6b9   :  { %3758 = vadd.xlane.f32.xlu1 %v3757_v44  ;;  %v3351_v22 = vpop.f32.mrb[35].mxu0  ;;  %9661 = vst [vmem:[#allocation29_spill] sm:$0xff] %v7545_v4 }
 0x6ba   :  { %v2120_v22 = vsub.f32 1.0, %v2056_v9  ;;  %v1787_v9 = vmax.f32 %v1723_v42, 0.0 }
 0x6bc   :  { %v2562_v26 = vpop.permute.xlu0 %2561  ;;  %v2184_v0 = vmax.f32 %v2120_v22, 0.0 }
 0x6bd   :  { %4302 = vadd.xlane.f32.xlu1 %v4301_v62  ;;  %v2121_v62 = vsub.f32 1.0, %v2057_v39  ;;  %v1788_v39 = vmax.f32 %v1724_v20, 0.0  ;;  %v2687_v8 = vmul.f32 %v7283_v25, %v2562_v26  ;;  %v2688_v35 = vmul.f32 %v7285_v40, %v2562_v26 }
 0x6be   :  { %2585 = vperm.xlu0 %5556, %v7513_v43  }
 0x6bf   :  { %v2185_v52 = vmax.f32 %v2121_v62, 0.0  ;;  %v2247_v42 = vmul.f32 %v2183_v46, %v1788_v39 }
 0x6c0   :  { %v7516_v19 = vpop.xlane.xlu1 %3746 }
 0x6c1   :  { %9653 = vst [vmem:[#allocation20_spill] sm:$0xff] %v7516_v19 }
 0x6c2   :  { %5558 = vset.pattern.permute.xlu0 %v9541_v55 }
 0x6c3   :  { %2376 = vperm.xlu0 %5558, %v7519_v12  }
 0x6c4   :  { %v7537_v38 = vpop.xlane.xlu1 %4290 }
 0x6c5   :  { %9659 = vst [vmem:[#allocation62_spill] sm:$0xff] %v7537_v38 }
 0x6c7   :  { %5560 = vset.pattern.permute.xlu0 %v9561_v3 }
 0x6c8   :  { %v2566_v5 = vpop.permute.xlu1 %2565  ;;  %2866 = vperm.xlu0 %5560, %v7519_v12  }
 0x6c9   :  { %v2689_v44 = vmul.f32 %v7283_v25, %v2566_v5  ;;  %v2690_v49 = vmul.f32 %v7285_v40, %v2566_v5  ;;  %v1789_v5 = vmax.f32 %v1725_v23, 0.0 }
 0x6cb   :  { %v2753_v2 = vadd.f32 %v2689_v44, %v2484_v16  ;;  %v2754_v63 = vadd.f32 %v2690_v49, %v2485_v34  ;;  %v2248_v47 = vmul.f32 %v2184_v0, %v1789_v5  ;;  %v2249_v16 = vmul.f32 %v2185_v52, %v1790_v29  ;;  %v9662_v0 = vld [vmem:[#allocation23_spill] sm:$0xff] }
 0x6cc   :  { %v2332_v54 = vpop.permute.xlu1 %2331  ;;  %5562 = vset.pattern.permute.xlu0 %v9572_v53  ;;  %v2246_v34 = vmul.f32 %v2182_v59, %v1787_v9  ;;  %v5894_v59 = vld [vmem:[%s9378_s7 + $0x60] sm:$0xff]  ;;  %v4254_v52 = vmul.f32 %v9662_v0, %v7513_v43  ;;  %v5895_v9 = vld [vmem:[%s9378_s7 + $0x58] sm:$0xff] }
 0x6cd   :  { %v2482_v30 = vmul.f32 %v9628_v6, %v2332_v54  ;;  %v2483_v61 = vmul.f32 %v9629_v18, %v2332_v54  ;;  %v3022_v15 = vadd.f32 %v2958_v58, %v2753_v2  ;;  %v3023_v44 = vadd.f32 %v2959_v11, %v2754_v63  ;;  %v9663_v58 = vld [vmem:[#allocation72_spill] sm:$0xff]  ;;  %v9664_v11 = vld [vmem:[#allocation75_spill] sm:$0xff] }
 0x6ce   :  { %2581 = vperm.xlu1 %5547, %v7369_v10   ;;  %v3710_v46 = vmul.f32 %v5894_v59, %v7513_v43  ;;  %5848 = vrcp.f32 %v9663_v58  ;;  %v3709_v39 = vmul.f32 %v5895_v9, %v7369_v10  ;;  %v9674_v59 = vld [vmem:[#allocation65_spill] sm:$0xff] }
 0x6cf   :  { %v2751_v7 = vadd.f32 %v2687_v8, %v2482_v30  ;;  %v2752_v41 = vadd.f32 %v2688_v35, %v2483_v61  ;;  %v3087_v45 = vmul.f32 %v3023_v44, %v2249_v16  ;;  %v3086_v2 = vmul.f32 %v3022_v15, %v2248_v47  ;;  %v9665_v35 = vld [vmem:[#allocation33_spill] sm:$0xff]  ;;  %v2347_v15 = vpop.permute.xlu0 %2346  ;;  %v9668_v47 = vld [vmem:[#allocation12_spill] sm:$0xff] }
 0x6d0   :  { %v3766_v61 = vsel %vm1088_vm5, %v3710_v46, 0.0  ;;  %5850 = vrcp.f32 %v9664_v11  ;;  %v3763_v8 = vsel %vm1088_vm5, %v3709_v39, 0.0  ;;  %v4253_v5 = vmul.f32 %v9665_v35, %v7369_v10  ;;  %v9669_v10 = vld [vmem:[#allocation63_spill] sm:$0xff] }
 0x6d1   :  { %v2831_v49 = vpop.permute.xlu1 %2830  ;;  %v1994_v46 = vsub.f32 %v9674_v59, %v7238_v50 }
 0x6d2   :  { %v2956_v22 = vmul.f32 %v9631_v17, %v2831_v49  ;;  %v2957_v62 = vmul.f32 %v9632_v24, %v2831_v49  ;;  %5549 = vset.pattern.permute.xlu1 %v9541_v55  ;;  %v4307_v44 = vsel %vm1088_vm5, %v4253_v5, 0.0  ;;  %v9666_v49 = vld [vmem:[#allocation7_spill] sm:$0xff] }
 0x6d3   :  { %2351 = vperm.xlu1 %5549, %v7436_v28  }
 0x6d4   :  { %v3020_v20 = vadd.f32 %v2956_v22, %v2751_v7  ;;  %v3021_v54 = vadd.f32 %v2957_v62, %v2752_v41  ;;  %v2843_v22 = vpop.permute.xlu0 %2842 }
 0x6d6   :  { %v3085_v23 = vmul.f32 %v3021_v54, %v2247_v42  ;;  %v3084_v26 = vmul.f32 %v3020_v20, %v2246_v34  ;;  %v1601_v34 = vsub.f32 %v9669_v10, %v7242_v51  ;;  %v1602_v42 = vsub.f32 %v9669_v10, %v7247_v13  ;;  %v9670_v20 = vld [vmem:[#allocation57_spill] sm:$0xff] }
 0x6d7   :  { %5551 = vset.pattern.permute.xlu1 %v9561_v3  ;;  %v1996_v54 = vsub.f32 %v9670_v20, %v7238_v50 }
 0x6d8   :  { %2846 = vperm.xlu1 %5551, %v7436_v28   ;;  %v3143_v63 = vpack.c.bf16 %v3087_v45, %v3085_v23  ;;  %v3142_v30 = vpack.c.bf16 %v3086_v2, %v3084_v26  ;;  %v4310_v28 = vsel %vm1088_vm5, %v4254_v52, 0.0  ;;  %v5849_v29 = vpop.eup %5848  ;;  %v1997_v23 = vsub.f32 %v9670_v20, %v7240_v27  ;;  %v7603_v45 = vpop.xlane.xlu0 %3749  ;;  %v9672_v26 = vld [vmem:[#allocation59_spill] sm:$0xff] }
 0x6d9   :  { %v7586_v7 = vmul.f32 %v5849_v29, %v9666_v49  ;;  %9671 = vst [vmem:[#allocation8_spill] sm:$0xff] %v7603_v45  ;;  %v1599_v2 = vsub.f32 %v9672_v26, %v7242_v51  ;;  %v1665_v0 = vand.u32 2147483647, %v1601_v34  ;;  %v1666_v52 = vand.u32 2147483647, %v1602_v42 }
 0x6da   :  { %5186 = vmatprep.mubr.msk.bf16.mxu0 %vm702_vm4, %v3143_v63  ;;  %v5851_v41 = vpop.eup %5850  ;;  %v1600_v63 = vsub.f32 %v9672_v26, %v7247_v13  ;;  %v2061_v58 = vand.u32 2147483647, %v1997_v23  ;;  %v2488_v34 = vmul.f32 %v9628_v6, %v2347_v15  ;;  %v2489_v42 = vmul.f32 %v9629_v18, %v2347_v15 }
 0x6db   :  { %3369 = vmatmul.mubr.bf16.gmra.mrb[44].mxu0 %v3142_v30  ;;  %v7592_v16 = vmul.f32 %v5851_v41, %v9668_v47  ;;  %v1663_v11 = vand.u32 2147483647, %v1599_v2  ;;  %v1729_v49 = vsub.f32 1.0, %v1665_v0  ;;  %v1730_v41 = vsub.f32 1.0, %v1666_v52 }
 0x6dc   :  { %5553 = vset.pattern.permute.xlu1 %v9572_v53  ;;  %v1664_v9 = vand.u32 2147483647, %v1600_v63  ;;  %v7618_v5 = vpop.xlane.xlu0 %4293  ;;  %v2125_v10 = vsub.f32 1.0, %v2061_v58  ;;  %v2962_v58 = vmul.f32 %v9631_v17, %v2843_v22 }
 0x6dd   :  { %9675 = vst [vmem:[#allocation51_spill] sm:$0xff] %v7618_v5  ;;  %v1727_v20 = vsub.f32 1.0, %v1663_v11  ;;  %v2963_v11 = vmul.f32 %v9632_v24, %v2843_v22 }
 0x6de   :  { %v2189_v15 = vmax.f32 %v2125_v10, 0.0 }
 0x6e0   :  { %v2570_v63 = vpop.permute.xlu0 %2569 }
 0x6e7   :  { %3767 = vadd.xlane.f32.xlu0 %v3766_v61  ;;  %v1995_v61 = vsub.f32 %v9674_v59, %v7240_v27 }
 0x6e9   :  { %v2059_v35 = vand.u32 2147483647, %v1995_v61  ;;  %v1793_v61 = vmax.f32 %v1729_v49, 0.0 }
 0x6eb   :  { %4311 = vadd.xlane.f32.xlu0 %v4310_v28  ;;  %v2060_v28 = vand.u32 2147483647, %v1996_v54  ;;  %v1728_v54 = vsub.f32 1.0, %v1664_v9  ;;  %v2123_v2 = vsub.f32 1.0, %v2059_v35  ;;  %v1791_v9 = vmax.f32 %v1727_v20, 0.0 }
 0x6ec   :  { %v2691_v35 = vmul.f32 %v7283_v25, %v2570_v63 }
 0x6ed   :  { %v2124_v47 = vsub.f32 1.0, %v2060_v28  ;;  %v2187_v49 = vmax.f32 %v2123_v2, 0.0 }
 0x6ef   :  { %v2188_v28 = vmax.f32 %v2124_v47, 0.0 }
 0x6f1   :  { %v2252_v22 = vmul.f32 %v2188_v28, %v1793_v61  ;;  %v5896_v61 = vld [vmem:[%s9378_s7 + $0x70] sm:$0xff] }
 0x6fc   :  { %3764 = vadd.xlane.f32.xlu1 %v3763_v8  ;;  %v2058_v8 = vand.u32 2147483647, %v1994_v46 }
 0x6fe   :  { %v2122_v26 = vsub.f32 1.0, %v2058_v8  ;;  %v1792_v8 = vmax.f32 %v1728_v54, 0.0 }
 0x700   :  { %4308 = vadd.xlane.f32.xlu1 %v4307_v44  ;;  %v2251_v4 = vmul.f32 %v2187_v49, %v1792_v8 }
 0x701   :  { %2593 = vperm.xlu0 %5562, %v7586_v7  }
 0x703   :  { %v7589_v62 = vpop.xlane.xlu1 %3752 }
 0x704   :  { %9667 = vst [vmem:[#allocation5_spill] sm:$0xff] %v7589_v62 }
 0x705   :  { %5564 = vset.pattern.permute.xlu0 %v9541_v55 }
 0x706   :  { %2386 = vperm.xlu0 %5564, %v7592_v16  }
 0x707   :  { %v7610_v30 = vpop.xlane.xlu1 %4296 }
 0x708   :  { %9673 = vst [vmem:[#allocation56_spill] sm:$0xff] %v7610_v30 }
 0x70a   :  { %5566 = vset.pattern.permute.xlu0 %v9561_v3 }
 0x70b   :  { %v2574_v39 = vpop.permute.xlu1 %2573  ;;  %2874 = vperm.xlu0 %5566, %v7592_v16  }
 0x70c   :  { %v2693_v29 = vmul.f32 %v7283_v25, %v2574_v39  ;;  %v2694_v44 = vmul.f32 %v7285_v40, %v2574_v39  ;;  %v1794_v39 = vmax.f32 %v1730_v41, 0.0 }
 0x70e   :  { %v2757_v59 = vadd.f32 %v2693_v29, %v2488_v34  ;;  %v2758_v46 = vadd.f32 %v2694_v44, %v2489_v42  ;;  %v2692_v29 = vmul.f32 %v7285_v40, %v2570_v63  ;;  %v2186_v44 = vmax.f32 %v2122_v26, 0.0 }
 0x70f   :  { %v2342_v23 = vpop.permute.xlu1 %2341  ;;  %5568 = vset.pattern.permute.xlu0 %v9572_v53  ;;  %v2253_v20 = vmul.f32 %v2189_v15, %v1794_v39 }
 0x710   :  { %v2486_v0 = vmul.f32 %v9628_v6, %v2342_v23  ;;  %v2487_v52 = vmul.f32 %v9629_v18, %v2342_v23  ;;  %v3026_v41 = vadd.f32 %v2962_v58, %v2757_v59  ;;  %v3027_v34 = vadd.f32 %v2963_v11, %v2758_v46 }
 0x711   :  { %2589 = vperm.xlu1 %5553, %v7442_v31   ;;  %v2250_v54 = vmul.f32 %v2186_v44, %v1791_v9  ;;  %v5897_v44 = vld [vmem:[%s9378_s7 + $0x68] sm:$0xff] }
 0x712   :  { %v2755_v23 = vadd.f32 %v2691_v35, %v2486_v0  ;;  %v2756_v5 = vadd.f32 %v2692_v29, %v2487_v52  ;;  %v3091_v59 = vmul.f32 %v3027_v34, %v2253_v20  ;;  %v3090_v58 = vmul.f32 %v3026_v41, %v2252_v22  ;;  %v9677_v35 = vld [vmem:[#allocation78_spill] sm:$0xff]  ;;  %v9678_v29 = vld [vmem:[#allocation81_spill] sm:$0xff]  ;;  %v9679_v34 = vld [vmem:[#allocation35_spill] sm:$0xff] }
 0x713   :  { %5852 = vrcp.f32 %v9677_v35  ;;  %v3711_v49 = vmul.f32 %v5897_v44, %v7442_v31  ;;  %v9680_v22 = vld [vmem:[#allocation9_spill] sm:$0xff] }
 0x714   :  { %v2839_v42 = vpop.permute.xlu1 %2838  ;;  %5854 = vrcp.f32 %v9678_v29 }
 0x715   :  { %v2960_v47 = vmul.f32 %v9631_v17, %v2839_v42  ;;  %v2961_v10 = vmul.f32 %v9632_v24, %v2839_v42  ;;  %5555 = vset.pattern.permute.xlu1 %v9541_v55  ;;  %v3769_v41 = vsel %vm1088_vm5, %v3711_v49, 0.0  ;;  %v4255_v42 = vmul.f32 %v9679_v34, %v7442_v31  ;;  %v9683_v31 = vld [vmem:[#allocation68_spill] sm:$0xff] }
 0x716   :  { %2361 = vperm.xlu1 %5555, %v7513_v43  }
 0x717   :  { %v3024_v63 = vadd.f32 %v2960_v47, %v2755_v23  ;;  %v3025_v26 = vadd.f32 %v2961_v10, %v2756_v5  ;;  %v2357_v47 = vpop.permute.xlu0 %2356  ;;  %v4313_v10 = vsel %vm1088_vm5, %v4255_v42, 0.0 }
 0x719   :  { %v3089_v2 = vmul.f32 %v3025_v26, %v2251_v4  ;;  %v3088_v46 = vmul.f32 %v3024_v63, %v2250_v54  ;;  %v3712_v4 = vmul.f32 %v5896_v61, %v7586_v7 }
 0x71a   :  { %5557 = vset.pattern.permute.xlu1 %v9561_v3 }
 0x71b   :  { %2854 = vperm.xlu1 %5557, %v7513_v43   ;;  %v3145_v0 = vpack.c.bf16 %v3091_v59, %v3089_v2  ;;  %v3144_v52 = vpack.c.bf16 %v3090_v58, %v3088_v46  ;;  %v3772_v28 = vsel %vm1088_vm5, %v3712_v4, 0.0  ;;  %v9676_v43 = vld [vmem:[#allocation24_spill] sm:$0xff]  ;;  %v2851_v63 = vpop.permute.xlu0 %2850  ;;  %v9682_v2 = vld [vmem:[#allocation14_spill] sm:$0xff]  ;;  %v1605_v46 = vsub.f32 %v9683_v31, %v7242_v51 }
 0x71c   :  { %v4256_v15 = vmul.f32 %v9676_v43, %v7586_v7  ;;  %v1606_v58 = vsub.f32 %v9683_v31, %v7247_v13 }
 0x71d   :  { %5187 = vmatprep.mubr.msk.bf16.mxu0 %vm702_vm4, %v3145_v0  ;;  %v5853_v23 = vpop.eup %5852  ;;  %v9684_v0 = vld [vmem:[#allocation64_spill] sm:$0xff]  ;;  %v1669_v29 = vand.u32 2147483647, %v1605_v46 }
 0x71e   :  { %3377 = vmatmul.mubr.bf16.gmra.mrb[48].mxu0 %v3144_v52  ;;  %v4316_v8 = vsel %vm1088_vm5, %v4256_v15, 0.0  ;;  %v7663_v20 = vmul.f32 %v5853_v23, %v9680_v22  ;;  %v5855_v54 = vpop.eup %5854  ;;  %v2000_v52 = vsub.f32 %v9684_v0, %v7238_v50  ;;  %v2001_v61 = vsub.f32 %v9684_v0, %v7240_v27 }
 0x71f   :  { %5559 = vset.pattern.permute.xlu1 %v9572_v53  ;;  %v7669_v59 = vmul.f32 %v5855_v54, %v9682_v2  ;;  %v7680_v4 = vpop.xlane.xlu0 %3755  ;;  %v1670_v44 = vand.u32 2147483647, %v1606_v58  ;;  %v1733_v0 = vsub.f32 1.0, %v1669_v29 }
 0x720   :  { %9685 = vst [vmem:[#allocation50_spill] sm:$0xff] %v7680_v4  ;;  %v2064_v49 = vand.u32 2147483647, %v2000_v52 }
 0x721   :  { %v1734_v46 = vsub.f32 1.0, %v1670_v44 }
 0x722   :  { %v2128_v58 = vsub.f32 1.0, %v2064_v49 }
 0x723   :  { %v7695_v54 = vpop.xlane.xlu0 %4299 }
 0x724   :  { %9689 = vst [vmem:[#allocation66_spill] sm:$0xff] %v7695_v54  ;;  %v2192_v49 = vmax.f32 %v2128_v58, 0.0 }
 0x727   :  { %v2578_v54 = vpop.permute.xlu0 %2577 }
 0x728   :  { %v7644_v5 = vpop.f32.mrb[36].mxu0 }
 0x729   :  { %v3356_v39 = vpop.f32.mrb[37].mxu0 }
 0x72a   :  { %3773 = vadd.xlane.f32.xlu0 %v3772_v28  ;;  %v7649_v11 = vpop.f32.mrb[38].mxu0  ;;  %v9686_v39 = vld [vmem:[#allocation67_spill] sm:$0xff] }
 0x72b   :  { %v3359_v9 = vpop.f32.mrb[39].mxu0  ;;  %v1603_v28 = vsub.f32 %v9686_v39, %v7242_v51  ;;  %v1604_v43 = vsub.f32 %v9686_v39, %v7247_v13  ;;  %v2493_v39 = vmul.f32 %v9629_v18, %v2357_v47 }
 0x72c   :  { %v9688_v9 = vld [vmem:[#allocation70_spill] sm:$0xff] }
 0x72d   :  { %v1999_v35 = vsub.f32 %v9688_v9, %v7240_v27  ;;  %v1667_v34 = vand.u32 2147483647, %v1603_v28  ;;  %v1668_v42 = vand.u32 2147483647, %v1604_v43 }
 0x72e   :  { %4317 = vadd.xlane.f32.xlu0 %v4316_v8  ;;  %v1998_v8 = vsub.f32 %v9688_v9, %v7238_v50 }
 0x72f   :  { %v2063_v22 = vand.u32 2147483647, %v1999_v35  ;;  %v1731_v28 = vsub.f32 1.0, %v1667_v34  ;;  %v1732_v43 = vsub.f32 1.0, %v1668_v42  ;;  %v2967_v34 = vmul.f32 %v9632_v24, %v2851_v63 }
 0x731   :  { %v2127_v35 = vsub.f32 1.0, %v2063_v22  ;;  %v1795_v42 = vmax.f32 %v1731_v28, 0.0  ;;  %v2695_v22 = vmul.f32 %v7283_v25, %v2578_v54 }
 0x73f   :  { %3770 = vadd.xlane.f32.xlu1 %v3769_v41  ;;  %v2065_v41 = vand.u32 2147483647, %v2001_v61  ;;  %v2492_v61 = vmul.f32 %v9628_v6, %v2357_v47 }
 0x741   :  { %v2129_v52 = vsub.f32 1.0, %v2065_v41  ;;  %v2966_v41 = vmul.f32 %v9631_v17, %v2851_v63 }
 0x743   :  { %4314 = vadd.xlane.f32.xlu1 %v4313_v10  ;;  %v2062_v10 = vand.u32 2147483647, %v1998_v8  ;;  %v2193_v47 = vmax.f32 %v2129_v52, 0.0 }
 0x744   :  { %2601 = vperm.xlu0 %5568, %v7663_v20  }
 0x745   :  { %v2126_v8 = vsub.f32 1.0, %v2062_v10  ;;  %v1796_v10 = vmax.f32 %v1732_v43, 0.0 }
 0x746   :  { %v7666_v26 = vpop.xlane.xlu1 %3758 }
 0x747   :  { %9681 = vst [vmem:[#allocation52_spill] sm:$0xff] %v7666_v26 }
 0x748   :  { %5570 = vset.pattern.permute.xlu0 %v9541_v55 }
 0x749   :  { %2396 = vperm.xlu0 %5570, %v7669_v59  }
 0x74a   :  { %v7687_v15 = vpop.xlane.xlu1 %4302 }
 0x74b   :  { %9687 = vst [vmem:[#allocation22_spill] sm:$0xff] %v7687_v15  ;;  %v1797_v15 = vmax.f32 %v1733_v0, 0.0  ;;  %v2191_v0 = vmax.f32 %v2127_v35, 0.0 }
 0x74d   :  { %5572 = vset.pattern.permute.xlu0 %v9561_v3  ;;  %v2256_v63 = vmul.f32 %v2192_v49, %v1797_v15  ;;  %v2255_v38 = vmul.f32 %v2191_v0, %v1796_v10  ;;  %v5898_v15 = vld [vmem:[%s9378_s7 + $0x80] sm:$0xff] }
 0x74e   :  { %v2582_v23 = vpop.permute.xlu1 %2581  ;;  %2882 = vperm.xlu0 %5572, %v7669_v59  }
 0x74f   :  { %v2697_v2 = vmul.f32 %v7283_v25, %v2582_v23  ;;  %v2698_v31 = vmul.f32 %v7285_v40, %v2582_v23  ;;  %v1798_v23 = vmax.f32 %v1734_v46, 0.0 }
 0x751   :  { %v2761_v1 = vadd.f32 %v2697_v2, %v2492_v61  ;;  %v2762_v57 = vadd.f32 %v2698_v31, %v2493_v39  ;;  %v2696_v2 = vmul.f32 %v7285_v40, %v2578_v54  ;;  %v2190_v31 = vmax.f32 %v2126_v8, 0.0 }
 0x752   :  { %v2352_v9 = vpop.permute.xlu1 %2351  ;;  %5574 = vset.pattern.permute.xlu0 %v9572_v53  ;;  %v2257_v28 = vmul.f32 %v2193_v47, %v1798_v23 }
 0x753   :  { %v2490_v29 = vmul.f32 %v9628_v6, %v2352_v9  ;;  %v2491_v44 = vmul.f32 %v9629_v18, %v2352_v9  ;;  %v3030_v46 = vadd.f32 %v2966_v41, %v2761_v1  ;;  %v3031_v61 = vadd.f32 %v2967_v34, %v2762_v57 }
 0x754   :  { %2597 = vperm.xlu1 %5559, %v7519_v12   ;;  %v2254_v43 = vmul.f32 %v2190_v31, %v1795_v42  ;;  %v5899_v31 = vld [vmem:[%s9378_s7 + $0x78] sm:$0xff] }
 0x755   :  { %v2759_v9 = vadd.f32 %v2695_v22, %v2490_v29  ;;  %v2760_v30 = vadd.f32 %v2696_v2, %v2491_v44  ;;  %v3095_v1 = vmul.f32 %v3031_v61, %v2257_v28  ;;  %v3094_v41 = vmul.f32 %v3030_v46, %v2256_v63  ;;  %v9691_v22 = vld [vmem:[#allocation83_spill] sm:$0xff]  ;;  %v9692_v2 = vld [vmem:[#allocation88_spill] sm:$0xff]  ;;  %v9693_v61 = vld [vmem:[#allocation38_spill] sm:$0xff] }
 0x756   :  { %5856 = vrcp.f32 %v9691_v22  ;;  %v3713_v0 = vmul.f32 %v5899_v31, %v7519_v12  ;;  %v9694_v63 = vld [vmem:[#allocation11_spill] sm:$0xff] }
 0x757   :  { %v2847_v39 = vpop.permute.xlu1 %2846  ;;  %5858 = vrcp.f32 %v9692_v2 }
 0x758   :  { %v2964_v58 = vmul.f32 %v9631_v17, %v2847_v39  ;;  %v2965_v52 = vmul.f32 %v9632_v24, %v2847_v39  ;;  %5561 = vset.pattern.permute.xlu1 %v9541_v55  ;;  %v3775_v46 = vsel %vm1088_vm5, %v3713_v0, 0.0  ;;  %v4257_v39 = vmul.f32 %v9693_v61, %v7519_v12  ;;  %v9697_v12 = vld [vmem:[#allocation74_spill] sm:$0xff] }
 0x759   :  { %2371 = vperm.xlu1 %5561, %v7586_v7  }
 0x75a   :  { %v3028_v54 = vadd.f32 %v2964_v58, %v2759_v9  ;;  %v3029_v8 = vadd.f32 %v2965_v52, %v2760_v30  ;;  %v2367_v58 = vpop.permute.xlu0 %2366  ;;  %v4319_v52 = vsel %vm1088_vm5, %v4257_v39, 0.0 }
 0x75c   :  { %v3093_v35 = vmul.f32 %v3029_v8, %v2255_v38  ;;  %v3092_v57 = vmul.f32 %v3028_v54, %v2254_v43  ;;  %v3714_v38 = vmul.f32 %v5898_v15, %v7663_v20 }
 0x75d   :  { %5563 = vset.pattern.permute.xlu1 %v9561_v3 }
 0x75e   :  { %2862 = vperm.xlu1 %5563, %v7586_v7   ;;  %v3147_v29 = vpack.c.bf16 %v3095_v1, %v3093_v35  ;;  %v3146_v44 = vpack.c.bf16 %v3094_v41, %v3092_v57  ;;  %v3778_v49 = vsel %vm1088_vm5, %v3714_v38, 0.0  ;;  %v9690_v7 = vld [vmem:[#allocation25_spill] sm:$0xff]  ;;  %v2859_v54 = vpop.permute.xlu0 %2858  ;;  %v9696_v35 = vld [vmem:[#allocation16_spill] sm:$0xff]  ;;  %v1609_v57 = vsub.f32 %v9697_v12, %v7242_v51 }
 0x75f   :  { %v4258_v47 = vmul.f32 %v9690_v7, %v7663_v20  ;;  %v1610_v41 = vsub.f32 %v9697_v12, %v7247_v13 }
 0x760   :  { %5188 = vmatprep.mubr.msk.bf16.mxu0 %vm702_vm4, %v3147_v29  ;;  %v5857_v9 = vpop.eup %5856  ;;  %v9698_v29 = vld [vmem:[#allocation71_spill] sm:$0xff]  ;;  %v1673_v2 = vand.u32 2147483647, %v1609_v57 }
 0x761   :  { %3385 = vmatmul.mubr.bf16.gmra.mrb[52].mxu0 %v3146_v44  ;;  %v4322_v10 = vsel %vm1088_vm5, %v4258_v47, 0.0  ;;  %v7740_v28 = vmul.f32 %v5857_v9, %v9694_v63  ;;  %v5859_v43 = vpop.eup %5858  ;;  %v2004_v44 = vsub.f32 %v9698_v29, %v7238_v50  ;;  %v2005_v15 = vsub.f32 %v9698_v29, %v7240_v27 }
 0x762   :  { %5565 = vset.pattern.permute.xlu1 %v9572_v53  ;;  %v7746_v1 = vmul.f32 %v5859_v43, %v9696_v35  ;;  %v7757_v38 = vpop.xlane.xlu0 %3761  ;;  %v1674_v31 = vand.u32 2147483647, %v1610_v41  ;;  %v1737_v29 = vsub.f32 1.0, %v1673_v2 }
 0x763   :  { %9699 = vst [vmem:[#allocation31_spill] sm:$0xff] %v7757_v38  ;;  %v2068_v0 = vand.u32 2147483647, %v2004_v44 }
 0x764   :  { %v1738_v57 = vsub.f32 1.0, %v1674_v31  ;;  %v1801_v4 = vmax.f32 %v1737_v29, 0.0 }
 0x765   :  { %v2132_v41 = vsub.f32 1.0, %v2068_v0 }
 0x766   :  { %v7772_v43 = vpop.xlane.xlu0 %4305 }
 0x767   :  { %9703 = vst [vmem:[#allocation10_spill] sm:$0xff] %v7772_v43  ;;  %v2196_v0 = vmax.f32 %v2132_v41, 0.0 }
 0x76b   :  { %v7721_v30 = vpop.f32.mrb[40].mxu0 }
 0x76c   :  { %v3364_v23 = vpop.f32.mrb[41].mxu0 }
 0x76d   :  { %3779 = vadd.xlane.f32.xlu0 %v3778_v49  ;;  %v7726_v34 = vpop.f32.mrb[42].mxu0  ;;  %v9700_v23 = vld [vmem:[#allocation73_spill] sm:$0xff] }
 0x76e   :  { %v3367_v42 = vpop.f32.mrb[43].mxu0  ;;  %v1607_v49 = vsub.f32 %v9700_v23, %v7242_v51  ;;  %v1608_v7 = vsub.f32 %v9700_v23, %v7247_v13  ;;  %v2497_v23 = vmul.f32 %v9629_v18, %v2367_v58 }
 0x76f   :  { %v9702_v42 = vld [vmem:[#allocation76_spill] sm:$0xff] }
 0x770   :  { %v2003_v22 = vsub.f32 %v9702_v42, %v7240_v27  ;;  %v1671_v61 = vand.u32 2147483647, %v1607_v49  ;;  %v1672_v39 = vand.u32 2147483647, %v1608_v7 }
 0x771   :  { %4323 = vadd.xlane.f32.xlu0 %v4322_v10  ;;  %v2002_v10 = vsub.f32 %v9702_v42, %v7238_v50 }
 0x772   :  { %v2067_v63 = vand.u32 2147483647, %v2003_v22  ;;  %v1735_v49 = vsub.f32 1.0, %v1671_v61  ;;  %v1736_v7 = vsub.f32 1.0, %v1672_v39  ;;  %v2971_v61 = vmul.f32 %v9632_v24, %v2859_v54 }
 0x774   :  { %v2131_v22 = vsub.f32 1.0, %v2067_v63  ;;  %v1799_v39 = vmax.f32 %v1735_v49, 0.0 }
 0x776   :  { %v2195_v29 = vmax.f32 %v2131_v22, 0.0 }
 0x782   :  { %3776 = vadd.xlane.f32.xlu1 %v3775_v46  ;;  %v2069_v46 = vand.u32 2147483647, %v2005_v15  ;;  %v2496_v15 = vmul.f32 %v9628_v6, %v2367_v58 }
 0x784   :  { %v2133_v44 = vsub.f32 1.0, %v2069_v46  ;;  %v2970_v46 = vmul.f32 %v9631_v17, %v2859_v54  ;;  %v2260_v54 = vmul.f32 %v2196_v0, %v1801_v4  ;;  %v5900_v4 = vld [vmem:[%s9378_s7 + $0x90] sm:$0xff] }
 0x786   :  { %4320 = vadd.xlane.f32.xlu1 %v4319_v52  ;;  %v2066_v52 = vand.u32 2147483647, %v2002_v10  ;;  %v2197_v58 = vmax.f32 %v2133_v44, 0.0 }
 0x787   :  { %2609 = vperm.xlu0 %5574, %v7740_v28  }
 0x788   :  { %v2130_v10 = vsub.f32 1.0, %v2066_v52  ;;  %v1800_v52 = vmax.f32 %v1736_v7, 0.0 }
 0x789   :  { %v7743_v8 = vpop.xlane.xlu1 %3764 }
 0x78a   :  { %9695 = vst [vmem:[#allocation69_spill] sm:$0xff] %v7743_v8  ;;  %v2259_v32 = vmul.f32 %v2195_v29, %v1800_v52 }
 0x78b   :  { %5576 = vset.pattern.permute.xlu0 %v9541_v55 }
 0x78c   :  { %2406 = vperm.xlu0 %5576, %v7746_v1  }
 0x78d   :  { %v7764_v47 = vpop.xlane.xlu1 %4308 }
 0x78e   :  { %9701 = vst [vmem:[#allocation6_spill] sm:$0xff] %v7764_v47  ;;  %v2586_v47 = vpop.permute.xlu0 %2585 }
 0x78f   :  { %v2699_v63 = vmul.f32 %v7283_v25, %v2586_v47 }
 0x790   :  { %5578 = vset.pattern.permute.xlu0 %v9561_v3 }
 0x791   :  { %v2590_v9 = vpop.permute.xlu1 %2589  ;;  %2890 = vperm.xlu0 %5578, %v7746_v1  }
 0x792   :  { %v2701_v35 = vmul.f32 %v7283_v25, %v2590_v9  ;;  %v2702_v12 = vmul.f32 %v7285_v40, %v2590_v9  ;;  %v1802_v9 = vmax.f32 %v1738_v57, 0.0 }
 0x794   :  { %v2765_v43 = vadd.f32 %v2701_v35, %v2496_v15  ;;  %v2766_v38 = vadd.f32 %v2702_v12, %v2497_v23  ;;  %v2700_v35 = vmul.f32 %v7285_v40, %v2586_v47  ;;  %v2194_v12 = vmax.f32 %v2130_v10, 0.0 }
 0x795   :  { %v2362_v42 = vpop.permute.xlu1 %2361  ;;  %5580 = vset.pattern.permute.xlu0 %v9572_v53  ;;  %v2261_v49 = vmul.f32 %v2197_v58, %v1802_v9 }
 0x796   :  { %v2494_v2 = vmul.f32 %v9628_v6, %v2362_v42  ;;  %v2495_v31 = vmul.f32 %v9629_v18, %v2362_v42  ;;  %v3034_v57 = vadd.f32 %v2970_v46, %v2765_v43  ;;  %v3035_v15 = vadd.f32 %v2971_v61, %v2766_v38 }
 0x797   :  { %2605 = vperm.xlu1 %5565, %v7592_v16   ;;  %v2258_v7 = vmul.f32 %v2194_v12, %v1799_v39  ;;  %v5901_v12 = vld [vmem:[%s9378_s7 + $0x88] sm:$0xff] }
 0x798   :  { %v2763_v42 = vadd.f32 %v2699_v63, %v2494_v2  ;;  %v2764_v21 = vadd.f32 %v2700_v35, %v2495_v31  ;;  %v3099_v43 = vmul.f32 %v3035_v15, %v2261_v49  ;;  %v3098_v46 = vmul.f32 %v3034_v57, %v2260_v54  ;;  %v9705_v63 = vld [vmem:[#allocation89_spill] sm:$0xff]  ;;  %v9706_v35 = vld [vmem:[#allocation94_spill] sm:$0xff]  ;;  %v9707_v15 = vld [vmem:[#allocation40_spill] sm:$0xff] }
 0x799   :  { %5860 = vrcp.f32 %v9705_v63  ;;  %v3715_v29 = vmul.f32 %v5901_v12, %v7592_v16  ;;  %v9708_v54 = vld [vmem:[#allocation13_spill] sm:$0xff] }
 0x79a   :  { %v2855_v23 = vpop.permute.xlu1 %2854  ;;  %5862 = vrcp.f32 %v9706_v35 }
 0x79b   :  { %v2968_v41 = vmul.f32 %v9631_v17, %v2855_v23  ;;  %v2969_v44 = vmul.f32 %v9632_v24, %v2855_v23  ;;  %5567 = vset.pattern.permute.xlu1 %v9541_v55  ;;  %v3781_v57 = vsel %vm1088_vm5, %v3715_v29, 0.0  ;;  %v4259_v23 = vmul.f32 %v9707_v15, %v7592_v16  ;;  %v9711_v16 = vld [vmem:[#allocation79_spill] sm:$0xff] }
 0x79c   :  { %2381 = vperm.xlu1 %5567, %v7663_v20  }
 0x79d   :  { %v3032_v47 = vadd.f32 %v2968_v41, %v2763_v42  ;;  %v3033_v10 = vadd.f32 %v2969_v44, %v2764_v21  ;;  %v2377_v41 = vpop.permute.xlu0 %2376  ;;  %v4325_v44 = vsel %vm1088_vm5, %v4259_v23, 0.0 }
 0x79f   :  { %v3097_v22 = vmul.f32 %v3033_v10, %v2259_v32  ;;  %v3096_v38 = vmul.f32 %v3032_v47, %v2258_v7  ;;  %v3716_v32 = vmul.f32 %v5900_v4, %v7740_v28 }
 0x7a0   :  { %5569 = vset.pattern.permute.xlu1 %v9561_v3 }
 0x7a1   :  { %2870 = vperm.xlu1 %5569, %v7663_v20   ;;  %v3149_v2 = vpack.c.bf16 %v3099_v43, %v3097_v22  ;;  %v3148_v31 = vpack.c.bf16 %v3098_v46, %v3096_v38  ;;  %v3784_v0 = vsel %vm1088_vm5, %v3716_v32, 0.0  ;;  %v9704_v20 = vld [vmem:[#allocation26_spill] sm:$0xff]  ;;  %v2867_v47 = vpop.permute.xlu0 %2866  ;;  %v1613_v38 = vsub.f32 %v9711_v16, %v7242_v51 }
 0x7a2   :  { %v4260_v58 = vmul.f32 %v9704_v20, %v7740_v28  ;;  %v9710_v22 = vld [vmem:[#allocation18_spill] sm:$0xff]  ;;  %v1614_v46 = vsub.f32 %v9711_v16, %v7247_v13 }
 0x7a3   :  { %5189 = vmatprep.mubr.msk.bf16.mxu0 %vm702_vm4, %v3149_v2  ;;  %v5861_v42 = vpop.eup %5860  ;;  %v9712_v2 = vld [vmem:[#allocation77_spill] sm:$0xff]  ;;  %v1677_v35 = vand.u32 2147483647, %v1613_v38 }
 0x7a4   :  { %3393 = vmatmul.mubr.bf16.gmra.mrb[56].mxu0 %v3148_v31  ;;  %v4328_v52 = vsel %vm1088_vm5, %v4260_v58, 0.0  ;;  %v7817_v49 = vmul.f32 %v5861_v42, %v9708_v54  ;;  %v5863_v7 = vpop.eup %5862  ;;  %v2008_v31 = vsub.f32 %v9712_v2, %v7238_v50  ;;  %v2009_v4 = vsub.f32 %v9712_v2, %v7240_v27 }
 0x7a5   :  { %5571 = vset.pattern.permute.xlu1 %v9572_v53  ;;  %v7823_v43 = vmul.f32 %v5863_v7, %v9710_v22  ;;  %v7834_v32 = vpop.xlane.xlu0 %3767  ;;  %v1678_v12 = vand.u32 2147483647, %v1614_v46  ;;  %v1741_v2 = vsub.f32 1.0, %v1677_v35 }
 0x7a6   :  { %9713 = vst [vmem:[#allocation54_spill] sm:$0xff] %v7834_v32  ;;  %v2072_v29 = vand.u32 2147483647, %v2008_v31 }
 0x7a7   :  { %v1742_v38 = vsub.f32 1.0, %v1678_v12  ;;  %v1805_v62 = vmax.f32 %v1741_v2, 0.0 }
 0x7a8   :  { %v2136_v46 = vsub.f32 1.0, %v2072_v29 }
 0x7a9   :  { %v7849_v7 = vpop.xlane.xlu0 %4311 }
 0x7aa   :  { %9717 = vst [vmem:[#allocation53_spill] sm:$0xff] %v7849_v7  ;;  %v2200_v29 = vmax.f32 %v2136_v46, 0.0 }
 0x7ae   :  { %v7798_v21 = vpop.f32.mrb[44].mxu0 }
 0x7af   :  { %v3372_v9 = vpop.f32.mrb[45].mxu0 }
 0x7b0   :  { %3785 = vadd.xlane.f32.xlu0 %v3784_v0  ;;  %v7803_v61 = vpop.f32.mrb[46].mxu0  ;;  %v9714_v9 = vld [vmem:[#allocation80_spill] sm:$0xff] }
 0x7b1   :  { %v3375_v39 = vpop.f32.mrb[47].mxu0  ;;  %v1611_v0 = vsub.f32 %v9714_v9, %v7242_v51  ;;  %v1612_v20 = vsub.f32 %v9714_v9, %v7247_v13  ;;  %v2501_v9 = vmul.f32 %v9629_v18, %v2377_v41 }
 0x7b2   :  { %v9716_v39 = vld [vmem:[#allocation82_spill] sm:$0xff] }
 0x7b3   :  { %v2007_v63 = vsub.f32 %v9716_v39, %v7240_v27  ;;  %v1675_v15 = vand.u32 2147483647, %v1611_v0  ;;  %v1676_v23 = vand.u32 2147483647, %v1612_v20 }
 0x7b4   :  { %4329 = vadd.xlane.f32.xlu0 %v4328_v52  ;;  %v2006_v52 = vsub.f32 %v9716_v39, %v7238_v50 }
 0x7b5   :  { %v2071_v54 = vand.u32 2147483647, %v2007_v63  ;;  %v1739_v0 = vsub.f32 1.0, %v1675_v15  ;;  %v1740_v20 = vsub.f32 1.0, %v1676_v23  ;;  %v2975_v15 = vmul.f32 %v9632_v24, %v2867_v47 }
 0x7b7   :  { %v2135_v63 = vsub.f32 1.0, %v2071_v54  ;;  %v1803_v23 = vmax.f32 %v1739_v0, 0.0 }
 0x7b9   :  { %v2199_v2 = vmax.f32 %v2135_v63, 0.0 }
 0x7c5   :  { %3782 = vadd.xlane.f32.xlu1 %v3781_v57  ;;  %v2073_v57 = vand.u32 2147483647, %v2009_v4  ;;  %v2500_v4 = vmul.f32 %v9628_v6, %v2377_v41 }
 0x7c7   :  { %v2137_v31 = vsub.f32 1.0, %v2073_v57  ;;  %v2974_v57 = vmul.f32 %v9631_v17, %v2867_v47  ;;  %v2264_v47 = vmul.f32 %v2200_v29, %v1805_v62  ;;  %v5902_v62 = vld [vmem:[%s9378_s7 + $0xa0] sm:$0xff] }
 0x7c9   :  { %4326 = vadd.xlane.f32.xlu1 %v4325_v44  ;;  %v2070_v44 = vand.u32 2147483647, %v2006_v52  ;;  %v2201_v41 = vmax.f32 %v2137_v31, 0.0 }
 0x7ca   :  { %2617 = vperm.xlu0 %5580, %v7817_v49  }
 0x7cb   :  { %v2134_v52 = vsub.f32 1.0, %v2070_v44  ;;  %v1804_v44 = vmax.f32 %v1740_v20, 0.0 }
 0x7cc   :  { %v7820_v10 = vpop.xlane.xlu1 %3770 }
 0x7cd   :  { %9709 = vst [vmem:[#allocation58_spill] sm:$0xff] %v7820_v10  ;;  %v2263_v10 = vmul.f32 %v2199_v2, %v1804_v44 }
 0x7ce   :  { %5582 = vset.pattern.permute.xlu0 %v9541_v55 }
 0x7cf   :  { %2416 = vperm.xlu0 %5582, %v7823_v43  }
 0x7d0   :  { %v7841_v58 = vpop.xlane.xlu1 %4314 }
 0x7d1   :  { %9715 = vst [vmem:[#allocation55_spill] sm:$0xff] %v7841_v58  ;;  %v2594_v58 = vpop.permute.xlu0 %2593 }
 0x7d2   :  { %v2703_v54 = vmul.f32 %v7283_v25, %v2594_v58 }
 0x7d3   :  { %5584 = vset.pattern.permute.xlu0 %v9561_v3 }
 0x7d4   :  { %v2598_v42 = vpop.permute.xlu1 %2597  ;;  %2898 = vperm.xlu0 %5584, %v7823_v43  }
 0x7d5   :  { %v2705_v22 = vmul.f32 %v7283_v25, %v2598_v42  ;;  %v2706_v16 = vmul.f32 %v7285_v40, %v2598_v42  ;;  %v1806_v42 = vmax.f32 %v1742_v38, 0.0 }
 0x7d7   :  { %v2769_v7 = vadd.f32 %v2705_v22, %v2500_v4  ;;  %v2770_v32 = vadd.f32 %v2706_v16, %v2501_v9  ;;  %v2704_v22 = vmul.f32 %v7285_v40, %v2594_v58  ;;  %v2198_v16 = vmax.f32 %v2134_v52, 0.0 }
 0x7d8   :  { %v2372_v39 = vpop.permute.xlu1 %2371  ;;  %5586 = vset.pattern.permute.xlu0 %v9572_v53  ;;  %v2265_v0 = vmul.f32 %v2201_v41, %v1806_v42 }
 0x7d9   :  { %v2498_v35 = vmul.f32 %v9628_v6, %v2372_v39  ;;  %v2499_v12 = vmul.f32 %v9629_v18, %v2372_v39  ;;  %v3038_v38 = vadd.f32 %v2974_v57, %v2769_v7  ;;  %v3039_v4 = vadd.f32 %v2975_v15, %v2770_v32 }
 0x7da   :  { %2613 = vperm.xlu1 %5571, %v7669_v59   ;;  %v2262_v20 = vmul.f32 %v2198_v16, %v1803_v23  ;;  %v5903_v16 = vld [vmem:[%s9378_s7 + $0x98] sm:$0xff] }
 0x7db   :  { %v2767_v39 = vadd.f32 %v2703_v54, %v2498_v35  ;;  %v2768_v45 = vadd.f32 %v2704_v22, %v2499_v12  ;;  %v3103_v7 = vmul.f32 %v3039_v4, %v2265_v0  ;;  %v3102_v57 = vmul.f32 %v3038_v38, %v2264_v47  ;;  %v9719_v54 = vld [vmem:[#allocation95_spill] sm:$0xff]  ;;  %v9720_v22 = vld [vmem:[#allocation101_spill] sm:$0xff] }
 0x7dc   :  { %5864 = vrcp.f32 %v9719_v54  ;;  %v3717_v2 = vmul.f32 %v5903_v16, %v7669_v59  ;;  %v9721_v4 = vld [vmem:[#allocation41_spill] sm:$0xff]  ;;  %v9722_v47 = vld [vmem:[#allocation15_spill] sm:$0xff] }
 0x7dd   :  { %v2863_v9 = vpop.permute.xlu1 %2862  ;;  %5866 = vrcp.f32 %v9720_v22 }
 0x7de   :  { %v2972_v46 = vmul.f32 %v9631_v17, %v2863_v9  ;;  %v2973_v31 = vmul.f32 %v9632_v24, %v2863_v9  ;;  %5573 = vset.pattern.permute.xlu1 %v9541_v55  ;;  %v3787_v38 = vsel %vm1088_vm5, %v3717_v2, 0.0  ;;  %v4261_v9 = vmul.f32 %v9721_v4, %v7669_v59  ;;  %v9725_v59 = vld [vmem:[#allocation85_spill] sm:$0xff] }
 0x7df   :  { %2391 = vperm.xlu1 %5573, %v7740_v28  }
 0x7e0   :  { %v3036_v58 = vadd.f32 %v2972_v46, %v2767_v39  ;;  %v3037_v52 = vadd.f32 %v2973_v31, %v2768_v45  ;;  %v3718_v45 = vmul.f32 %v5902_v62, %v7817_v49  ;;  %v2387_v46 = vpop.permute.xlu0 %2386  ;;  %v4331_v31 = vsel %vm1088_vm5, %v4261_v9, 0.0 }
 0x7e2   :  { %v3101_v63 = vmul.f32 %v3037_v52, %v2263_v10  ;;  %v3100_v32 = vmul.f32 %v3036_v58, %v2262_v20  ;;  %v3790_v29 = vsel %vm1088_vm5, %v3718_v45, 0.0 }
 0x7e3   :  { %5575 = vset.pattern.permute.xlu1 %v9561_v3 }
 0x7e4   :  { %2878 = vperm.xlu1 %5575, %v7740_v28   ;;  %v3151_v35 = vpack.c.bf16 %v3103_v7, %v3101_v63  ;;  %v3150_v12 = vpack.c.bf16 %v3102_v57, %v3100_v32  ;;  %v9718_v28 = vld [vmem:[#allocation28_spill] sm:$0xff]  ;;  %v2875_v58 = vpop.permute.xlu0 %2874  ;;  %v9724_v63 = vld [vmem:[#allocation21_spill] sm:$0xff]  ;;  %v1617_v32 = vsub.f32 %v9725_v59, %v7242_v51  ;;  %v1618_v57 = vsub.f32 %v9725_v59, %v7247_v13 }
 0x7e5   :  { %v4262_v41 = vmul.f32 %v9718_v28, %v7817_v49 }
 0x7e6   :  { %5190 = vmatprep.mubr.msk.bf16.mxu0 %vm702_vm4, %v3151_v35  ;;  %v5865_v39 = vpop.eup %5864  ;;  %v9726_v35 = vld [vmem:[#allocation84_spill] sm:$0xff]  ;;  %v1681_v22 = vand.u32 2147483647, %v1617_v32  ;;  %v1682_v16 = vand.u32 2147483647, %v1618_v57 }
 0x7e7   :  { %3401 = vmatmul.mubr.bf16.gmra.mrb[60].mxu0 %v3150_v12  ;;  %v4334_v44 = vsel %vm1088_vm5, %v4262_v41, 0.0  ;;  %v7894_v0 = vmul.f32 %v5865_v39, %v9722_v47  ;;  %v5867_v20 = vpop.eup %5866  ;;  %v2012_v12 = vsub.f32 %v9726_v35, %v7238_v50  ;;  %v2013_v62 = vsub.f32 %v9726_v35, %v7240_v27 }
 0x7e8   :  { %5577 = vset.pattern.permute.xlu1 %v9572_v53  ;;  %v7900_v7 = vmul.f32 %v5867_v20, %v9724_v63  ;;  %v7911_v45 = vpop.xlane.xlu0 %3773  ;;  %v1745_v35 = vsub.f32 1.0, %v1681_v22  ;;  %v1746_v32 = vsub.f32 1.0, %v1682_v16 }
 0x7e9   :  { %9727 = vst [vmem:[#allocation72_spill] sm:$0xff] %v7911_v45  ;;  %v2076_v2 = vand.u32 2147483647, %v2012_v12 }
 0x7eb   :  { %v2140_v57 = vsub.f32 1.0, %v2076_v2 }
 0x7ec   :  { %v7926_v20 = vpop.xlane.xlu0 %4317 }
 0x7ed   :  { %9731 = vst [vmem:[#allocation33_spill] sm:$0xff] %v7926_v20  ;;  %v2204_v2 = vmax.f32 %v2140_v57, 0.0 }
 0x7f1   :  { %v7875_v10 = vpop.f32.mrb[48].mxu0 }
 0x7f2   :  { %v3380_v42 = vpop.f32.mrb[49].mxu0 }
 0x7f3   :  { %3791 = vadd.xlane.f32.xlu0 %v3790_v29  ;;  %v7880_v15 = vpop.f32.mrb[50].mxu0  ;;  %v9728_v42 = vld [vmem:[#allocation86_spill] sm:$0xff] }
 0x7f4   :  { %v3383_v23 = vpop.f32.mrb[51].mxu0  ;;  %v1615_v29 = vsub.f32 %v9728_v42, %v7242_v51  ;;  %v1616_v28 = vsub.f32 %v9728_v42, %v7247_v13  ;;  %v2505_v42 = vmul.f32 %v9629_v18, %v2387_v46 }
 0x7f5   :  { %v9730_v23 = vld [vmem:[#allocation87_spill] sm:$0xff] }
 0x7f6   :  { %v2011_v54 = vsub.f32 %v9730_v23, %v7240_v27  ;;  %v1679_v4 = vand.u32 2147483647, %v1615_v29  ;;  %v1680_v9 = vand.u32 2147483647, %v1616_v28 }
 0x7f7   :  { %4335 = vadd.xlane.f32.xlu0 %v4334_v44  ;;  %v2010_v44 = vsub.f32 %v9730_v23, %v7238_v50 }
 0x7f8   :  { %v2075_v47 = vand.u32 2147483647, %v2011_v54  ;;  %v1743_v29 = vsub.f32 1.0, %v1679_v4  ;;  %v1744_v28 = vsub.f32 1.0, %v1680_v9  ;;  %v2979_v4 = vmul.f32 %v9632_v24, %v2875_v58 }
 0x7fa   :  { %v2139_v54 = vsub.f32 1.0, %v2075_v47  ;;  %v1807_v9 = vmax.f32 %v1743_v29, 0.0 }
 0x808   :  { %3788 = vadd.xlane.f32.xlu1 %v3787_v38  ;;  %v2077_v38 = vand.u32 2147483647, %v2013_v62  ;;  %v2504_v62 = vmul.f32 %v9628_v6, %v2387_v46 }
 0x80a   :  { %v2141_v12 = vsub.f32 1.0, %v2077_v38  ;;  %v2978_v38 = vmul.f32 %v9631_v17, %v2875_v58 }
 0x80c   :  { %4332 = vadd.xlane.f32.xlu1 %v4331_v31  ;;  %v2074_v31 = vand.u32 2147483647, %v2010_v44  ;;  %v2205_v46 = vmax.f32 %v2141_v12, 0.0 }
 0x80d   :  { %2625 = vperm.xlu0 %5586, %v7894_v0  }
 0x80e   :  { %v2138_v44 = vsub.f32 1.0, %v2074_v31  ;;  %v1808_v31 = vmax.f32 %v1744_v28, 0.0 }
 0x80f   :  { %v7897_v52 = vpop.xlane.xlu1 %3776 }
 0x810   :  { %9723 = vst [vmem:[#allocation23_spill] sm:$0xff] %v7897_v52  ;;  %v1809_v52 = vmax.f32 %v1745_v35, 0.0  ;;  %v2203_v35 = vmax.f32 %v2139_v54, 0.0 }
 0x811   :  { %5588 = vset.pattern.permute.xlu0 %v9541_v55 }
 0x812   :  { %2426 = vperm.xlu0 %5588, %v7900_v7   ;;  %v2268_v58 = vmul.f32 %v2204_v2, %v1809_v52  ;;  %v2267_v33 = vmul.f32 %v2203_v35, %v1808_v31  ;;  %v5904_v52 = vld [vmem:[%s9378_s7 + $0xb0] sm:$0xff] }
 0x813   :  { %v7918_v41 = vpop.xlane.xlu1 %4320 }
 0x814   :  { %9729 = vst [vmem:[#allocation75_spill] sm:$0xff] %v7918_v41  ;;  %v2602_v41 = vpop.permute.xlu0 %2601 }
 0x815   :  { %v2707_v47 = vmul.f32 %v7283_v25, %v2602_v41 }
 0x816   :  { %5590 = vset.pattern.permute.xlu0 %v9561_v3 }
 0x817   :  { %v2606_v39 = vpop.permute.xlu1 %2605  ;;  %2906 = vperm.xlu0 %5590, %v7900_v7  }
 0x818   :  { %v2709_v63 = vmul.f32 %v7283_v25, %v2606_v39  ;;  %v2710_v59 = vmul.f32 %v7285_v40, %v2606_v39  ;;  %v1810_v39 = vmax.f32 %v1746_v32, 0.0 }
 0x81a   :  { %v2773_v20 = vadd.f32 %v2709_v63, %v2504_v62  ;;  %v2774_v45 = vadd.f32 %v2710_v59, %v2505_v42  ;;  %v2708_v63 = vmul.f32 %v7285_v40, %v2602_v41  ;;  %v2202_v59 = vmax.f32 %v2138_v44, 0.0 }
 0x81b   :  { %v2382_v23 = vpop.permute.xlu1 %2381  ;;  %5592 = vset.pattern.permute.xlu0 %v9572_v53  ;;  %v2269_v29 = vmul.f32 %v2205_v46, %v1810_v39 }
 0x81c   :  { %v2502_v22 = vmul.f32 %v9628_v6, %v2382_v23  ;;  %v2503_v16 = vmul.f32 %v9629_v18, %v2382_v23  ;;  %v3042_v32 = vadd.f32 %v2978_v38, %v2773_v20  ;;  %v3043_v62 = vadd.f32 %v2979_v4, %v2774_v45 }
 0x81d   :  { %2621 = vperm.xlu1 %5577, %v7746_v1   ;;  %v2266_v28 = vmul.f32 %v2202_v59, %v1807_v9  ;;  %v5905_v59 = vld [vmem:[%s9378_s7 + $0xa8] sm:$0xff] }
 0x81e   :  { %v2771_v23 = vadd.f32 %v2707_v47, %v2502_v22  ;;  %v2772_v19 = vadd.f32 %v2708_v63, %v2503_v16  ;;  %v3107_v20 = vmul.f32 %v3043_v62, %v2269_v29  ;;  %v3106_v38 = vmul.f32 %v3042_v32, %v2268_v58  ;;  %v9733_v47 = vld [vmem:[#allocation100_spill] sm:$0xff]  ;;  %v9734_v63 = vld [vmem:[#allocation107_spill] sm:$0xff]  ;;  %v9735_v62 = vld [vmem:[#allocation42_spill] sm:$0xff] }
 0x81f   :  { %5868 = vrcp.f32 %v9733_v47  ;;  %v3719_v35 = vmul.f32 %v5905_v59, %v7746_v1  ;;  %v9736_v58 = vld [vmem:[#allocation17_spill] sm:$0xff] }
 0x820   :  { %v2871_v42 = vpop.permute.xlu1 %2870  ;;  %5870 = vrcp.f32 %v9734_v63 }
 0x821   :  { %v2976_v57 = vmul.f32 %v9631_v17, %v2871_v42  ;;  %v2977_v12 = vmul.f32 %v9632_v24, %v2871_v42  ;;  %5579 = vset.pattern.permute.xlu1 %v9541_v55  ;;  %v3793_v32 = vsel %vm1088_vm5, %v3719_v35, 0.0  ;;  %v4263_v42 = vmul.f32 %v9735_v62, %v7746_v1  ;;  %v9739_v1 = vld [vmem:[#allocation91_spill] sm:$0xff] }
 0x822   :  { %2401 = vperm.xlu1 %5579, %v7817_v49  }
 0x823   :  { %v3040_v41 = vadd.f32 %v2976_v57, %v2771_v23  ;;  %v3041_v44 = vadd.f32 %v2977_v12, %v2772_v19  ;;  %v3720_v19 = vmul.f32 %v5904_v52, %v7894_v0  ;;  %v2397_v57 = vpop.permute.xlu0 %2396  ;;  %v4337_v12 = vsel %vm1088_vm5, %v4263_v42, 0.0 }
 0x825   :  { %v3105_v54 = vmul.f32 %v3041_v44, %v2267_v33  ;;  %v3104_v45 = vmul.f32 %v3040_v41, %v2266_v28  ;;  %v3796_v2 = vsel %vm1088_vm5, %v3720_v19, 0.0 }
 0x826   :  { %5581 = vset.pattern.permute.xlu1 %v9561_v3 }
 0x827   :  { %2886 = vperm.xlu1 %5581, %v7817_v49   ;;  %v3153_v22 = vpack.c.bf16 %v3107_v20, %v3105_v54  ;;  %v3152_v16 = vpack.c.bf16 %v3106_v38, %v3104_v45  ;;  %v9732_v49 = vld [vmem:[#allocation30_spill] sm:$0xff]  ;;  %v2883_v41 = vpop.permute.xlu0 %2882  ;;  %v9738_v54 = vld [vmem:[#allocation37_spill] sm:$0xff]  ;;  %v1621_v45 = vsub.f32 %v9739_v1, %v7242_v51  ;;  %v1622_v38 = vsub.f32 %v9739_v1, %v7247_v13 }
 0x828   :  { %v4264_v46 = vmul.f32 %v9732_v49, %v7894_v0 }
 0x829   :  { %5191 = vmatprep.mubr.msk.bf16.mxu0 %vm702_vm4, %v3153_v22  ;;  %v5869_v23 = vpop.eup %5868  ;;  %v9740_v22 = vld [vmem:[#allocation90_spill] sm:$0xff]  ;;  %v1685_v63 = vand.u32 2147483647, %v1621_v45  ;;  %v1686_v59 = vand.u32 2147483647, %v1622_v38 }
 0x82a   :  { %3409 = vmatmul.mubr.bf16.gmra.mrb[64].mxu0 %v3152_v16  ;;  %v4340_v31 = vsel %vm1088_vm5, %v4264_v46, 0.0  ;;  %v7971_v29 = vmul.f32 %v5869_v23, %v9736_v58  ;;  %v5871_v28 = vpop.eup %5870  ;;  %v2016_v16 = vsub.f32 %v9740_v22, %v7238_v50  ;;  %v2017_v52 = vsub.f32 %v9740_v22, %v7240_v27 }
 0x82b   :  { %5583 = vset.pattern.permute.xlu1 %v9572_v53  ;;  %v7977_v20 = vmul.f32 %v5871_v28, %v9738_v54  ;;  %v7988_v19 = vpop.xlane.xlu0 %3779  ;;  %v1749_v22 = vsub.f32 1.0, %v1685_v63  ;;  %v1750_v45 = vsub.f32 1.0, %v1686_v59 }
 0x82c   :  { %9741 = vst [vmem:[#allocation12_spill] sm:$0xff] %v7988_v19  ;;  %v2080_v35 = vand.u32 2147483647, %v2016_v16 }
 0x82e   :  { %v2144_v38 = vsub.f32 1.0, %v2080_v35 }
 0x82f   :  { %v8003_v28 = vpop.xlane.xlu0 %4323 }
 0x830   :  { %9745 = vst [vmem:[#allocation57_spill] sm:$0xff] %v8003_v28  ;;  %v2208_v35 = vmax.f32 %v2144_v38, 0.0 }
 0x834   :  { %v7952_v33 = vpop.f32.mrb[52].mxu0 }
 0x835   :  { %v3388_v39 = vpop.f32.mrb[53].mxu0 }
 0x836   :  { %3797 = vadd.xlane.f32.xlu0 %v3796_v2  ;;  %v7957_v4 = vpop.f32.mrb[54].mxu0  ;;  %v9742_v39 = vld [vmem:[#allocation92_spill] sm:$0xff] }
 0x837   :  { %v3391_v9 = vpop.f32.mrb[55].mxu0  ;;  %v1619_v2 = vsub.f32 %v9742_v39, %v7242_v51  ;;  %v1620_v49 = vsub.f32 %v9742_v39, %v7247_v13  ;;  %v2509_v39 = vmul.f32 %v9629_v18, %v2397_v57 }
 0x838   :  { %v9744_v9 = vld [vmem:[#allocation93_spill] sm:$0xff] }
 0x839   :  { %v2015_v47 = vsub.f32 %v9744_v9, %v7240_v27  ;;  %v1683_v62 = vand.u32 2147483647, %v1619_v2  ;;  %v1684_v42 = vand.u32 2147483647, %v1620_v49 }
 0x83a   :  { %4341 = vadd.xlane.f32.xlu0 %v4340_v31  ;;  %v2014_v31 = vsub.f32 %v9744_v9, %v7238_v50 }
 0x83b   :  { %v2079_v58 = vand.u32 2147483647, %v2015_v47  ;;  %v1747_v2 = vsub.f32 1.0, %v1683_v62  ;;  %v1748_v49 = vsub.f32 1.0, %v1684_v42  ;;  %v2983_v62 = vmul.f32 %v9632_v24, %v2883_v41 }
 0x83d   :  { %v2143_v47 = vsub.f32 1.0, %v2079_v58  ;;  %v1811_v42 = vmax.f32 %v1747_v2, 0.0 }
 0x84b   :  { %3794 = vadd.xlane.f32.xlu1 %v3793_v32  ;;  %v2081_v32 = vand.u32 2147483647, %v2017_v52  ;;  %v2508_v52 = vmul.f32 %v9628_v6, %v2397_v57 }
 0x84d   :  { %v2145_v16 = vsub.f32 1.0, %v2081_v32  ;;  %v2982_v32 = vmul.f32 %v9631_v17, %v2883_v41 }
 0x84f   :  { %4338 = vadd.xlane.f32.xlu1 %v4337_v12  ;;  %v2078_v12 = vand.u32 2147483647, %v2014_v31  ;;  %v2209_v57 = vmax.f32 %v2145_v16, 0.0 }
 0x850   :  { %2633 = vperm.xlu0 %5592, %v7971_v29  }
 0x851   :  { %v2142_v31 = vsub.f32 1.0, %v2078_v12  ;;  %v1812_v12 = vmax.f32 %v1748_v49, 0.0 }
 0x852   :  { %v7974_v44 = vpop.xlane.xlu1 %3782 }
 0x853   :  { %9737 = vst [vmem:[#allocation7_spill] sm:$0xff] %v7974_v44  ;;  %v1813_v44 = vmax.f32 %v1749_v22, 0.0  ;;  %v2207_v22 = vmax.f32 %v2143_v47, 0.0 }
 0x854   :  { %5594 = vset.pattern.permute.xlu0 %v9541_v55 }
 0x855   :  { %2436 = vperm.xlu0 %5594, %v7977_v20   ;;  %v2272_v41 = vmul.f32 %v2208_v35, %v1813_v44  ;;  %v2271_v56 = vmul.f32 %v2207_v22, %v1812_v12  ;;  %v5906_v44 = vld [vmem:[%s9378_s7 + $0xc0] sm:$0xff] }
 0x856   :  { %v7995_v46 = vpop.xlane.xlu1 %4326 }
 0x857   :  { %9743 = vst [vmem:[#allocation63_spill] sm:$0xff] %v7995_v46  ;;  %v2610_v46 = vpop.permute.xlu0 %2609 }
 0x858   :  { %v2711_v58 = vmul.f32 %v7283_v25, %v2610_v46 }
 0x859   :  { %5596 = vset.pattern.permute.xlu0 %v9561_v3 }
 0x85a   :  { %v2614_v23 = vpop.permute.xlu1 %2613  ;;  %2914 = vperm.xlu0 %5596, %v7977_v20  }
 0x85b   :  { %v2713_v54 = vmul.f32 %v7283_v25, %v2614_v23  ;;  %v2714_v1 = vmul.f32 %v7285_v40, %v2614_v23  ;;  %v1814_v23 = vmax.f32 %v1750_v45, 0.0 }
 0x85d   :  { %v2777_v19 = vadd.f32 %v2713_v54, %v2508_v52  ;;  %v2778_v28 = vadd.f32 %v2714_v1, %v2509_v39  ;;  %v2712_v54 = vmul.f32 %v7285_v40, %v2610_v46  ;;  %v2206_v1 = vmax.f32 %v2142_v31, 0.0 }
 0x85e   :  { %v2392_v9 = vpop.permute.xlu1 %2391  ;;  %5598 = vset.pattern.permute.xlu0 %v9572_v53  ;;  %v2273_v2 = vmul.f32 %v2209_v57, %v1814_v23  ;;  %v9746_v57 = vld [vmem:[#allocation32_spill] sm:$0xff] }
 0x85f   :  { %v2506_v63 = vmul.f32 %v9628_v6, %v2392_v9  ;;  %v2507_v59 = vmul.f32 %v9629_v18, %v2392_v9  ;;  %v3046_v45 = vadd.f32 %v2982_v32, %v2777_v19  ;;  %v3047_v52 = vadd.f32 %v2983_v62, %v2778_v28 }
 0x860   :  { %2629 = vperm.xlu1 %5583, %v7823_v43   ;;  %v2270_v49 = vmul.f32 %v2206_v1, %v1811_v42  ;;  %v5907_v1 = vld [vmem:[%s9378_s7 + $0xb8] sm:$0xff] }
 0x861   :  { %v2775_v9 = vadd.f32 %v2711_v58, %v2506_v63  ;;  %v2776_v8 = vadd.f32 %v2712_v54, %v2507_v59  ;;  %v3110_v47 = vmul.f32 %v3046_v45, %v2272_v41  ;;  %v3111_v32 = vmul.f32 %v3047_v52, %v2273_v2  ;;  %v9747_v58 = vld [vmem:[#allocation106_spill] sm:$0xff]  ;;  %v9749_v52 = vld [vmem:[#allocation43_spill] sm:$0xff] }
 0x862   :  { %5872 = vrcp.f32 %v9747_v58  ;;  %v9748_v54 = vld [vmem:[#allocation114_spill] sm:$0xff]  ;;  %v3721_v22 = vmul.f32 %v5907_v1, %v7823_v43  ;;  %v9750_v41 = vld [vmem:[#allocation19_spill] sm:$0xff] }
 0x863   :  { %v2879_v39 = vpop.permute.xlu1 %2878  ;;  %5874 = vrcp.f32 %v9748_v54 }
 0x864   :  { %v2980_v38 = vmul.f32 %v9631_v17, %v2879_v39  ;;  %v2981_v16 = vmul.f32 %v9632_v24, %v2879_v39  ;;  %5585 = vset.pattern.permute.xlu1 %v9541_v55  ;;  %v3799_v45 = vsel %vm1088_vm5, %v3721_v22, 0.0  ;;  %v4265_v39 = vmul.f32 %v9749_v52, %v7823_v43  ;;  %v9753_v43 = vld [vmem:[#allocation96_spill] sm:$0xff] }
 0x865   :  { %2411 = vperm.xlu1 %5585, %v7894_v0  }
 0x866   :  { %v3044_v46 = vadd.f32 %v2980_v38, %v2775_v9  ;;  %v3045_v31 = vadd.f32 %v2981_v16, %v2776_v8  ;;  %v3722_v8 = vmul.f32 %v5906_v44, %v7971_v29  ;;  %v2407_v38 = vpop.permute.xlu0 %2406  ;;  %v4343_v16 = vsel %vm1088_vm5, %v4265_v39, 0.0 }
 0x868   :  { %v3108_v19 = vmul.f32 %v3044_v46, %v2270_v49  ;;  %v3109_v28 = vmul.f32 %v3045_v31, %v2271_v56  ;;  %v3802_v35 = vsel %vm1088_vm5, %v3722_v8, 0.0 }
 0x869   :  { %5587 = vset.pattern.permute.xlu1 %v9561_v3 }
 0x86a   :  { %v3154_v63 = vpack.c.bf16 %v3110_v47, %v3108_v19  ;;  %2894 = vperm.xlu1 %5587, %v7894_v0   ;;  %v3155_v59 = vpack.c.bf16 %v3111_v32, %v3109_v28  ;;  %v4266_v0 = vmul.f32 %v9746_v57, %v7971_v29  ;;  %v2891_v46 = vpop.permute.xlu0 %2890  ;;  %v9752_v47 = vld [vmem:[#allocation49_spill] sm:$0xff]  ;;  %v1625_v28 = vsub.f32 %v9753_v43, %v7242_v51 }
 0x86b   :  { %v1626_v32 = vsub.f32 %v9753_v43, %v7247_v13 }
 0x86c   :  { %5192 = vmatprep.mubr.msk.bf16.mxu1 %vm702_vm4, %v3155_v59  ;;  %v4346_v12 = vsel %vm1088_vm5, %v4266_v0, 0.0  ;;  %v5873_v9 = vpop.eup %5872  ;;  %v1689_v54 = vand.u32 2147483647, %v1625_v28 }
 0x86d   :  { %3417 = vmatmul.mubr.bf16.vlgmr.msra.gmra.mrb[32].mxu1 %v3154_v63  ;;  %v8048_v2 = vmul.f32 %v5873_v9, %v9750_v41  ;;  %v5875_v49 = vpop.eup %5874  ;;  %v9754_v63 = vld [vmem:[#allocation97_spill] sm:$0xff]  ;;  %v1690_v1 = vand.u32 2147483647, %v1626_v32 }
 0x86e   :  { %5589 = vset.pattern.permute.xlu1 %v9572_v53  ;;  %v8054_v19 = vmul.f32 %v5875_v49, %v9752_v47  ;;  %v2020_v59 = vsub.f32 %v9754_v63, %v7238_v50  ;;  %v2021_v44 = vsub.f32 %v9754_v63, %v7240_v27  ;;  %v8065_v8 = vpop.xlane.xlu0 %3785  ;;  %v1753_v63 = vsub.f32 1.0, %v1689_v54 }
 0x86f   :  { %9755 = vst [vmem:[#allocation65_spill] sm:$0xff] %v8065_v8  ;;  %v1754_v28 = vsub.f32 1.0, %v1690_v1 }
 0x870   :  { %v2084_v22 = vand.u32 2147483647, %v2020_v59 }
 0x872   :  { %v8080_v49 = vpop.xlane.xlu0 %4329  ;;  %v2148_v32 = vsub.f32 1.0, %v2084_v22 }
 0x873   :  { %9759 = vst [vmem:[#allocation78_spill] sm:$0xff] %v8080_v49 }
 0x874   :  { %v2212_v22 = vmax.f32 %v2148_v32, 0.0 }
 0x877   :  { %v8029_v23 = vpop.f32.mrb[56].mxu0 }
 0x878   :  { %v3396_v56 = vpop.f32.mrb[57].mxu0 }
 0x879   :  { %3803 = vadd.xlane.f32.xlu0 %v3802_v35  ;;  %v8034_v62 = vpop.f32.mrb[58].mxu0  ;;  %v9756_v56 = vld [vmem:[#allocation99_spill] sm:$0xff] }
 0x87a   :  { %v3399_v42 = vpop.f32.mrb[59].mxu0  ;;  %v1623_v35 = vsub.f32 %v9756_v56, %v7242_v51  ;;  %v1624_v57 = vsub.f32 %v9756_v56, %v7247_v13  ;;  %v2513_v56 = vmul.f32 %v9629_v18, %v2407_v38 }
 0x87b   :  { %v9758_v42 = vld [vmem:[#allocation98_spill] sm:$0xff] }
 0x87c   :  { %v2019_v58 = vsub.f32 %v9758_v42, %v7240_v27  ;;  %v1687_v52 = vand.u32 2147483647, %v1623_v35  ;;  %v1688_v39 = vand.u32 2147483647, %v1624_v57 }
 0x87d   :  { %4347 = vadd.xlane.f32.xlu0 %v4346_v12  ;;  %v2018_v12 = vsub.f32 %v9758_v42, %v7238_v50 }
 0x87e   :  { %v2083_v41 = vand.u32 2147483647, %v2019_v58  ;;  %v1751_v35 = vsub.f32 1.0, %v1687_v52  ;;  %v1752_v57 = vsub.f32 1.0, %v1688_v39  ;;  %v2987_v52 = vmul.f32 %v9632_v24, %v2891_v46 }
 0x880   :  { %v2147_v58 = vsub.f32 1.0, %v2083_v41  ;;  %v1815_v39 = vmax.f32 %v1751_v35, 0.0 }
 0x88e   :  { %3800 = vadd.xlane.f32.xlu1 %v3799_v45  ;;  %v2085_v45 = vand.u32 2147483647, %v2021_v44  ;;  %v2512_v44 = vmul.f32 %v9628_v6, %v2407_v38 }
 0x890   :  { %v2149_v59 = vsub.f32 1.0, %v2085_v45  ;;  %v2986_v45 = vmul.f32 %v9631_v17, %v2891_v46 }
 0x892   :  { %4344 = vadd.xlane.f32.xlu1 %v4343_v16  ;;  %v2082_v16 = vand.u32 2147483647, %v2018_v12  ;;  %v2213_v38 = vmax.f32 %v2149_v59, 0.0 }
 0x893   :  { %2641 = vperm.xlu0 %5598, %v8048_v2  }
 0x894   :  { %v2146_v12 = vsub.f32 1.0, %v2082_v16  ;;  %v1816_v16 = vmax.f32 %v1752_v57, 0.0 }
 0x895   :  { %v8051_v31 = vpop.xlane.xlu1 %3788 }
 0x896   :  { %9751 = vst [vmem:[#allocation59_spill] sm:$0xff] %v8051_v31  ;;  %v1817_v31 = vmax.f32 %v1753_v63, 0.0  ;;  %v2211_v63 = vmax.f32 %v2147_v58, 0.0 }
 0x897   :  { %5600 = vset.pattern.permute.xlu0 %v9541_v55 }
 0x898   :  { %2446 = vperm.xlu0 %5600, %v8054_v19   ;;  %v2276_v46 = vmul.f32 %v2212_v22, %v1817_v31  ;;  %v2275_v26 = vmul.f32 %v2211_v63, %v1816_v16  ;;  %v5908_v31 = vld [vmem:[%s9378_s7 + $0xd0] sm:$0xff] }
 0x899   :  { %v8072_v0 = vpop.xlane.xlu1 %4332 }
 0x89a   :  { %9757 = vst [vmem:[#allocation24_spill] sm:$0xff] %v8072_v0  ;;  %v2618_v0 = vpop.permute.xlu0 %2617 }
 0x89b   :  { %v2715_v41 = vmul.f32 %v7283_v25, %v2618_v0 }
 0x89c   :  { %5602 = vset.pattern.permute.xlu0 %v9561_v3 }
 0x89d   :  { %v2622_v9 = vpop.permute.xlu1 %2621  ;;  %2922 = vperm.xlu0 %5602, %v8054_v19  }
 0x89e   :  { %v2717_v47 = vmul.f32 %v7283_v25, %v2622_v9  ;;  %v2718_v43 = vmul.f32 %v7285_v40, %v2622_v9  ;;  %v1818_v9 = vmax.f32 %v1754_v28, 0.0 }
 0x8a0   :  { %v2781_v8 = vadd.f32 %v2717_v47, %v2512_v44  ;;  %v2782_v49 = vadd.f32 %v2718_v43, %v2513_v56  ;;  %v2716_v47 = vmul.f32 %v7285_v40, %v2618_v0  ;;  %v2210_v43 = vmax.f32 %v2146_v12, 0.0 }
 0x8a1   :  { %v2402_v42 = vpop.permute.xlu1 %2401  ;;  %5604 = vset.pattern.permute.xlu0 %v9572_v53  ;;  %v2277_v35 = vmul.f32 %v2213_v38, %v1818_v9 }
 0x8a2   :  { %v2510_v54 = vmul.f32 %v9628_v6, %v2402_v42  ;;  %v2511_v1 = vmul.f32 %v9629_v18, %v2402_v42  ;;  %v3050_v28 = vadd.f32 %v2986_v45, %v2781_v8  ;;  %v3051_v44 = vadd.f32 %v2987_v52, %v2782_v49 }
 0x8a3   :  { %2637 = vperm.xlu1 %5589, %v7900_v7   ;;  %v2274_v57 = vmul.f32 %v2210_v43, %v1815_v39  ;;  %v5909_v43 = vld [vmem:[%s9378_s7 + $0xc8] sm:$0xff] }
 0x8a4   :  { %v2779_v42 = vadd.f32 %v2715_v41, %v2510_v54  ;;  %v2780_v37 = vadd.f32 %v2716_v47, %v2511_v1  ;;  %v3115_v8 = vmul.f32 %v3051_v44, %v2277_v35  ;;  %v3114_v45 = vmul.f32 %v3050_v28, %v2276_v46  ;;  %v9761_v41 = vld [vmem:[#allocation111_spill] sm:$0xff]  ;;  %v9762_v47 = vld [vmem:[#allocation121_spill] sm:$0xff] }
 0x8a5   :  { %5876 = vrcp.f32 %v9761_v41  ;;  %v3723_v63 = vmul.f32 %v5909_v43, %v7900_v7  ;;  %v9763_v44 = vld [vmem:[#allocation45_spill] sm:$0xff]  ;;  %v9764_v46 = vld [vmem:[#allocation27_spill] sm:$0xff] }
 0x8a6   :  { %v2887_v56 = vpop.permute.xlu1 %2886  ;;  %5878 = vrcp.f32 %v9762_v47 }
 0x8a7   :  { %v2984_v32 = vmul.f32 %v9631_v17, %v2887_v56  ;;  %v2985_v59 = vmul.f32 %v9632_v24, %v2887_v56  ;;  %5591 = vset.pattern.permute.xlu1 %v9541_v55  ;;  %v3805_v28 = vsel %vm1088_vm5, %v3723_v63, 0.0  ;;  %v4267_v56 = vmul.f32 %v9763_v44, %v7900_v7  ;;  %v9767_v7 = vld [vmem:[#allocation102_spill] sm:$0xff] }
 0x8a8   :  { %2421 = vperm.xlu1 %5591, %v7971_v29  }
 0x8a9   :  { %v3048_v0 = vadd.f32 %v2984_v32, %v2779_v42  ;;  %v3049_v12 = vadd.f32 %v2985_v59, %v2780_v37  ;;  %v3724_v37 = vmul.f32 %v5908_v31, %v8048_v2  ;;  %v2417_v32 = vpop.permute.xlu0 %2416  ;;  %v4349_v59 = vsel %vm1088_vm5, %v4267_v56, 0.0 }
 0x8ab   :  { %v3113_v58 = vmul.f32 %v3049_v12, %v2275_v26  ;;  %v3112_v49 = vmul.f32 %v3048_v0, %v2274_v57  ;;  %v3808_v22 = vsel %vm1088_vm5, %v3724_v37, 0.0 }
 0x8ac   :  { %5593 = vset.pattern.permute.xlu1 %v9561_v3 }
 0x8ad   :  { %2902 = vperm.xlu1 %5593, %v7971_v29   ;;  %v3157_v54 = vpack.c.bf16 %v3115_v8, %v3113_v58  ;;  %v3156_v1 = vpack.c.bf16 %v3114_v45, %v3112_v49  ;;  %v9760_v29 = vld [vmem:[#allocation34_spill] sm:$0xff]  ;;  %v2899_v0 = vpop.permute.xlu0 %2898  ;;  %v9766_v58 = vld [vmem:[#allocation61_spill] sm:$0xff]  ;;  %v1629_v49 = vsub.f32 %v9767_v7, %v7242_v51  ;;  %v1630_v45 = vsub.f32 %v9767_v7, %v7247_v13 }
 0x8ae   :  { %v4268_v38 = vmul.f32 %v9760_v29, %v8048_v2 }
 0x8af   :  { %5193 = vmatprep.mubr.msk.bf16.mxu1 %vm702_vm4, %v3157_v54  ;;  %v5877_v42 = vpop.eup %5876  ;;  %v9768_v54 = vld [vmem:[#allocation103_spill] sm:$0xff]  ;;  %v1693_v47 = vand.u32 2147483647, %v1629_v49  ;;  %v1694_v43 = vand.u32 2147483647, %v1630_v45 }
 0x8b0   :  { %3425 = vmatmul.mubr.bf16.gmra.mrb[36].mxu1 %v3156_v1  ;;  %v4352_v16 = vsel %vm1088_vm5, %v4268_v38, 0.0  ;;  %v8125_v35 = vmul.f32 %v5877_v42, %v9764_v46  ;;  %v5879_v57 = vpop.eup %5878  ;;  %v2024_v1 = vsub.f32 %v9768_v54, %v7238_v50  ;;  %v2025_v31 = vsub.f32 %v9768_v54, %v7240_v27 }
 0x8b1   :  { %5595 = vset.pattern.permute.xlu1 %v9572_v53  ;;  %v8131_v8 = vmul.f32 %v5879_v57, %v9766_v58  ;;  %v8142_v37 = vpop.xlane.xlu0 %3791  ;;  %v1757_v54 = vsub.f32 1.0, %v1693_v47  ;;  %v1758_v49 = vsub.f32 1.0, %v1694_v43 }
 0x8b2   :  { %9769 = vst [vmem:[#allocation35_spill] sm:$0xff] %v8142_v37  ;;  %v2088_v63 = vand.u32 2147483647, %v2024_v1 }
 0x8b4   :  { %v2152_v45 = vsub.f32 1.0, %v2088_v63 }
 0x8b5   :  { %v8157_v57 = vpop.xlane.xlu0 %4335 }
 0x8b6   :  { %9773 = vst [vmem:[#allocation14_spill] sm:$0xff] %v8157_v57  ;;  %v2216_v63 = vmax.f32 %v2152_v45, 0.0 }
 0x8ba   :  { %v8106_v26 = vpop.f32.mrb[60].mxu0 }
 0x8bb   :  { %v3404_v9 = vpop.f32.mrb[61].mxu0 }
 0x8bc   :  { %3809 = vadd.xlane.f32.xlu0 %v3808_v22  ;;  %v8111_v52 = vpop.f32.mrb[62].mxu0  ;;  %v9770_v9 = vld [vmem:[#allocation105_spill] sm:$0xff] }
 0x8bd   :  { %v3407_v39 = vpop.f32.mrb[63].mxu0  ;;  %v1627_v22 = vsub.f32 %v9770_v9, %v7242_v51  ;;  %v1628_v29 = vsub.f32 %v9770_v9, %v7247_v13  ;;  %v2517_v9 = vmul.f32 %v9629_v18, %v2417_v32 }
 0x8be   :  { %v9772_v39 = vld [vmem:[#allocation104_spill] sm:$0xff] }
 0x8bf   :  { %v2023_v41 = vsub.f32 %v9772_v39, %v7240_v27  ;;  %v1691_v44 = vand.u32 2147483647, %v1627_v22  ;;  %v1692_v56 = vand.u32 2147483647, %v1628_v29 }
 0x8c0   :  { %4353 = vadd.xlane.f32.xlu0 %v4352_v16  ;;  %v2022_v16 = vsub.f32 %v9772_v39, %v7238_v50 }
 0x8c1   :  { %v2087_v46 = vand.u32 2147483647, %v2023_v41  ;;  %v1755_v22 = vsub.f32 1.0, %v1691_v44  ;;  %v1756_v29 = vsub.f32 1.0, %v1692_v56  ;;  %v2991_v44 = vmul.f32 %v9632_v24, %v2899_v0 }
 0x8c3   :  { %v2151_v41 = vsub.f32 1.0, %v2087_v46  ;;  %v1819_v56 = vmax.f32 %v1755_v22, 0.0 }
 0x8d1   :  { %3806 = vadd.xlane.f32.xlu1 %v3805_v28  ;;  %v2089_v28 = vand.u32 2147483647, %v2025_v31  ;;  %v2516_v31 = vmul.f32 %v9628_v6, %v2417_v32 }
 0x8d3   :  { %v2153_v1 = vsub.f32 1.0, %v2089_v28  ;;  %v2990_v28 = vmul.f32 %v9631_v17, %v2899_v0 }
 0x8d5   :  { %4350 = vadd.xlane.f32.xlu1 %v4349_v59  ;;  %v2086_v59 = vand.u32 2147483647, %v2022_v16  ;;  %v2217_v32 = vmax.f32 %v2153_v1, 0.0 }
 0x8d6   :  { %2649 = vperm.xlu0 %5604, %v8125_v35  }
 0x8d7   :  { %v2150_v16 = vsub.f32 1.0, %v2086_v59  ;;  %v1820_v59 = vmax.f32 %v1756_v29, 0.0 }
 0x8d8   :  { %v8128_v12 = vpop.xlane.xlu1 %3794 }
 0x8d9   :  { %9765 = vst [vmem:[#allocation81_spill] sm:$0xff] %v8128_v12  ;;  %v1821_v12 = vmax.f32 %v1757_v54, 0.0  ;;  %v2215_v54 = vmax.f32 %v2151_v41, 0.0 }
 0x8da   :  { %5606 = vset.pattern.permute.xlu0 %v9541_v55 }
 0x8db   :  { %2456 = vperm.xlu0 %5606, %v8131_v8   ;;  %v2280_v0 = vmul.f32 %v2216_v63, %v1821_v12  ;;  %v2279_v14 = vmul.f32 %v2215_v54, %v1820_v59  ;;  %v5910_v12 = vld [vmem:[%s9378_s7 + $0xe0] sm:$0xff] }
 0x8dc   :  { %v8149_v38 = vpop.xlane.xlu1 %4338 }
 0x8dd   :  { %9771 = vst [vmem:[#allocation9_spill] sm:$0xff] %v8149_v38  ;;  %v2626_v38 = vpop.permute.xlu0 %2625 }
 0x8de   :  { %v2719_v46 = vmul.f32 %v7283_v25, %v2626_v38 }
 0x8df   :  { %5608 = vset.pattern.permute.xlu0 %v9561_v3 }
 0x8e0   :  { %v2630_v42 = vpop.permute.xlu1 %2629  ;;  %2930 = vperm.xlu0 %5608, %v8131_v8  }
 0x8e1   :  { %v2721_v58 = vmul.f32 %v7283_v25, %v2630_v42  ;;  %v2722_v7 = vmul.f32 %v7285_v40, %v2630_v42  ;;  %v1822_v42 = vmax.f32 %v1758_v49, 0.0 }
 0x8e3   :  { %v2785_v37 = vadd.f32 %v2721_v58, %v2516_v31  ;;  %v2786_v57 = vadd.f32 %v2722_v7, %v2517_v9  ;;  %v2720_v58 = vmul.f32 %v7285_v40, %v2626_v38  ;;  %v2214_v7 = vmax.f32 %v2150_v16, 0.0 }
 0x8e4   :  { %v2412_v39 = vpop.permute.xlu1 %2411  ;;  %5610 = vset.pattern.permute.xlu0 %v9572_v53  ;;  %v2281_v22 = vmul.f32 %v2217_v32, %v1822_v42 }
 0x8e5   :  { %v2514_v47 = vmul.f32 %v9628_v6, %v2412_v39  ;;  %v2515_v43 = vmul.f32 %v9629_v18, %v2412_v39  ;;  %v3054_v49 = vadd.f32 %v2990_v28, %v2785_v37  ;;  %v3055_v31 = vadd.f32 %v2991_v44, %v2786_v57 }
 0x8e6   :  { %2645 = vperm.xlu1 %5595, %v7977_v20   ;;  %v2278_v29 = vmul.f32 %v2214_v7, %v1819_v56 }
 0x8e7   :  { %v2783_v39 = vadd.f32 %v2719_v46, %v2514_v47  ;;  %v2784_v36 = vadd.f32 %v2720_v58, %v2515_v43  ;;  %v3119_v37 = vmul.f32 %v3055_v31, %v2281_v22  ;;  %v3118_v28 = vmul.f32 %v3054_v49, %v2280_v0  ;;  %v9776_v46 = vld [vmem:[#allocation117_spill] sm:$0xff]  ;;  %v5911_v58 = vld [vmem:[%s9378_s7 + $0xd8] sm:$0xff]  ;;  %v9777_v49 = vld [vmem:[#allocation46_spill] sm:$0xff] }
 0x8e8   :  { %5880 = vrcp.f32 %v9776_v46  ;;  %v3725_v7 = vmul.f32 %v5911_v58, %v7977_v20  ;;  %v4269_v31 = vmul.f32 %v9777_v49, %v7977_v20 }
 0x8e9   :  { %v2895_v9 = vpop.permute.xlu1 %2894 }
 0x8ea   :  { %v2988_v45 = vmul.f32 %v9631_v17, %v2895_v9  ;;  %v2989_v1 = vmul.f32 %v9632_v24, %v2895_v9  ;;  %5597 = vset.pattern.permute.xlu1 %v9541_v55  ;;  %v3811_v54 = vsel %vm1088_vm5, %v3725_v7, 0.0 }
 0x8eb   :  { %2431 = vperm.xlu1 %5597, %v8048_v2  }
 0x8ec   :  { %v3052_v38 = vadd.f32 %v2988_v45, %v2783_v39  ;;  %v3053_v16 = vadd.f32 %v2989_v1, %v2784_v36  ;;  %v3726_v36 = vmul.f32 %v5910_v12, %v8125_v35  ;;  %v2427_v39 = vpop.permute.xlu0 %2426  ;;  %v4355_v45 = vsel %vm1088_vm5, %v4269_v31, 0.0  ;;  %v9778_v1 = vld [vmem:[#allocation44_spill] sm:$0xff] }
 0x8ee   :  { %v3117_v41 = vmul.f32 %v3053_v16, %v2279_v14  ;;  %v3116_v57 = vmul.f32 %v3052_v38, %v2278_v29  ;;  %v3814_v63 = vsel %vm1088_vm5, %v3726_v36, 0.0  ;;  %v9780_v38 = vld [vmem:[#allocation108_spill] sm:$0xff] }
 0x8ef   :  { %5599 = vset.pattern.permute.xlu1 %v9561_v3  ;;  %v1633_v16 = vsub.f32 %v9780_v38, %v7242_v51  ;;  %v1634_v20 = vsub.f32 %v9780_v38, %v7247_v13 }
 0x8f0   :  { %2910 = vperm.xlu1 %5599, %v8048_v2   ;;  %v3159_v47 = vpack.c.bf16 %v3119_v37, %v3117_v41  ;;  %v3158_v43 = vpack.c.bf16 %v3118_v28, %v3116_v57  ;;  %v9774_v2 = vld [vmem:[#allocation36_spill] sm:$0xff]  ;;  %v2907_v22 = vpop.permute.xlu0 %2906  ;;  %v9781_v41 = vld [vmem:[#allocation109_spill] sm:$0xff] }
 0x8f1   :  { %v4270_v32 = vmul.f32 %v9774_v2, %v8125_v35  ;;  %v2028_v37 = vsub.f32 %v9781_v41, %v7238_v50  ;;  %v2029_v57 = vsub.f32 %v9781_v41, %v7240_v27 }
 0x8f2   :  { %5194 = vmatprep.mubr.msk.bf16.mxu1 %vm702_vm4, %v3159_v47  ;;  %v5881_v9 = vpop.eup %5880  ;;  %v9783_v47 = vld [vmem:[#allocation112_spill] sm:$0xff] }
 0x8f3   :  { %3433 = vmatmul.mubr.bf16.gmra.mrb[40].mxu1 %v3158_v43  ;;  %v4358_v59 = vsel %vm1088_vm5, %v4270_v32, 0.0  ;;  %v8201_v0 = vmul.f32 %v5881_v9, %v9778_v1  ;;  %v1631_v43 = vsub.f32 %v9783_v47, %v7242_v51  ;;  %v1632_v12 = vsub.f32 %v9783_v47, %v7247_v13 }
 0x8f4   :  { %5601 = vset.pattern.permute.xlu1 %v9572_v53  ;;  %v8215_v28 = vpop.xlane.xlu0 %3797  ;;  %v1697_v32 = vand.u32 2147483647, %v1633_v16  ;;  %v2093_v46 = vand.u32 2147483647, %v2029_v57  ;;  %v2520_v16 = vmul.f32 %v9628_v6, %v2427_v39 }
 0x8f5   :  { %9782 = vst [vmem:[#allocation67_spill] sm:$0xff] %v8215_v28  ;;  %v1695_v58 = vand.u32 2147483647, %v1631_v43  ;;  %v1696_v7 = vand.u32 2147483647, %v1632_v12 }
 0x8f6   :  { %v1761_v38 = vsub.f32 1.0, %v1697_v32 }
 0x8f7   :  { %v1760_v57 = vsub.f32 1.0, %v1696_v7 }
 0x8f8   :  { %v8227_v9 = vpop.xlane.xlu0 %4341 }
 0x8f9   :  { %9786 = vst [vmem:[#allocation25_spill] sm:$0xff] %v8227_v9  ;;  %v1825_v9 = vmax.f32 %v1761_v38, 0.0  ;;  %v1824_v7 = vmax.f32 %v1760_v57, 0.0 }
 0x8fd   :  { %v8183_v14 = vpop.f32.mrb[64].mxu0 }
 0x8fe   :  { %v3412_v42 = vpop.f32.mrb[65].mxu0 }
 0x8ff   :  { %3815 = vadd.xlane.f32.xlu0 %v3814_v63  ;;  %v8188_v44 = vpop.f32.mrb[66].mxu0  ;;  %v9785_v42 = vld [vmem:[#allocation110_spill] sm:$0xff] }
 0x900   :  { %9775 = vst [vmem:[#allocation68_spill] sm:$0xff] %v8188_v44  ;;  %v3415_v56 = vpop.f32.mrb[67].mxu0  ;;  %v2026_v63 = vsub.f32 %v9785_v42, %v7238_v50  ;;  %v2027_v2 = vsub.f32 %v9785_v42, %v7240_v27 }
 0x901   :  { %v1698_v56 = vand.u32 2147483647, %v1634_v20  ;;  %v2521_v20 = vmul.f32 %v9629_v18, %v2427_v39  ;;  %v2994_v39 = vmul.f32 %v9631_v17, %v2907_v22 }
 0x902   :  { %v2090_v49 = vand.u32 2147483647, %v2026_v63  ;;  %v2091_v31 = vand.u32 2147483647, %v2027_v2  ;;  %v2634_v63 = vpop.permute.xlu0 %2633 }
 0x903   :  { %4359 = vadd.xlane.f32.xlu0 %v4358_v59  ;;  %v2092_v59 = vand.u32 2147483647, %v2028_v37  ;;  %v1762_v41 = vsub.f32 1.0, %v1698_v56  ;;  %v1759_v37 = vsub.f32 1.0, %v1695_v58 }
 0x904   :  { %v2154_v12 = vsub.f32 1.0, %v2090_v49  ;;  %v2155_v42 = vsub.f32 1.0, %v2091_v31  ;;  %v2723_v49 = vmul.f32 %v7283_v25, %v2634_v63  ;;  %v2724_v31 = vmul.f32 %v7285_v40, %v2634_v63 }
 0x905   :  { %v2156_v47 = vsub.f32 1.0, %v2092_v59  ;;  %v1823_v58 = vmax.f32 %v1759_v37, 0.0 }
 0x907   :  { %v2220_v56 = vmax.f32 %v2156_v47, 0.0 }
 0x914   :  { %3812 = vadd.xlane.f32.xlu1 %v3811_v54 }
 0x918   :  { %4356 = vadd.xlane.f32.xlu1 %v4355_v45 }
 0x919   :  { %2657 = vperm.xlu0 %5610, %v8201_v0  }
 0x91b   :  { %v8204_v29 = vpop.xlane.xlu1 %3800 }
 0x91c   :  { %9779 = vst [vmem:[#allocation64_spill] sm:$0xff] %v8204_v29  ;;  %v1826_v29 = vmax.f32 %v1762_v41, 0.0 }
 0x91d   :  { %5612 = vset.pattern.permute.xlu0 %v9541_v55 }
 0x91f   :  { %v8221_v36 = vpop.xlane.xlu1 %4344 }
 0x920   :  { %9784 = vst [vmem:[#allocation70_spill] sm:$0xff] %v8221_v36  ;;  %v2157_v36 = vsub.f32 1.0, %v2093_v46  ;;  %v2995_v46 = vmul.f32 %v9632_v24, %v2907_v22  ;;  %v2284_v22 = vmul.f32 %v2220_v56, %v1825_v9  ;;  %v9787_v56 = vld [vmem:[#allocation39_spill] sm:$0xff] }
 0x922   :  { %v2221_v59 = vmax.f32 %v2157_v36, 0.0 }
 0x923   :  { %v2638_v54 = vpop.permute.xlu1 %2637 }
 0x924   :  { %v2725_v45 = vmul.f32 %v7283_v25, %v2638_v54  ;;  %v2726_v1 = vmul.f32 %v7285_v40, %v2638_v54  ;;  %v2285_v37 = vmul.f32 %v2221_v59, %v1826_v29  ;;  %v5912_v29 = vld [vmem:[%s9378_s7 + $0xf0] sm:$0xff]  ;;  %v4272_v59 = vmul.f32 %v9787_v56, %v8201_v0 }
 0x925   :  { %v3728_v9 = vmul.f32 %v5912_v29, %v8201_v0 }
 0x926   :  { %v2789_v2 = vadd.f32 %v2725_v45, %v2520_v16  ;;  %v2790_v28 = vadd.f32 %v2726_v1, %v2521_v20  ;;  %v2218_v45 = vmax.f32 %v2154_v12, 0.0  ;;  %v2219_v1 = vmax.f32 %v2155_v42, 0.0 }
 0x927   :  { %v2422_v43 = vpop.permute.xlu1 %2421 }
 0x928   :  { %v2518_v54 = vmul.f32 %v9628_v6, %v2422_v43  ;;  %v2519_v32 = vmul.f32 %v9629_v18, %v2422_v43  ;;  %v3058_v38 = vadd.f32 %v2994_v39, %v2789_v2  ;;  %v3059_v41 = vadd.f32 %v2995_v46, %v2790_v28 }
 0x929   :  { %2653 = vperm.xlu1 %5601, %v8054_v19   ;;  %v2282_v57 = vmul.f32 %v2218_v45, %v1823_v58  ;;  %v2283_v44 = vmul.f32 %v2219_v1, %v1824_v7 }
 0x92a   :  { %v2787_v20 = vadd.f32 %v2723_v49, %v2518_v54  ;;  %v2788_v43 = vadd.f32 %v2724_v31, %v2519_v32  ;;  %v3123_v2 = vmul.f32 %v3059_v41, %v2285_v37  ;;  %v3122_v39 = vmul.f32 %v3058_v38, %v2284_v22  ;;  %v3473_v31 = vld [vmem:[%s9379_s8] sm:$0xff]  ;;  %v9788_v41 = vld [vmem:[#allocation47_spill] sm:$0xff] }
 0x92b   :  { %v8264_v45 = vmul.f32 %v3473_v31, %v7504_v48 }
 0x92c   :  { %v2903_v16 = vpop.permute.xlu1 %2902 }
 0x92d   :  { %v2992_v47 = vmul.f32 %v9631_v17, %v2903_v16  ;;  %v2993_v36 = vmul.f32 %v9632_v24, %v2903_v16  ;;  %5603 = vset.pattern.permute.xlu1 %v9541_v55  ;;  %v4271_v16 = vmul.f32 %v9788_v41, %v8054_v19 }
 0x92e   :  { %2441 = vperm.xlu1 %5603, %v8125_v35  }
 0x92f   :  { %v3056_v63 = vadd.f32 %v2992_v47, %v2787_v20  ;;  %v3057_v12 = vadd.f32 %v2993_v36, %v2788_v43  ;;  %v2437_v20 = vpop.permute.xlu0 %2436  ;;  %v4361_v48 = vsel %vm1088_vm5, %v4271_v16, 0.0  ;;  %v9789_v47 = vld [vmem:[#allocation113_spill] sm:$0xff] }
 0x930   :  { %v1637_v36 = vsub.f32 %v9789_v47, %v7242_v51  ;;  %v1638_v22 = vsub.f32 %v9789_v47, %v7247_v13 }
 0x931   :  { %v3121_v42 = vmul.f32 %v3057_v12, %v2283_v44  ;;  %v3120_v28 = vmul.f32 %v3056_v63, %v2282_v57  ;;  %v3820_v44 = vsel %vm1088_vm5, %v3728_v9, 0.0  ;;  %v9790_v57 = vld [vmem:[#allocation115_spill] sm:$0xff]  ;;  %v9791_v12 = vld [vmem:[#allocation116_spill] sm:$0xff] }
 0x932   :  { %5605 = vset.pattern.permute.xlu1 %v9561_v3  ;;  %v2030_v63 = vsub.f32 %v9790_v57, %v7238_v50  ;;  %v1702_v29 = vand.u32 2147483647, %v1638_v22 }
 0x933   :  { %2918 = vperm.xlu1 %5605, %v8125_v35   ;;  %v3161_v54 = vpack.c.bf16 %v3123_v2, %v3121_v42  ;;  %v3160_v32 = vpack.c.bf16 %v3122_v39, %v3120_v28  ;;  %v4364_v35 = vsel %vm1088_vm5, %v4272_v59, 0.0  ;;  %v2915_v43 = vpop.permute.xlu0 %2914  ;;  %v2032_v42 = vsub.f32 %v9791_v12, %v7238_v50  ;;  %v9792_v28 = vld [vmem:[#allocation118_spill] sm:$0xff] }
 0x934   :  { %v2033_v2 = vsub.f32 %v9791_v12, %v7240_v27  ;;  %v1635_v39 = vsub.f32 %v9792_v28, %v7242_v51  ;;  %v1636_v9 = vsub.f32 %v9792_v28, %v7247_v13  ;;  %v2094_v56 = vand.u32 2147483647, %v2030_v63 }
 0x935   :  { %5195 = vmatprep.mubr.msk.bf16.mxu1 %vm702_vm4, %v3161_v54  ;;  %v2524_v12 = vmul.f32 %v9628_v6, %v2437_v20 }
 0x936   :  { %3441 = vmatmul.mubr.bf16.gmra.mrb[44].mxu1 %v3160_v32  ;;  %v1701_v32 = vand.u32 2147483647, %v1637_v36  ;;  %v2158_v41 = vsub.f32 1.0, %v2094_v56 }
 0x937   :  { %5607 = vset.pattern.permute.xlu1 %v9572_v53  ;;  %v5913_v53 = vld [vmem:[%s9378_s7 + $0xe8] sm:$0xff]  ;;  %v8292_v54 = vpop.xlane.xlu0 %3803 }
 0x938   :  { %3821 = vadd.xlane.f32.xlu0 %v3820_v44  ;;  %v3727_v1 = vmul.f32 %v5913_v53, %v8054_v19  ;;  %v2031_v19 = vsub.f32 %v9790_v57, %v7240_v27  ;;  %9793 = vst [vmem:[#allocation83_spill] sm:$0xff] %v8292_v54  ;;  %v1765_v31 = vsub.f32 1.0, %v1701_v32  ;;  %v1766_v53 = vsub.f32 1.0, %v1702_v29  ;;  %v3474_v57 = vld [vmem:[%s9379_s8 + $0x8] sm:$0xff] }
 0x939   :  { %v2222_v29 = vmax.f32 %v2158_v41, 0.0 }
 0x93a   :  { %v3817_v38 = vsel %vm1088_vm5, %v3727_v1, 0.0  ;;  %v2095_v59 = vand.u32 2147483647, %v2031_v19  ;;  %v1700_v1 = vand.u32 2147483647, %v1636_v9  ;;  %v1830_v28 = vmax.f32 %v1766_v53, 0.0 }
 0x93b   :  { %v8298_v16 = vpop.xlane.xlu0 %4347  ;;  %v8308_v9 = vmul.f32 %v3474_v57, %v7506_v60  ;;  %v2998_v60 = vmul.f32 %v9631_v17, %v2915_v43 }
 0x93c   :  { %4365 = vadd.xlane.f32.xlu0 %v4364_v35  ;;  %v2096_v35 = vand.u32 2147483647, %v2032_v42  ;;  %v2159_v36 = vsub.f32 1.0, %v2095_v59  ;;  %v2525_v42 = vmul.f32 %v9629_v18, %v2437_v20 }
 0x93e   :  { %v2160_v22 = vsub.f32 1.0, %v2096_v35 }
 0x93f   :  { %v2642_v56 = vpop.permute.xlu0 %2641 }
 0x940   :  { %v8256_v46 = vpop.f32.mrb[32].mxu1 }
 0x941   :  { %v3420_v58 = vpop.f32.mrb[33].mxu1 }
 0x942   :  { %v8258_v7 = vpop.f32.mrb[34].mxu1  ;;  %v2097_v58 = vand.u32 2147483647, %v2033_v2  ;;  %v1829_v2 = vmax.f32 %v1765_v31, 0.0 }
 0x943   :  { %v3423_v49 = vpop.f32.mrb[35].mxu1 }
 0x944   :  { %v1699_v49 = vand.u32 2147483647, %v1635_v39  ;;  %v2161_v63 = vsub.f32 1.0, %v2097_v58  ;;  %v1764_v39 = vsub.f32 1.0, %v1700_v1  ;;  %v3475_v58 = vld [vmem:[%s9379_s8 + $0x10] sm:$0xff]  ;;  %v2999_v1 = vmul.f32 %v9632_v24, %v2915_v43 }
 0x946   :  { %v1763_v19 = vsub.f32 1.0, %v1699_v49  ;;  %v2225_v31 = vmax.f32 %v2161_v63, 0.0  ;;  %v1828_v41 = vmax.f32 %v1764_v39, 0.0  ;;  %v3605_v63 = vsel %vm3601_vm6, %v8308_v9, 0.0 }
 0x948   :  { %v1827_v53 = vmax.f32 %v1763_v19, 0.0 }
 0x952   :  { %3922 = vrot.lane.b32.xlu0 %v8264_v45, %s5946_s11 }
 0x957   :  { %3818 = vadd.xlane.f32.xlu1 %v3817_v38 }
 0x95b   :  { %4362 = vadd.xlane.f32.xlu1 %v4361_v48 }
 0x95e   :  { %v8280_v37 = vpop.xlane.xlu1 %3806 }
 0x962   :  { %v8296_v44 = vpop.xlane.xlu1 %4350 }
 0x963   :  { %9794 = vst [vmem:[#allocation88_spill] sm:$0xff] %v8296_v44  ;;  %v2224_v44 = vmax.f32 %v2160_v22, 0.0 }
 0x965   :  { %v2288_v39 = vmul.f32 %v2224_v44, %v1829_v2 }
 0x966   :  { %v2646_v38 = vpop.permute.xlu1 %2645 }
 0x967   :  { %v2729_v48 = vmul.f32 %v7283_v25, %v2646_v38  ;;  %v2730_v47 = vmul.f32 %v7285_v40, %v2646_v38  ;;  %v2223_v38 = vmax.f32 %v2159_v36, 0.0  ;;  %v8321_v36 = vmul.f32 %v3475_v58, %v7644_v5 }
 0x968   :  { %v2286_v5 = vmul.f32 %v2222_v29, %v1827_v53 }
 0x969   :  { %v2793_v59 = vadd.f32 %v2729_v48, %v2524_v12  ;;  %v2794_v35 = vadd.f32 %v2730_v47, %v2525_v42  ;;  %v2727_v48 = vmul.f32 %v7283_v25, %v2642_v56  ;;  %v2728_v47 = vmul.f32 %v7285_v40, %v2642_v56 }
 0x96a   :  { %v2432_v32 = vpop.permute.xlu1 %2431  ;;  %v2289_v56 = vmul.f32 %v2225_v31, %v1830_v28  ;;  %v3476_v31 = vld [vmem:[%s9379_s8 + $0x18] sm:$0xff] }
 0x96b   :  { %v2522_v49 = vmul.f32 %v9628_v6, %v2432_v32  ;;  %v2523_v20 = vmul.f32 %v9629_v18, %v2432_v32  ;;  %v3062_v22 = vadd.f32 %v2998_v60, %v2793_v59  ;;  %v3063_v57 = vadd.f32 %v2999_v1, %v2794_v35 }
 0x96c   :  { %2661 = vperm.xlu1 %5607, %v8131_v8   ;;  %v2287_v59 = vmul.f32 %v2223_v38, %v1828_v41  ;;  %v3608_v60 = vsel %vm3601_vm6, %v8321_v36, 0.0  ;;  %v8343_v53 = vmul.f32 %v3476_v31, %v7649_v11 }
 0x96d   :  { %v2791_v19 = vadd.f32 %v2727_v48, %v2522_v49  ;;  %v2792_v42 = vadd.f32 %v2728_v47, %v2523_v20  ;;  %v3127_v20 = vmul.f32 %v3063_v57, %v2289_v56  ;;  %v3126_v48 = vmul.f32 %v3062_v22, %v2288_v39  ;;  %v9795_v47 = vld [vmem:[#allocation48_spill] sm:$0xff]  ;;  %v2447_v57 = vpop.permute.xlu0 %2446 }
 0x96e   :  { %v4273_v22 = vmul.f32 %v9795_v47, %v8131_v8  ;;  %v9797_v39 = vld [vmem:[#allocation124_spill] sm:$0xff] }
 0x96f   :  { %v2911_v12 = vpop.permute.xlu1 %2910  ;;  %v2036_v56 = vsub.f32 %v9797_v39, %v7238_v50 }
 0x970   :  { %v2996_v32 = vmul.f32 %v9631_v17, %v2911_v12  ;;  %v2997_v43 = vmul.f32 %v9632_v24, %v2911_v12  ;;  %5609 = vset.pattern.permute.xlu1 %v9541_v55  ;;  %v4367_v12 = vsel %vm1088_vm5, %v4273_v22, 0.0 }
 0x971   :  { %2451 = vperm.xlu1 %5609, %v8201_v0   ;;  %3606 = vadd.xlane.f32.xlu0 %v3605_v63  ;;  %v2923_v11 = vpop.permute.xlu0 %2922 }
 0x972   :  { %v3060_v35 = vadd.f32 %v2996_v32, %v2791_v19  ;;  %v3061_v58 = vadd.f32 %v2997_v43, %v2792_v42  ;;  %v3602_v19 = vsel %vm3601_vm6, %v8264_v45, 0.0  ;;  %v3477_v42 = vld [vmem:[%s9379_s8 + $0x20] sm:$0xff]  ;;  %v9796_v32 = vld [vmem:[#allocation119_spill] sm:$0xff]  ;;  %v9799_v45 = vld [vmem:[#allocation126_spill] sm:$0xff] }
 0x973   :  { %v1641_v43 = vsub.f32 %v9796_v32, %v7242_v51 }
 0x974   :  { %v3125_v49 = vmul.f32 %v3061_v58, %v2287_v59  ;;  %v3124_v1 = vmul.f32 %v3060_v35, %v2286_v5  ;;  %v2037_v5 = vsub.f32 %v9797_v39, %v7240_v27  ;;  %v1639_v35 = vsub.f32 %v9799_v45, %v7242_v51 }
 0x975   :  { %5611 = vset.pattern.permute.xlu1 %v9561_v3  ;;  %3609 = vadd.xlane.f32.xlu0 %v3608_v60  ;;  %v8370_v59 = vpop.xlane.xlu0 %3809  ;;  %v1640_v58 = vsub.f32 %v9799_v45, %v7247_v13  ;;  %v8377_v60 = vmul.f32 %v3477_v42, %v7721_v30  ;;  %v2528_v39 = vmul.f32 %v9628_v6, %v2447_v57 }
 0x976   :  { %2926 = vperm.xlu1 %5611, %v8201_v0   ;;  %v3163_v44 = vpack.c.bf16 %v3127_v20, %v3125_v49  ;;  %v3162_v2 = vpack.c.bf16 %v3126_v48, %v3124_v1  ;;  %9798 = vst [vmem:[#allocation38_spill] sm:$0xff] %v8370_v59  ;;  %v9801_v20 = vld [vmem:[#allocation123_spill] sm:$0xff]  ;;  %v2101_v31 = vand.u32 2147483647, %v2037_v5 }
 0x977   :  { %v2034_v1 = vsub.f32 %v9801_v20, %v7238_v50  ;;  %v2035_v48 = vsub.f32 %v9801_v20, %v7240_v27 }
 0x978   :  { %5196 = vmatprep.mubr.msk.bf16.mxu1 %vm702_vm4, %v3163_v44  ;;  %v1705_v44 = vand.u32 2147483647, %v1641_v43 }
 0x979   :  { %3449 = vmatmul.mubr.bf16.gmra.mrb[48].mxu1 %v3162_v2  ;;  %v2098_v30 = vand.u32 2147483647, %v2034_v1  ;;  %v2099_v47 = vand.u32 2147483647, %v2035_v48  ;;  %v8387_v22 = vpop.xlane.xlu0 %4353 }
 0x97a   :  { %5613 = vset.pattern.permute.xlu1 %v9541_v55  ;;  %v5914_v55 = vld [vmem:[%s9378_s7 + $0xf8] sm:$0xff]  ;;  %9802 = vst [vmem:[#allocation16_spill] sm:$0xff] %v8387_v22  ;;  %v1769_v42 = vsub.f32 1.0, %v1705_v44 }
 0x97b   :  { %v3729_v0 = vmul.f32 %v5914_v55, %v8131_v8  ;;  %v1642_v8 = vsub.f32 %v9796_v32, %v7247_v13  ;;  %v1704_v55 = vand.u32 2147483647, %v1640_v58  ;;  %v2162_v58 = vsub.f32 1.0, %v2098_v30 }
 0x97c   :  { %v2163_v20 = vsub.f32 1.0, %v2099_v47  ;;  %v1833_v59 = vmax.f32 %v1769_v42, 0.0 }
 0x97d   :  { %v3823_v41 = vsel %vm1088_vm5, %v3729_v0, 0.0  ;;  %v1706_v2 = vand.u32 2147483647, %v1642_v8  ;;  %v2165_v8 = vsub.f32 1.0, %v2101_v31  ;;  %v1768_v45 = vsub.f32 1.0, %v1704_v55  ;;  %v2650_v1 = vpop.permute.xlu0 %2649 }
 0x97e   :  { %v3002_v31 = vmul.f32 %v9631_v17, %v2923_v11  ;;  %v2732_v30 = vmul.f32 %v7285_v40, %v2650_v1  ;;  %v2226_v47 = vmax.f32 %v2162_v58, 0.0  ;;  %vm4664_vm5 = vcmask 982912  }
 0x97f   :  { %v1770_v32 = vsub.f32 1.0, %v1706_v2  ;;  %v1832_v55 = vmax.f32 %v1768_v45, 0.0 }
 0x981   :  { %v1834_v54 = vmax.f32 %v1770_v32, 0.0 }
 0x983   :  { %v8335_v28 = vpop.f32.mrb[36].mxu1 }
 0x984   :  { %v3428_v29 = vpop.f32.mrb[37].mxu1 }
 0x985   :  { %v8337_v38 = vpop.f32.mrb[38].mxu1  ;;  %v2100_v29 = vand.u32 2147483647, %v2036_v56  ;;  %v2529_v56 = vmul.f32 %v9629_v18, %v2447_v57  ;;  %v3003_v57 = vmul.f32 %v9632_v24, %v2923_v11 }
 0x986   :  { %v3431_v3 = vpop.f32.mrb[39].mxu1 }
 0x987   :  { %v1703_v3 = vand.u32 2147483647, %v1639_v35  ;;  %v2164_v43 = vsub.f32 1.0, %v2100_v29  ;;  %v2229_v29 = vmax.f32 %v2165_v8, 0.0 }
 0x989   :  { %v1767_v5 = vsub.f32 1.0, %v1703_v3  ;;  %v2228_v2 = vmax.f32 %v2164_v43, 0.0 }
 0x98b   :  { %3928 = vrot.lane.b32.xlu0 %v8343_v53, %s5946_s11  ;;  %v1831_v3 = vmax.f32 %v1767_v5, 0.0  ;;  %v2292_v11 = vmul.f32 %v2228_v2, %v1833_v59  ;;  %v2293_v5 = vmul.f32 %v2229_v29, %v1834_v54  ;;  %v3479_v2 = vld [vmem:[%s9379_s8 + $0x30] sm:$0xff] }
 0x98c   :  { %v8422_v29 = vmul.f32 %v3479_v2, %v7798_v21  ;;  %v9804_v21 = vld [vmem:[#allocation127_spill] sm:$0xff] }
 0x98d   :  { %v2290_v45 = vmul.f32 %v2226_v47, %v1831_v3 }
 0x98e   :  { %v3620_v3 = vsel %vm3601_vm6, %v8422_v29, 0.0 }
 0x99a   :  { %3824 = vadd.xlane.f32.xlu1 %v3823_v41  ;;  %v3614_v41 = vsel %vm3601_vm6, %v8377_v60, 0.0 }
 0x99e   :  { %4368 = vadd.xlane.f32.xlu1 %v4367_v12 }
 0x9a1   :  { %v8355_v63 = vpop.xlane.xlu1 %3812 }
 0x9a2   :  { %3603 = vadd.xlane.f32.xlu1 %v3602_v19 }
 0x9a5   :  { %v8379_v49 = vpop.xlane.xlu1 %4356 }
 0x9a6   :  { %9800 = vst [vmem:[#allocation11_spill] sm:$0xff] %v8379_v49 }
 0x9a9   :  { %v2654_v0 = vpop.permute.xlu1 %2653 }
 0x9aa   :  { %v2733_v12 = vmul.f32 %v7283_v25, %v2654_v0  ;;  %v2734_v19 = vmul.f32 %v7285_v40, %v2654_v0  ;;  %3615 = vadd.xlane.f32.xlu0 %v3614_v41  ;;  %v2731_v41 = vmul.f32 %v7283_v25, %v2650_v1 }
 0x9ac   :  { %v2797_v48 = vadd.f32 %v2733_v12, %v2528_v39  ;;  %v2798_v49 = vadd.f32 %v2734_v19, %v2529_v56  ;;  %v2227_v12 = vmax.f32 %v2163_v20, 0.0 }
 0x9ad   :  { %v2442_v35 = vpop.permute.xlu1 %2441 }
 0x9ae   :  { %v2526_v0 = vmul.f32 %v9628_v6, %v2442_v35  ;;  %v2527_v44 = vmul.f32 %v9629_v18, %v2442_v35  ;;  %v3066_v19 = vadd.f32 %v3002_v31, %v2797_v48  ;;  %v3067_v42 = vadd.f32 %v3003_v57, %v2798_v49  ;;  %v3478_v31 = vld [vmem:[%s9379_s8 + $0x28] sm:$0xff]  ;;  %v2457_v57 = vpop.permute.xlu0 %2456 }
 0x9af   :  { %v2291_v35 = vmul.f32 %v2227_v12, %v1832_v55  ;;  %v8410_v54 = vmul.f32 %v3478_v31, %v7726_v34  ;;  %v3611_v34 = vsel %vm3601_vm6, %v8343_v53, 0.0  ;;  %v2041_v53 = vsub.f32 %v9804_v21, %v7240_v27 }
 0x9b0   :  { %v2795_v39 = vadd.f32 %v2731_v41, %v2526_v0  ;;  %v2796_v56 = vadd.f32 %v2732_v30, %v2527_v44  ;;  %v3131_v49 = vmul.f32 %v3067_v42, %v2293_v5  ;;  %v3130_v48 = vmul.f32 %v3066_v19, %v2292_v11  ;;  %v9803_v41 = vld [vmem:[#allocation125_spill] sm:$0xff]  ;;  %v9807_v11 = vld [vmem:[#allocation128_spill] sm:$0xff] }
 0x9b1   :  { %v1645_v30 = vsub.f32 %v9803_v41, %v7242_v51  ;;  %v1646_v12 = vsub.f32 %v9803_v41, %v7247_v13  ;;  %v2040_v19 = vsub.f32 %v9804_v21, %v7238_v50  ;;  %v2038_v5 = vsub.f32 %v9807_v11, %v7238_v50 }
 0x9b2   :  { %v2919_v32 = vpop.permute.xlu1 %2918  ;;  %v2931_v55 = vpop.permute.xlu0 %2930  ;;  %v2532_v2 = vmul.f32 %v9628_v6, %v2457_v57 }
 0x9b3   :  { %v3000_v43 = vmul.f32 %v9631_v17, %v2919_v32  ;;  %v3001_v8 = vmul.f32 %v9632_v24, %v2919_v32  ;;  %3924 = vrot.lane.b32.xlu1 %v8308_v9, %s5946_s11  ;;  %v1709_v32 = vand.u32 2147483647, %v1645_v30 }
 0x9b5   :  { %v3064_v22 = vadd.f32 %v3000_v43, %v2795_v39  ;;  %v3065_v1 = vadd.f32 %v3001_v8, %v2796_v56  ;;  %v9805_v39 = vld [vmem:[#allocation129_spill] sm:$0xff] }
 0x9b6   :  { %v8438_v42 = vpop.xlane.xlu0 %3815  ;;  %v1643_v56 = vsub.f32 %v9805_v39, %v7242_v51  ;;  %v1644_v43 = vsub.f32 %v9805_v39, %v7247_v13  ;;  %v2102_v51 = vand.u32 2147483647, %v2038_v5 }
 0x9b7   :  { %v3129_v58 = vmul.f32 %v3065_v1, %v2291_v35  ;;  %3926 = vrot.lane.b32.xlu1 %v8321_v36, %s5946_s11  ;;  %v3128_v20 = vmul.f32 %v3064_v22, %v2290_v45  ;;  %v2039_v45 = vsub.f32 %v9807_v11, %v7240_v27  ;;  %v1710_v35 = vand.u32 2147483647, %v1646_v12 }
 0x9b8   :  { %v2104_v1 = vand.u32 2147483647, %v2040_v19  ;;  %v2166_v21 = vsub.f32 1.0, %v2102_v51 }
 0x9b9   :  { %v3165_v0 = vpack.c.bf16 %v3131_v49, %v3129_v58  ;;  %v3164_v44 = vpack.c.bf16 %v3130_v48, %v3128_v20  ;;  %v2105_v58 = vand.u32 2147483647, %v2041_v53  ;;  %v1773_v49 = vsub.f32 1.0, %v1709_v32 }
 0x9ba   :  { %v1707_v20 = vand.u32 2147483647, %v1643_v56  ;;  %v1708_v48 = vand.u32 2147483647, %v1644_v43  ;;  %v2103_v13 = vand.u32 2147483647, %v2039_v45 }
 0x9bb   :  { %5197 = vmatprep.mubr.msk.bf16.mxu1 %vm702_vm4, %v3165_v0  ;;  %v2168_v27 = vsub.f32 1.0, %v2104_v1  ;;  %v3007_v1 = vmul.f32 %v9632_v24, %v2931_v55 }
 0x9bc   :  { %3457 = vmatmul.mubr.bf16.gmra.mrb[52].mxu1 %v3164_v44  ;;  %v8452_v44 = vpop.xlane.xlu0 %4359  ;;  %v1771_v41 = vsub.f32 1.0, %v1707_v20  ;;  %v1772_v30 = vsub.f32 1.0, %v1708_v48  ;;  %v2167_v19 = vsub.f32 1.0, %v2103_v13 }
 0x9bd   :  { %v2232_v43 = vmax.f32 %v2168_v27, 0.0 }
 0x9be   :  { %v2231_v51 = vmax.f32 %v2167_v19, 0.0 }
 0x9c0   :  { %3932 = vrot.lane.b32.xlu0 %v8410_v54, %s5946_s11  ;;  %v2658_v53 = vpop.permute.xlu0 %2657 }
 0x9c1   :  { %v2735_v20 = vmul.f32 %v7283_v25, %v2658_v53  ;;  %v2736_v48 = vmul.f32 %v7285_v40, %v2658_v53 }
 0x9c6   :  { %v8414_v9 = vpop.f32.mrb[40].mxu1 }
 0x9c7   :  { %v3436_v36 = vpop.f32.mrb[41].mxu1 }
 0x9c8   :  { %v8416_v59 = vpop.f32.mrb[42].mxu1  ;;  %v1774_v36 = vsub.f32 1.0, %v1710_v35  ;;  %v3006_v35 = vmul.f32 %v9631_v17, %v2931_v55 }
 0x9c9   :  { %v3439_v22 = vpop.f32.mrb[43].mxu1 }
 0x9ca   :  { %v2169_v22 = vsub.f32 1.0, %v2105_v58  ;;  %v1838_v56 = vmax.f32 %v1774_v36, 0.0  ;;  %v1835_v58 = vmax.f32 %v1771_v41, 0.0 }
 0x9db   :  { %3612 = vadd.xlane.f32.xlu1 %v3611_v34  ;;  %v2533_v34 = vmul.f32 %v9629_v18, %v2457_v57  ;;  %v2233_v57 = vmax.f32 %v2169_v22, 0.0 }
 0x9dd   :  { %v2297_v27 = vmul.f32 %v2233_v57, %v1838_v56 }
 0x9df   :  { %3621 = vadd.xlane.f32.xlu0 %v3620_v3  ;;  %v1837_v3 = vmax.f32 %v1773_v49, 0.0  ;;  %v1836_v49 = vmax.f32 %v1772_v30, 0.0 }
 0x9e1   :  { %v2296_v55 = vmul.f32 %v2232_v43, %v1837_v3  ;;  %v3482_v43 = vld [vmem:[%s9379_s8 + $0x48] sm:$0xff] }
 0x9e4   :  { %v8430_v47 = vpop.xlane.xlu1 %3818 }
 0x9e8   :  { %v8444_v8 = vpop.xlane.xlu1 %4362 }
 0x9e9   :  { %9806 = vst [vmem:[#allocation74_spill] sm:$0xff] %v8444_v8 }
 0x9ec   :  { %v2662_v0 = vpop.permute.xlu1 %2661  ;;  %3930 = vrot.lane.b32.xlu1 %v8377_v60, %s5946_s11  ;;  %v3480_v60 = vld [vmem:[%s9379_s8 + $0x38] sm:$0xff] }
 0x9ed   :  { %v2737_v31 = vmul.f32 %v7283_v25, %v2662_v0  ;;  %v2738_v50 = vmul.f32 %v7285_v40, %v2662_v0  ;;  %v3512_v45 = vmul.f32 %v3480_v60, %v7803_v61  ;;  %v2230_v0 = vmax.f32 %v2166_v21, 0.0 }
 0x9ef   :  { %v2801_v32 = vadd.f32 %v2737_v31, %v2532_v2  ;;  %v2802_v39 = vadd.f32 %v2738_v50, %v2533_v34  ;;  %v2294_v22 = vmul.f32 %v2230_v0, %v1835_v58  ;;  %v2295_v2 = vmul.f32 %v2231_v51, %v1836_v49  ;;  %v3492_v58 = vld [vmem:[%s9379_s8 + $0x98] sm:$0xff] }
 0x9f0   :  { %v2452_v12 = vpop.permute.xlu1 %2451 }
 0x9f1   :  { %v2530_v11 = vmul.f32 %v9628_v6, %v2452_v12  ;;  %v2531_v5 = vmul.f32 %v9629_v18, %v2452_v12  ;;  %v3070_v13 = vadd.f32 %v3006_v35, %v2801_v32  ;;  %v3071_v31 = vadd.f32 %v3007_v1, %v2802_v39 }
 0x9f2   :  { %v3617_v39 = vsel %vm3601_vm6, %v8410_v54, 0.0 }
 0x9f3   :  { %v2799_v18 = vadd.f32 %v2735_v20, %v2530_v11  ;;  %v2800_v50 = vadd.f32 %v2736_v48, %v2531_v5  ;;  %v3135_v41 = vmul.f32 %v3071_v31, %v2297_v27  ;;  %v3134_v60 = vmul.f32 %v3070_v13, %v2296_v55 }
 0x9f4   :  { %v3514_v11 = vmul.f32 %v3482_v43, %v7880_v15  ;;  %v3623_v5 = vsel %vm3601_vm6, %v3512_v45, 0.0 }
 0x9f5   :  { %v2927_v6 = vpop.permute.xlu1 %2926  ;;  %3936 = vrot.lane.b32.xlu0 %v3512_v45, %s5946_s11  ;;  %v3483_v45 = vld [vmem:[%s9379_s8 + $0x50] sm:$0xff] }
 0x9f6   :  { %v3004_v61 = vmul.f32 %v9631_v17, %v2927_v6  ;;  %v3005_v36 = vmul.f32 %v9632_v24, %v2927_v6  ;;  %v3481_v24 = vld [vmem:[%s9379_s8 + $0x40] sm:$0xff]  ;;  %v3515_v49 = vmul.f32 %v3483_v45, %v7952_v33  ;;  %v3629_v20 = vsel %vm3601_vm6, %v3514_v11, 0.0  ;;  %v3500_v45 = vld [vmem:[%s9379_s8 + $0xd8] sm:$0xff] }
 0x9f7   :  { %v3513_v32 = vmul.f32 %v3481_v24, %v7875_v10  ;;  %v3491_v10 = vld [vmem:[%s9379_s8 + $0x90] sm:$0xff]  ;;  %v3493_v6 = vld [vmem:[%s9379_s8 + $0xa0] sm:$0xff] }
 0x9f8   :  { %v3068_v25 = vadd.f32 %v3004_v61, %v2799_v18  ;;  %v3069_v34 = vadd.f32 %v3005_v36, %v2800_v50  ;;  %v3523_v54 = vmul.f32 %v3491_v10, %v8256_v46  ;;  %v3524_v46 = vmul.f32 %v3492_v58, %v8258_v7  ;;  %v3484_v7 = vld [vmem:[%s9379_s8 + $0x58] sm:$0xff] }
 0x9f9   :  { %v3626_v56 = vsel %vm3601_vm6, %v3513_v32, 0.0  ;;  %v3632_v48 = vsel %vm3601_vm6, %v3515_v49, 0.0  ;;  %v3516_v31 = vmul.f32 %v3484_v7, %v7957_v4  ;;  %v3525_v18 = vmul.f32 %v3493_v6, %v8335_v28  ;;  %v3494_v4 = vld [vmem:[%s9379_s8 + $0xa8] sm:$0xff] }
 0x9fa   :  { %v3133_v40 = vmul.f32 %v3069_v34, %v2295_v2  ;;  %v3132_v30 = vmul.f32 %v3068_v25, %v2294_v22  ;;  %v3656_v57 = vsel %vm3601_vm6, %v3523_v54, 0.0  ;;  %v3659_v50 = vsel %vm3601_vm6, %v3524_v46, 0.0  ;;  %v3485_v2 = vld [vmem:[%s9379_s8 + $0x60] sm:$0xff] }
 0x9fb   :  { %v3662_v61 = vsel %vm3601_vm6, %v3525_v18, 0.0  ;;  %v3526_v36 = vmul.f32 %v3494_v4, %v8337_v38  ;;  %v3517_v25 = vmul.f32 %v3485_v2, %v8029_v23  ;;  %v3635_v34 = vsel %vm3601_vm6, %v3516_v31, 0.0  ;;  %v3486_v38 = vld [vmem:[%s9379_s8 + $0x68] sm:$0xff]  ;;  %v3495_v23 = vld [vmem:[%s9379_s8 + $0xb0] sm:$0xff] }
 0x9fc   :  { %v3167_v12 = vpack.c.bf16 %v3135_v41, %v3133_v40  ;;  %v3166_v21 = vpack.c.bf16 %v3134_v60, %v3132_v30  ;;  %v3518_v41 = vmul.f32 %v3486_v38, %v8034_v62  ;;  %v3527_v30 = vmul.f32 %v3495_v23, %v8414_v9  ;;  %v3496_v62 = vld [vmem:[%s9379_s8 + $0xb8] sm:$0xff]  ;;  %v3487_v9 = vld [vmem:[%s9379_s8 + $0x70] sm:$0xff] }
 0x9fd   :  { %v3638_v40 = vsel %vm3601_vm6, %v3517_v25, 0.0  ;;  %v3665_v60 = vsel %vm3601_vm6, %v3526_v36, 0.0 }
 0x9fe   :  { %5198 = vmatprep.mubr.msk.bf16.mxu1 %vm702_vm4, %v3167_v12  ;;  %v3668_v12 = vsel %vm3601_vm6, %v3527_v30, 0.0  ;;  %v3641_v24 = vsel %vm3601_vm6, %v3518_v41, 0.0  ;;  %vm4657_vm4 = vcmask 917312  }
 0x9ff   :  { %3465 = vmatmul.mubr.bf16.gmra.mrb[56].mxu1 %v3166_v21  ;;  %v3528_v21 = vmul.f32 %v3496_v62, %v8416_v59  ;;  %v3488_v59 = vld [vmem:[%s9379_s8 + $0x78] sm:$0xff] }
 0xa09   :  { %v8472_v19 = vpop.f32.mrb[44].mxu1 }
 0xa0a   :  { %v3444_v17 = vpop.f32.mrb[45].mxu1 }
 0xa0b   :  { %v8474_v53 = vpop.f32.mrb[46].mxu1  ;;  %v3519_v17 = vmul.f32 %v3487_v9, %v8106_v26  ;;  %v3497_v26 = vld [vmem:[%s9379_s8 + $0xc0] sm:$0xff] }
 0xa0c   :  { %v3447_v3 = vpop.f32.mrb[47].mxu1 }
 0xa0d   :  { %v3644_v3 = vsel %vm3601_vm6, %v3519_v17, 0.0 }
 0xa10   :  { %3618 = vadd.xlane.f32.xlu1 %v3617_v39  ;;  %v3529_v39 = vmul.f32 %v3497_v26, %v8472_v19  ;;  %v3489_v19 = vld [vmem:[%s9379_s8 + $0x80] sm:$0xff] }
 0xa11   :  { %v3521_v10 = vmul.f32 %v3489_v19, %v8183_v14  ;;  %v3499_v14 = vld [vmem:[%s9379_s8 + $0xd0] sm:$0xff] }
 0xa12   :  { %v3674_v43 = vsel %vm3601_vm6, %v3529_v39, 0.0 }
 0xa14   :  { %3627 = vadd.xlane.f32.xlu0 %v3626_v56  ;;  %v3671_v56 = vsel %vm3601_vm6, %v3528_v21, 0.0 }
 0xa21   :  { %3934 = vrot.lane.b32.xlu1 %v8422_v29, %s5946_s11 }
 0xa2a   :  { %3940 = vrot.lane.b32.xlu0 %v3514_v11, %s5946_s11 }
 0xa45   :  { %3624 = vadd.xlane.f32.xlu1 %v3623_v5  ;;  %v3650_v5 = vsel %vm3601_vm6, %v3521_v10, 0.0 }
 0xa49   :  { %3657 = vadd.xlane.f32.xlu0 %v3656_v57  ;;  %v9808_v57 = vld [vmem:[#allocation68_spill] sm:$0xff] }
 0xa4c   :  { %v8496_v29 = vpop.f32.mrb[48].mxu1 }
 0xa4d   :  { %v3452_v35 = vpop.f32.mrb[49].mxu1 }
 0xa4e   :  { %v8498_v1 = vpop.f32.mrb[50].mxu1 }
 0xa4f   :  { %v3455_v15 = vpop.f32.mrb[51].mxu1 }
 0xa50   :  { %v3531_v15 = vmul.f32 %v3499_v14, %v8496_v29  ;;  %v3501_v29 = vld [vmem:[%s9379_s8 + $0xe0] sm:$0xff] }
 0xa56   :  { %3938 = vrot.lane.b32.xlu1 %v3513_v32, %s5946_s11  ;;  %v3520_v32 = vmul.f32 %v3488_v59, %v8111_v52  ;;  %v3498_v52 = vld [vmem:[%s9379_s8 + $0xc8] sm:$0xff] }
 0xa57   :  { %v3530_v11 = vmul.f32 %v3498_v52, %v8474_v53  ;;  %v3490_v53 = vld [vmem:[%s9379_s8 + $0x88] sm:$0xff] }
 0xa58   :  { %v3522_v35 = vmul.f32 %v3490_v53, %v9808_v57 }
 0xa59   :  { %v3677_v58 = vsel %vm3601_vm6, %v3530_v11, 0.0 }
 0xa5f   :  { %3960 = vrot.lane.b32.xlu0 %v3524_v46, %s5946_s11  ;;  %v3680_v46 = vsel %vm3601_vm6, %v3531_v15, 0.0 }
 0xa7a   :  { %3630 = vadd.xlane.f32.xlu1 %v3629_v20 }
 0xa7e   :  { %3633 = vadd.xlane.f32.xlu0 %v3632_v48  ;;  %v3653_v48 = vsel %vm3601_vm6, %v3522_v35, 0.0 }
 0xa8b   :  { %3958 = vrot.lane.b32.xlu1 %v3523_v54, %s5946_s11  ;;  %v3647_v54 = vsel %vm3601_vm6, %v3520_v32, 0.0 }
 0xa8f   :  { %v8516_v0 = vpop.f32.mrb[52].mxu1 }
 0xa90   :  { %v3460_v51 = vpop.f32.mrb[53].mxu1  ;;  %v3533_v20 = vmul.f32 %v3501_v29, %v8516_v0  ;;  %v3503_v0 = vld [vmem:[%s9379_s8 + $0xf0] sm:$0xff] }
 0xa91   :  { %v8518_v13 = vpop.f32.mrb[54].mxu1 }
 0xa92   :  { %v3463_v33 = vpop.f32.mrb[55].mxu1  ;;  %v3686_v7 = vsel %vm3601_vm6, %v3533_v20, 0.0 }
 0xa94   :  { %3944 = vrot.lane.b32.xlu0 %v3516_v31, %s5946_s11 }
 0xaaf   :  { %3660 = vadd.xlane.f32.xlu1 %v3659_v50 }
 0xab3   :  { %3663 = vadd.xlane.f32.xlu0 %v3662_v61 }
 0xac0   :  { %3942 = vrot.lane.b32.xlu1 %v3515_v49, %s5946_s11  ;;  %v3532_v49 = vmul.f32 %v3500_v45, %v8498_v1  ;;  %v3502_v1 = vld [vmem:[%s9379_s8 + $0xe8] sm:$0xff] }
 0xac1   :  { %v3534_v51 = vmul.f32 %v3502_v1, %v8518_v13  ;;  %v3504_v13 = vld [vmem:[%s9379_s8 + $0xf8] sm:$0xff] }
 0xac2   :  { %v3683_v33 = vsel %vm3601_vm6, %v3532_v49, 0.0 }
 0xac3   :  { %v3689_v2 = vsel %vm3601_vm6, %v3534_v51, 0.0 }
 0xac9   :  { %3964 = vrot.lane.b32.xlu0 %v3526_v36, %s5946_s11 }
 0xad2   :  { %v8534_v55 = vpop.f32.mrb[56].mxu1 }
 0xad3   :  { %v3468_v27 = vpop.f32.mrb[57].mxu1  ;;  %v3535_v31 = vmul.f32 %v3503_v0, %v8534_v55 }
 0xad4   :  { %v8536_v28 = vpop.f32.mrb[58].mxu1 }
 0xad5   :  { %v3471_v22 = vpop.f32.mrb[59].mxu1  ;;  %v3692_v6 = vsel %vm3601_vm6, %v3535_v31, 0.0  ;;  %v3536_v61 = vmul.f32 %v3504_v13, %v8536_v28 }
 0xae4   :  { %3636 = vadd.xlane.f32.xlu1 %v3635_v34 }
 0xae8   :  { %3639 = vadd.xlane.f32.xlu0 %v3638_v40 }
 0xaf5   :  { %3962 = vrot.lane.b32.xlu1 %v3525_v18, %s5946_s11  ;;  %v8628_v18 = vpop.xlane.xlu1 %3824 }
 0xaf9   :  { %v8634_v50 = vpop.xlane.xlu1 %4368 }
 0xafa   :  { %9809 = vst [vmem:[#allocation71_spill] sm:$0xff] %v8634_v50 }
 0xafd   :  { %v3604_v4 = vpop.xlane.xlu1 %3603 }
 0xafe   :  { %3948 = vrot.lane.b32.xlu0 %v3518_v41, %s5946_s11 }
 0xb01   :  { %v3925_v36 = vpop.permute.xlu1 %3924 }
 0xb02   :  { %v4021_v34 = vsel %vm3601_vm6, %v3925_v36, 0.0 }
 0xb05   :  { %v3927_v55 = vpop.permute.xlu1 %3926 }
 0xb06   :  { %v4024_v38 = vsel %vm3601_vm6, %v3927_v55, 0.0 }
 0xb09   :  { %v8638_v27 = vpop.xlane.xlu1 %3612 }
 0xb0d   :  { %v3931_v22 = vpop.permute.xlu1 %3930 }
 0xb0e   :  { %v4030_v41 = vsel %vm3601_vm6, %v3931_v22, 0.0 }
 0xb19   :  { %3666 = vadd.xlane.f32.xlu1 %v3665_v60 }
 0xb1d   :  { %3669 = vadd.xlane.f32.xlu0 %v3668_v12 }
 0xb2a   :  { %3946 = vrot.lane.b32.xlu1 %v3517_v25, %s5946_s11  ;;  %v8641_v25 = vpop.xlane.xlu1 %3618 }
 0xb2e   :  { %v3935_v40 = vpop.permute.xlu1 %3934 }
 0xb2f   :  { %v4036_v23 = vsel %vm3601_vm6, %v3935_v40, 0.0 }
 0xb32   :  { %v8645_v28 = vpop.xlane.xlu1 %3624 }
 0xb33   :  { %3968 = vrot.lane.b32.xlu0 %v3528_v21, %s5946_s11 }
 0xb36   :  { %v3939_v60 = vpop.permute.xlu1 %3938 }
 0xb3a   :  { %v8652_v12 = vpop.xlane.xlu1 %3630 }
 0xb3e   :  { %v3959_v21 = vpop.permute.xlu1 %3958 }
 0xb4e   :  { %3642 = vadd.xlane.f32.xlu1 %v3641_v24  ;;  %v9811_v24 = vld [vmem:[#allocation130_spill] sm:$0xff] }
 0xb52   :  { %3645 = vadd.xlane.f32.xlu0 %v3644_v3  ;;  %v3826_v3 = vadd.f32 %v9811_v24, %v3604_v4 }
 0xb5f   :  { %3966 = vrot.lane.b32.xlu1 %v3527_v30, %s5946_s11  ;;  %v8649_v30 = vpop.xlane.xlu0 %3821 }
 0xb63   :  { %v8654_v62 = vpop.xlane.xlu0 %4365 }
 0xb64   :  { %9810 = vst [vmem:[#allocation73_spill] sm:$0xff] %v8654_v62 }
 0xb67   :  { %v3923_v9 = vpop.permute.xlu0 %3922 }
 0xb68   :  { %3952 = vrot.lane.b32.xlu0 %v3520_v32, %s5946_s11  ;;  %v8662_v32 = vld [vmem:[%s9380_s9] sm:$0xff]  ;;  %v4018_v53 = vsel %vm3601_vm6, %v3923_v9, 0.0 }
 0xb69   :  { %9812 = vst [vmem:[#allocation76_spill] sm:$0xff] %v8662_v32  ;;  %v3858_v26 = vadd.f32 %v3826_v3, %v8662_v32  ;;  %v8849_v32 = vld [vmem:[%s9380_s9 + $0xa8] sm:$0xff] }
 0xb6b   :  { %v3607_v59 = vpop.xlane.xlu0 %3606 }
 0xb83   :  { %3672 = vadd.xlane.f32.xlu1 %v3671_v56  ;;  %v8665_v56 = vpop.xlane.xlu0 %3609 }
 0xb87   :  { %3675 = vadd.xlane.f32.xlu0 %v3674_v43  ;;  %v3929_v52 = vpop.permute.xlu0 %3928 }
 0xb88   :  { %v4027_v14 = vsel %vm3601_vm6, %v3929_v52, 0.0 }
 0xb8b   :  { %v8669_v19 = vpop.xlane.xlu0 %3615 }
 0xb94   :  { %3950 = vrot.lane.b32.xlu1 %v3519_v17, %s5946_s11  ;;  %v8656_v17 = vpop.xlane.xlu1 %3660 }
 0xb9d   :  { %3972 = vrot.lane.b32.xlu0 %v3530_v11, %s5946_s11 }
 0xbb8   :  { %3648 = vadd.xlane.f32.xlu1 %v3647_v54  ;;  %v3695_v54 = vsel %vm3601_vm6, %v3536_v61, 0.0 }
 0xbbc   :  { %3651 = vadd.xlane.f32.xlu0 %v3650_v5  ;;  %v3933_v5 = vpop.permute.xlu0 %3932 }
 0xbc9   :  { %3970 = vrot.lane.b32.xlu1 %v3529_v39, %s5946_s11  ;;  %v3943_v39 = vpop.permute.xlu1 %3942 }
 0xbcd   :  { %v8667_v43 = vpop.xlane.xlu1 %3636 }
 0xbd1   :  { %v3963_v11 = vpop.permute.xlu1 %3962 }
 0xbd2   :  { %3956 = vrot.lane.b32.xlu0 %v3522_v35, %s5946_s11  ;;  %v8675_v35 = vpop.xlane.xlu0 %3621  ;;  %v4078_v13 = vsel %vm3601_vm6, %v3963_v11, 0.0  ;;  %v8721_v11 = vld [vmem:[%s9380_s9 + $0x48] sm:$0xff] }
 0xbed   :  { %3678 = vadd.xlane.f32.xlu1 %v3677_v58  ;;  %v4033_v58 = vsel %vm3601_vm6, %v3933_v5, 0.0 }
 0xbf1   :  { %3681 = vadd.xlane.f32.xlu0 %v3680_v46  ;;  %v3937_v46 = vpop.permute.xlu0 %3936 }
 0xbf2   :  { %v4039_v29 = vsel %vm3601_vm6, %v3937_v46, 0.0  ;;  %v9815_v46 = vld [vmem:[#allocation120_spill] sm:$0xff] }
 0xbfe   :  { %3954 = vrot.lane.b32.xlu1 %v3521_v10, %s5946_s11  ;;  %v8671_v10 = vpop.xlane.xlu1 %3666 }
 0xc02   :  { %v3947_v57 = vpop.permute.xlu1 %3946 }
 0xc03   :  { %v4054_v55 = vsel %vm3601_vm6, %v3947_v57, 0.0 }
 0xc07   :  { %3976 = vrot.lane.b32.xlu0 %v3532_v49, %s5946_s11  ;;  %v4042_v49 = vsel %vm3601_vm6, %v3939_v60, 0.0 }
 0xc22   :  { %3654 = vadd.xlane.f32.xlu1 %v3653_v48 }
 0xc26   :  { %3687 = vadd.xlane.f32.xlu0 %v3686_v7  ;;  %v4072_v7 = vsel %vm3601_vm6, %v3959_v21, 0.0 }
 0xc33   :  { %3974 = vrot.lane.b32.xlu1 %v3531_v15, %s5946_s11  ;;  %v8678_v15 = vpop.xlane.xlu1 %3642 }
 0xc37   :  { %v3967_v45 = vpop.permute.xlu1 %3966 }
 0xc3b   :  { %v8685_v48 = vpop.xlane.xlu1 %3672 }
 0xc3c   :  { %3980 = vrot.lane.b32.xlu0 %v3534_v51, %s5946_s11  ;;  %v4048_v51 = vsel %vm3601_vm6, %v3943_v39, 0.0  ;;  %v9814_v39 = vld [vmem:[#allocation52_spill] sm:$0xff] }
 0xc3d   :  { %v3835_v52 = vadd.f32 %v9814_v39, %v8652_v12  ;;  %v9820_v39 = vld [vmem:[#allocation69_spill] sm:$0xff] }
 0xc3f   :  { %v3951_v0 = vpop.permute.xlu1 %3950  ;;  %v3867_v5 = vadd.f32 %v3835_v52, %v8721_v11  ;;  %v3837_v52 = vadd.f32 %v9820_v39, %v8667_v43 }
 0xc45   :  { %v8698_v4 = vpop.xlane.xlu1 %3648 }
 0xc57   :  { %3684 = vadd.xlane.f32.xlu1 %v3683_v33 }
 0xc5b   :  { %3693 = vadd.xlane.f32.xlu0 %v3692_v6 }
 0xc68   :  { %3978 = vrot.lane.b32.xlu1 %v3533_v20, %s5946_s11  ;;  %v8683_v20 = vpop.xlane.xlu0 %3627 }
 0xc6c   :  { %v3941_v1 = vpop.permute.xlu0 %3940 }
 0xc70   :  { %v8690_v6 = vpop.xlane.xlu0 %3657 }
 0xc71   :  { %3984 = vrot.lane.b32.xlu0 %v3536_v61, %s5946_s11  ;;  %v8696_v61 = vld [vmem:[%s9380_s9 + $0x8] sm:$0xff] }
 0xc74   :  { %v3961_v22 = vpop.permute.xlu0 %3960 }
 0xc75   :  { %v4075_v57 = vsel %vm3601_vm6, %v3961_v22, 0.0 }
 0xc78   :  { %v8703_v40 = vpop.xlane.xlu0 %3633 }
 0xc8c   :  { %3690 = vadd.xlane.f32.xlu1 %v3689_v2  ;;  %v3971_v2 = vpop.permute.xlu1 %3970 }
 0xc8d   :  { %v4090_v60 = vsel %vm3601_vm6, %v3971_v2, 0.0 }
 0xc90   :  { %4022 = vadd.xlane.f32.xlu0 %v4021_v34  ;;  %v4084_v34 = vsel %vm3601_vm6, %v3967_v45, 0.0  ;;  %v3828_v45 = vadd.f32 %v9815_v46, %v8665_v56 }
 0xc94   :  { %4025 = vadd.xlane.f32.xlu0 %v4024_v38  ;;  %v8705_v38 = vpop.xlane.xlu1 %3678 }
 0xc98   :  { %4031 = vadd.xlane.f32.xlu0 %v4030_v41  ;;  %v4060_v41 = vsel %vm3601_vm6, %v3951_v0, 0.0  ;;  %v3955_v21 = vpop.permute.xlu1 %3954  ;;  %v8749_v0 = vld [vmem:[%s9380_s9 + $0x18] sm:$0xff] }
 0xc99   :  { %v4066_v24 = vsel %vm3601_vm6, %v3955_v21, 0.0  ;;  %v8772_v21 = vld [vmem:[%s9380_s9 + $0x98] sm:$0xff] }
 0xc9a   :  { %9819 = vst [vmem:[#allocation89_spill] sm:$0xff] %v8772_v21 }
 0xc9c   :  { %4037 = vadd.xlane.f32.xlu0 %v4036_v23  ;;  %v3945_v23 = vpop.permute.xlu0 %3944 }
 0xc9d   :  { %3982 = vrot.lane.b32.xlu1 %v3535_v31, %s5946_s11  ;;  %v9813_v31 = vld [vmem:[#allocation134_spill] sm:$0xff] }
 0xc9e   :  { %v3827_v33 = vadd.f32 %v9813_v31, %v3607_v59 }
 0xca0   :  { %v3859_v36 = vadd.f32 %v3827_v33, %v8696_v61  ;;  %v8709_v9 = vpop.xlane.xlu0 %3663 }
 0xca4   :  { %v3965_v3 = vpop.permute.xlu0 %3964 }
 0xca8   :  { %v8712_v59 = vpop.xlane.xlu0 %3639 }
 0xcaf   :  { %v8751_v31 = vpop.xlane.xlu1 %3654 }
 0xcb2   :  { %4467 = vperm.xlu0 %5612, %v3858_v26   ;;  %v8714_v26 = vpop.permute.xlu0 %3948 }
 0xcc1   :  { %3696 = vadd.xlane.f32.xlu1 %v3695_v54  ;;  %v8723_v54 = vpop.xlane.xlu0 %3669 }
 0xcc5   :  { %4019 = vadd.xlane.f32.xlu1 %v4018_v53  ;;  %v4045_v53 = vsel %vm3601_vm6, %v3941_v1, 0.0  ;;  %v9817_v1 = vld [vmem:[#allocation131_spill] sm:$0xff] }
 0xcc9   :  { %4028 = vadd.xlane.f32.xlu1 %v4027_v14  ;;  %v8728_v14 = vpop.permute.xlu0 %3968 }
 0xccd   :  { %4034 = vadd.xlane.f32.xlu1 %v4033_v58  ;;  %v8730_v58 = vpop.xlane.xlu0 %3645 }
 0xcd1   :  { %4043 = vadd.xlane.f32.xlu0 %v4042_v49  ;;  %4040 = vadd.xlane.f32.xlu1 %v4039_v29  ;;  %v8732_v12 = vpop.permute.xlu0 %3952  ;;  %v8739_v49 = vld [vmem:[%s9380_s9 + $0x10] sm:$0xff] }
 0xcd2   :  { %9816 = vst [vmem:[#allocation26_spill] sm:$0xff] %v8739_v49 }
 0xcd5   :  { %4073 = vadd.xlane.f32.xlu0 %v4072_v7  ;;  %v8741_v29 = vpop.xlane.xlu0 %3675  ;;  %v3860_v7 = vadd.f32 %v3828_v45, %v8739_v49  ;;  %v9831_v49 = vld [vmem:[#allocation81_spill] sm:$0xff] }
 0xcd9   :  { %4049 = vadd.xlane.f32.xlu0 %v4048_v51  ;;  %v3829_v51 = vadd.f32 %v9817_v1, %v8638_v27  ;;  %v8754_v33 = vpop.permute.xlu0 %3972 }
 0xcdb   :  { %v3861_v56 = vadd.f32 %v3829_v51, %v8749_v0  ;;  %v4081_v51 = vsel %vm3601_vm6, %v3965_v3, 0.0  ;;  %v9825_v3 = vld [vmem:[#allocation20_spill] sm:$0xff] }
 0xcdd   :  { %4079 = vadd.xlane.f32.xlu0 %v4078_v13  ;;  %v8756_v13 = vpop.xlane.xlu0 %3651 }
 0xce1   :  { %4055 = vadd.xlane.f32.xlu0 %v4054_v55  ;;  %v8759_v27 = vpop.permute.xlu0 %3956 }
 0xce2   :  { %4470 = vperm.xlu1 %5613, %v3859_v36   ;;  %v3975_v36 = vpop.permute.xlu1 %3974 }
 0xce3   :  { %v4096_v55 = vsel %vm3601_vm6, %v3975_v36, 0.0 }
 0xce5   :  { %4085 = vadd.xlane.f32.xlu0 %v4084_v34  ;;  %v8761_v22 = vpop.xlane.xlu0 %3681  ;;  %v9818_v34 = vld [vmem:[#allocation59_spill] sm:$0xff] }
 0xce9   :  { %4061 = vadd.xlane.f32.xlu0 %v4060_v41  ;;  %v8763_v2 = vpop.permute.xlu0 %3976  ;;  %v3845_v41 = vadd.f32 %v9818_v34, %v8656_v17 }
 0xced   :  { %4091 = vadd.xlane.f32.xlu0 %v4090_v60  ;;  %v8767_v60 = vpop.xlane.xlu0 %3687 }
 0xcf1   :  { %4067 = vadd.xlane.f32.xlu0 %v4066_v24  ;;  %v3877_v24 = vadd.f32 %v3845_v41, %v8772_v21  ;;  %v8784_v17 = vpop.permute.xlu0 %3980  ;;  %v9823_v41 = vld [vmem:[#allocation60_spill] sm:$0xff]  ;;  %v9829_v21 = vld [vmem:[#allocation122_spill] sm:$0xff] }
 0xcf5   :  { %v8787_v45 = vpop.xlane.xlu0 %3693 }
 0xcf9   :  { %v8792_v1 = vpop.permute.xlu0 %3984 }
 0xd06   :  { %4046 = vadd.xlane.f32.xlu1 %v4045_v53  ;;  %v8782_v53 = vld [vmem:[%s9380_s9 + $0x58] sm:$0xff] }
 0xd07   :  { %4494 = vperm.xlu0 %5612, %v3867_v5   ;;  %v8777_v5 = vpop.xlane.xlu1 %3684  ;;  %9821 = vst [vmem:[#allocation94_spill] sm:$0xff] %v8782_v53 }
 0xd0a   :  { %4076 = vadd.xlane.f32.xlu1 %v4075_v57  ;;  %v3869_v57 = vadd.f32 %v3837_v52, %v8782_v53  ;;  %v3831_v52 = vadd.f32 %v9825_v3, %v8641_v25 }
 0xd0b   :  { %v3979_v46 = vpop.permute.xlu1 %3978 }
 0xd0c   :  { %v4102_v53 = vsel %vm3601_vm6, %v3979_v46, 0.0  ;;  %v3847_v46 = vadd.f32 %v9831_v49, %v8671_v10  ;;  %v4057_v10 = vsel %vm3601_vm6, %v8714_v26, 0.0  ;;  %v4087_v49 = vsel %vm3601_vm6, %v8728_v14, 0.0  ;;  %v8879_v26 = vld [vmem:[%s9380_s9 + $0x38] sm:$0xff] }
 0xd19   :  { %v8790_v43 = vpop.xlane.xlu1 %3690 }
 0xd1b   :  { %4473 = vperm.xlu1 %5613, %v3860_v7   ;;  %v4051_v7 = vsel %vm3601_vm6, %v3945_v23, 0.0  ;;  %v8808_v23 = vld [vmem:[%s9380_s9 + $0x20] sm:$0xff] }
 0xd1c   :  { %9824 = vst [vmem:[#allocation13_spill] sm:$0xff] %v8808_v23 }
 0xd1d   :  { %v8795_v36 = vpop.xlane.xlu0 %4022 }
 0xd1f   :  { %4476 = vperm.xlu1 %5613, %v3861_v56   ;;  %v3983_v56 = vpop.permute.xlu1 %3982 }
 0xd21   :  { %v8799_v34 = vpop.xlane.xlu0 %4025 }
 0xd22   :  { %9822 = vst [vmem:[#allocation40_spill] sm:$0xff] %v8799_v34 }
 0xd26   :  { %4097 = vadd.xlane.f32.xlu0 %v4096_v55 }
 0xd3c   :  { %4524 = vperm.xlu0 %5612, %v3877_v24   ;;  %v3830_v24 = vadd.f32 %v9823_v41, %v8669_v19  ;;  %v8820_v19 = vld [vmem:[%s9380_s9 + $0x28] sm:$0xff]  ;;  %v9827_v41 = vlaneseq }
 0xd3d   :  { %v3863_v62 = vadd.f32 %v3831_v52, %v8820_v19 }
 0xd3e   :  { %v8823_v50 = vand.u32 127, %v9827_v41 }
 0xd40   :  { %4500 = vperm.xlu0 %5612, %v3869_v57   ;;  %v3862_v57 = vadd.f32 %v3830_v24, %v8808_v23  ;;  %v4568_v25 = vadd.s32 4294967288, %v8823_v50  ;;  %v8836_v23 = vsub.s32 %v8823_v50, %v9829_v21  ;;  %v4575_v14 = vadd.s32 4294967280, %v8823_v50 }
 0xd42   :  { %9830 = vst [vmem:[#allocation77_spill] sm:$0xff] %v8836_v23 }
 0xd43   :  { %4052 = vadd.xlane.f32.xlu1 %v4051_v7  ;;  %v8813_v7 = vpop.xlane.xlu0 %4031 }
 0xd44   :  { %9826 = vst [vmem:[#allocation18_spill] sm:$0xff] %v8813_v7 }
 0xd47   :  { %4082 = vadd.xlane.f32.xlu1 %v4081_v51  ;;  %v8829_v24 = vpop.xlane.xlu0 %4037 }
 0xd48   :  { %9828 = vst [vmem:[#allocation79_spill] sm:$0xff] %v8829_v24 }
 0xd4b   :  { %v4468_v52 = vpop.permute.xlu0 %4467 }
 0xd4c   :  { %v4567_v7 = vrot.slane %v4468_v52, %v8836_v23  ;;  %v8857_v52 = vld [vmem:[%s9380_s9 + $0x68] sm:$0xff] }
 0xd4e   :  { %v8797_v55 = vpop.xlane.xlu1 %3696 }
 0xd52   :  { %v8803_v39 = vpop.xlane.xlu1 %4019 }
 0xd56   :  { %v8815_v51 = vpop.xlane.xlu1 %4028 }
 0xd58   :  { %4479 = vperm.xlu1 %5613, %v3862_v57   ;;  %v8839_v57 = vsub.s32 %v4568_v25, %v9829_v21  ;;  %v9832_v25 = vld [vmem:[#allocation58_spill] sm:$0xff] }
 0xd59   :  { %v3839_v34 = vadd.f32 %v9832_v25, %v8678_v15 }
 0xd5a   :  { %v8826_v8 = vpop.xlane.xlu1 %4034 }
 0xd5c   :  { %4482 = vperm.xlu1 %5613, %v3863_v62  }
 0xd5e   :  { %v8831_v3 = vpop.xlane.xlu1 %4040 }
 0xd5f   :  { %4103 = vadd.xlane.f32.xlu0 %v4102_v53  ;;  %v3879_v53 = vadd.f32 %v3847_v46, %v8849_v32  ;;  %v9834_v46 = vld [vmem:[#allocation5_spill] sm:$0xff] }
 0xd62   :  { %v4471_v41 = vpop.permute.xlu1 %4470 }
 0xd63   :  { %v4572_v24 = vrot.slane %v4471_v41, %v8839_v57  ;;  %v8869_v41 = vld [vmem:[%s9380_s9 + $0x30] sm:$0xff] }
 0xd65   :  { %v4574_v62 = vsel %vm4573_vm7, %v4572_v24, %v4567_v7  ;;  %v3871_v7 = vadd.f32 %v3839_v34, %v8857_v52  ;;  %v9833_v24 = vld [vmem:[#allocation8_spill] sm:$0xff]  ;;  %v3833_v34 = vadd.f32 %v9834_v46, %v8645_v28  ;;  %v8887_v28 = vsub.s32 %v4575_v14, %v9829_v21 }
 0xd66   :  { %v3832_v15 = vadd.f32 %v9833_v24, %v8675_v35  ;;  %v9836_v14 = vld [vmem:[#allocation64_spill] sm:$0xff] }
 0xd67   :  { %v3865_v35 = vadd.f32 %v3833_v34, %v8879_v26  ;;  %v3849_v23 = vadd.f32 %v9836_v14, %v8685_v48  ;;  %v3851_v48 = vadd.f32 %v8280_v37, %v8705_v38 }
 0xd75   :  { %4530 = vperm.xlu0 %5612, %v3879_v53   ;;  %v3864_v53 = vadd.f32 %v3832_v15, %v8869_v41 }
 0xd79   :  { %4506 = vperm.xlu0 %5612, %v3871_v7  }
 0xd80   :  { %4058 = vadd.xlane.f32.xlu1 %v4057_v10  ;;  %v4108_v10 = vsel %vm3601_vm6, %v3983_v56, 0.0 }
 0xd84   :  { %4088 = vadd.xlane.f32.xlu1 %v4087_v49  ;;  %v4582_v49 = vadd.s32 4294967272, %v8823_v50 }
 0xd86   :  { %v8892_v46 = vsub.s32 %v4582_v49, %v9829_v21 }
 0xd88   :  { %9835 = vst [vmem:[#allocation80_spill] sm:$0xff] %v8892_v46 }
 0xd93   :  { %v8874_v25 = vpop.xlane.xlu1 %4046 }
 0xd95   :  { %4485 = vperm.xlu1 %5613, %v3864_v53  }
 0xd97   :  { %v8883_v7 = vpop.xlane.xlu1 %4076 }
 0xd98   :  { %4109 = vadd.xlane.f32.xlu0 %v4108_v10 }
 0xd99   :  { %4488 = vperm.xlu1 %5613, %v3865_v35   ;;  %v8904_v35 = vld [vmem:[%s9380_s9 + $0xb8] sm:$0xff] }
 0xd9a   :  { %v3881_v49 = vadd.f32 %v3849_v23, %v8904_v35  ;;  %v8922_v23 = vpop.xlane.xlu0 %4043 }
 0xd9b   :  { %v4474_v24 = vpop.permute.xlu1 %4473 }
 0xd9c   :  { %v4579_v15 = vrot.slane %v4474_v24, %v8887_v28  ;;  %v9837_v24 = vld [vmem:[#allocation23_spill] sm:$0xff] }
 0xd9e   :  { %v4581_v34 = vsel %vm4580_vm8, %v4579_v15, %v4574_v62  ;;  %v3841_v62 = vadd.f32 %v9837_v24, %v8698_v4  ;;  %v8912_v15 = vld [vmem:[%s9380_s9 + $0x78] sm:$0xff]  ;;  %v4074_v37 = vpop.xlane.xlu0 %4073  ;;  %v3853_v24 = vadd.f32 %v8355_v63, %v8777_v5 }
 0xd9f   :  { %v4477_v53 = vpop.permute.xlu1 %4476 }
 0xda0   :  { %v4586_v56 = vrot.slane %v4477_v53, %v8892_v46  ;;  %v8920_v53 = vld [vmem:[%s9380_s9 + $0xc8] sm:$0xff] }
 0xda1   :  { %v3883_v4 = vadd.f32 %v3851_v48, %v8920_v53  ;;  %v4063_v48 = vsel %vm3601_vm6, %v8732_v12, 0.0  ;;  %v8960_v12 = vld [vmem:[%s9380_s9 + $0xf8] sm:$0xff] }
 0xda2   :  { %v8897_v10 = vsel %vm4587_vm9, %v4586_v56, %v4581_v34  ;;  %v3873_v34 = vadd.f32 %v3841_v62, %v8912_v15  ;;  %v9838_v56 = vld [vmem:[#allocation7_spill] sm:$0xff]  ;;  %v8950_v63 = vpop.xlane.xlu0 %4049 }
 0xda3   :  { %v3843_v14 = vadd.f32 %v9838_v56, %v8751_v31  ;;  %v8938_v62 = vld [vmem:[%s9380_s9 + $0xd8] sm:$0xff]  ;;  %v3857_v56 = vadd.f32 %v8628_v18, %v8797_v55 }
 0xda4   :  { %v3885_v31 = vadd.f32 %v3853_v24, %v8938_v62  ;;  %v9840_v18 = vld [vmem:[#allocation132_spill] sm:$0xff] }
 0xda5   :  { %v3889_v24 = vadd.f32 %v3857_v56, %v8960_v12  ;;  %v4373_v55 = vadd.f32 %v9840_v18, %v8815_v51  ;;  %v9843_v56 = vld [vmem:[#allocation56_spill] sm:$0xff] }
 0xdae   :  { %4536 = vperm.xlu0 %5612, %v3881_v49   ;;  %v8930_v49 = vld [vmem:[%s9380_s9 + $0x88] sm:$0xff] }
 0xdaf   :  { %v3875_v38 = vadd.f32 %v3843_v14, %v8930_v49  ;;  %v9839_v14 = vld [vmem:[#allocation135_spill] sm:$0xff] }
 0xdb2   :  { %4512 = vperm.xlu0 %5612, %v3873_v34   ;;  %v3855_v34 = vadd.f32 %v8430_v47, %v8790_v43  ;;  %v4093_v47 = vsel %vm3601_vm6, %v8754_v33, 0.0  ;;  %v4080_v43 = vpop.xlane.xlu0 %4079 }
 0xdb6   :  { %4542 = vperm.xlu0 %5612, %v3883_v4   ;;  %v8948_v4 = vld [vmem:[%s9380_s9 + $0xe8] sm:$0xff]  ;;  %v8968_v33 = vpop.xlane.xlu0 %4055 }
 0xdb7   :  { %v3887_v5 = vadd.f32 %v3855_v34, %v8948_v4  ;;  %v9841_v34 = vld [vmem:[#allocation50_spill] sm:$0xff] }
 0xdba   :  { %4518 = vperm.xlu0 %5612, %v3875_v38   ;;  %v4371_v38 = vadd.f32 %v9839_v14, %v8795_v36  ;;  %v8978_v36 = vld [vmem:[%s9380_s9 + $0x40] sm:$0xff]  ;;  %v4377_v14 = vadd.f32 %v9843_v56, %v8831_v3  ;;  %v4596_v3 = vadd.s32 4294967256, %v8823_v50 }
 0xdbd   :  { %4064 = vadd.xlane.f32.xlu1 %v4063_v48  ;;  %v3834_v48 = vadd.f32 %v9841_v34, %v8683_v20 }
 0xdbe   :  { %4548 = vperm.xlu0 %5612, %v3885_v31   ;;  %v4403_v31 = vadd.f32 %v4371_v38, %v8696_v61  ;;  %v4086_v61 = vpop.xlane.xlu0 %4085 }
 0xdbf   :  { %v3866_v38 = vadd.f32 %v3834_v48, %v8978_v36 }
 0xdc1   :  { %4094 = vadd.xlane.f32.xlu1 %v4093_v47  ;;  %v9842_v47 = vld [vmem:[#allocation62_spill] sm:$0xff] }
 0xdc2   :  { %4554 = vperm.xlu0 %5612, %v3887_v5   ;;  %v4405_v5 = vadd.f32 %v4373_v55, %v8749_v0  ;;  %v4375_v46 = vadd.f32 %v9842_v47, %v8826_v8  ;;  %v4589_v0 = vadd.s32 4294967264, %v8823_v50  ;;  %v4409_v8 = vadd.f32 %v4377_v14, %v8879_v26  ;;  %v8992_v55 = vpop.xlane.xlu0 %4061  ;;  %v3587_v47 = vld [vmem:[%s9380_s9 + $0x90] sm:$0xff] }
 0xdc4   :  { %v4407_v51 = vadd.f32 %v4375_v46, %v8820_v19  ;;  %v8995_v19 = vsub.s32 %v4589_v0, %v9829_v21  ;;  %v9845_v46 = vld [vmem:[#allocation78_spill] sm:$0xff] }
 0xdc5   :  { %v4388_v34 = vadd.f32 %v9845_v46, %v4074_v37  ;;  %v9846_v37 = vld [vmem:[#allocation14_spill] sm:$0xff] }
 0xdc6   :  { %4560 = vperm.xlu0 %5612, %v3889_v24   ;;  %v9844_v24 = vld [vmem:[#allocation22_spill] sm:$0xff] }
 0xdc7   :  { %v4420_v14 = vadd.f32 %v4388_v34, %v3587_v47 }
 0xdca   :  { %4790 = vperm.xlu0 %5612, %v4403_v31   ;;  %v4379_v31 = vadd.f32 %v9844_v24, %v8874_v25  ;;  %v9002_v25 = vsub.s32 %v4596_v3, %v9829_v21  ;;  %v9847_v3 = vld [vmem:[#allocation25_spill] sm:$0xff] }
 0xdcb   :  { %v4392_v46 = vadd.f32 %v9847_v3, %v4086_v61  ;;  %v4069_v3 = vsel %vm3601_vm6, %v8759_v27, 0.0 }
 0xdcc   :  { %v4411_v48 = vadd.f32 %v4379_v31, %v8721_v11 }
 0xdce   :  { %4796 = vperm.xlu0 %5612, %v4405_v5  }
 0xdd0   :  { %v8984_v20 = vpop.xlane.xlu1 %4052 }
 0xdd2   :  { %4491 = vperm.xlu1 %5613, %v3866_v38   ;;  %4802 = vperm.xlu0 %5612, %v4407_v51   ;;  %v4092_v51 = vpop.xlane.xlu0 %4091  ;;  %v4390_v38 = vadd.f32 %v9846_v37, %v4080_v43 }
 0xdd3   :  { %v4394_v34 = vadd.f32 %v8298_v16, %v4092_v51  ;;  %v9849_v51 = vld [vmem:[#allocation16_spill] sm:$0xff] }
 0xdd4   :  { %v8990_v18 = vpop.xlane.xlu1 %4082 }
 0xdd6   :  { %4808 = vperm.xlu0 %5612, %v4409_v8   ;;  %v3589_v8 = vld [vmem:[%s9380_s9 + $0xa0] sm:$0xff] }
 0xdd7   :  { %v4422_v31 = vadd.f32 %v4390_v38, %v3589_v8  ;;  %v9033_v38 = vld [vmem:[%s9380_s9 + $0x80] sm:$0xff] }
 0xdd8   :  { %v4480_v5 = vpop.permute.xlu1 %4479 }
 0xdd9   :  { %v4593_v26 = vrot.slane %v4480_v5, %v8995_v19 }
 0xdda   :  { %4814 = vperm.xlu0 %5612, %v4411_v48   ;;  %v4068_v48 = vpop.xlane.xlu0 %4067 }
 0xddb   :  { %v4595_v56 = vsel %vm4594_vm10, %v4593_v26, %v8897_v10  ;;  %v9019_v10 = vld [vmem:[%s9380_s9 + $0xb0] sm:$0xff]  ;;  %v9026_v26 = vld [vmem:[%s9380_s9 + $0xc0] sm:$0xff] }
 0xddc   :  { %v4483_v11 = vpop.permute.xlu1 %4482  ;;  %v4424_v43 = vadd.f32 %v4392_v46, %v9019_v10  ;;  %v4426_v61 = vadd.f32 %v4394_v34, %v9026_v26  ;;  %v9850_v46 = vld [vmem:[#allocation65_spill] sm:$0xff] }
 0xddd   :  { %v4600_v0 = vrot.slane %v4483_v11, %v9002_v25 }
 0xdde   :  { %4841 = vperm.xlu0 %5612, %v4420_v14   ;;  %v4495_v5 = vpop.permute.xlu0 %4494 }
 0xddf   :  { %v4602_v24 = vsel %vm4601_vm11, %v4600_v0, %v4595_v56  ;;  %v9848_v56 = vld [vmem:[#allocation57_spill] sm:$0xff]  ;;  %v9040_v0 = vld [vmem:[%s9380_s9 + $0xd0] sm:$0xff] }
 0xde0   :  { %v4386_v14 = vadd.f32 %v9848_v56, %v4068_v48  ;;  %v3844_v48 = vadd.f32 %v9850_v46, %v8690_v6  ;;  %v9851_v46 = vld [vmem:[#allocation31_spill] sm:$0xff] }
 0xde2   :  { %4847 = vperm.xlu0 %5612, %v4422_v31   ;;  %v4098_v37 = vpop.xlane.xlu0 %4097  ;;  %v4418_v16 = vadd.f32 %v4386_v14, %v9033_v38 }
 0xde3   :  { %v4396_v11 = vadd.f32 %v9849_v51, %v4098_v37  ;;  %v4610_v37 = vadd.s32 4294967240, %v8823_v50 }
 0xde5   :  { %v4428_v31 = vadd.f32 %v4396_v11, %v9040_v0  ;;  %v9058_v51 = vsub.s32 %v4610_v37, %v9829_v21 }
 0xde6   :  { %4853 = vperm.xlu0 %5612, %v4424_v43   ;;  %v3876_v43 = vadd.f32 %v3844_v48, %v3587_v47  ;;  %v3836_v48 = vadd.f32 %v9851_v46, %v8703_v40 }
 0xdea   :  { %4859 = vperm.xlu0 %5612, %v4426_v61   ;;  %v4603_v61 = vadd.s32 4294967248, %v8823_v50 }
 0xdec   :  { %v9053_v14 = vsub.s32 %v4603_v61, %v9829_v21 }
 0xdee   :  { %4835 = vperm.xlu0 %5612, %v4418_v16  }
 0xdf2   :  { %4865 = vperm.xlu0 %5612, %v4428_v31  }
 0xdf6   :  { %4070 = vadd.xlane.f32.xlu1 %v4069_v3  ;;  %v4099_v3 = vsel %vm3601_vm6, %v8763_v2, 0.0  ;;  %v4617_v2 = vadd.s32 4294967232, %v8823_v50 }
 0xe07   :  { %4521 = vperm.xlu1 %5613, %v3876_v43   ;;  %v9070_v43 = vld [vmem:[%s9380_s9 + $0x50] sm:$0xff] }
 0xe08   :  { %v3868_v37 = vadd.f32 %v3836_v48, %v9070_v43 }
 0xe0d   :  { %v9047_v34 = vpop.xlane.xlu1 %4058 }
 0xe11   :  { %v9050_v56 = vpop.xlane.xlu1 %4088 }
 0xe15   :  { %v4486_v16 = vpop.permute.xlu1 %4485 }
 0xe16   :  { %v4607_v27 = vrot.slane %v4486_v16, %v9053_v14 }
 0xe18   :  { %v4609_v6 = vsel %vm4608_vm12, %v4607_v27, %v4602_v24  ;;  %v9852_v24 = vld [vmem:[#allocation35_spill] sm:$0xff] }
 0xe19   :  { %v4489_v47 = vpop.permute.xlu1 %4488  ;;  %v3846_v61 = vadd.f32 %v9852_v24, %v8709_v9  ;;  %v4105_v24 = vsel %vm3601_vm6, %v8784_v17, 0.0  ;;  %v4111_v17 = vsel %vm3601_vm6, %v8792_v1, 0.0  ;;  %v9857_v1 = vld [vmem:[#allocation12_spill] sm:$0xff]  ;;  %vm4671_vm6 = vcmask 1048512  }
 0xe1a   :  { %v4614_v11 = vrot.slane %v4489_v47, %v9058_v51  ;;  %v9082_v47 = vsub.s32 %v4617_v2, %v9829_v21  ;;  %v9854_v2 = vld [vmem:[#allocation67_spill] sm:$0xff] }
 0xe1b   :  { %v3878_v16 = vadd.f32 %v3846_v61, %v3589_v8  ;;  %v9853_v61 = vld [vmem:[#allocation54_spill] sm:$0xff] }
 0xe1c   :  { %v4616_v31 = vsel %vm4615_vm13, %v4614_v11, %v4609_v6  ;;  %v4624_v6 = vadd.s32 4294967224, %v8823_v50 }
 0xe1e   :  { %v9085_v11 = vsub.s32 %v4624_v6, %v9829_v21  ;;  %v3848_v6 = vadd.f32 %v9854_v2, %v8723_v54  ;;  %v9856_v54 = vld [vmem:[#allocation83_spill] sm:$0xff] }
 0xe20   :  { %v4628_v8 = vrot.slane %v4495_v5, %v9085_v11 }
 0xe2b   :  { %4100 = vadd.xlane.f32.xlu1 %v4099_v3 }
 0xe3c   :  { %4497 = vperm.xlu1 %5613, %v3868_v37   ;;  %v3838_v37 = vadd.f32 %v9853_v61, %v8712_v59  ;;  %v9855_v59 = vld [vmem:[#allocation72_spill] sm:$0xff]  ;;  %v3842_v61 = vadd.f32 %v9857_v1, %v8756_v13 }
 0xe40   :  { %4527 = vperm.xlu1 %5613, %v3878_v16   ;;  %v9098_v16 = vld [vmem:[%s9380_s9 + $0x60] sm:$0xff] }
 0xe41   :  { %v3870_v5 = vadd.f32 %v3838_v37, %v9098_v16  ;;  %v9858_v37 = vld [vmem:[#allocation38_spill] sm:$0xff] }
 0xe42   :  { %v3852_v2 = vadd.f32 %v9858_v37, %v8761_v22  ;;  %v3597_v22 = vld [vmem:[%s9380_s9 + $0xe0] sm:$0xff] }
 0xe44   :  { %v3884_v13 = vadd.f32 %v3852_v2, %v9040_v0  ;;  %v3856_v0 = vadd.f32 %v8649_v30, %v8787_v45  ;;  %v9860_v30 = vld [vmem:[#allocation136_spill] sm:$0xff] }
 0xe45   :  { %v4370_v45 = vadd.f32 %v9860_v30, %v8803_v39  ;;  %v9868_v39 = vld [vmem:[#allocation79_spill] sm:$0xff]  ;;  %v9872_v30 = vld [vmem:[#allocation10_spill] sm:$0xff] }
 0xe4a   :  { %v9075_v27 = vpop.xlane.xlu1 %4064 }
 0xe4e   :  { %v9079_v40 = vpop.xlane.xlu1 %4094 }
 0xe52   :  { %v4492_v9 = vpop.permute.xlu1 %4491 }
 0xe53   :  { %v4621_v3 = vrot.slane %v4492_v9, %v9082_v47  ;;  %v3840_v9 = vadd.f32 %v9855_v59, %v8730_v58  ;;  %v3854_v59 = vadd.f32 %v8438_v42, %v8767_v60 }
 0xe55   :  { %v4623_v46 = vsel %vm4622_vm14, %v4621_v3, %v4616_v31  ;;  %v3880_v31 = vadd.f32 %v3848_v6, %v9019_v10  ;;  %v9111_v3 = vld [vmem:[%s9380_s9 + $0x70] sm:$0xff]  ;;  %v3874_v6 = vadd.f32 %v3842_v61, %v9033_v38  ;;  %v3886_v60 = vadd.f32 %v3854_v59, %v3597_v22  ;;  %v9862_v59 = vld [vmem:[#allocation133_spill] sm:$0xff] }
 0xe56   :  { %v4630_v48 = vsel %vm4629_vm15, %v4628_v8, %v4623_v46  ;;  %v3850_v8 = vadd.f32 %v9856_v54, %v8741_v29  ;;  %v3872_v46 = vadd.f32 %v3840_v9, %v9111_v3  ;;  %v9859_v38 = vld [vmem:[#allocation11_spill] sm:$0xff] }
 0xe58   :  { %v3882_v58 = vadd.f32 %v3850_v8, %v9026_v26 }
 0xe64   :  { %4106 = vadd.xlane.f32.xlu1 %v4105_v24  ;;  %v9116_v24 = vpop.permute.xlu0 %4524 }
 0xe75   :  { %4503 = vperm.xlu1 %5613, %v3870_v5   ;;  %v4501_v5 = vpop.permute.xlu0 %4500 }
 0xe79   :  { %4533 = vperm.xlu1 %5613, %v3880_v31   ;;  %v4638_v31 = vadd.s32 4294967208, %v8823_v50  ;;  %v4104_v26 = vpop.xlane.xlu0 %4103 }
 0xe7b   :  { %v9138_v8 = vsub.s32 %v4638_v31, %v9829_v21 }
 0xe83   :  { %v9118_v10 = vpop.xlane.xlu1 %4070 }
 0xe87   :  { %v9126_v29 = vpop.permute.xlu1 %4521 }
 0xe9d   :  { %4112 = vadd.xlane.f32.xlu1 %v4111_v17  ;;  %v4631_v17 = vadd.s32 4294967216, %v8823_v50 }
 0xe9f   :  { %v9142_v1 = vsub.s32 %v4631_v17, %v9829_v21  ;;  %v9861_v17 = vld [vmem:[#allocation40_spill] sm:$0xff] }
 0xeae   :  { %4509 = vperm.xlu1 %5613, %v3872_v46   ;;  %v4398_v46 = vadd.f32 %v8452_v44, %v4104_v26  ;;  %v4642_v44 = vrot.slane %v4501_v5, %v9138_v8  ;;  %v9863_v26 = vld [vmem:[#allocation76_spill] sm:$0xff]  ;;  %v9864_v5 = vld [vmem:[#allocation26_spill] sm:$0xff] }
 0xeb0   :  { %v4430_v2 = vadd.f32 %v4398_v46, %v3597_v22  ;;  %v9867_v46 = vld [vmem:[#allocation13_spill] sm:$0xff] }
 0xeb2   :  { %4539 = vperm.xlu1 %5613, %v3882_v58   ;;  %v9150_v58 = vld [vmem:[%s9380_s9 + $0xf0] sm:$0xff]  ;;  %s5947_s9 = smov [#allocation2]  }
 0xeb3   :  { %s5062_s24 = sshll.u32 %s5947_s9, 4  ;;  %s5063_s24 = int_to_ptr.vmem [resolvable:$true] %s5062_s24 }
 0xeb4   :  { %s5915_s25 = scalar_lea.vmem %s5063_s24, 64  ;;  %p5920_p1 = scmp.lt.s32.totalorder %s5063_s24, %s5063_s24 }
 0xeb5   :  { %p5916_p0 = scmp.ne.s32.totalorder %s5063_s24, %s5915_s25  ;;  %p5921_p2 = scmp.lt.s32.totalorder %s5915_s25, %s5915_s25 }
 0xeb6   :  { %4515 = vperm.xlu1 %5613, %v3874_v6   ;;  %v3888_v6 = vadd.f32 %v3856_v0, %v9150_v58 }
 0xeb7   :  { %p5922_p3 = por %p5921_p2, %p5920_p1 }
 0xeb8   :  { %v4101_v9 = vpop.xlane.xlu1 %4100 }
 0xeb9   :  { %v4397_v54 = vadd.f32 %v9859_v38, %v4101_v9  ;;  %v4402_v9 = vadd.f32 %v4370_v45, %v9863_v26  ;;  %v9865_v38 = vld [vmem:[#allocation18_spill] sm:$0xff]  ;;  %v4380_v45 = vadd.f32 %v9872_v30, %v8950_v63  ;;  %v9883_v30 = vld [vmem:[#allocation73_spill] sm:$0xff]  ;;  %p5923_p4 = pnand %p5922_p3, %p5916_p0 }
 0xeba   :  { %4545 = vperm.xlu1 %5613, %v3884_v13   ;;  %v4372_v13 = vadd.f32 %v9862_v59, %v9861_v17  ;;  %v9873_v17 = vld [vmem:[#allocation89_spill] sm:$0xff] }
 0xebb   :  { %v4429_v42 = vadd.f32 %v4397_v54, %v8938_v62 }
 0xebc   :  { %v4498_v61 = vpop.permute.xlu1 %4497  ;;  %v4404_v22 = vadd.f32 %v4372_v13, %v9864_v5  ;;  %v4412_v13 = vadd.f32 %v4380_v45, %v9070_v43 }
 0xebd   :  { %v4635_v37 = vrot.slane %v4498_v61, %v9142_v1  ;;  %4868 = vperm.xlu0 %5612, %v4429_v42  }
 0xebe   :  { %4551 = vperm.xlu1 %5613, %v3886_v60   ;;  %v9869_v60 = vld [vmem:[#allocation51_spill] sm:$0xff] }
 0xebf   :  { %v4637_v62 = vsel %vm4636_vm1, %v4635_v37, %v4630_v48  ;;  %v9866_v48 = vld [vmem:[#allocation29_spill] sm:$0xff]  ;;  %v4376_v0 = vadd.f32 %v9869_v60, %v9868_v39  ;;  %v9870_v37 = vld [vmem:[#allocation66_spill] sm:$0xff] }
 0xec0   :  { %v9159_v31 = vsel %vm4643_vm2, %v4642_v44, %v4637_v62  ;;  %v4374_v54 = vadd.f32 %v9866_v48, %v9865_v38  ;;  %v4378_v44 = vadd.f32 %v9870_v37, %v8922_v23  ;;  %v9871_v62 = vld [vmem:[#allocation24_spill] sm:$0xff]  ;;  %v9875_v23 = vld [vmem:[#allocation94_spill] sm:$0xff]  ;;  %v9188_v38 = vpop.permute.xlu0 %4530  ;;  %v9196_v39 = vpop.permute.xlu1 %4527  ;;  %v9880_v60 = vld [vmem:[#allocation53_spill] sm:$0xff] }
 0xec1   :  { %4871 = vperm.xlu0 %5612, %v4430_v2   ;;  %v4408_v61 = vadd.f32 %v4376_v0, %v8869_v41  ;;  %v9874_v41 = vld [vmem:[#allocation6_spill] sm:$0xff]  ;;  %v9878_v48 = vld [vmem:[#allocation88_spill] sm:$0xff] }
 0xec2   :  { %4557 = vperm.xlu1 %5613, %v3888_v6   ;;  %v4406_v42 = vadd.f32 %v4374_v54, %v9867_v46  ;;  %v4410_v2 = vadd.f32 %v4378_v44, %v8978_v36  ;;  %v4389_v6 = vadd.f32 %v9871_v62, %v8883_v7  ;;  %v4381_v26 = vadd.f32 %v9874_v41, %v8984_v20  ;;  %v9876_v36 = vld [vmem:[#allocation9_spill] sm:$0xff]  ;;  %v9879_v46 = vld [vmem:[#allocation63_spill] sm:$0xff]  ;;  %v9881_v37 = vld [vmem:[#allocation74_spill] sm:$0xff] }
 0xec3   :  { %v4391_v5 = vadd.f32 %v9876_v36, %v8990_v18  ;;  %v4395_v20 = vadd.f32 %v9878_v48, %v9079_v40  ;;  %v4387_v18 = vadd.f32 %v9879_v46, %v9118_v10  ;;  %v9882_v62 = vld [vmem:[#allocation55_spill] sm:$0xff] }
 0xec4   :  { %v4421_v59 = vadd.f32 %v4389_v6, %v9873_v17  ;;  %v4383_v6 = vadd.f32 %v9882_v62, %v9047_v34 }
 0xec5   :  { %v4423_v7 = vadd.f32 %v4391_v5, %v8849_v32  ;;  %v4427_v54 = vadd.f32 %v4395_v20, %v8920_v53  ;;  %v4645_v32 = vadd.s32 4294967200, %v8823_v50  ;;  %v4419_v0 = vadd.f32 %v4387_v18, %v8930_v49 }
 0xec6   :  { %4787 = vperm.xlu1 %5613, %v4402_v9   ;;  %v4413_v9 = vadd.f32 %v4381_v26, %v9875_v23 }
 0xec7   :  { %v9205_v10 = vsub.s32 %v4645_v32, %v9829_v21 }
 0xeca   :  { %4793 = vperm.xlu1 %5613, %v4404_v22   ;;  %v9877_v22 = vld [vmem:[#allocation70_spill] sm:$0xff] }
 0xecb   :  { %v4393_v63 = vadd.f32 %v9877_v22, %v9050_v56  ;;  %v4652_v56 = vadd.s32 4294967192, %v8823_v50 }
 0xecd   :  { %v4425_v43 = vadd.f32 %v4393_v63, %v8904_v35  ;;  %v4382_v35 = vadd.f32 %v9880_v60, %v8968_v33  ;;  %v9208_v44 = vsub.s32 %v4652_v56, %v9829_v21 }
 0xece   :  { %4799 = vperm.xlu1 %5613, %v4406_v42   ;;  %v4507_v42 = vpop.permute.xlu0 %4506 }
 0xed2   :  { %4805 = vperm.xlu1 %5613, %v4408_v61   ;;  %v4110_v40 = vpop.xlane.xlu0 %4109 }
 0xed3   :  { %v4400_v33 = vadd.f32 %v9883_v30, %v4110_v40  ;;  %v9888_v40 = vld [vmem:[#allocation80_spill] sm:$0xff] }
 0xed5   :  { %v4432_v34 = vadd.f32 %v4400_v33, %v9150_v58  ;;  %v4659_v58 = vadd.s32 4294967184, %v8823_v50 }
 0xed6   :  { %4811 = vperm.xlu1 %5613, %v4410_v2   ;;  %v4414_v2 = vadd.f32 %v4382_v35, %v9098_v16  ;;  %v4415_v16 = vadd.f32 %v4383_v6, %v8857_v52  ;;  %v4700_v6 = vrot.slane %v9188_v38, %v9002_v25 }
 0xeda   :  { %4844 = vperm.xlu1 %5613, %v4421_v59   ;;  %v4656_v59 = vrot.slane %v4507_v42, %v9208_v44 }
 0xede   :  { %4817 = vperm.xlu1 %5613, %v4412_v13   ;;  %v9884_v13 = vld [vmem:[#allocation33_spill] sm:$0xff] }
 0xedf   :  { %v4384_v41 = vadd.f32 %v9884_v13, %v8992_v55  ;;  %v4537_v55 = vpop.permute.xlu0 %4536 }
 0xee1   :  { %v4416_v23 = vadd.f32 %v4384_v41, %v9111_v3  ;;  %v9232_v3 = vsub.s32 %v4659_v58, %v9829_v21 }
 0xee2   :  { %4820 = vperm.xlu1 %5613, %v4413_v9   ;;  %v9885_v9 = vld [vmem:[#allocation75_spill] sm:$0xff] }
 0xee3   :  { %v4385_v36 = vadd.f32 %v9885_v9, %v9075_v27  ;;  %v4513_v52 = vpop.permute.xlu0 %4512 }
 0xee5   :  { %v4417_v5 = vadd.f32 %v4385_v36, %v8912_v15 }
 0xee6   :  { %4850 = vperm.xlu1 %5613, %v4423_v7  }
 0xee7   :  { %v4543_v22 = vpop.permute.xlu0 %4542 }
 0xee8   :  { %v4720_v13 = vrot.slane %v4543_v22, %v9085_v11 }
 0xeea   :  { %4856 = vperm.xlu1 %5613, %v4425_v43   ;;  %v9886_v43 = vld [vmem:[#allocation71_spill] sm:$0xff] }
 0xeeb   :  { %v4519_v46 = vpop.permute.xlu0 %4518 }
 0xeec   :  { %v4680_v60 = vrot.slane %v4519_v46, %v8839_v57 }
 0xeee   :  { %4862 = vperm.xlu1 %5613, %v4427_v54  }
 0xeef   :  { %v4549_v56 = vpop.permute.xlu0 %4548 }
 0xef1   :  { %v4107_v61 = vpop.xlane.xlu1 %4106 }
 0xef2   :  { %v4399_v53 = vadd.f32 %v9881_v37, %v4107_v61  ;;  %4838 = vperm.xlu1 %5613, %v4419_v0   ;;  %v4685_v0 = vrot.slane %v9126_v29, %v8887_v28  ;;  %v4690_v61 = vrot.slane %v9116_v24, %v9888_v40  ;;  %v4710_v24 = vrot.slane %v4537_v55, %v9058_v51 }
 0xef3   :  { %v4555_v33 = vpop.permute.xlu0 %4554 }
 0xef4   :  { %v4431_v49 = vadd.f32 %v4399_v53, %v8948_v4  ;;  %v4695_v53 = vrot.slane %v9196_v39, %v8995_v19 }
 0xef5   :  { %v4504_v45 = vpop.permute.xlu1 %4503 }
 0xef6   :  { %v4649_v17 = vrot.slane %v4504_v45, %v9205_v10  ;;  %4823 = vperm.xlu1 %5613, %v4414_v2   ;;  %4874 = vperm.xlu0 %5612, %v4431_v49  }
 0xef8   :  { %v4651_v26 = vsel %vm4650_vm3, %v4649_v17, %v9159_v31  ;;  %v4666_v31 = vadd.s32 4294967176, %v8823_v50 }
 0xef9   :  { %v4658_v4 = vsel %vm4657_vm4, %v4656_v59, %v4651_v26  ;;  %v4534_v7 = vpop.permute.xlu1 %4533 }
 0xefa   :  { %4826 = vperm.xlu1 %5613, %v4415_v16   ;;  %4877 = vperm.xlu0 %5612, %v4432_v34   ;;  %v9235_v27 = vsub.s32 %v4666_v31, %v9829_v21  ;;  %v4705_v49 = vrot.slane %v4534_v7, %v9053_v14  ;;  %v4730_v34 = vrot.slane %v4549_v56, %v9138_v8 }
 0xefc   :  { %v4670_v50 = vrot.slane %v4513_v52, %v9235_v27 }
 0xefe   :  { %4829 = vperm.xlu1 %5613, %v4416_v23  }
 0xf02   :  { %4832 = vperm.xlu1 %5613, %v4417_v5   ;;  %v4740_v5 = vrot.slane %v4555_v33, %v9208_v44 }
 0xf2a   :  { %v4113_v63 = vpop.xlane.xlu1 %4112 }
 0xf2b   :  { %v4401_v48 = vadd.f32 %v9886_v43, %v4113_v63 }
 0xf2d   :  { %v4433_v15 = vadd.f32 %v4401_v48, %v8960_v12  ;;  %v9887_v12 = vld [vmem:[#allocation77_spill] sm:$0xff] }
 0xf2e   :  { %v4510_v20 = vpop.permute.xlu1 %4509 }
 0xf2f   :  { %v4663_v54 = vrot.slane %v4510_v20, %v9232_v3  ;;  %4880 = vperm.xlu0 %5612, %v4433_v15  }
 0xf31   :  { %v4665_v18 = vsel %vm4664_vm5, %v4663_v54, %v4658_v4  ;;  %v4561_v4 = vpop.permute.xlu0 %4560 }
 0xf32   :  { %v4540_v42 = vpop.permute.xlu1 %4539  ;;  %v9242_v32 = vsel %vm4671_vm6, %v4670_v50, %v4665_v18  ;;  %v4750_v58 = vrot.slane %v4561_v4, %v9235_v27 }
 0xf33   :  { %v4715_v17 = vrot.slane %v4540_v42, %v9082_v47 }
 0xf35   :  { %v4791_v15 = vpop.permute.xlu0 %4790 }
 0xf36   :  { %v4516_v21 = vpop.permute.xlu1 %4515 }
 0xf37   :  { %v4676_v35 = vrot.slane %v4516_v21, %v9887_v12 }
 0xf39   :  { %v4681_v37 = vsel %vm4573_vm7, %v4680_v60, %v4676_v35  ;;  %v4797_v50 = vpop.permute.xlu0 %4796 }
 0xf3a   :  { %v4686_v2 = vsel %vm4580_vm8, %v4685_v0, %v4681_v37  ;;  %v4546_v62 = vpop.permute.xlu1 %4545 }
 0xf3b   :  { %v4691_v30 = vsel %vm4587_vm9, %v4690_v61, %v4686_v2  ;;  %v4725_v16 = vrot.slane %v4546_v62, %v9142_v1 }
 0xf3c   :  { %v4696_v29 = vsel %vm4594_vm10, %v4695_v53, %v4691_v30 }
 0xf3d   :  { %v4701_v45 = vsel %vm4601_vm11, %v4700_v6, %v4696_v29  ;;  %v4803_v18 = vpop.permute.xlu0 %4802 }
 0xf3e   :  { %v4706_v39 = vsel %vm4608_vm12, %v4705_v49, %v4701_v45  ;;  %v4552_v59 = vpop.permute.xlu1 %4551 }
 0xf3f   :  { %v4711_v38 = vsel %vm4615_vm13, %v4710_v24, %v4706_v39  ;;  %v4735_v9 = vrot.slane %v4552_v59, %v9205_v10 }
 0xf40   :  { %v4716_v41 = vsel %vm4622_vm14, %v4715_v17, %v4711_v38 }
 0xf41   :  { %v4721_v26 = vsel %vm4629_vm15, %v4720_v13, %v4716_v41  ;;  %v4809_v56 = vpop.permute.xlu0 %4808 }
 0xf42   :  { %v4726_v23 = vsel %vm4636_vm1, %v4725_v16, %v4721_v26  ;;  %v4558_v36 = vpop.permute.xlu1 %4557 }
 0xf43   :  { %v4731_v55 = vsel %vm4643_vm2, %v4730_v34, %v4726_v23  ;;  %v4745_v52 = vrot.slane %v4558_v36, %v9232_v3  ;;  %v4889_v36 = vrot.slane %v4791_v15, %v8839_v57 }
 0xf44   :  { %v4736_v7 = vsel %vm4650_vm3, %v4735_v9, %v4731_v55 }
 0xf45   :  { %v4741_v31 = vsel %vm4657_vm4, %v4740_v5, %v4736_v7  ;;  %v9285_v60 = vpop.permute.xlu0 %4814 }
 0xf46   :  { %v4746_v22 = vsel %vm4664_vm5, %v4745_v52, %v4741_v31  ;;  %v4788_v63 = vpop.permute.xlu1 %4787  ;;  %v4899_v31 = vrot.slane %v4797_v50, %v9888_v40 }
 0xf47   :  { %v9279_v43 = vsel %vm4671_vm6, %v4750_v58, %v4746_v22  ;;  %v4885_v16 = vrot.slane %v4788_v63, %v9887_v12 }
 0xf49   :  { %v4842_v0 = vpop.permute.xlu0 %4841  ;;  %v4890_v55 = vsel %vm4573_vm7, %v4889_v36, %v4885_v16 }
 0xf4a   :  { %v4794_v48 = vpop.permute.xlu1 %4793  ;;  %v4973_v45 = vrot.slane %v4842_v0, %v8887_v28  ;;  %v4909_v0 = vrot.slane %v4803_v18, %v9002_v25 }
 0xf4b   :  { %v4894_v23 = vrot.slane %v4794_v48, %v8887_v28 }
 0xf4d   :  { %v4848_v37 = vpop.permute.xlu0 %4847  ;;  %v4895_v58 = vsel %vm4580_vm8, %v4894_v23, %v4890_v55 }
 0xf4e   :  { %v4800_v20 = vpop.permute.xlu1 %4799  ;;  %v4983_v13 = vrot.slane %v4848_v37, %v8995_v19 }
 0xf51   :  { %v4854_v2 = vpop.permute.xlu0 %4853 }
 0xf52   :  { %v4806_v54 = vpop.permute.xlu1 %4805  ;;  %v4993_v26 = vrot.slane %v4854_v2, %v9053_v14 }
 0xf53   :  { %v4914_v15 = vrot.slane %v4806_v54, %v9053_v14  ;;  %v4919_v14 = vrot.slane %v4809_v56, %v9058_v51 }
 0xf55   :  { %v4860_v6 = vpop.permute.xlu0 %4859 }
 0xf56   :  { %v9281_v46 = vpop.permute.xlu1 %4811  ;;  %v5003_v28 = vrot.slane %v4860_v6, %v9082_v47 }
 0xf59   :  { %v4836_v33 = vpop.permute.xlu0 %4835 }
 0xf5a   :  { %v4845_v42 = vpop.permute.xlu1 %4844  ;;  %v4964_v29 = vrot.slane %v4836_v33, %v9887_v12  ;;  %v4904_v12 = vrot.slane %v4800_v20, %v8995_v19  ;;  %v4929_v33 = vrot.slane %v9285_v60, %v9085_v11 }
 0xf5b   :  { %v4978_v39 = vrot.slane %v4845_v42, %v9888_v40 }
 0xf5d   :  { %v4866_v4 = vpop.permute.xlu0 %4865 }
 0xf5e   :  { %v9283_v21 = vpop.permute.xlu1 %4817  ;;  %v5013_v50 = vrot.slane %v4866_v4, %v9142_v1 }
 0xf61   :  { %v4869_v7 = vpop.permute.xlu0 %4868 }
 0xf62   :  { %v9287_v35 = vpop.permute.xlu1 %4820  ;;  %v5018_v18 = vrot.slane %v4869_v7, %v9138_v8 }
 0xf65   :  { %v4872_v19 = vpop.permute.xlu0 %4871 }
 0xf66   :  { %v4851_v61 = vpop.permute.xlu1 %4850 }
 0xf67   :  { %v4988_v41 = vrot.slane %v4851_v61, %v9002_v25 }
 0xf6a   :  { %v4857_v53 = vpop.permute.xlu1 %4856 }
 0xf6b   :  { %v4998_v52 = vrot.slane %v4857_v53, %v9058_v51  ;;  %v4924_v53 = vrot.slane %v9281_v46, %v9082_v47  ;;  %v4939_v47 = vrot.slane %v9287_v35, %v9138_v8  ;;  %v5023_v46 = vrot.slane %v4872_v19, %v9205_v10 }
 0xf6e   :  { %v4863_v62 = vpop.permute.xlu1 %4862 }
 0xf6f   :  { %v5008_v61 = vrot.slane %v4863_v62, %v9085_v11 }
 0xf72   :  { %v4839_v30 = vpop.permute.xlu1 %4838 }
 0xf73   :  { %v4968_v49 = vrot.slane %v4839_v30, %v8839_v57  ;;  %v4900_v57 = vsel %vm4587_vm9, %v4899_v31, %v4895_v58  ;;  %v4934_v30 = vrot.slane %v9283_v21, %v9142_v1 }
 0xf74   :  { %v4905_v48 = vsel %vm4594_vm10, %v4904_v12, %v4900_v57 }
 0xf75   :  { %v4969_v24 = vsel %vm4573_vm7, %v4968_v49, %v4964_v29  ;;  %v4910_v40 = vsel %vm4601_vm11, %v4909_v0, %v4905_v48  ;;  %v4875_v25 = vpop.permute.xlu0 %4874 }
 0xf76   :  { %v4974_v17 = vsel %vm4580_vm8, %v4973_v45, %v4969_v24  ;;  %v4824_v9 = vpop.permute.xlu1 %4823  ;;  %v4915_v37 = vsel %vm4608_vm12, %v4914_v15, %v4910_v40  ;;  %v5028_v60 = vrot.slane %v4875_v25, %v9208_v44 }
 0xf77   :  { %v4979_v59 = vsel %vm4587_vm9, %v4978_v39, %v4974_v17  ;;  %v4920_v62 = vsel %vm4615_vm13, %v4919_v14, %v4915_v37  ;;  %v4944_v56 = vrot.slane %v4824_v9, %v9205_v10 }
 0xf78   :  { %v4984_v38 = vsel %vm4594_vm10, %v4983_v13, %v4979_v59  ;;  %v4925_v6 = vsel %vm4622_vm14, %v4924_v53, %v4920_v62 }
 0xf79   :  { %v4989_v34 = vsel %vm4601_vm11, %v4988_v41, %v4984_v38  ;;  %v4930_v29 = vsel %vm4629_vm15, %v4929_v33, %v4925_v6  ;;  %v4878_v21 = vpop.permute.xlu0 %4877 }
 0xf7a   :  { %v4994_v5 = vsel %vm4608_vm12, %v4993_v26, %v4989_v34  ;;  %v4827_v63 = vpop.permute.xlu1 %4826  ;;  %v4935_v45 = vsel %vm4636_vm1, %v4934_v30, %v4930_v29  ;;  %v5033_v59 = vrot.slane %v4878_v21, %v9232_v3 }
 0xf7b   :  { %v4999_v22 = vsel %vm4615_vm13, %v4998_v52, %v4994_v5  ;;  %v4949_v24 = vrot.slane %v4827_v63, %v9208_v44  ;;  %v4940_v8 = vsel %vm4643_vm2, %v4939_v47, %v4935_v45 }
 0xf7c   :  { %v5004_v42 = vsel %vm4622_vm14, %v5003_v28, %v4999_v22  ;;  %v4945_v10 = vsel %vm4650_vm3, %v4944_v56, %v4940_v8 }
 0xf7d   :  { %v5009_v20 = vsel %vm4629_vm15, %v5008_v61, %v5004_v42  ;;  %v4950_v39 = vsel %vm4657_vm4, %v4949_v24, %v4945_v10 }
 0xf7e   :  { %v4830_v2 = vpop.permute.xlu1 %4829  ;;  %v5014_v54 = vsel %vm4636_vm1, %v5013_v50, %v5009_v20 }
 0xf7f   :  { %v5019_v51 = vsel %vm4643_vm2, %v5018_v18, %v5014_v54  ;;  %v4954_v11 = vrot.slane %v4830_v2, %v9232_v3 }
 0xf80   :  { %v5024_v1 = vsel %vm4650_vm3, %v5023_v46, %v5019_v51 }
 0xf81   :  { %v5029_v17 = vsel %vm4657_vm4, %v5028_v60, %v5024_v1  ;;  %v4955_v13 = vsel %vm4664_vm5, %v4954_v11, %v4950_v39 }
 0xf82   :  { %v4833_v49 = vpop.permute.xlu1 %4832  ;;  %v5034_v34 = vsel %vm4664_vm5, %v5033_v59, %v5029_v17 }
 0xf83   :  { %v4959_v35 = vrot.slane %v4833_v49, %v9235_v27 }
 0xf85   :  { %v4960_v41 = vsel %vm4671_vm6, %v4959_v35, %v4955_v13 }
 0xf86   :  { %v5042_v26 = vsel %vm170_vm0, %v9242_v32, %v4960_v41 }
 0xfae   :  { %v4881_v38 = vpop.permute.xlu0 %4880 }
 0xfaf   :  { %v5038_v16 = vrot.slane %v4881_v38, %v9235_v27 }
 0xfb1   :  { %v5039_v44 = vsel %vm4671_vm6, %v5038_v16, %v5034_v34 }
 0xfb2   :  { %v5043_v4 = vsel %vm170_vm0, %v9279_v43, %v5039_v44 }
 0xfb3   :  { %v5046_v3 = vcombine.low %v5042_v26, %v5043_v4 }
 0xfb5   :  { %5199 = vst.sshfl [vmem:[#allocation2] sm:$0x33 pattern:$0x76325410] %v5046_v3 }
 0xfb6   :  { %5926 = shalt.err (!%p5923_p4)
}
 0xfb7   :  { %s5927_s1 = scalar_lea.hbm %s9381_s10, 64 }
 0xfb8   :  { %p5928_p5 = scmp.ne.s32.totalorder %s9381_s10, %s5927_s1  ;;  %p5931_p6 = scmp.lt.u32.totalorder %s5927_s1, %s9381_s10 }
 0xfba   :  { %p5933_p7 = pnand %p5931_p6, %p5928_p5 }
 0xfbc   :  { %5936 = shalt.err (!%p5933_p7)
}
 0xfbd   :  { %5065 = dma.vmem_to_hbm [thread:$0]  %s5063_s24, 64, %s9381_s10, [#allocation3]  }
 0xfbe   :  { %5937 = dma.done.wait [#allocation3], 64  }
 0xfbf   :  { %5938 = vsyncadd [#allocation3], 4294967232 }
 0xfc0   :  { %5069 = vsyncpa [#allocation3], 1 }

</bundles_post_ra>
